<compile_context>
chip_gen: v5e
topology: v5e:2x2
jax: 0.10.0
libtpu: 0.0.40
codegen_flags: <defaults>
</compile_context>

<pallas_src>
import jax
import jax.numpy as jnp
from jax.experimental import pallas as pl
from jax.experimental.pallas import tpu as pltpu

NUM_FEATURES = 3077
HIDDEN = 256
NUM_CLASSES = 3
NC_PAD = 128          # FC output padded to a full lane width


def _round_up(x, m):
    return (x + m - 1) // m * m


def _largest_divisor(n, cap, align):
    """Largest tile d <= cap with n % d == 0 and d % align == 0 (or d == n)."""
    if n <= cap:
        return n
    start = cap - cap % align
    for d in range(start, 0, -align):
        if n % d == 0:
            return d
    return n  # fall back to a single full block


# ------------------------------------------------------------------
# Kernel 1: input projection  Z = X @ W_ih_cat + b_cat
#   X: (M, F_pad) bf16   W: (F_pad, 8H) bf16   b: (1, 8H) f32   Z: (M, 8H) f32
#   grid = (M tiles [parallel], K tiles [reduction]); f32 accumulation in the
#   resident output block, initialized with the bias at k == 0.
# ------------------------------------------------------------------
def _inproj_kernel(a_ref, w_ref, b_ref, o_ref):
    @pl.when(pl.program_id(1) == 0)
    def _():
        o_ref[...] = jnp.broadcast_to(b_ref[...], o_ref.shape)

    o_ref[...] += jnp.dot(a_ref[...], w_ref[...],
                          preferred_element_type=jnp.float32)


def input_projection(x_flat, w_cat, b_cat, *, tk_target=640, tm_target=256):
    M, K = x_flat.shape
    _, N = w_cat.shape
    tm = _largest_divisor(M, tm_target, 8)
    tk = _largest_divisor(K, tk_target, 128)
    return pl.pallas_call(
        _inproj_kernel,
        out_shape=jax.ShapeDtypeStruct((M, N), jnp.float32),
        grid_spec=pltpu.PrefetchScalarGridSpec(
            num_scalar_prefetch=0,
            grid=(M // tm, K // tk),
            in_specs=[
                pl.BlockSpec((tm, tk), lambda m, k: (m, k)),
                pl.BlockSpec((tk, N), lambda m, k: (k, 0)),
                pl.BlockSpec((1, N), lambda m, k: (0, 0)),
            ],
            out_specs=pl.BlockSpec((tm, N), lambda m, k: (m, 0)),
        ),
        compiler_params=pltpu.CompilerParams(
            dimension_semantics=("parallel", "arbitrary")),
    )(x_flat, w_cat, b_cat)


# ------------------------------------------------------------------
# Kernel 2: bidirectional LSTM recurrence with the time loop fused in-kernel.
#   grid = (direction [parallel], time-chunk [arbitrary]).
#   Each grid step runs TT timesteps with lax.fori_loop, carrying h/c in vregs;
#   h/c only touch VMEM scratch at chunk boundaries. The direction selects
#   which 4H lane-half of z to read and which H lane-half of the output to
#   write, via the BlockSpec lane-block index (no XLA transpose/concat).
#   Per-(t, b) masking from the lengths vector freezes the state and zeroes the
#   output beyond each sequence length (== packed-sequence semantics).
# ------------------------------------------------------------------
def _lstm_chunk_kernel(len_ref, z_ref, whh_ref, o_ref, h_sc, c_sc):
    d = pl.program_id(0)           # 0 = forward, 1 = backward
    tc = pl.program_id(1)          # time-chunk index (chunks already reversed
    n_chunks = pl.num_programs(1)  # for the backward direction by the index_map)
    TT = z_ref.shape[0]

    @pl.when(tc == 0)
    def _():
        h_sc[...] = jnp.zeros_like(h_sc)
        c_sc[...] = jnp.zeros_like(c_sc)

    whh = whh_ref[0]               # (H, 4H)
    len_vec = len_ref[...]         # (B_pad, 1) int32
    chunk_idx = tc * (1 - d) + (n_chunks - 1 - tc) * d
    base_t = chunk_idx * TT        # global timestep of local index 0

    def step(ll, carry):
        h, c = carry
        local = ll * (1 - d) + (TT - 1 - ll) * d      # reversed walk for bwd
        z = z_ref[local]                              # (B_pad, 4H)
        gates = z + jnp.dot(h, whh, preferred_element_type=jnp.float32)
        i_g = jax.nn.sigmoid(gates[:, 0 * HIDDEN:1 * HIDDEN])
        f_g = jax.nn.sigmoid(gates[:, 1 * HIDDEN:2 * HIDDEN])
        g_g = jnp.tanh(gates[:, 2 * HIDDEN:3 * HIDDEN])
        o_g = jax.nn.sigmoid(gates[:, 3 * HIDDEN:4 * HIDDEN])
        c_new = f_g * c + i_g * g_g
        h_new = o_g * jnp.tanh(c_new)
        m = ((base_t + local) < len_vec).astype(jnp.float32)   # (B_pad, 1)
        h = m * h_new + (1.0 - m) * h
        c = m * c_new + (1.0 - m) * c
        o_ref[local] = m * h_new                      # padded rows -> exact zeros
        return h, c

    h_fin, c_fin = jax.lax.fori_loop(0, TT, step, (h_sc[...], c_sc[...]))
    h_sc[...] = h_fin
    c_sc[...] = c_fin


def bilstm_recurrence(z, w_hh, lengths, *, T, B_pad, tt_target=64):
    # z: (T, B_pad, 8H) f32, w_hh: (2, H, 4H) f32, lengths: (B_pad, 1) int32
    TT = _largest_divisor(T, tt_target, 1)
    n_chunks = T // TT

    def t_chunk(d, tc):
        # forward direction walks chunks 0..n-1, backward walks n-1..0
        return tc * (1 - d) + (n_chunks - 1 - tc) * d

    return pl.pallas_call(
        _lstm_chunk_kernel,
        out_shape=jax.ShapeDtypeStruct((T, B_pad, 2 * HIDDEN), jnp.float32),
        grid_spec=pltpu.PrefetchScalarGridSpec(
            num_scalar_prefetch=0,
            grid=(2, n_chunks),
            in_specs=[
                pl.BlockSpec((B_pad, 1), lambda d, tc: (0, 0)),
                pl.BlockSpec((TT, B_pad, 4 * HIDDEN),
                             lambda d, tc: (t_chunk(d, tc), 0, d)),
                pl.BlockSpec((1, HIDDEN, 4 * HIDDEN), lambda d, tc: (d, 0, 0)),
            ],
            out_specs=pl.BlockSpec((TT, B_pad, HIDDEN),
                                   lambda d, tc: (t_chunk(d, tc), 0, d)),
            scratch_shapes=[pltpu.VMEM((B_pad, HIDDEN), jnp.float32),
                            pltpu.VMEM((B_pad, HIDDEN), jnp.float32)],
        ),
        # direction axis "parallel": the two directions run on the two v7x
        # TensorCores (each core has its own h/c scratch; reset at tc == 0).
        compiler_params=pltpu.CompilerParams(
            dimension_semantics=("parallel", "arbitrary")),
    )(lengths, z, w_hh)


# ------------------------------------------------------------------
# Kernel 3: FC head  (M, 2H) @ (2H, 128) + b   (lane-dense padded output)
# ------------------------------------------------------------------
def _fc_kernel(x_ref, w_ref, b_ref, o_ref):
    o_ref[...] = jnp.dot(x_ref[...], w_ref[...],
                         preferred_element_type=jnp.float32) + b_ref[...]


def fc_layer(x, w, b, *, tm_target=512):
    M, K = x.shape
    _, N = w.shape
    tm = _largest_divisor(M, tm_target, 8)
    return pl.pallas_call(
        _fc_kernel,
        out_shape=jax.ShapeDtypeStruct((M, N), jnp.float32),
        grid_spec=pltpu.PrefetchScalarGridSpec(
            num_scalar_prefetch=0,
            grid=(M // tm,),
            in_specs=[pl.BlockSpec((tm, K), lambda m: (m, 0)),
                      pl.BlockSpec((K, N), lambda m: (0, 0)),
                      pl.BlockSpec((1, N), lambda m: (0, 0))],
            out_specs=pl.BlockSpec((tm, N), lambda m: (m, 0)),
        ),
        compiler_params=pltpu.CompilerParams(
            dimension_semantics=("parallel",)),
    )(x, w, b)


# ------------------------------------------------------------------
# Parameter init (deterministic, PyTorch-style uniform(-1/sqrt(H), 1/sqrt(H)))
# ------------------------------------------------------------------
def init_params(key):
    keys = jax.random.split(key, 10)
    kh = 1.0 / jnp.sqrt(jnp.float32(HIDDEN))
    kf = 1.0 / jnp.sqrt(jnp.float32(2 * HIDDEN))

    def u(k, shape, bound):
        return jax.random.uniform(k, shape, jnp.float32, -bound, bound)

    # LSTM parameters (PyTorch gate order: i, f, g, o)
    w_ih_f = u(keys[0], (4 * HIDDEN, NUM_FEATURES), kh)
    w_hh_f = u(keys[1], (4 * HIDDEN, HIDDEN), kh)
    b_f = u(keys[2], (4 * HIDDEN,), kh) + u(keys[3], (4 * HIDDEN,), kh)
    w_ih_b = u(keys[4], (4 * HIDDEN, NUM_FEATURES), kh)
    w_hh_b = u(keys[5], (4 * HIDDEN, HIDDEN), kh)
    b_b = u(keys[6], (4 * HIDDEN,), kh) + u(keys[7], (4 * HIDDEN,), kh)

    F_pad = _round_up(NUM_FEATURES, 128)
    w_ih_cat = jnp.zeros((F_pad, 2 * 4 * HIDDEN), jnp.float32)
    w_ih_cat = w_ih_cat.at[:NUM_FEATURES, :4 * HIDDEN].set(w_ih_f.T)
    w_ih_cat = w_ih_cat.at[:NUM_FEATURES, 4 * HIDDEN:].set(w_ih_b.T)
    b_cat = jnp.concatenate([b_f, b_b]).reshape(1, 2 * 4 * HIDDEN)
    w_hh = jnp.stack([w_hh_f.T, w_hh_b.T], axis=0)          # (2, H, 4H)

    # FC: Linear(512 -> 3), output padded to 128 lanes with zeros at init
    w_fc = u(keys[8], (NUM_CLASSES, 2 * HIDDEN), kf)
    b_fc = u(keys[9], (NUM_CLASSES,), kf)
    w_fc_pad = jnp.zeros((2 * HIDDEN, NC_PAD), jnp.float32)
    w_fc_pad = w_fc_pad.at[:, :NUM_CLASSES].set(w_fc.T)
    b_fc_pad = jnp.zeros((1, NC_PAD), jnp.float32).at[0, :NUM_CLASSES].set(b_fc)

    return {
        # bf16 weights for the HBM-bandwidth-bound input projection
        # (accumulation stays f32; ~1e-2 relative diff vs. an f32 reference).
        "w_ih_cat": w_ih_cat.astype(jnp.bfloat16),
        "b_cat": b_cat,
        "w_hh": w_hh,
        "w_fc": w_fc_pad,
        "b_fc": b_fc_pad,
    }


# ------------------------------------------------------------------
# Forward pass (glue in plain JAX, hot paths in Pallas)
# ------------------------------------------------------------------
def bilstm_crf_forward(params, batch, masks, max_size):
    B, T, F = batch.shape
    assert T == max_size
    lengths = jnp.sum(masks.astype(jnp.int32), axis=1)       # (B,)

    B_pad = _round_up(B, 8)
    F_pad = _round_up(F, 128)

    # one fused pad + transpose-to-time-major + bf16 cast of the raw input
    x_tm = jnp.zeros((T, B_pad, F_pad), jnp.bfloat16)
    x_tm = x_tm.at[:, :B, :F].set(batch.astype(jnp.bfloat16).transpose(1, 0, 2))
    len_p = jnp.zeros((B_pad, 1), jnp.int32).at[:B, 0].set(lengths)

    # 1) input projection for both directions: (T*B_pad, 8H) f32
    z_flat = input_projection(x_tm.reshape(T * B_pad, F_pad),
                              params["w_ih_cat"], params["b_cat"])
    z = z_flat.reshape(T, B_pad, 2 * 4 * HIDDEN)              # free reshape

    # 2) fused bidirectional recurrence -> (T, B_pad, 2H) written in place
    h_cat = bilstm_recurrence(z, params["w_hh"], len_p, T=T, B_pad=B_pad)

    # 3) lane-dense FC head, then slice the 3 real classes / real batch rows
    fc_out = fc_layer(h_cat.reshape(T * B_pad, 2 * HIDDEN),
                      params["w_fc"], params["b_fc"])
    fc_out = fc_out.reshape(T, B_pad, NC_PAD)[:, :B, :NUM_CLASSES]
    return fc_out.transpose(1, 0, 2)                          # (B, T, 3)


if __name__ == "__main__":
    key = jax.random.PRNGKey(0)
    pkey, dkey = jax.random.split(key)
    params = init_params(pkey)

    B, T = 2, 8
    batch = jax.random.normal(dkey, (B, T, NUM_FEATURES), jnp.float32)
    seq_lengths = jnp.array([T, 5], jnp.int32)
    masks = (jnp.arange(T)[None, :] < seq_lengths[:, None]).astype(jnp.int32)

    fwd = jax.jit(bilstm_crf_forward, static_argnames="max_size")
    out = fwd(params, batch, masks, max_size=T)
    out = jax.block_until_ready(out)
    assert out.shape == (B, T, NUM_CLASSES)
    assert out.dtype == jnp.float32
    print("KERNEL_OK")
</pallas_src>

<mosaic_0001>
module attributes {stable_mosaic.version = 11 : i64} {
  func.func @_inproj_kernel(%arg0: i32, %arg1: i32, %arg2: memref<64x640xbf16, #tpu.memory_space<vmem>>, %arg3: memref<640x2048xbf16, #tpu.memory_space<vmem>>, %arg4: memref<1x2048xf32, #tpu.memory_space<vmem>>, %arg5: memref<64x2048xf32, #tpu.memory_space<vmem>>) attributes {dimension_semantics = [#tpu.dimension_semantics<parallel>, #tpu.dimension_semantics<arbitrary>], iteration_bounds = array<i64: 1, 5>, scalar_prefetch = 0 : i64, scratch_operands = 0 : i64, tpu.core_type = #tpu.core_type<tc>, window_params = [{transform_indices = @transform_0, window_bounds = array<i64: 64, 640>}, {transform_indices = @transform_1, window_bounds = array<i64: 640, 2048>}, {pipeline_mode = #tpu.pipeline_mode<synchronous>, transform_indices = @transform_2, window_bounds = array<i64: 1, 2048>}, {transform_indices = @transform_3, window_bounds = array<i64: 64, 2048>}]} {
    %c0_i32 = arith.constant 0 : i32
    %0 = arith.cmpi eq, %arg1, %c0_i32 : i32
    %1 = arith.extui %0 : i1 to i32
    %c0_i32_0 = arith.constant 0 : i32
    %2 = arith.cmpi ne, %1, %c0_i32_0 : i32
    scf.if %2 {
      %c0_8 = arith.constant 0 : index
      %c0_9 = arith.constant 0 : index
      %9 = vector.load %arg4[%c0_8, %c0_9] : memref<1x2048xf32, #tpu.memory_space<vmem>>, vector<1x2048xf32>
      %10 = vector.shape_cast %9 : vector<1x2048xf32> to vector<1x2048xf32>
      %11 = vector.broadcast %10 : vector<1x2048xf32> to vector<64x2048xf32>
      %c0_10 = arith.constant 0 : index
      %c0_11 = arith.constant 0 : index
      %12 = vector.load %arg5[%c0_10, %c0_11] : memref<64x2048xf32, #tpu.memory_space<vmem>>, vector<64x2048xf32>
      tpu.vector_store %arg5[%c0_10, %c0_11], %11 {strides = array<i32>} : memref<64x2048xf32, #tpu.memory_space<vmem>>, vector<64x2048xf32>,
    } else {
    }
    %c0 = arith.constant 0 : index
    %c0_1 = arith.constant 0 : index
    %3 = vector.load %arg5[%c0, %c0_1] : memref<64x2048xf32, #tpu.memory_space<vmem>>, vector<64x2048xf32>
    %c0_2 = arith.constant 0 : index
    %c0_3 = arith.constant 0 : index
    %4 = vector.load %arg2[%c0_2, %c0_3] : memref<64x640xbf16, #tpu.memory_space<vmem>>, vector<64x640xbf16>
    %c0_4 = arith.constant 0 : index
    %c0_5 = arith.constant 0 : index
    %5 = vector.load %arg3[%c0_4, %c0_5] : memref<640x2048xbf16, #tpu.memory_space<vmem>>, vector<640x2048xbf16>
    %cst = arith.constant dense<0.000000e+00> : vector<64x2048xf32>
    %6 = tpu.matmul %4, %5, %cst {dimension_numbers = #tpu.dot_dimension_numbers<[1], [0], [0], [1], [0, 0, 1, 1], [], []>} : vector<64x640xbf16>, vector<640x2048xbf16>, vector<64x2048xf32> -> vector<64x2048xf32>
    %7 = arith.addf %3, %6 : vector<64x2048xf32>
    %c0_6 = arith.constant 0 : index
    %c0_7 = arith.constant 0 : index
    %8 = vector.load %arg5[%c0_6, %c0_7] : memref<64x2048xf32, #tpu.memory_space<vmem>>, vector<64x2048xf32>
    tpu.vector_store %arg5[%c0_6, %c0_7], %7 {strides = array<i32>} : memref<64x2048xf32, #tpu.memory_space<vmem>>, vector<64x2048xf32>,
    return
  }
  func.func @transform_0(%arg0: i32, %arg1: i32) -> (i32, i32) {
    %c0_i32 = arith.constant 0 : i32
    return %arg0, %arg1 : i32, i32
  }
  func.func @transform_1(%arg0: i32, %arg1: i32) -> (i32, i32) {
    %c0_i32 = arith.constant 0 : i32
    %c0_i32_0 = arith.constant 0 : i32
    return %arg1, %c0_i32 : i32, i32
  }
  func.func @transform_2(%arg0: i32, %arg1: i32) -> (i32, i32) {
    %c0_i32 = arith.constant 0 : i32
    %c0_i32_0 = arith.constant 0 : i32
    %c0_i32_1 = arith.constant 0 : i32
    return %c0_i32, %c0_i32_0 : i32, i32
  }
  func.func @transform_3(%arg0: i32, %arg1: i32) -> (i32, i32) {
    %c0_i32 = arith.constant 0 : i32
    %c0_i32_0 = arith.constant 0 : i32
    return %arg0, %c0_i32 : i32, i32
  }
}

module attributes {stable_mosaic.version = 11 : i64} {
  func.func @_fc_kernel(%arg0: i32, %arg1: memref<64x512xf32, #tpu.memory_space<vmem>>, %arg2: memref<512x128xf32, #tpu.memory_space<vmem>>, %arg3: memref<1x128xf32, #tpu.memory_space<vmem>>, %arg4: memref<64x128xf32, #tpu.memory_space<vmem>>) attributes {dimension_semantics = [#tpu.dimension_semantics<parallel>], iteration_bounds = array<i64: 1>, scalar_prefetch = 0 : i64, scratch_operands = 0 : i64, tpu.core_type = #tpu.core_type<tc>, window_params = [{transform_indices = @transform_0, window_bounds = array<i64: 64, 512>}, {pipeline_mode = #tpu.pipeline_mode<synchronous>, transform_indices = @transform_1, window_bounds = array<i64: 512, 128>}, {pipeline_mode = #tpu.pipeline_mode<synchronous>, transform_indices = @transform_2, window_bounds = array<i64: 1, 128>}, {transform_indices = @transform_3, window_bounds = array<i64: 64, 128>}]} {
    %c0 = arith.constant 0 : index
    %c0_0 = arith.constant 0 : index
    %0 = vector.load %arg1[%c0, %c0_0] : memref<64x512xf32, #tpu.memory_space<vmem>>, vector<64x512xf32>
    %c0_1 = arith.constant 0 : index
    %c0_2 = arith.constant 0 : index
    %1 = vector.load %arg2[%c0_1, %c0_2] : memref<512x128xf32, #tpu.memory_space<vmem>>, vector<512x128xf32>
    %cst = arith.constant dense<0.000000e+00> : vector<64x128xf32>
    %2 = tpu.matmul %0, %1, %cst {dimension_numbers = #tpu.dot_dimension_numbers<[1], [0], [0], [1], [0, 0, 1, 1], [], []>} : vector<64x512xf32>, vector<512x128xf32>, vector<64x128xf32> -> vector<64x128xf32>
    %c0_3 = arith.constant 0 : index
    %c0_4 = arith.constant 0 : index
    %3 = vector.load %arg3[%c0_3, %c0_4] : memref<1x128xf32, #tpu.memory_space<vmem>>, vector<1x128xf32>
    %4 = vector.broadcast %3 : vector<1x128xf32> to vector<64x128xf32>
    %5 = arith.addf %2, %4 : vector<64x128xf32>
    %c0_5 = arith.constant 0 : index
    %c0_6 = arith.constant 0 : index
    %6 = vector.load %arg4[%c0_5, %c0_6] : memref<64x128xf32, #tpu.memory_space<vmem>>, vector<64x128xf32>
    tpu.vector_store %arg4[%c0_5, %c0_6], %5 {strides = array<i32>} : memref<64x128xf32, #tpu.memory_space<vmem>>, vector<64x128xf32>,
    return
  }
  func.func @transform_0(%arg0: i32) -> (i32, i32) {
    %c0_i32 = arith.constant 0 : i32
    %c0_i32_0 = arith.constant 0 : i32
    return %arg0, %c0_i32 : i32, i32
  }
  func.func @transform_1(%arg0: i32) -> (i32, i32) {
    %c0_i32 = arith.constant 0 : i32
    %c0_i32_0 = arith.constant 0 : i32
    %c0_i32_1 = arith.constant 0 : i32
    return %c0_i32, %c0_i32_0 : i32, i32
  }
  func.func @transform_2(%arg0: i32) -> (i32, i32) {
    %c0_i32 = arith.constant 0 : i32
    %c0_i32_0 = arith.constant 0 : i32
    %c0_i32_1 = arith.constant 0 : i32
    return %c0_i32, %c0_i32_0 : i32, i32
  }
  func.func @transform_3(%arg0: i32) -> (i32, i32) {
    %c0_i32 = arith.constant 0 : i32
    %c0_i32_0 = arith.constant 0 : i32
    return %arg0, %c0_i32 : i32, i32
  }
}

module attributes {stable_mosaic.version = 11 : i64} {
  func.func @_lstm_chunk_kernel(%arg0: i32, %arg1: i32, %arg2: memref<8x1xi32, #tpu.memory_space<vmem>>, %arg3: memref<8x8x1024xf32, #tpu.memory_space<vmem>>, %arg4: memref<1x256x1024xf32, #tpu.memory_space<vmem>>, %arg5: memref<8x8x256xf32, #tpu.memory_space<vmem>>, %arg6: memref<8x256xf32, #tpu.memory_space<vmem>>, %arg7: memref<8x256xf32, #tpu.memory_space<vmem>>) attributes {dimension_semantics = [#tpu.dimension_semantics<parallel>, #tpu.dimension_semantics<arbitrary>], iteration_bounds = array<i64: 2, 1>, scalar_prefetch = 0 : i64, scratch_operands = 2 : i64, tpu.core_type = #tpu.core_type<tc>, window_params = [{pipeline_mode = #tpu.pipeline_mode<synchronous>, transform_indices = @transform_0, window_bounds = array<i64: 8, 1>}, {transform_indices = @transform_1, window_bounds = array<i64: 8, 8, 1024>}, {transform_indices = @transform_2, window_bounds = array<i64: 1, 256, 1024>}, {transform_indices = @transform_3, window_bounds = array<i64: 8, 8, 256>}]} {
    %c0_i32 = arith.constant 0 : i32
    %0 = arith.cmpi eq, %arg1, %c0_i32 : i32
    %1 = arith.extui %0 : i1 to i32
    %c0_i32_0 = arith.constant 0 : i32
    %2 = arith.cmpi ne, %1, %c0_i32_0 : i32
    scf.if %2 {
      %cst = arith.constant 0.000000e+00 : f32
      %18 = vector.broadcast %cst : f32 to vector<8x256xf32>
      %c0_18 = arith.constant 0 : index
      %c0_19 = arith.constant 0 : index
      %19 = vector.load %arg6[%c0_18, %c0_19] : memref<8x256xf32, #tpu.memory_space<vmem>>, vector<8x256xf32>
      tpu.vector_store %arg6[%c0_18, %c0_19], %18 {strides = array<i32>} : memref<8x256xf32, #tpu.memory_space<vmem>>, vector<8x256xf32>,
      %cst_20 = arith.constant 0.000000e+00 : f32
      %20 = vector.broadcast %cst_20 : f32 to vector<8x256xf32>
      %c0_21 = arith.constant 0 : index
      %c0_22 = arith.constant 0 : index
      %21 = vector.load %arg7[%c0_21, %c0_22] : memref<8x256xf32, #tpu.memory_space<vmem>>, vector<8x256xf32>
      tpu.vector_store %arg7[%c0_21, %c0_22], %20 {strides = array<i32>} : memref<8x256xf32, #tpu.memory_space<vmem>>, vector<8x256xf32>,
    } else {
    }
    %c0 = arith.constant 0 : index
    %c0_1 = arith.constant 0 : index
    %c0_2 = arith.constant 0 : index
    %3 = vector.load %arg4[%c0, %c0_1, %c0_2] : memref<1x256x1024xf32, #tpu.memory_space<vmem>>, vector<1x256x1024xf32>
    %4 = vector.shape_cast %3 : vector<1x256x1024xf32> to vector<256x1024xf32>
    %c0_3 = arith.constant 0 : index
    %c0_4 = arith.constant 0 : index
    %5 = vector.load %arg2[%c0_3, %c0_4] : memref<8x1xi32, #tpu.memory_space<vmem>>, vector<8x1xi32>
    %c1_i32 = arith.constant 1 : i32
    %6 = arith.subi %c1_i32, %arg0 : i32
    %7 = arith.muli %arg1, %6 : i32
    %c0_i32_5 = arith.constant 0 : i32
    %8 = arith.subi %c0_i32_5, %arg1 : i32
    %9 = arith.muli %8, %arg0 : i32
    %10 = arith.addi %7, %9 : i32
    %c8_i32 = arith.constant 8 : i32
    %11 = arith.muli %10, %c8_i32 : i32
    %c0_6 = arith.constant 0 : index
    %c0_7 = arith.constant 0 : index
    %12 = vector.load %arg6[%c0_6, %c0_7] : memref<8x256xf32, #tpu.memory_space<vmem>>, vector<8x256xf32>
    %c0_8 = arith.constant 0 : index
    %c0_9 = arith.constant 0 : index
    %13 = vector.load %arg7[%c0_8, %c0_9] : memref<8x256xf32, #tpu.memory_space<vmem>>, vector<8x256xf32>
    %c0_i32_10 = arith.constant 0 : i32
    %c8_i32_11 = arith.constant 8 : i32
    %14 = arith.addi %c0_i32_10, %c8_i32_11 : i32
    %c1_i32_12 = arith.constant 1 : i32
    %15:2 = scf.for %arg8 = %c0_i32_10 to %14 step %c1_i32_12 iter_args(%arg9 = %12, %arg10 = %13) -> (vector<8x256xf32>, vector<8x256xf32>)  : i32 {
      %c1_i32_18 = arith.constant 1 : i32
      %18 = arith.subi %c1_i32_18, %arg0 : i32
      %19 = arith.muli %arg8, %18 : i32
      %c7_i32 = arith.constant 7 : i32
      %20 = arith.subi %c7_i32, %arg8 : i32
      %21 = arith.muli %20, %arg0 : i32
      %22 = arith.addi %19, %21 : i32
      %23 = arith.index_cast %22 : i32 to index
      %c0_19 = arith.constant 0 : index
      %c0_20 = arith.constant 0 : index
      %24 = vector.load %arg3[%23, %c0_19, %c0_20] : memref<8x8x1024xf32, #tpu.memory_space<vmem>>, vector<1x8x1024xf32>
      %25 = vector.shape_cast %24 : vector<1x8x1024xf32> to vector<8x1024xf32>
      %cst = arith.constant dense<0.000000e+00> : vector<8x1024xf32>
      %26 = tpu.matmul %arg9, %4, %cst {dimension_numbers = #tpu.dot_dimension_numbers<[1], [0], [0], [1], [0, 0, 1, 1], [], []>} : vector<8x256xf32>, vector<256x1024xf32>, vector<8x1024xf32> -> vector<8x1024xf32>
      %27 = arith.addf %25, %26 : vector<8x1024xf32>
      %28 = vector.extract_strided_slice %27 {offsets = [0, 0], sizes = [8, 256], strides = [1, 1]} : vector<8x1024xf32> to vector<8x256xf32>
      %29 = arith.negf %28 : vector<8x256xf32>
      %30 = math.exp %29 : vector<8x256xf32>
      %cst_21 = arith.constant 1.000000e+00 : f32
      %31 = vector.broadcast %cst_21 : f32 to vector<8x256xf32>
      %32 = arith.addf %31, %30 : vector<8x256xf32>
      %33 = arith.divf %31, %32 : vector<8x256xf32>
      %34 = vector.extract_strided_slice %27 {offsets = [0, 256], sizes = [8, 256], strides = [1, 1]} : vector<8x1024xf32> to vector<8x256xf32>
      %35 = arith.negf %34 : vector<8x256xf32>
      %36 = math.exp %35 : vector<8x256xf32>
      %cst_22 = arith.constant 1.000000e+00 : f32
      %37 = vector.broadcast %cst_22 : f32 to vector<8x256xf32>
      %38 = arith.addf %37, %36 : vector<8x256xf32>
      %39 = arith.divf %37, %38 : vector<8x256xf32>
      %40 = vector.extract_strided_slice %27 {offsets = [0, 512], sizes = [8, 256], strides = [1, 1]} : vector<8x1024xf32> to vector<8x256xf32>
      %41 = math.tanh %40 : vector<8x256xf32>
      %42 = vector.extract_strided_slice %27 {offsets = [0, 768], sizes = [8, 256], strides = [1, 1]} : vector<8x1024xf32> to vector<8x256xf32>
      %43 = arith.negf %42 : vector<8x256xf32>
      %44 = math.exp %43 : vector<8x256xf32>
      %cst_23 = arith.constant 1.000000e+00 : f32
      %45 = vector.broadcast %cst_23 : f32 to vector<8x256xf32>
      %46 = arith.addf %45, %44 : vector<8x256xf32>
      %47 = arith.divf %45, %46 : vector<8x256xf32>
      %48 = arith.mulf %39, %arg10 : vector<8x256xf32>
      %49 = arith.mulf %33, %41 : vector<8x256xf32>
      %50 = arith.addf %48, %49 : vector<8x256xf32>
      %51 = math.tanh %50 : vector<8x256xf32>
      %52 = arith.mulf %47, %51 : vector<8x256xf32>
      %53 = arith.addi %11, %22 : i32
      %54 = vector.broadcast %53 : i32 to vector<8x1xi32>
      %55 = arith.cmpi slt, %54, %5 : vector<8x1xi32>
      %56 = arith.extui %55 : vector<8x1xi1> to vector<8x1xi32>
      %57 = arith.sitofp %56 : vector<8x1xi32> to vector<8x1xf32>
      %58 = vector.broadcast %57 : vector<8x1xf32> to vector<8x256xf32>
      %59 = arith.mulf %58, %52 : vector<8x256xf32>
      %cst_24 = arith.constant 1.000000e+00 : f32
      %60 = vector.broadcast %cst_24 : f32 to vector<8x1xf32>
      %61 = arith.subf %60, %57 : vector<8x1xf32>
      %62 = vector.broadcast %61 : vector<8x1xf32> to vector<8x256xf32>
      %63 = arith.mulf %62, %arg9 : vector<8x256xf32>
      %64 = arith.addf %59, %63 : vector<8x256xf32>
      %65 = vector.broadcast %57 : vector<8x1xf32> to vector<8x256xf32>
      %66 = arith.mulf %65, %50 : vector<8x256xf32>
      %cst_25 = arith.constant 1.000000e+00 : f32
      %67 = vector.broadcast %cst_25 : f32 to vector<8x1xf32>
      %68 = arith.subf %67, %57 : vector<8x1xf32>
      %69 = vector.broadcast %68 : vector<8x1xf32> to vector<8x256xf32>
      %70 = arith.mulf %69, %arg10 : vector<8x256xf32>
      %71 = arith.addf %66, %70 : vector<8x256xf32>
      %72 = vector.broadcast %57 : vector<8x1xf32> to vector<8x256xf32>
      %73 = arith.mulf %72, %52 : vector<8x256xf32>
      %74 = arith.index_cast %22 : i32 to index
      %c0_26 = arith.constant 0 : index
      %c0_27 = arith.constant 0 : index
      %75 = vector.load %arg5[%74, %c0_26, %c0_27] : memref<8x8x256xf32, #tpu.memory_space<vmem>>, vector<1x8x256xf32>
      %76 = vector.shape_cast %75 : vector<1x8x256xf32> to vector<8x256xf32>
      %77 = vector.shape_cast %73 : vector<8x256xf32> to vector<1x8x256xf32>
      tpu.vector_store %arg5[%74, %c0_26, %c0_27], %77 {strides = array<i32>} : memref<8x8x256xf32, #tpu.memory_space<vmem>>, vector<1x8x256xf32>,
      scf.yield %64, %71 : vector<8x256xf32>, vector<8x256xf32>
    }
    %c8_i32_13 = arith.constant 8 : i32
    %c0_14 = arith.constant 0 : index
    %c0_15 = arith.constant 0 : index
    %16 = vector.load %arg6[%c0_14, %c0_15] : memref<8x256xf32, #tpu.memory_space<vmem>>, vector<8x256xf32>
    tpu.vector_store %arg6[%c0_14, %c0_15], %15#0 {strides = array<i32>} : memref<8x256xf32, #tpu.memory_space<vmem>>, vector<8x256xf32>,
    %c0_16 = arith.constant 0 : index
    %c0_17 = arith.constant 0 : index
    %17 = vector.load %arg7[%c0_16, %c0_17] : memref<8x256xf32, #tpu.memory_space<vmem>>, vector<8x256xf32>
    tpu.vector_store %arg7[%c0_16, %c0_17], %15#1 {strides = array<i32>} : memref<8x256xf32, #tpu.memory_space<vmem>>, vector<8x256xf32>,
    return
  }
  func.func @transform_0(%arg0: i32, %arg1: i32) -> (i32, i32) {
    %c0_i32 = arith.constant 0 : i32
    %c0_i32_0 = arith.constant 0 : i32
    %c0_i32_1 = arith.constant 0 : i32
    return %c0_i32, %c0_i32_0 : i32, i32
  }
  func.func @transform_1(%arg0: i32, %arg1: i32) -> (i32, i32, i32) {
    %c1_i32 = arith.constant 1 : i32
    %0 = arith.subi %c1_i32, %arg0 : i32
    %1 = arith.muli %arg1, %0 : i32
    %c0_i32 = arith.constant 0 : i32
    %2 = arith.subi %c0_i32, %arg1 : i32
    %3 = arith.muli %2, %arg0 : i32
    %4 = arith.addi %1, %3 : i32
    %c0_i32_0 = arith.constant 0 : i32
    %c0_i32_1 = arith.constant 0 : i32
    return %4, %c0_i32_0, %arg0 : i32, i32, i32
  }
  func.func @transform_2(%arg0: i32, %arg1: i32) -> (i32, i32, i32) {
    %c0_i32 = arith.constant 0 : i32
    %c0_i32_0 = arith.constant 0 : i32
    %c0_i32_1 = arith.constant 0 : i32
    return %arg0, %c0_i32, %c0_i32_0 : i32, i32, i32
  }
  func.func @transform_3(%arg0: i32, %arg1: i32) -> (i32, i32, i32) {
    %c1_i32 = arith.constant 1 : i32
    %0 = arith.subi %c1_i32, %arg0 : i32
    %1 = arith.muli %arg1, %0 : i32
    %c0_i32 = arith.constant 0 : i32
    %2 = arith.subi %c0_i32, %arg1 : i32
    %3 = arith.muli %2, %arg0 : i32
    %4 = arith.addi %1, %3 : i32
    %c0_i32_0 = arith.constant 0 : i32
    %c0_i32_1 = arith.constant 0 : i32
    return %4, %c0_i32_0, %arg0 : i32, i32, i32
  }
}

</mosaic_0001>

<bundles_post_ra>
// kernel: bilstm_crf_forward.5
= control target key start
LH: loop header
LB: loop body
LE: loop exit
PB: predicated region body
PF: predicated region fallthrough
CT: control target
= control target key end

     0   :  { %8 = vsyncpa [#allocation3], 0  ;;  %s539_s0 = inlined_call_operand.vmem [shape: f32[64,512], index: 0, kind: input, shape index: {}]   ;;  %s540_s1 = inlined_call_operand.hbm [shape: f32[512,128], index: 1, kind: input, shape index: {}]   ;;  %s541_s2 = inlined_call_operand.hbm [shape: f32[1,128], index: 2, kind: input, shape index: {}]   ;;  %s542_s3 = inlined_call_operand.vmem [shape: f32[64,128], index: 3, kind: output, shape index: {}]  }
   0x1   :  { %s16_s14 = sshll.u32 %s540_s1, 4  ;;  %s17_s14 = int_to_ptr.hbm [resolvable:$true] %s16_s14 }
   0x2   :  { %9 = vsyncpa [#allocation5], 0  ;;  %s379_s15 = smov [#allocation2]   ;;  %s30_s19 = sshll.u32 %s541_s2, 4  ;;  %s31_s19 = int_to_ptr.hbm [resolvable:$true] %s30_s19 }
   0x3   :  { %s18_s16 = sshll.u32 %s379_s15, 4  ;;  %s380_s20 = smov 128   ;;  %s19_s16 = int_to_ptr.vmem [resolvable:$true] %s18_s16 }
   0x4   :  { %s381_s21 = smov 8   ;;  %s382_s22 = smov [#allocation4]  }
   0x5   :  { %24 = dma.hbm_to_vmem [thread:$0]  %s17_s14, 8192, %s19_s16, [#allocation3], %s380_s20, %s380_s20, %s381_s21  }
   0x6   :  { %s32_s23 = sshll.u32 %s382_s22, 4  ;;  %s33_s23 = int_to_ptr.vmem [resolvable:$true] %s32_s23 }
   0x7   :  { %35 = dma.hbm_to_vmem [thread:$0]  %s31_s19, 16, %s33_s23, [#allocation5]  }
   0x8   :  { %375 = dma.done.wait [#allocation3], 8192  }
   0x9   :  { %376 = vsyncadd [#allocation3], 4294959104 }
   0xa   :  { %377 = dma.done.wait [#allocation5], 16  }
   0xb   :  { %378 = vsyncadd [#allocation5], 4294967280  ;;  %v123_v0 = vld [vmem:[#allocation2 + $0x178] sm:$0xff]  ;;  %v122_v2 = vld [vmem:[#allocation2 + $0x170] sm:$0xff] }
   0xc   :  { %v91_v1 = vld [vmem:[#allocation2 + $0x78] sm:$0xff]  ;;  %226 = vmatpush.msra.mxu2 %v123_v0  ;;  %v90_v4 = vld [vmem:[#allocation2 + $0x70] sm:$0xff]  ;;  %v121_v6 = vld [vmem:[#allocation2 + $0x168] sm:$0xff] }
   0xd   :  { %144 = vmatpush.msra.mxu0 %v91_v1  ;;  %v139_v3 = vld [vmem:[#allocation2 + $0x1f8] sm:$0xff]  ;;  %v138_v7 = vld [vmem:[#allocation2 + $0x1f0] sm:$0xff]  ;;  %v89_v8 = vld [vmem:[#allocation2 + $0x68] sm:$0xff] }
   0xe   :  { %v107_v5 = vld [vmem:[#allocation2 + $0xf8] sm:$0xff]  ;;  %267 = vmatpush.msra.mxu3 %v139_v3  ;;  %227 = vmatpush.msra.mxu2 %v122_v2  ;;  %v106_v9 = vld [vmem:[#allocation2 + $0xf0] sm:$0xff]  ;;  %v137_v10 = vld [vmem:[#allocation2 + $0x1e8] sm:$0xff] }
   0xf   :  { %185 = vmatpush.msra.mxu1 %v107_v5  ;;  %145 = vmatpush.msra.mxu0 %v90_v4  ;;  %v120_v11 = vld [vmem:[#allocation2 + $0x160] sm:$0xff]  ;;  %v105_v13 = vld [vmem:[#allocation2 + $0xe8] sm:$0xff]  ;;  %v119_v16 = vld [vmem:[#allocation2 + $0x158] sm:$0xff] }
  0x10   :  { %268 = vmatpush.msra.mxu3 %v138_v7  ;;  %v88_v12 = vld [vmem:[#allocation2 + $0x60] sm:$0xff]  ;;  %228 = vmatpush.msra.mxu2 %v121_v6  ;;  %v87_v17 = vld [vmem:[#allocation2 + $0x58] sm:$0xff]  ;;  %v118_v20 = vld [vmem:[#allocation2 + $0x150] sm:$0xff] }
  0x11   :  { %186 = vmatpush.msra.mxu1 %v106_v9  ;;  %146 = vmatpush.msra.mxu0 %v89_v8  ;;  %v136_v14 = vld [vmem:[#allocation2 + $0x1e0] sm:$0xff]  ;;  %v135_v18 = vld [vmem:[#allocation2 + $0x1d8] sm:$0xff]  ;;  %v86_v21 = vld [vmem:[#allocation2 + $0x50] sm:$0xff] }
  0x12   :  { %v104_v15 = vld [vmem:[#allocation2 + $0xe0] sm:$0xff]  ;;  %269 = vmatpush.msra.mxu3 %v137_v10  ;;  %229 = vmatpush.msra.mxu2 %v120_v11  ;;  %v103_v19 = vld [vmem:[#allocation2 + $0xd8] sm:$0xff]  ;;  %v134_v22 = vld [vmem:[#allocation2 + $0x1d0] sm:$0xff] }
  0x13   :  { %187 = vmatpush.msra.mxu1 %v105_v13  ;;  %147 = vmatpush.msra.mxu0 %v88_v12  ;;  %v102_v23 = vld [vmem:[#allocation2 + $0xd0] sm:$0xff]  ;;  %v117_v24 = vld [vmem:[#allocation2 + $0x148] sm:$0xff]  ;;  %v116_v28 = vld [vmem:[#allocation2 + $0x140] sm:$0xff] }
  0x14   :  { %270 = vmatpush.msra.mxu3 %v136_v14  ;;  %230 = vmatpush.msra.mxu2 %v119_v16  ;;  %v85_v25 = vld [vmem:[#allocation2 + $0x48] sm:$0xff]  ;;  %v84_v29 = vld [vmem:[#allocation2 + $0x40] sm:$0xff]  ;;  %v115_v32 = vld [vmem:[#allocation2 + $0x138] sm:$0xff] }
  0x15   :  { %188 = vmatpush.msra.mxu1 %v104_v15  ;;  %148 = vmatpush.msra.mxu0 %v87_v17  ;;  %v133_v26 = vld [vmem:[#allocation2 + $0x1c8] sm:$0xff]  ;;  %v132_v30 = vld [vmem:[#allocation2 + $0x1c0] sm:$0xff]  ;;  %v83_v33 = vld [vmem:[#allocation2 + $0x38] sm:$0xff] }
  0x16   :  { %271 = vmatpush.msra.mxu3 %v135_v18  ;;  %231 = vmatpush.msra.mxu2 %v118_v20  ;;  %v101_v27 = vld [vmem:[#allocation2 + $0xc8] sm:$0xff]  ;;  %v100_v31 = vld [vmem:[#allocation2 + $0xc0] sm:$0xff]  ;;  %v131_v34 = vld [vmem:[#allocation2 + $0x1b8] sm:$0xff] }
  0x17   :  { %189 = vmatpush.msra.mxu1 %v103_v19  ;;  %149 = vmatpush.msra.mxu0 %v86_v21  ;;  %v99_v35 = vld [vmem:[#allocation2 + $0xb8] sm:$0xff]  ;;  %v114_v36 = vld [vmem:[#allocation2 + $0x130] sm:$0xff]  ;;  %v113_v40 = vld [vmem:[#allocation2 + $0x128] sm:$0xff] }
  0x18   :  { %272 = vmatpush.msra.mxu3 %v134_v22  ;;  %232 = vmatpush.msra.mxu2 %v117_v24  ;;  %v82_v37 = vld [vmem:[#allocation2 + $0x30] sm:$0xff]  ;;  %v81_v41 = vld [vmem:[#allocation2 + $0x28] sm:$0xff]  ;;  %v112_v44 = vld [vmem:[#allocation2 + $0x120] sm:$0xff] }
  0x19   :  { %190 = vmatpush.msra.mxu1 %v102_v23  ;;  %150 = vmatpush.msra.mxu0 %v85_v25  ;;  %v130_v38 = vld [vmem:[#allocation2 + $0x1b0] sm:$0xff]  ;;  %v129_v42 = vld [vmem:[#allocation2 + $0x1a8] sm:$0xff]  ;;  %v80_v45 = vld [vmem:[#allocation2 + $0x20] sm:$0xff] }
  0x1a   :  { %273 = vmatpush.msra.mxu3 %v133_v26  ;;  %233 = vmatpush.msra.mxu2 %v116_v28  ;;  %v98_v39 = vld [vmem:[#allocation2 + $0xb0] sm:$0xff]  ;;  %v97_v43 = vld [vmem:[#allocation2 + $0xa8] sm:$0xff]  ;;  %v128_v46 = vld [vmem:[#allocation2 + $0x1a0] sm:$0xff] }
  0x1b   :  { %191 = vmatpush.msra.mxu1 %v101_v27  ;;  %151 = vmatpush.msra.mxu0 %v84_v29  ;;  %v96_v47 = vld [vmem:[#allocation2 + $0xa0] sm:$0xff]  ;;  %v111_v48 = vld [vmem:[#allocation2 + $0x118] sm:$0xff]  ;;  %v110_v52 = vld [vmem:[#allocation2 + $0x110] sm:$0xff] }
  0x1c   :  { %274 = vmatpush.msra.mxu3 %v132_v30  ;;  %234 = vmatpush.msra.mxu2 %v115_v32  ;;  %v79_v49 = vld [vmem:[#allocation2 + $0x18] sm:$0xff]  ;;  %v78_v53 = vld [vmem:[#allocation2 + $0x10] sm:$0xff]  ;;  %v109_v56 = vld [vmem:[#allocation2 + $0x108] sm:$0xff] }
  0x1d   :  { %192 = vmatpush.msra.mxu1 %v100_v31  ;;  %152 = vmatpush.msra.mxu0 %v83_v33  ;;  %v127_v50 = vld [vmem:[#allocation2 + $0x198] sm:$0xff]  ;;  %v126_v54 = vld [vmem:[#allocation2 + $0x190] sm:$0xff]  ;;  %v77_v57 = vld [vmem:[#allocation2 + $0x8] sm:$0xff] }
  0x1e   :  { %275 = vmatpush.msra.mxu3 %v131_v34  ;;  %235 = vmatpush.msra.mxu2 %v114_v36  ;;  %v95_v51 = vld [vmem:[#allocation2 + $0x98] sm:$0xff]  ;;  %v94_v55 = vld [vmem:[#allocation2 + $0x90] sm:$0xff]  ;;  %v125_v58 = vld [vmem:[#allocation2 + $0x188] sm:$0xff] }
  0x1f   :  { %193 = vmatpush.msra.mxu1 %v99_v35  ;;  %153 = vmatpush.msra.mxu0 %v82_v37  ;;  %v93_v59 = vld [vmem:[#allocation2 + $0x88] sm:$0xff]  ;;  %v108_v60 = vld [vmem:[#allocation2 + $0x100] sm:$0xff]  ;;  %v46_v62 = vld [vmem:[%s539_s0 + $0x10] sm:$0xff] }
  0x20   :  { %276 = vmatpush.msra.mxu3 %v130_v38  ;;  %236 = vmatpush.msra.mxu2 %v113_v40  ;;  %v76_v61 = vld [vmem:[#allocation2] sm:$0xff]  ;;  %v47_v1 = vld [vmem:[%s539_s0 + $0x18] sm:$0xff]  ;;  %v45_v3 = vld [vmem:[%s539_s0 + $0x8] sm:$0xff] }
  0x21   :  { %194 = vmatpush.msra.mxu1 %v98_v39  ;;  %154 = vmatpush.msra.mxu0 %v81_v41  ;;  %v124_v63 = vld [vmem:[#allocation2 + $0x180] sm:$0xff]  ;;  %v50_v4 = vld [vmem:[%s539_s0 + $0x30] sm:$0xff]  ;;  %v51_v6 = vld [vmem:[%s539_s0 + $0x38] sm:$0xff] }
  0x22   :  { %277 = vmatpush.msra.mxu3 %v129_v42  ;;  %237 = vmatpush.msra.mxu2 %v112_v44  ;;  %v44_v0 = vld [vmem:[%s539_s0] sm:$0xff]  ;;  %v49_v7 = vld [vmem:[%s539_s0 + $0x28] sm:$0xff]  ;;  %v54_v8 = vld [vmem:[%s539_s0 + $0x50] sm:$0xff] }
  0x23   :  { %195 = vmatpush.msra.mxu1 %v97_v43  ;;  %155 = vmatpush.msra.mxu0 %v80_v45  ;;  %v92_v2 = vld [vmem:[#allocation2 + $0x80] sm:$0xff]  ;;  %v55_v10 = vld [vmem:[%s539_s0 + $0x58] sm:$0xff]  ;;  %v53_v11 = vld [vmem:[%s539_s0 + $0x48] sm:$0xff] }
  0x24   :  { %278 = vmatpush.msra.mxu3 %v128_v46  ;;  %238 = vmatpush.msra.mxu2 %v111_v48  ;;  %v48_v5 = vld [vmem:[%s539_s0 + $0x20] sm:$0xff]  ;;  %v58_v12 = vld [vmem:[%s539_s0 + $0x70] sm:$0xff]  ;;  %v59_v14 = vld [vmem:[%s539_s0 + $0x78] sm:$0xff] }
  0x25   :  { %196 = vmatpush.msra.mxu1 %v96_v47  ;;  %156 = vmatpush.msra.mxu0 %v79_v49  ;;  %v52_v9 = vld [vmem:[%s539_s0 + $0x40] sm:$0xff]  ;;  %v57_v15 = vld [vmem:[%s539_s0 + $0x68] sm:$0xff]  ;;  %v62_v16 = vld [vmem:[%s539_s0 + $0x90] sm:$0xff] }
  0x26   :  { %279 = vmatpush.msra.mxu3 %v127_v50  ;;  %239 = vmatpush.msra.mxu2 %v110_v52  ;;  %v56_v13 = vld [vmem:[%s539_s0 + $0x60] sm:$0xff]  ;;  %v63_v18 = vld [vmem:[%s539_s0 + $0x98] sm:$0xff]  ;;  %v61_v19 = vld [vmem:[%s539_s0 + $0x88] sm:$0xff] }
  0x27   :  { %197 = vmatpush.msra.mxu1 %v95_v51  ;;  %157 = vmatpush.msra.mxu0 %v78_v53  ;;  %v60_v17 = vld [vmem:[%s539_s0 + $0x80] sm:$0xff]  ;;  %v66_v20 = vld [vmem:[%s539_s0 + $0xb0] sm:$0xff]  ;;  %v67_v22 = vld [vmem:[%s539_s0 + $0xb8] sm:$0xff] }
  0x28   :  { %280 = vmatpush.msra.mxu3 %v126_v54  ;;  %240 = vmatpush.msra.mxu2 %v109_v56  ;;  %v64_v21 = vld [vmem:[%s539_s0 + $0xa0] sm:$0xff]  ;;  %v65_v23 = vld [vmem:[%s539_s0 + $0xa8] sm:$0xff]  ;;  %v70_v24 = vld [vmem:[%s539_s0 + $0xd0] sm:$0xff] }
  0x29   :  { %198 = vmatpush.msra.mxu1 %v94_v55  ;;  %158 = vmatpush.msra.mxu0 %v77_v57  ;;  %v68_v25 = vld [vmem:[%s539_s0 + $0xc0] sm:$0xff]  ;;  %v71_v26 = vld [vmem:[%s539_s0 + $0xd8] sm:$0xff]  ;;  %v69_v27 = vld [vmem:[%s539_s0 + $0xc8] sm:$0xff] }
  0x2a   :  { %281 = vmatpush.msra.mxu3 %v125_v58  ;;  %241 = vmatpush.msra.mxu2 %v108_v60  ;;  %v74_v28 = vld [vmem:[%s539_s0 + $0xf0] sm:$0xff]  ;;  %v72_v29 = vld [vmem:[%s539_s0 + $0xe0] sm:$0xff]  ;;  %v75_v30 = vld [vmem:[%s539_s0 + $0xf8] sm:$0xff] }
  0x2b   :  { %199 = vmatpush.msra.mxu1 %v93_v59  ;;  %159 = vmatpush.msra.mxu0 %v76_v61  ;;  %v73_v31 = vld [vmem:[%s539_s0 + $0xe8] sm:$0xff]  ;;  %v505_v32 = vld [vmem:[#allocation4] ss:$0 sm:$0xff] }
  0x2c   :  { %242 = vmatmul.f32.vlgmr.msra.gmra.mxu2 %v46_v62  ;;  %282 = vmatpush.msra.mxu3 %v124_v63 }
  0x2d   :  { %160 = vmatmul.f32.vlgmr.msra.gmra.mxu0 %v44_v0  ;;  %283 = vmatmul.f32.vlgmr.msra.gmra.mxu3 %v47_v1 }
  0x2e   :  { %200 = vmatpush.msra.mxu1 %v92_v2 }
  0x2f   :  { %201 = vmatmul.f32.vlgmr.msra.gmra.mxu1 %v45_v3 }
  0x34   :  { %245 = vmatmul.f32.gmra.mxu2 %v50_v4 }
  0x35   :  { %163 = vmatmul.f32.gmra.mxu0 %v48_v5  ;;  %286 = vmatmul.f32.gmra.mxu3 %v51_v6 }
  0x37   :  { %204 = vmatmul.f32.gmra.mxu1 %v49_v7 }
  0x3c   :  { %248 = vmatmul.f32.gmra.mxu2 %v54_v8 }
  0x3d   :  { %166 = vmatmul.f32.gmra.mxu0 %v52_v9  ;;  %289 = vmatmul.f32.gmra.mxu3 %v55_v10 }
  0x3f   :  { %207 = vmatmul.f32.gmra.mxu1 %v53_v11 }
  0x44   :  { %251 = vmatmul.f32.gmra.mxu2 %v58_v12 }
  0x45   :  { %169 = vmatmul.f32.gmra.mxu0 %v56_v13  ;;  %292 = vmatmul.f32.gmra.mxu3 %v59_v14 }
  0x47   :  { %210 = vmatmul.f32.gmra.mxu1 %v57_v15 }
  0x4c   :  { %254 = vmatmul.f32.gmra.mxu2 %v62_v16 }
  0x4d   :  { %172 = vmatmul.f32.gmra.mxu0 %v60_v17  ;;  %295 = vmatmul.f32.gmra.mxu3 %v63_v18 }
  0x4f   :  { %213 = vmatmul.f32.gmra.mxu1 %v61_v19 }
  0x54   :  { %257 = vmatmul.f32.gmra.mxu2 %v66_v20 }
  0x55   :  { %175 = vmatmul.f32.gmra.mxu0 %v64_v21  ;;  %298 = vmatmul.f32.gmra.mxu3 %v67_v22 }
  0x57   :  { %216 = vmatmul.f32.gmra.mxu1 %v65_v23 }
  0x5c   :  { %260 = vmatmul.f32.gmra.mxu2 %v70_v24 }
  0x5d   :  { %178 = vmatmul.f32.gmra.mxu0 %v68_v25  ;;  %301 = vmatmul.f32.gmra.mxu3 %v71_v26 }
  0x5f   :  { %219 = vmatmul.f32.gmra.mxu1 %v69_v27 }
  0x64   :  { %263 = vmatmul.f32.gmra.mxu2 %v74_v28 }
  0x65   :  { %181 = vmatmul.f32.gmra.mxu0 %v72_v29  ;;  %304 = vmatmul.f32.gmra.mxu3 %v75_v30 }
  0x67   :  { %222 = vmatmul.f32.gmra.mxu1 %v73_v31 }
  0xaa   :  { %v161_v33 = vpop.f32.mrf.mxu0 }
  0xab   :  { %v162_v34 = vadd.f32 %v505_v32, %v161_v33 }
  0xac   :  { %v202_v35 = vpop.f32.mrf.mxu1 }
  0xad   :  { %v203_v36 = vadd.f32 %v202_v35, %v162_v34 }
  0xaf   :  { %v243_v37 = vpop.f32.mrf.mxu2 }
  0xb0   :  { %v244_v38 = vadd.f32 %v243_v37, %v203_v36  ;;  %v284_v39 = vpop.f32.mrf.mxu3 }
  0xb2   :  { %v285_v40 = vadd.f32 %v284_v39, %v244_v38  ;;  %v164_v41 = vpop.f32.mrf.mxu0 }
  0xb3   :  { %v165_v42 = vadd.f32 %v505_v32, %v164_v41 }
  0xb4   :  { %308 = vst [vmem:[%s542_s3] sm:$0xff] %v285_v40  ;;  %v205_v43 = vpop.f32.mrf.mxu1 }
  0xb5   :  { %v206_v44 = vadd.f32 %v205_v43, %v165_v42 }
  0xb7   :  { %v246_v45 = vpop.f32.mrf.mxu2 }
  0xb8   :  { %v247_v46 = vadd.f32 %v246_v45, %v206_v44  ;;  %v287_v47 = vpop.f32.mrf.mxu3 }
  0xba   :  { %v288_v48 = vadd.f32 %v287_v47, %v247_v46  ;;  %v167_v49 = vpop.f32.mrf.mxu0 }
  0xbb   :  { %v168_v50 = vadd.f32 %v505_v32, %v167_v49 }
  0xbc   :  { %309 = vst [vmem:[%s542_s3 + $0x8] sm:$0xff] %v288_v48  ;;  %v208_v51 = vpop.f32.mrf.mxu1 }
  0xbd   :  { %v209_v52 = vadd.f32 %v208_v51, %v168_v50 }
  0xbf   :  { %v249_v53 = vpop.f32.mrf.mxu2 }
  0xc0   :  { %v250_v54 = vadd.f32 %v249_v53, %v209_v52  ;;  %v290_v55 = vpop.f32.mrf.mxu3 }
  0xc2   :  { %v291_v56 = vadd.f32 %v290_v55, %v250_v54  ;;  %v170_v57 = vpop.f32.mrf.mxu0 }
  0xc3   :  { %v171_v58 = vadd.f32 %v505_v32, %v170_v57 }
  0xc4   :  { %310 = vst [vmem:[%s542_s3 + $0x10] sm:$0xff] %v291_v56  ;;  %v211_v59 = vpop.f32.mrf.mxu1 }
  0xc5   :  { %v212_v60 = vadd.f32 %v211_v59, %v171_v58 }
  0xc7   :  { %v252_v61 = vpop.f32.mrf.mxu2 }
  0xc8   :  { %v253_v62 = vadd.f32 %v252_v61, %v212_v60  ;;  %v293_v63 = vpop.f32.mrf.mxu3 }
  0xca   :  { %v294_v0 = vadd.f32 %v293_v63, %v253_v62  ;;  %v173_v1 = vpop.f32.mrf.mxu0 }
  0xcb   :  { %v174_v2 = vadd.f32 %v505_v32, %v173_v1 }
  0xcc   :  { %311 = vst [vmem:[%s542_s3 + $0x18] sm:$0xff] %v294_v0  ;;  %v214_v3 = vpop.f32.mrf.mxu1 }
  0xcd   :  { %v215_v4 = vadd.f32 %v214_v3, %v174_v2 }
  0xcf   :  { %v255_v5 = vpop.f32.mrf.mxu2 }
  0xd0   :  { %v256_v6 = vadd.f32 %v255_v5, %v215_v4  ;;  %v296_v7 = vpop.f32.mrf.mxu3 }
  0xd2   :  { %v297_v8 = vadd.f32 %v296_v7, %v256_v6  ;;  %v176_v9 = vpop.f32.mrf.mxu0 }
  0xd3   :  { %v177_v10 = vadd.f32 %v505_v32, %v176_v9 }
  0xd4   :  { %312 = vst [vmem:[%s542_s3 + $0x20] sm:$0xff] %v297_v8  ;;  %v217_v11 = vpop.f32.mrf.mxu1 }
  0xd5   :  { %v218_v12 = vadd.f32 %v217_v11, %v177_v10 }
  0xd7   :  { %v258_v13 = vpop.f32.mrf.mxu2 }
  0xd8   :  { %v259_v14 = vadd.f32 %v258_v13, %v218_v12  ;;  %v299_v15 = vpop.f32.mrf.mxu3 }
  0xda   :  { %v300_v16 = vadd.f32 %v299_v15, %v259_v14  ;;  %v179_v17 = vpop.f32.mrf.mxu0 }
  0xdb   :  { %v180_v18 = vadd.f32 %v505_v32, %v179_v17 }
  0xdc   :  { %313 = vst [vmem:[%s542_s3 + $0x28] sm:$0xff] %v300_v16  ;;  %v220_v19 = vpop.f32.mrf.mxu1 }
  0xdd   :  { %v221_v20 = vadd.f32 %v220_v19, %v180_v18 }
  0xdf   :  { %v261_v21 = vpop.f32.mrf.mxu2 }
  0xe0   :  { %v262_v22 = vadd.f32 %v261_v21, %v221_v20  ;;  %v302_v23 = vpop.f32.mrf.mxu3 }
  0xe2   :  { %v303_v24 = vadd.f32 %v302_v23, %v262_v22  ;;  %v182_v25 = vpop.f32.mrf.mxu0 }
  0xe3   :  { %v183_v26 = vadd.f32 %v505_v32, %v182_v25 }
  0xe4   :  { %314 = vst [vmem:[%s542_s3 + $0x30] sm:$0xff] %v303_v24  ;;  %v223_v27 = vpop.f32.mrf.mxu1 }
  0xe5   :  { %v224_v28 = vadd.f32 %v223_v27, %v183_v26 }
  0xe7   :  { %v264_v29 = vpop.f32.mrf.mxu2 }
  0xe8   :  { %v265_v30 = vadd.f32 %v264_v29, %v224_v28  ;;  %v305_v31 = vpop.f32.mrf.mxu3 }
  0xea   :  { %v306_v33 = vadd.f32 %v305_v31, %v265_v30 }
  0xec   :  { %315 = vst [vmem:[%s542_s3 + $0x38] sm:$0xff] %v306_v33 }
  0xed   :  { %320 = vsyncpa [#allocation3], 1 }
  0xee   :  { %321 = vsyncpa [#allocation5], 1 }

// kernel: bilstm_crf_forward.4
= control target key start
LH: loop header
LB: loop body
LE: loop exit
PB: predicated region body
PF: predicated region fallthrough
CT: control target
= control target key end

     0   :  { %8 = vsyncpa [#allocation6], 0  ;;  %s3125_s0 = inlined_call_operand.vmem [shape: s32[8,1], index: 0, kind: input, shape index: {}]   ;;  %s3126_s1 = inlined_call_operand.vmem [shape: f32[8,8,2048], index: 1, kind: input, shape index: {}]   ;;  %s3127_s2 = inlined_call_operand.hbm [shape: f32[2,256,1024], index: 2, kind: input, shape index: {}]   ;;  %s3128_s3 = inlined_call_operand.vmem [shape: f32[8,8,512], index: 3, kind: output, shape index: {}]  }
   0x1   :  { %10 = vsyncpa [#allocation6 + $0x1], 0  ;;  %s1693_s12 = smov 0   ;;  %s1695_s13 = smov 0  }
   0x2   :  { %s1697_s14 = smov 0   ;;  %s1699_s15 = smov 0  }
   0x3   :  { %s1701_s16 = smov 0   ;;  %s1703_s17 = smov 0  }
   0x4 LB: > { %s1386_s18 = sadd.s32 4294967295, %s1647_s17   ;;  %s28_s19 = sadd.s32 1, %s1643_s16  ;;  %s1647_s17 = sphi %s1703_s17, %s16_s17   ;;  %s1643_s16 = sphi %s1701_s16, %s3590_s16   ;;  %s1639_s15 = sphi %s1699_s15, %s3589_s15   ;;  %s1635_s14 = sphi %s1697_s14, %s3588_s14   ;;  %s1631_s13 = sphi %s1695_s13, %s3587_s13   ;;  %s1627_s12 = sphi %s1693_s12, %s3586_s12  }
   0x5   : > { %p30_p0 = scmp.ge.s32.totalorder %s28_s19, 2  ;;  %s68_s20 = sadd.s32 1, %s1635_s14 }
   0x6   : > { %p75_p1 = scmp.ne.s32.totalorder %s1635_s14, %s1631_s13  ;;  %p76_p2 = scmp.eq.s32.totalorder %s1647_s17, 0 }
   0x7   : > { %s3592_s19 = smov (%p30_p0, %s28_s19), 0  ;;  %p107_p4 = scmp.ne.s32.totalorder %s1631_s13, %s1627_s12 }
   0x8   : > { %p1729_p3 = por %p76_p2, %p75_p1  ;;  %s64_s22 = ssub.s32 %s1643_s16, %s3592_s19 }
   0x9   : > { %p108_p5 = scmp.eq.s32.totalorder %s1386_s18, 0  ;;  %p66_p6 = scmp.eq.s32.totalorder %s64_s22, 0 }
   0xa   : > { %p143_p7 = scmp.eq.s32.totalorder %s1386_s18, 1  ;;  %p1389_p10 = scmp.ge.s32.totalorder %s1647_s17, 2 }
   0xb   : > { %p1736_p8 = por %p108_p5, %p107_p4 }
   0xc   : > { %s1741_s24 = scalar_select %p66_p6, %s1635_s14, %s68_s20  }
   0xd   : > { %p1743_p9 = por %p143_p7, %p75_p1  ;;  %168 = sbr.rel (%p1389_p10) target bundleno = 92 (0x5c), region = 20 }
  0x12   : > { %171 = sbr.rel (!%p1729_p3) target bundleno = 86 (0x56), region = 24  ;;  %s173_s26 = sand.u32 (%p1729_p3), 1, %s1635_s14  }
  0x13   : > { %s1416_s27 = sshll.u32 (%p1729_p3), %s1643_s16, 6  ;;  %s1390_s28 = sshll.u32 (%p1729_p3), %s173_s26, 9 }
  0x14   : > { %s1755_s4 = scalar_lea.vmem (%p1729_p3), %s3126_s1, %s1416_s27  ;;  %s1760_s5 = scalar_lea.vmem (%p1729_p3), [#allocation4], %s1390_s28 }
  0x15   : > { %v199_v0 = vld [vmem:[%s1755_s4] sm:$0xff] (%p1729_p3)  ;;  %v201_v1 = vld [vmem:[%s1755_s4 + $0x8] sm:$0xff] (%p1729_p3)  ;;  %v203_v2 = vld [vmem:[%s1755_s4 + $0x10] sm:$0xff] (%p1729_p3) }
  0x16   : > { %200 = vst [vmem:[%s1760_s5] sm:$0xff] (%p1729_p3), %v199_v0  ;;  %v205_v3 = vld [vmem:[%s1755_s4 + $0x18] sm:$0xff] (%p1729_p3)  ;;  %v207_v4 = vld [vmem:[%s1755_s4 + $0x20] sm:$0xff] (%p1729_p3)  ;;  %v209_v5 = vld [vmem:[%s1755_s4 + $0x28] sm:$0xff] (%p1729_p3) }
  0x17   : > { %202 = vst [vmem:[%s1760_s5 + $0x8] sm:$0xff] %v201_v1  ;;  %v211_v6 = vld [vmem:[%s1755_s4 + $0x30] sm:$0xff]  ;;  %v213_v7 = vld [vmem:[%s1755_s4 + $0x38] sm:$0xff]  ;;  %v215_v8 = vld [vmem:[%s1755_s4 + $0x80] sm:$0xff] }
  0x18   : > { %204 = vst [vmem:[%s1760_s5 + $0x10] sm:$0xff] %v203_v2  ;;  %v217_v9 = vld [vmem:[%s1755_s4 + $0x88] sm:$0xff]  ;;  %v219_v10 = vld [vmem:[%s1755_s4 + $0x90] sm:$0xff]  ;;  %v221_v11 = vld [vmem:[%s1755_s4 + $0x98] sm:$0xff] }
  0x19   : > { %206 = vst [vmem:[%s1760_s5 + $0x18] sm:$0xff] %v205_v3  ;;  %v223_v12 = vld [vmem:[%s1755_s4 + $0xa0] sm:$0xff]  ;;  %v225_v13 = vld [vmem:[%s1755_s4 + $0xa8] sm:$0xff]  ;;  %v227_v14 = vld [vmem:[%s1755_s4 + $0xb0] sm:$0xff] }
  0x1a   : > { %208 = vst [vmem:[%s1760_s5 + $0x20] sm:$0xff] %v207_v4  ;;  %v229_v15 = vld [vmem:[%s1755_s4 + $0xb8] sm:$0xff]  ;;  %v231_v16 = vld [vmem:[%s1755_s4 + $0x100] sm:$0xff]  ;;  %v233_v17 = vld [vmem:[%s1755_s4 + $0x108] sm:$0xff] }
  0x1b   : > { %210 = vst [vmem:[%s1760_s5 + $0x28] sm:$0xff] %v209_v5  ;;  %v235_v18 = vld [vmem:[%s1755_s4 + $0x110] sm:$0xff]  ;;  %v237_v19 = vld [vmem:[%s1755_s4 + $0x118] sm:$0xff]  ;;  %v239_v20 = vld [vmem:[%s1755_s4 + $0x120] sm:$0xff] }
  0x1c   : > { %212 = vst [vmem:[%s1760_s5 + $0x30] sm:$0xff] %v211_v6  ;;  %v241_v21 = vld [vmem:[%s1755_s4 + $0x128] sm:$0xff]  ;;  %v243_v22 = vld [vmem:[%s1755_s4 + $0x130] sm:$0xff]  ;;  %v245_v23 = vld [vmem:[%s1755_s4 + $0x138] sm:$0xff] }
  0x1d   : > { %214 = vst [vmem:[%s1760_s5 + $0x38] sm:$0xff] %v213_v7  ;;  %v247_v24 = vld [vmem:[%s1755_s4 + $0x180] sm:$0xff]  ;;  %v249_v25 = vld [vmem:[%s1755_s4 + $0x188] sm:$0xff]  ;;  %v251_v26 = vld [vmem:[%s1755_s4 + $0x190] sm:$0xff] }
  0x1e   : > { %216 = vst [vmem:[%s1760_s5 + $0x40] sm:$0xff] %v215_v8  ;;  %v253_v27 = vld [vmem:[%s1755_s4 + $0x198] sm:$0xff]  ;;  %v255_v28 = vld [vmem:[%s1755_s4 + $0x1a0] sm:$0xff]  ;;  %v257_v29 = vld [vmem:[%s1755_s4 + $0x1a8] sm:$0xff] }
  0x1f   : > { %218 = vst [vmem:[%s1760_s5 + $0x48] sm:$0xff] %v217_v9  ;;  %v259_v30 = vld [vmem:[%s1755_s4 + $0x1b0] sm:$0xff]  ;;  %v261_v31 = vld [vmem:[%s1755_s4 + $0x1b8] sm:$0xff]  ;;  %v263_v32 = vld [vmem:[%s1755_s4 + $0x200] sm:$0xff] }
  0x20   : > { %220 = vst [vmem:[%s1760_s5 + $0x50] sm:$0xff] %v219_v10  ;;  %v265_v33 = vld [vmem:[%s1755_s4 + $0x208] sm:$0xff]  ;;  %v267_v34 = vld [vmem:[%s1755_s4 + $0x210] sm:$0xff]  ;;  %v269_v35 = vld [vmem:[%s1755_s4 + $0x218] sm:$0xff] }
  0x21   : > { %222 = vst [vmem:[%s1760_s5 + $0x58] sm:$0xff] %v221_v11  ;;  %v271_v36 = vld [vmem:[%s1755_s4 + $0x220] sm:$0xff]  ;;  %v273_v37 = vld [vmem:[%s1755_s4 + $0x228] sm:$0xff]  ;;  %v275_v38 = vld [vmem:[%s1755_s4 + $0x230] sm:$0xff] }
  0x22   : > { %224 = vst [vmem:[%s1760_s5 + $0x60] sm:$0xff] %v223_v12  ;;  %v277_v39 = vld [vmem:[%s1755_s4 + $0x238] sm:$0xff]  ;;  %v279_v40 = vld [vmem:[%s1755_s4 + $0x280] sm:$0xff]  ;;  %v281_v41 = vld [vmem:[%s1755_s4 + $0x288] sm:$0xff] }
  0x23   : > { %226 = vst [vmem:[%s1760_s5 + $0x68] sm:$0xff] %v225_v13  ;;  %v283_v42 = vld [vmem:[%s1755_s4 + $0x290] sm:$0xff]  ;;  %v285_v43 = vld [vmem:[%s1755_s4 + $0x298] sm:$0xff]  ;;  %v287_v44 = vld [vmem:[%s1755_s4 + $0x2a0] sm:$0xff] }
  0x24   : > { %228 = vst [vmem:[%s1760_s5 + $0x70] sm:$0xff] %v227_v14  ;;  %v289_v45 = vld [vmem:[%s1755_s4 + $0x2a8] sm:$0xff]  ;;  %v291_v46 = vld [vmem:[%s1755_s4 + $0x2b0] sm:$0xff]  ;;  %v293_v47 = vld [vmem:[%s1755_s4 + $0x2b8] sm:$0xff] }
  0x25   : > { %230 = vst [vmem:[%s1760_s5 + $0x78] sm:$0xff] %v229_v15  ;;  %v295_v48 = vld [vmem:[%s1755_s4 + $0x300] sm:$0xff]  ;;  %v297_v49 = vld [vmem:[%s1755_s4 + $0x308] sm:$0xff]  ;;  %v299_v50 = vld [vmem:[%s1755_s4 + $0x310] sm:$0xff] }
  0x26   : > { %232 = vst [vmem:[%s1760_s5 + $0x80] sm:$0xff] %v231_v16  ;;  %v301_v51 = vld [vmem:[%s1755_s4 + $0x318] sm:$0xff]  ;;  %v303_v52 = vld [vmem:[%s1755_s4 + $0x320] sm:$0xff]  ;;  %v305_v53 = vld [vmem:[%s1755_s4 + $0x328] sm:$0xff] }
  0x27   : > { %234 = vst [vmem:[%s1760_s5 + $0x88] sm:$0xff] %v233_v17  ;;  %v307_v54 = vld [vmem:[%s1755_s4 + $0x330] sm:$0xff]  ;;  %v309_v55 = vld [vmem:[%s1755_s4 + $0x338] sm:$0xff]  ;;  %v311_v56 = vld [vmem:[%s1755_s4 + $0x380] sm:$0xff] }
  0x28   : > { %236 = vst [vmem:[%s1760_s5 + $0x90] sm:$0xff] %v235_v18  ;;  %v313_v57 = vld [vmem:[%s1755_s4 + $0x388] sm:$0xff]  ;;  %v315_v58 = vld [vmem:[%s1755_s4 + $0x390] sm:$0xff]  ;;  %v317_v59 = vld [vmem:[%s1755_s4 + $0x398] sm:$0xff] }
  0x29   : > { %238 = vst [vmem:[%s1760_s5 + $0x98] sm:$0xff] %v237_v19  ;;  %v319_v60 = vld [vmem:[%s1755_s4 + $0x3a0] sm:$0xff]  ;;  %v321_v61 = vld [vmem:[%s1755_s4 + $0x3a8] sm:$0xff]  ;;  %v323_v62 = vld [vmem:[%s1755_s4 + $0x3b0] sm:$0xff] }
  0x2a   : > { %240 = vst [vmem:[%s1760_s5 + $0xa0] sm:$0xff] %v239_v20  ;;  %v325_v63 = vld [vmem:[%s1755_s4 + $0x3b8] sm:$0xff] }
  0x2b   : > { %242 = vst [vmem:[%s1760_s5 + $0xa8] sm:$0xff] %v241_v21 }
  0x2c   : > { %244 = vst [vmem:[%s1760_s5 + $0xb0] sm:$0xff] %v243_v22 }
  0x2d   : > { %246 = vst [vmem:[%s1760_s5 + $0xb8] sm:$0xff] %v245_v23 }
  0x2e   : > { %248 = vst [vmem:[%s1760_s5 + $0xc0] sm:$0xff] %v247_v24 }
  0x2f   : > { %250 = vst [vmem:[%s1760_s5 + $0xc8] sm:$0xff] %v249_v25 }
  0x30   : > { %252 = vst [vmem:[%s1760_s5 + $0xd0] sm:$0xff] %v251_v26 }
  0x31   : > { %254 = vst [vmem:[%s1760_s5 + $0xd8] sm:$0xff] %v253_v27 }
  0x32   : > { %256 = vst [vmem:[%s1760_s5 + $0xe0] sm:$0xff] %v255_v28 }
  0x33   : > { %258 = vst [vmem:[%s1760_s5 + $0xe8] sm:$0xff] %v257_v29 }
  0x34   : > { %260 = vst [vmem:[%s1760_s5 + $0xf0] sm:$0xff] %v259_v30 }
  0x35   : > { %262 = vst [vmem:[%s1760_s5 + $0xf8] sm:$0xff] %v261_v31 }
  0x36   : > { %264 = vst [vmem:[%s1760_s5 + $0x100] sm:$0xff] %v263_v32 }
  0x37   : > { %266 = vst [vmem:[%s1760_s5 + $0x108] sm:$0xff] %v265_v33 }
  0x38   : > { %268 = vst [vmem:[%s1760_s5 + $0x110] sm:$0xff] %v267_v34 }
  0x39   : > { %270 = vst [vmem:[%s1760_s5 + $0x118] sm:$0xff] %v269_v35 }
  0x3a   : > { %272 = vst [vmem:[%s1760_s5 + $0x120] sm:$0xff] %v271_v36 }
  0x3b   : > { %274 = vst [vmem:[%s1760_s5 + $0x128] sm:$0xff] %v273_v37 }
  0x3c   : > { %276 = vst [vmem:[%s1760_s5 + $0x130] sm:$0xff] %v275_v38 }
  0x3d   : > { %278 = vst [vmem:[%s1760_s5 + $0x138] sm:$0xff] %v277_v39 }
  0x3e   : > { %280 = vst [vmem:[%s1760_s5 + $0x140] sm:$0xff] %v279_v40 }
  0x3f   : > { %282 = vst [vmem:[%s1760_s5 + $0x148] sm:$0xff] %v281_v41 }
  0x40   : > { %284 = vst [vmem:[%s1760_s5 + $0x150] sm:$0xff] %v283_v42 }
  0x41   : > { %286 = vst [vmem:[%s1760_s5 + $0x158] sm:$0xff] %v285_v43 }
  0x42   : > { %288 = vst [vmem:[%s1760_s5 + $0x160] sm:$0xff] %v287_v44 }
  0x43   : > { %290 = vst [vmem:[%s1760_s5 + $0x168] sm:$0xff] %v289_v45 }
  0x44   : > { %292 = vst [vmem:[%s1760_s5 + $0x170] sm:$0xff] %v291_v46 }
  0x45   : > { %294 = vst [vmem:[%s1760_s5 + $0x178] sm:$0xff] %v293_v47 }
  0x46   : > { %296 = vst [vmem:[%s1760_s5 + $0x180] sm:$0xff] %v295_v48 }
  0x47   : > { %298 = vst [vmem:[%s1760_s5 + $0x188] sm:$0xff] %v297_v49 }
  0x48   : > { %300 = vst [vmem:[%s1760_s5 + $0x190] sm:$0xff] %v299_v50 }
  0x49   : > { %302 = vst [vmem:[%s1760_s5 + $0x198] sm:$0xff] %v301_v51 }
  0x4a   : > { %304 = vst [vmem:[%s1760_s5 + $0x1a0] sm:$0xff] %v303_v52 }
  0x4b   : > { %306 = vst [vmem:[%s1760_s5 + $0x1a8] sm:$0xff] %v305_v53 }
  0x4c   : > { %308 = vst [vmem:[%s1760_s5 + $0x1b0] sm:$0xff] %v307_v54 }
  0x4d   : > { %310 = vst [vmem:[%s1760_s5 + $0x1b8] sm:$0xff] %v309_v55 }
  0x4e   : > { %312 = vst [vmem:[%s1760_s5 + $0x1c0] sm:$0xff] %v311_v56 }
  0x4f   : > { %314 = vst [vmem:[%s1760_s5 + $0x1c8] sm:$0xff] %v313_v57 }
  0x50   : > { %316 = vst [vmem:[%s1760_s5 + $0x1d0] sm:$0xff] %v315_v58 }
  0x51   : > { %318 = vst [vmem:[%s1760_s5 + $0x1d8] sm:$0xff] %v317_v59 }
  0x52   : > { %320 = vst [vmem:[%s1760_s5 + $0x1e0] sm:$0xff] %v319_v60 }
  0x53   : > { %322 = vst [vmem:[%s1760_s5 + $0x1e8] sm:$0xff] %v321_v61 }
  0x54   : > { %324 = vst [vmem:[%s1760_s5 + $0x1f0] sm:$0xff] %v323_v62 }
  0x55   : > { %326 = vst [vmem:[%s1760_s5 + $0x1f8] sm:$0xff] %v325_v63 }
  0x56 PF: > { %s333_s6 = sand.u32 1, %s1635_s14   ;;  %s1417_s7 = sshll.u32 %s1643_s16, 11 }
  0x57   : > { %s1393_s8 = sshll.u32 %s333_s6, 11  ;;  %s342_s11 = scalar_lea.hbm %s3127_s2, %s1417_s7 }
  0x58   : > { %s343_s12 = sshll.u32 %s342_s11, 4  ;;  %s337_s18 = scalar_lea.vmem [#allocation5], %s1393_s8  ;;  %s344_s12 = int_to_ptr.hbm [resolvable:$true] %s343_s12 }
  0x59   : > { %s345_s20 = sshll.u32 %s337_s18, 4  ;;  %s334_s22 = scalar_lea.sflag [#allocation6], %s333_s6  ;;  %s346_s20 = int_to_ptr.vmem [resolvable:$true] %s345_s20 }
  0x5a   : > { %s1669_s26 = smov 1024   ;;  %s1670_s27 = smov 64  }
  0x5b   : > { %1421 = dma.hbm_to_vmem [thread:$0]  (%p1729_p3), %s344_s12, 32768, %s346_s20, %s334_s22, %s1669_s26, %s1669_s26, %s1670_s27  }
  0x5c PF: > { %p1396_p11 = scmp.ge.s32.totalorder %s1647_s17, 1  ;;  %p353_p12 = scmp.lt.s32.totalorder %s1647_s17, 3 }
  0x5e   : > { %p354_p13 = pnand %p1396_p11, %p353_p12 }
  0x60   : > { %357 = sbr.rel (%p354_p13) target bundleno = 661 (0x295), region = 51 }
  0x65   : > { %s1897_s28 = sand.u32 1, %s1631_s13  }
  0x66   : > { %s1397_s29 = sshll.u32 %s1897_s28, 9  ;;  %s1398_s30 = sshll.u32 %s1897_s28, 11 }
  0x67   : > { %s1901_s4 = scalar_lea.vmem [#allocation4], %s1397_s29  ;;  %s367_s21 = scalar_lea.sflag [#allocation6], %s1897_s28 }
  0x68   : > { %s1904_s5 = scalar_lea.vmem [#allocation5], %s1398_s30 }
  0x69   : > { %1622 = dma.done.wait (%p1736_p8), %s367_s21, 32768  }
  0x6a   : > { %1624 = vsyncadd (%p1736_p8), %s367_s21, 4294934528  ;;  %s1399_s6 = sshll.u32 %s1897_s28, 7  ;;  %s676_s23 = ssub.s32 1, %s1639_s15  ;;  %v1913_v0 = vld [vmem:[%s1904_s5] sm:$0xff]  ;;  %v1916_v1 = vld [vmem:[%s1904_s5 + $0x8] sm:$0xff] }
  0x6b   : > { %3132 = vst [vmem:[#allocation9_spill] sm:$0xff] %v1913_v0  ;;  %v1919_v2 = vld [vmem:[%s1904_s5 + $0x10] sm:$0xff]  ;;  %v1922_v3 = vld [vmem:[%s1904_s5 + $0x18] sm:$0xff]  ;;  %v1925_v4 = vld [vmem:[%s1904_s5 + $0x20] sm:$0xff]  ;;  %s2687_s9 = scalar_lea.vmem [#allocation7], %s1399_s6  ;;  %s2697_s10 = smov 0  }
  0x6c   : > { %3133 = vst [vmem:[#allocation10_spill] sm:$0xff] %v1916_v1  ;;  %v1928_v5 = vld [vmem:[%s1904_s5 + $0x28] sm:$0xff]  ;;  %v1931_v6 = vld [vmem:[%s1904_s5 + $0x30] sm:$0xff]  ;;  %v1934_v7 = vld [vmem:[%s1904_s5 + $0x38] sm:$0xff] }
  0x6d   : > { %3134 = vst [vmem:[#allocation11_spill] sm:$0xff] %v1919_v2  ;;  %v1937_v8 = vld [vmem:[%s1904_s5 + $0x40] sm:$0xff]  ;;  %v1940_v9 = vld [vmem:[%s1904_s5 + $0x48] sm:$0xff]  ;;  %v1943_v10 = vld [vmem:[%s1904_s5 + $0x50] sm:$0xff] }
  0x6e   : > { %3135 = vst [vmem:[#allocation12_spill] sm:$0xff] %v1922_v3  ;;  %v1946_v11 = vld [vmem:[%s1904_s5 + $0x58] sm:$0xff]  ;;  %v1949_v12 = vld [vmem:[%s1904_s5 + $0x60] sm:$0xff]  ;;  %v1952_v13 = vld [vmem:[%s1904_s5 + $0x68] sm:$0xff] }
  0x6f   : > { %3136 = vst [vmem:[#allocation13_spill] sm:$0xff] %v1925_v4  ;;  %v1955_v14 = vld [vmem:[%s1904_s5 + $0x70] sm:$0xff]  ;;  %v1958_v15 = vld [vmem:[%s1904_s5 + $0x78] sm:$0xff]  ;;  %v1961_v16 = vld [vmem:[%s1904_s5 + $0x80] sm:$0xff] }
  0x70   : > { %3137 = vst [vmem:[#allocation14_spill] sm:$0xff] %v1928_v5  ;;  %v1964_v17 = vld [vmem:[%s1904_s5 + $0x88] sm:$0xff]  ;;  %v1967_v18 = vld [vmem:[%s1904_s5 + $0x90] sm:$0xff]  ;;  %v1970_v19 = vld [vmem:[%s1904_s5 + $0x98] sm:$0xff] }
  0x71   : > { %3138 = vst [vmem:[#allocation15_spill] sm:$0xff] %v1931_v6  ;;  %v1973_v20 = vld [vmem:[%s1904_s5 + $0xa0] sm:$0xff]  ;;  %v1976_v21 = vld [vmem:[%s1904_s5 + $0xa8] sm:$0xff]  ;;  %v1979_v22 = vld [vmem:[%s1904_s5 + $0xb0] sm:$0xff] }
  0x72   : > { %3139 = vst [vmem:[#allocation16_spill] sm:$0xff] %v1934_v7  ;;  %v1982_v23 = vld [vmem:[%s1904_s5 + $0xb8] sm:$0xff]  ;;  %v1985_v24 = vld [vmem:[%s1904_s5 + $0xc0] sm:$0xff]  ;;  %v1988_v25 = vld [vmem:[%s1904_s5 + $0xc8] sm:$0xff] }
  0x73   : > { %3140 = vst [vmem:[#allocation17_spill] sm:$0xff] %v1937_v8  ;;  %v1991_v26 = vld [vmem:[%s1904_s5 + $0xd0] sm:$0xff]  ;;  %v1994_v27 = vld [vmem:[%s1904_s5 + $0xd8] sm:$0xff]  ;;  %v1997_v28 = vld [vmem:[%s1904_s5 + $0xe0] sm:$0xff] }
  0x74   : > { %3141 = vst [vmem:[#allocation18_spill] sm:$0xff] %v1940_v9  ;;  %v2000_v29 = vld [vmem:[%s1904_s5 + $0xe8] sm:$0xff]  ;;  %v2003_v30 = vld [vmem:[%s1904_s5 + $0xf0] sm:$0xff]  ;;  %v2006_v31 = vld [vmem:[%s1904_s5 + $0xf8] sm:$0xff] }
  0x75   : > { %3142 = vst [vmem:[#allocation19_spill] sm:$0xff] %v1943_v10  ;;  %v2009_v32 = vld [vmem:[%s1904_s5 + $0x100] sm:$0xff]  ;;  %v2012_v33 = vld [vmem:[%s1904_s5 + $0x108] sm:$0xff]  ;;  %v2015_v34 = vld [vmem:[%s1904_s5 + $0x110] sm:$0xff] }
  0x76   : > { %3143 = vst [vmem:[#allocation20_spill] sm:$0xff] %v1946_v11  ;;  %v2018_v35 = vld [vmem:[%s1904_s5 + $0x118] sm:$0xff]  ;;  %v2021_v36 = vld [vmem:[%s1904_s5 + $0x120] sm:$0xff]  ;;  %v2024_v37 = vld [vmem:[%s1904_s5 + $0x128] sm:$0xff] }
  0x77   : > { %3144 = vst [vmem:[#allocation21_spill] sm:$0xff] %v1949_v12  ;;  %v2027_v38 = vld [vmem:[%s1904_s5 + $0x130] sm:$0xff]  ;;  %v2030_v39 = vld [vmem:[%s1904_s5 + $0x138] sm:$0xff]  ;;  %v2033_v40 = vld [vmem:[%s1904_s5 + $0x140] sm:$0xff] }
  0x78   : > { %3145 = vst [vmem:[#allocation22_spill] sm:$0xff] %v1952_v13  ;;  %v2036_v41 = vld [vmem:[%s1904_s5 + $0x148] sm:$0xff]  ;;  %v2039_v42 = vld [vmem:[%s1904_s5 + $0x150] sm:$0xff]  ;;  %v2042_v43 = vld [vmem:[%s1904_s5 + $0x158] sm:$0xff] }
  0x79   : > { %3146 = vst [vmem:[#allocation23_spill] sm:$0xff] %v1955_v14  ;;  %v2045_v44 = vld [vmem:[%s1904_s5 + $0x160] sm:$0xff]  ;;  %v2048_v45 = vld [vmem:[%s1904_s5 + $0x168] sm:$0xff]  ;;  %v2051_v46 = vld [vmem:[%s1904_s5 + $0x170] sm:$0xff] }
  0x7a   : > { %3147 = vst [vmem:[#allocation24_spill] sm:$0xff] %v1958_v15  ;;  %v2054_v47 = vld [vmem:[%s1904_s5 + $0x178] sm:$0xff]  ;;  %v2057_v48 = vld [vmem:[%s1904_s5 + $0x180] sm:$0xff]  ;;  %v2060_v49 = vld [vmem:[%s1904_s5 + $0x188] sm:$0xff] }
  0x7b   : > { %3148 = vst [vmem:[#allocation25_spill] sm:$0xff] %v1961_v16  ;;  %v2063_v50 = vld [vmem:[%s1904_s5 + $0x190] sm:$0xff]  ;;  %v2066_v51 = vld [vmem:[%s1904_s5 + $0x198] sm:$0xff]  ;;  %v2069_v52 = vld [vmem:[%s1904_s5 + $0x1a0] sm:$0xff] }
  0x7c   : > { %3149 = vst [vmem:[#allocation26_spill] sm:$0xff] %v1964_v17  ;;  %v2072_v53 = vld [vmem:[%s1904_s5 + $0x1a8] sm:$0xff]  ;;  %v2075_v54 = vld [vmem:[%s1904_s5 + $0x1b0] sm:$0xff]  ;;  %v2078_v55 = vld [vmem:[%s1904_s5 + $0x1b8] sm:$0xff] }
  0x7d   : > { %3150 = vst [vmem:[#allocation27_spill] sm:$0xff] %v1967_v18  ;;  %v2081_v56 = vld [vmem:[%s1904_s5 + $0x1c0] sm:$0xff]  ;;  %v2084_v57 = vld [vmem:[%s1904_s5 + $0x1c8] sm:$0xff]  ;;  %v2087_v58 = vld [vmem:[%s1904_s5 + $0x1d0] sm:$0xff] }
  0x7e   : > { %3151 = vst [vmem:[#allocation28_spill] sm:$0xff] %v1970_v19  ;;  %v2090_v59 = vld [vmem:[%s1904_s5 + $0x1d8] sm:$0xff]  ;;  %v2093_v60 = vld [vmem:[%s1904_s5 + $0x1e0] sm:$0xff]  ;;  %v2096_v61 = vld [vmem:[%s1904_s5 + $0x1e8] sm:$0xff] }
  0x7f   : > { %3152 = vst [vmem:[#allocation29_spill] sm:$0xff] %v1973_v20  ;;  %v2099_v62 = vld [vmem:[%s1904_s5 + $0x1f0] sm:$0xff]  ;;  %v2102_v63 = vld [vmem:[%s1904_s5 + $0x1f8] sm:$0xff]  ;;  %v2105_v7 = vld [vmem:[%s1904_s5 + $0x200] sm:$0xff] }
  0x80   : > { %3153 = vst [vmem:[#allocation30_spill] sm:$0xff] %v1976_v21  ;;  %v2108_v6 = vld [vmem:[%s1904_s5 + $0x208] sm:$0xff]  ;;  %v2111_v15 = vld [vmem:[%s1904_s5 + $0x210] sm:$0xff]  ;;  %v2114_v14 = vld [vmem:[%s1904_s5 + $0x218] sm:$0xff] }
  0x81   : > { %3154 = vst [vmem:[#allocation31_spill] sm:$0xff] %v1979_v22  ;;  %v2120_v22 = vld [vmem:[%s1904_s5 + $0x228] sm:$0xff]  ;;  %v2159_v5 = vld [vmem:[%s1904_s5 + $0x290] sm:$0xff]  ;;  %v2162_v4 = vld [vmem:[%s1904_s5 + $0x298] sm:$0xff] }
  0x82   : > { %3155 = vst [vmem:[#allocation32_spill] sm:$0xff] %v1982_v23  ;;  %v2117_v23 = vld [vmem:[%s1904_s5 + $0x220] sm:$0xff]  ;;  %v2174_v12 = vld [vmem:[%s1904_s5 + $0x2b8] sm:$0xff]  ;;  %v2180_v20 = vld [vmem:[%s1904_s5 + $0x2c8] sm:$0xff] }
  0x83   : > { %3156 = vst [vmem:[#allocation33_spill] sm:$0xff] %v1985_v24  ;;  %v2165_v13 = vld [vmem:[%s1904_s5 + $0x2a0] sm:$0xff]  ;;  %v2276_v2 = vld [vmem:[%s1904_s5 + $0x3c8] sm:$0xff]  ;;  %v2279_v11 = vld [vmem:[%s1904_s5 + $0x3d0] sm:$0xff] }
  0x84   : > { %3157 = vst [vmem:[#allocation34_spill] sm:$0xff] %v1988_v25  ;;  %v2177_v21 = vld [vmem:[%s1904_s5 + $0x2c0] sm:$0xff]  ;;  %v2294_v10 = vld [vmem:[%s1904_s5 + $0x3f8] sm:$0xff]  ;;  %v2300_v18 = vld [vmem:[%s1904_s5 + $0x408] sm:$0xff] }
  0x85   : > { %3158 = vst [vmem:[#allocation35_spill] sm:$0xff] %v1991_v26  ;;  %v2273_v3 = vld [vmem:[%s1904_s5 + $0x3c0] sm:$0xff]  ;;  %v2318_v26 = vld [vmem:[%s1904_s5 + $0x438] sm:$0xff]  ;;  %v2636_v0 = vld [vmem:[%s1904_s5 + $0x788] sm:$0xff] }
  0x86   : > { %3159 = vst [vmem:[#allocation36_spill] sm:$0xff] %v1994_v27  ;;  %v2297_v19 = vld [vmem:[%s1904_s5 + $0x400] sm:$0xff]  ;;  %v2303_v27 = vld [vmem:[%s1904_s5 + $0x410] sm:$0xff]  ;;  %v2630_v1 = vld [vmem:[%s1904_s5 + $0x778] sm:$0xff] }
  0x87   : > { %3160 = vst [vmem:[#allocation37_spill] sm:$0xff] %v1997_v28  ;;  %v2186_v28 = vld [vmem:[%s1904_s5 + $0x2d8] sm:$0xff]  ;;  %v2657_v9 = vld [vmem:[%s1904_s5 + $0x7c0] sm:$0xff] }
  0x88   : > { %3161 = vst [vmem:[#allocation38_spill] sm:$0xff] %v2000_v29  ;;  %v2183_v29 = vld [vmem:[%s1904_s5 + $0x2d0] sm:$0xff]  ;;  %v2666_v8 = vld [vmem:[%s1904_s5 + $0x7d8] sm:$0xff] }
  0x89   : > { %3162 = vst [vmem:[#allocation39_spill] sm:$0xff] %v2003_v30  ;;  %v2126_v30 = vld [vmem:[%s1904_s5 + $0x238] sm:$0xff] }
  0x8a   : > { %3163 = vst [vmem:[#allocation40_spill] sm:$0xff] %v2006_v31  ;;  %v2123_v31 = vld [vmem:[%s1904_s5 + $0x230] sm:$0xff] }
  0x8b   : > { %3164 = vst [vmem:[#allocation41_spill] sm:$0xff] %v2015_v34  ;;  %v2342_v34 = vld [vmem:[%s1904_s5 + $0x478] sm:$0xff] }
  0x8c   : > { %3165 = vst [vmem:[#allocation42_spill] sm:$0xff] %v2018_v35  ;;  %v2321_v35 = vld [vmem:[%s1904_s5 + $0x440] sm:$0xff] }
  0x8d   : > { %3166 = vst [vmem:[#allocation43_spill] sm:$0xff] %v2021_v36  ;;  %v2198_v36 = vld [vmem:[%s1904_s5 + $0x2f8] sm:$0xff] }
  0x8e   : > { %3167 = vst [vmem:[#allocation44_spill] sm:$0xff] %v2024_v37  ;;  %v2189_v37 = vld [vmem:[%s1904_s5 + $0x2e0] sm:$0xff] }
  0x8f   : > { %3168 = vst [vmem:[#allocation45_spill] sm:$0xff] %v2027_v38  ;;  %v2132_v38 = vld [vmem:[%s1904_s5 + $0x248] sm:$0xff] }
  0x90   : > { %3169 = vst [vmem:[#allocation46_spill] sm:$0xff] %v2030_v39  ;;  %v2129_v39 = vld [vmem:[%s1904_s5 + $0x240] sm:$0xff] }
  0x91   : > { %3170 = vst [vmem:[#allocation47_spill] sm:$0xff] %v2039_v42  ;;  %v2366_v42 = vld [vmem:[%s1904_s5 + $0x4b8] sm:$0xff] }
  0x92   : > { %3171 = vst [vmem:[#allocation48_spill] sm:$0xff] %v2042_v43  ;;  %v2345_v43 = vld [vmem:[%s1904_s5 + $0x480] sm:$0xff] }
  0x93   : > { %3172 = vst [vmem:[#allocation49_spill] sm:$0xff] %v2045_v44  ;;  %v2204_v44 = vld [vmem:[%s1904_s5 + $0x308] sm:$0xff] }
  0x94   : > { %3173 = vst [vmem:[#allocation50_spill] sm:$0xff] %v2048_v45  ;;  %v2201_v45 = vld [vmem:[%s1904_s5 + $0x300] sm:$0xff] }
  0x95   : > { %3174 = vst [vmem:[#allocation51_spill] sm:$0xff] %v2051_v46  ;;  %v2138_v46 = vld [vmem:[%s1904_s5 + $0x258] sm:$0xff] }
  0x96   : > { %3175 = vst [vmem:[#allocation52_spill] sm:$0xff] %v2054_v47  ;;  %v2135_v47 = vld [vmem:[%s1904_s5 + $0x250] sm:$0xff] }
  0x97   : > { %3176 = vst [vmem:[#allocation53_spill] sm:$0xff] %v2063_v50  ;;  %v2390_v50 = vld [vmem:[%s1904_s5 + $0x4f8] sm:$0xff] }
  0x98   : > { %3177 = vst [vmem:[#allocation54_spill] sm:$0xff] %v2066_v51  ;;  %v2369_v51 = vld [vmem:[%s1904_s5 + $0x4c0] sm:$0xff] }
  0x99   : > { %3178 = vst [vmem:[#allocation55_spill] sm:$0xff] %v2069_v52  ;;  %v2210_v52 = vld [vmem:[%s1904_s5 + $0x318] sm:$0xff] }
  0x9a   : > { %3179 = vst [vmem:[#allocation56_spill] sm:$0xff] %v2072_v53  ;;  %v2207_v53 = vld [vmem:[%s1904_s5 + $0x310] sm:$0xff] }
  0x9b   : > { %3180 = vst [vmem:[#allocation57_spill] sm:$0xff] %v2075_v54  ;;  %v2144_v54 = vld [vmem:[%s1904_s5 + $0x268] sm:$0xff] }
  0x9c   : > { %3181 = vst [vmem:[#allocation58_spill] sm:$0xff] %v2078_v55  ;;  %v2141_v55 = vld [vmem:[%s1904_s5 + $0x260] sm:$0xff] }
  0x9d   : > { %3182 = vst [vmem:[#allocation59_spill] sm:$0xff] %v2087_v58  ;;  %v2414_v58 = vld [vmem:[%s1904_s5 + $0x538] sm:$0xff] }
  0x9e   : > { %3183 = vst [vmem:[#allocation60_spill] sm:$0xff] %v2090_v59  ;;  %v2393_v59 = vld [vmem:[%s1904_s5 + $0x500] sm:$0xff] }
  0x9f   : > { %3184 = vst [vmem:[#allocation61_spill] sm:$0xff] %v2093_v60  ;;  %v2222_v60 = vld [vmem:[%s1904_s5 + $0x338] sm:$0xff] }
  0xa0   : > { %3185 = vst [vmem:[#allocation62_spill] sm:$0xff] %v2096_v61  ;;  %v2213_v61 = vld [vmem:[%s1904_s5 + $0x320] sm:$0xff] }
  0xa1   : > { %3186 = vst [vmem:[#allocation63_spill] sm:$0xff] %v2099_v62  ;;  %v2150_v62 = vld [vmem:[%s1904_s5 + $0x278] sm:$0xff] }
  0xa2   : > { %3187 = vst [vmem:[#allocation64_spill] sm:$0xff] %v2102_v63  ;;  %v2147_v63 = vld [vmem:[%s1904_s5 + $0x270] sm:$0xff] }
  0xa3   : > { %3188 = vst [vmem:[#allocation65_spill] sm:$0xff] %v2105_v7 }
  0xa4   : > { %3189 = vst [vmem:[#allocation66_spill] sm:$0xff] %v2108_v6 }
  0xa5   : > { %3190 = vst [vmem:[#allocation67_spill] sm:$0xff] %v2111_v15  ;;  %v2438_v15 = vld [vmem:[%s1904_s5 + $0x578] sm:$0xff] }
  0xa6   : > { %3191 = vst [vmem:[#allocation68_spill] sm:$0xff] %v2114_v14  ;;  %v2417_v14 = vld [vmem:[%s1904_s5 + $0x540] sm:$0xff] }
  0xa7   : > { %3192 = vst [vmem:[#allocation69_spill] sm:$0xff] %v2117_v23  ;;  %v2228_v23 = vld [vmem:[%s1904_s5 + $0x348] sm:$0xff] }
  0xa8   : > { %3193 = vst [vmem:[#allocation70_spill] sm:$0xff] %v2120_v22  ;;  %v2225_v22 = vld [vmem:[%s1904_s5 + $0x340] sm:$0xff] }
  0xa9   : > { %3194 = vst [vmem:[#allocation71_spill] sm:$0xff] %v2123_v31  ;;  %v2156_v31 = vld [vmem:[%s1904_s5 + $0x288] sm:$0xff] }
  0xaa   : > { %3195 = vst [vmem:[#allocation72_spill] sm:$0xff] %v2126_v30  ;;  %v2153_v30 = vld [vmem:[%s1904_s5 + $0x280] sm:$0xff] }
  0xab   : > { %3196 = vst [vmem:[#allocation73_spill] sm:$0xff] %v2135_v47  ;;  %v2462_v47 = vld [vmem:[%s1904_s5 + $0x5b8] sm:$0xff] }
  0xac   : > { %3197 = vst [vmem:[#allocation74_spill] sm:$0xff] %v2138_v46  ;;  %v2441_v46 = vld [vmem:[%s1904_s5 + $0x580] sm:$0xff] }
  0xad   : > { %3198 = vst [vmem:[#allocation75_spill] sm:$0xff] %v2141_v55  ;;  %v2234_v55 = vld [vmem:[%s1904_s5 + $0x358] sm:$0xff] }
  0xae   : > { %3199 = vst [vmem:[#allocation76_spill] sm:$0xff] %v2144_v54  ;;  %v2231_v54 = vld [vmem:[%s1904_s5 + $0x350] sm:$0xff] }
  0xaf   : > { %3200 = vst [vmem:[#allocation77_spill] sm:$0xff] %v2147_v63  ;;  %v2168_v63 = vld [vmem:[%s1904_s5 + $0x2a8] sm:$0xff] }
  0xb0   : > { %3201 = vst [vmem:[#allocation78_spill] sm:$0xff] %v2150_v62  ;;  %v2171_v62 = vld [vmem:[%s1904_s5 + $0x2b0] sm:$0xff] }
  0xb1   : > { %3202 = vst [vmem:[#allocation79_spill] sm:$0xff] %v2159_v5  ;;  %v2486_v5 = vld [vmem:[%s1904_s5 + $0x5f8] sm:$0xff] }
  0xb2   : > { %3203 = vst [vmem:[#allocation80_spill] sm:$0xff] %v2162_v4  ;;  %v2465_v4 = vld [vmem:[%s1904_s5 + $0x5c0] sm:$0xff] }
  0xb3   : > { %3204 = vst [vmem:[#allocation81_spill] sm:$0xff] %v2165_v13  ;;  %v2246_v13 = vld [vmem:[%s1904_s5 + $0x378] sm:$0xff] }
  0xb4   : > { %3205 = vst [vmem:[#allocation82_spill] sm:$0xff] %v2168_v63  ;;  %v2237_v63 = vld [vmem:[%s1904_s5 + $0x360] sm:$0xff] }
  0xb5   : > { %3206 = vst [vmem:[#allocation83_spill] sm:$0xff] %v2171_v62  ;;  %v2192_v62 = vld [vmem:[%s1904_s5 + $0x2e8] sm:$0xff] }
  0xb6   : > { %3207 = vst [vmem:[#allocation84_spill] sm:$0xff] %v2174_v12  ;;  %v2195_v12 = vld [vmem:[%s1904_s5 + $0x2f0] sm:$0xff] }
  0xb7   : > { %3208 = vst [vmem:[#allocation85_spill] sm:$0xff] %v2177_v21 }
  0xb8   : > { %3209 = vst [vmem:[#allocation86_spill] sm:$0xff] %v2180_v20 }
  0xb9   : > { %3210 = vst [vmem:[#allocation87_spill] sm:$0xff] %v2183_v29  ;;  %v2510_v29 = vld [vmem:[%s1904_s5 + $0x638] sm:$0xff] }
  0xba   : > { %3211 = vst [vmem:[#allocation88_spill] sm:$0xff] %v2186_v28  ;;  %v2489_v28 = vld [vmem:[%s1904_s5 + $0x600] sm:$0xff] }
  0xbb   : > { %3212 = vst [vmem:[#allocation89_spill] sm:$0xff] %v2189_v37  ;;  %v2252_v37 = vld [vmem:[%s1904_s5 + $0x388] sm:$0xff] }
  0xbc   : > { %3213 = vst [vmem:[#allocation90_spill] sm:$0xff] %v2192_v62  ;;  %v2249_v62 = vld [vmem:[%s1904_s5 + $0x380] sm:$0xff] }
  0xbd   : > { %3214 = vst [vmem:[#allocation91_spill] sm:$0xff] %v2195_v12  ;;  %v2216_v12 = vld [vmem:[%s1904_s5 + $0x328] sm:$0xff] }
  0xbe   : > { %3215 = vst [vmem:[#allocation92_spill] sm:$0xff] %v2198_v36  ;;  %v2219_v36 = vld [vmem:[%s1904_s5 + $0x330] sm:$0xff] }
  0xbf   : > { %3216 = vst [vmem:[#allocation93_spill] sm:$0xff] %v2207_v53  ;;  %v2534_v53 = vld [vmem:[%s1904_s5 + $0x678] sm:$0xff] }
  0xc0   : > { %3217 = vst [vmem:[#allocation94_spill] sm:$0xff] %v2210_v52  ;;  %v2513_v52 = vld [vmem:[%s1904_s5 + $0x640] sm:$0xff] }
  0xc1   : > { %3218 = vst [vmem:[#allocation95_spill] sm:$0xff] %v2213_v61  ;;  %v2258_v61 = vld [vmem:[%s1904_s5 + $0x398] sm:$0xff] }
  0xc2   : > { %3219 = vst [vmem:[#allocation96_spill] sm:$0xff] %v2216_v12  ;;  %v2255_v12 = vld [vmem:[%s1904_s5 + $0x390] sm:$0xff] }
  0xc3   : > { %3220 = vst [vmem:[#allocation97_spill] sm:$0xff] %v2219_v36  ;;  %v2240_v36 = vld [vmem:[%s1904_s5 + $0x368] sm:$0xff] }
  0xc4   : > { %3221 = vst [vmem:[#allocation98_spill] sm:$0xff] %v2222_v60  ;;  %v2243_v60 = vld [vmem:[%s1904_s5 + $0x370] sm:$0xff] }
  0xc5   : > { %3222 = vst [vmem:[#allocation99_spill] sm:$0xff] %v2225_v22 }
  0xc6   : > { %3223 = vst [vmem:[#allocation100_spill] sm:$0xff] %v2228_v23 }
  0xc7   : > { %3224 = vst [vmem:[#allocation101_spill] sm:$0xff] %v2231_v54  ;;  %v2558_v54 = vld [vmem:[%s1904_s5 + $0x6b8] sm:$0xff] }
  0xc8   : > { %3225 = vst [vmem:[#allocation102_spill] sm:$0xff] %v2234_v55  ;;  %v2537_v55 = vld [vmem:[%s1904_s5 + $0x680] sm:$0xff] }
  0xc9   : > { %3226 = vst [vmem:[#allocation103_spill] sm:$0xff] %v2237_v63  ;;  %v2270_v63 = vld [vmem:[%s1904_s5 + $0x3b8] sm:$0xff] }
  0xca   : > { %3227 = vst [vmem:[#allocation104_spill] sm:$0xff] %v2240_v36  ;;  %v2261_v36 = vld [vmem:[%s1904_s5 + $0x3a0] sm:$0xff] }
  0xcb   : > { %3228 = vst [vmem:[#allocation105_spill] sm:$0xff] %v2243_v60  ;;  %v2264_v60 = vld [vmem:[%s1904_s5 + $0x3a8] sm:$0xff] }
  0xcc   : > { %3229 = vst [vmem:[#allocation106_spill] sm:$0xff] %v2246_v13  ;;  %v2267_v13 = vld [vmem:[%s1904_s5 + $0x3b0] sm:$0xff] }
  0xcd   : > { %3230 = vst [vmem:[#allocation107_spill] sm:$0xff] %v2255_v12  ;;  %v2582_v12 = vld [vmem:[%s1904_s5 + $0x6f8] sm:$0xff] }
  0xce   : > { %3231 = vst [vmem:[#allocation108_spill] sm:$0xff] %v2258_v61  ;;  %v2561_v61 = vld [vmem:[%s1904_s5 + $0x6c0] sm:$0xff] }
  0xcf   : > { %3232 = vst [vmem:[#allocation109_spill] sm:$0xff] %v2261_v36  ;;  %v2282_v36 = vld [vmem:[%s1904_s5 + $0x3d8] sm:$0xff] }
  0xd0   : > { %3233 = vst [vmem:[#allocation110_spill] sm:$0xff] %v2264_v60  ;;  %v2285_v60 = vld [vmem:[%s1904_s5 + $0x3e0] sm:$0xff] }
  0xd1   : > { %3234 = vst [vmem:[#allocation111_spill] sm:$0xff] %v2267_v13  ;;  %v2288_v13 = vld [vmem:[%s1904_s5 + $0x3e8] sm:$0xff] }
  0xd2   : > { %3235 = vst [vmem:[#allocation112_spill] sm:$0xff] %v2270_v63  ;;  %v2291_v63 = vld [vmem:[%s1904_s5 + $0x3f0] sm:$0xff] }
  0xd3   : > { %3236 = vst [vmem:[#allocation113_spill] sm:$0xff] %v2273_v3 }
  0xd4   : > { %3237 = vst [vmem:[#allocation114_spill] sm:$0xff] %v2276_v2 }
  0xd5   : > { %3238 = vst [vmem:[#allocation115_spill] sm:$0xff] %v2279_v11  ;;  %v2606_v11 = vld [vmem:[%s1904_s5 + $0x738] sm:$0xff] }
  0xd6   : > { %3239 = vst [vmem:[#allocation116_spill] sm:$0xff] %v2282_v36  ;;  %v2585_v36 = vld [vmem:[%s1904_s5 + $0x700] sm:$0xff] }
  0xd7   : > { %3240 = vst [vmem:[#allocation117_spill] sm:$0xff] %v2285_v60  ;;  %v2306_v60 = vld [vmem:[%s1904_s5 + $0x418] sm:$0xff] }
  0xd8   : > { %3241 = vst [vmem:[#allocation118_spill] sm:$0xff] %v2288_v13  ;;  %v2309_v13 = vld [vmem:[%s1904_s5 + $0x420] sm:$0xff] }
  0xd9   : > { %3242 = vst [vmem:[#allocation119_spill] sm:$0xff] %v2291_v63  ;;  %v2312_v63 = vld [vmem:[%s1904_s5 + $0x428] sm:$0xff] }
  0xda   : > { %3243 = vst [vmem:[#allocation120_spill] sm:$0xff] %v2294_v10  ;;  %v2315_v10 = vld [vmem:[%s1904_s5 + $0x430] sm:$0xff] }
  0xdb   : > { %3244 = vst [vmem:[#allocation121_spill] sm:$0xff] %v2297_v19  ;;  %v2633_v19 = vld [vmem:[%s1904_s5 + $0x780] sm:$0xff] }
  0xdc   : > { %3245 = vst [vmem:[#allocation122_spill] sm:$0xff] %v2300_v18  ;;  %v2609_v18 = vld [vmem:[%s1904_s5 + $0x740] sm:$0xff] }
  0xdd   : > { %3246 = vst [vmem:[#allocation123_spill] sm:$0xff] %v2303_v27  ;;  %v2324_v27 = vld [vmem:[%s1904_s5 + $0x448] sm:$0xff] }
  0xde   : > { %3247 = vst [vmem:[#allocation124_spill] sm:$0xff] %v2306_v60  ;;  %v2327_v60 = vld [vmem:[%s1904_s5 + $0x450] sm:$0xff] }
  0xdf   : > { %3248 = vst [vmem:[#allocation125_spill] sm:$0xff] %v2309_v13  ;;  %v2330_v13 = vld [vmem:[%s1904_s5 + $0x458] sm:$0xff] }
  0xe0   : > { %3249 = vst [vmem:[#allocation126_spill] sm:$0xff] %v2312_v63  ;;  %v2333_v63 = vld [vmem:[%s1904_s5 + $0x460] sm:$0xff] }
  0xe1   : > { %3250 = vst [vmem:[#allocation127_spill] sm:$0xff] %v2315_v10  ;;  %v2336_v10 = vld [vmem:[%s1904_s5 + $0x468] sm:$0xff] }
  0xe2   : > { %3251 = vst [vmem:[#allocation128_spill] sm:$0xff] %v2318_v26  ;;  %v2339_v26 = vld [vmem:[%s1904_s5 + $0x470] sm:$0xff] }
  0xe3   : > { %3252 = vst [vmem:[#allocation129_spill] sm:$0xff] %v2321_v35  ;;  %v2663_v35 = vld [vmem:[%s1904_s5 + $0x7d0] sm:$0xff] }
  0xe4   : > { %3253 = vst [vmem:[#allocation130_spill] sm:$0xff] %v2324_v27  ;;  %v2648_v27 = vld [vmem:[%s1904_s5 + $0x7a8] sm:$0xff] }
  0xe5   : > { %3254 = vst [vmem:[#allocation131_spill] sm:$0xff] %v2327_v60  ;;  %v2348_v60 = vld [vmem:[%s1904_s5 + $0x488] sm:$0xff] }
  0xe6   : > { %3255 = vst [vmem:[#allocation132_spill] sm:$0xff] %v2330_v13  ;;  %v2351_v13 = vld [vmem:[%s1904_s5 + $0x490] sm:$0xff] }
  0xe7   : > { %3256 = vst [vmem:[#allocation133_spill] sm:$0xff] %v2333_v63  ;;  %v2354_v63 = vld [vmem:[%s1904_s5 + $0x498] sm:$0xff] }
  0xe8   : > { %3257 = vst [vmem:[#allocation134_spill] sm:$0xff] %v2336_v10  ;;  %v2357_v10 = vld [vmem:[%s1904_s5 + $0x4a0] sm:$0xff] }
  0xe9   : > { %3258 = vst [vmem:[#allocation135_spill] sm:$0xff] %v2339_v26  ;;  %v2360_v26 = vld [vmem:[%s1904_s5 + $0x4a8] sm:$0xff] }
  0xea   : > { %3259 = vst [vmem:[#allocation136_spill] sm:$0xff] %v2342_v34  ;;  %v2363_v34 = vld [vmem:[%s1904_s5 + $0x4b0] sm:$0xff] }
  0xeb   : > { %3260 = vst [vmem:[#allocation137_spill] sm:$0xff] %v2348_v60  ;;  %v2669_v60 = vld [vmem:[%s1904_s5 + $0x7e0] sm:$0xff] }
  0xec   : > { %3261 = vst [vmem:[#allocation138_spill] sm:$0xff] %v2351_v13  ;;  %v2372_v13 = vld [vmem:[%s1904_s5 + $0x4c8] sm:$0xff] }
  0xed   : > { %3262 = vst [vmem:[#allocation139_spill] sm:$0xff] %v2354_v63  ;;  %v2375_v63 = vld [vmem:[%s1904_s5 + $0x4d0] sm:$0xff] }
  0xee   : > { %3263 = vst [vmem:[#allocation140_spill] sm:$0xff] %v2357_v10  ;;  %v2378_v10 = vld [vmem:[%s1904_s5 + $0x4d8] sm:$0xff] }
  0xef   : > { %3264 = vst [vmem:[#allocation141_spill] sm:$0xff] %v2360_v26  ;;  %v2381_v26 = vld [vmem:[%s1904_s5 + $0x4e0] sm:$0xff] }
  0xf0   : > { %3265 = vst [vmem:[#allocation142_spill] sm:$0xff] %v2363_v34  ;;  %v2384_v34 = vld [vmem:[%s1904_s5 + $0x4e8] sm:$0xff] }
  0xf1   : > { %3266 = vst [vmem:[#allocation143_spill] sm:$0xff] %v2366_v42  ;;  %v2387_v42 = vld [vmem:[%s1904_s5 + $0x4f0] sm:$0xff] }
  0xf2   : > { %3267 = vst [vmem:[#allocation144_spill] sm:$0xff] %v2372_v13 }
  0xf3   : > { %3268 = vst [vmem:[#allocation145_spill] sm:$0xff] %v2375_v63  ;;  %v2396_v63 = vld [vmem:[%s1904_s5 + $0x508] sm:$0xff] }
  0xf4   : > { %3269 = vst [vmem:[#allocation146_spill] sm:$0xff] %v2378_v10  ;;  %v2399_v10 = vld [vmem:[%s1904_s5 + $0x510] sm:$0xff] }
  0xf5   : > { %3270 = vst [vmem:[#allocation147_spill] sm:$0xff] %v2381_v26  ;;  %v2402_v26 = vld [vmem:[%s1904_s5 + $0x518] sm:$0xff] }
  0xf6   : > { %3271 = vst [vmem:[#allocation148_spill] sm:$0xff] %v2384_v34  ;;  %v2405_v34 = vld [vmem:[%s1904_s5 + $0x520] sm:$0xff] }
  0xf7   : > { %3272 = vst [vmem:[#allocation149_spill] sm:$0xff] %v2387_v42  ;;  %v2408_v42 = vld [vmem:[%s1904_s5 + $0x528] sm:$0xff] }
  0xf8   : > { %3273 = vst [vmem:[#allocation150_spill] sm:$0xff] %v2390_v50  ;;  %v2411_v50 = vld [vmem:[%s1904_s5 + $0x530] sm:$0xff] }
  0xf9   : > { %3274 = vst [vmem:[#allocation151_spill] sm:$0xff] %v2399_v10  ;;  %v2420_v10 = vld [vmem:[%s1904_s5 + $0x548] sm:$0xff] }
  0xfa   : > { %3275 = vst [vmem:[#allocation152_spill] sm:$0xff] %v2402_v26  ;;  %v2423_v26 = vld [vmem:[%s1904_s5 + $0x550] sm:$0xff] }
  0xfb   : > { %3276 = vst [vmem:[#allocation153_spill] sm:$0xff] %v2405_v34  ;;  %v2426_v34 = vld [vmem:[%s1904_s5 + $0x558] sm:$0xff] }
  0xfc   : > { %3277 = vst [vmem:[#allocation154_spill] sm:$0xff] %v2408_v42  ;;  %v2429_v42 = vld [vmem:[%s1904_s5 + $0x560] sm:$0xff] }
  0xfd   : > { %3278 = vst [vmem:[#allocation155_spill] sm:$0xff] %v2411_v50  ;;  %v2432_v50 = vld [vmem:[%s1904_s5 + $0x568] sm:$0xff] }
  0xfe   : > { %3279 = vst [vmem:[#allocation156_spill] sm:$0xff] %v2414_v58  ;;  %v2435_v58 = vld [vmem:[%s1904_s5 + $0x570] sm:$0xff] }
  0xff   : > { %3280 = vst [vmem:[#allocation157_spill] sm:$0xff] %v2417_v14 }
 0x100   : > { %3281 = vst [vmem:[#allocation158_spill] sm:$0xff] %v2420_v10 }
 0x101   : > { %3282 = vst [vmem:[#allocation159_spill] sm:$0xff] %v2423_v26  ;;  %v2444_v26 = vld [vmem:[%s1904_s5 + $0x588] sm:$0xff] }
 0x102   : > { %3283 = vst [vmem:[#allocation160_spill] sm:$0xff] %v2426_v34  ;;  %v2447_v34 = vld [vmem:[%s1904_s5 + $0x590] sm:$0xff] }
 0x103   : > { %3284 = vst [vmem:[#allocation161_spill] sm:$0xff] %v2429_v42  ;;  %v2450_v42 = vld [vmem:[%s1904_s5 + $0x598] sm:$0xff] }
 0x104   : > { %3285 = vst [vmem:[#allocation162_spill] sm:$0xff] %v2432_v50  ;;  %v2453_v50 = vld [vmem:[%s1904_s5 + $0x5a0] sm:$0xff] }
 0x105   : > { %3286 = vst [vmem:[#allocation163_spill] sm:$0xff] %v2435_v58  ;;  %v2456_v58 = vld [vmem:[%s1904_s5 + $0x5a8] sm:$0xff] }
 0x106   : > { %3287 = vst [vmem:[#allocation164_spill] sm:$0xff] %v2438_v15  ;;  %v2459_v15 = vld [vmem:[%s1904_s5 + $0x5b0] sm:$0xff] }
 0x107   : > { %3288 = vst [vmem:[#allocation165_spill] sm:$0xff] %v2444_v26 }
 0x108   : > { %3289 = vst [vmem:[#allocation166_spill] sm:$0xff] %v2447_v34  ;;  %v2468_v34 = vld [vmem:[%s1904_s5 + $0x5c8] sm:$0xff] }
 0x109   : > { %3290 = vst [vmem:[#allocation167_spill] sm:$0xff] %v2450_v42  ;;  %v2471_v42 = vld [vmem:[%s1904_s5 + $0x5d0] sm:$0xff] }
 0x10a   : > { %3291 = vst [vmem:[#allocation168_spill] sm:$0xff] %v2453_v50  ;;  %v2474_v50 = vld [vmem:[%s1904_s5 + $0x5d8] sm:$0xff] }
 0x10b   : > { %3292 = vst [vmem:[#allocation169_spill] sm:$0xff] %v2456_v58  ;;  %v2477_v58 = vld [vmem:[%s1904_s5 + $0x5e0] sm:$0xff] }
 0x10c   : > { %3293 = vst [vmem:[#allocation170_spill] sm:$0xff] %v2459_v15  ;;  %v2480_v15 = vld [vmem:[%s1904_s5 + $0x5e8] sm:$0xff] }
 0x10d   : > { %3294 = vst [vmem:[#allocation171_spill] sm:$0xff] %v2462_v47  ;;  %v2483_v47 = vld [vmem:[%s1904_s5 + $0x5f0] sm:$0xff] }
 0x10e   : > { %3295 = vst [vmem:[#allocation172_spill] sm:$0xff] %v2465_v4 }
 0x10f   : > { %3296 = vst [vmem:[#allocation173_spill] sm:$0xff] %v2471_v42  ;;  %v2492_v42 = vld [vmem:[%s1904_s5 + $0x608] sm:$0xff] }
 0x110   : > { %3297 = vst [vmem:[#allocation174_spill] sm:$0xff] %v2474_v50  ;;  %v2495_v50 = vld [vmem:[%s1904_s5 + $0x610] sm:$0xff] }
 0x111   : > { %3298 = vst [vmem:[#allocation175_spill] sm:$0xff] %v2477_v58  ;;  %v2498_v58 = vld [vmem:[%s1904_s5 + $0x618] sm:$0xff] }
 0x112   : > { %3299 = vst [vmem:[#allocation176_spill] sm:$0xff] %v2480_v15  ;;  %v2501_v15 = vld [vmem:[%s1904_s5 + $0x620] sm:$0xff] }
 0x113   : > { %3300 = vst [vmem:[#allocation177_spill] sm:$0xff] %v2483_v47  ;;  %v2504_v47 = vld [vmem:[%s1904_s5 + $0x628] sm:$0xff] }
 0x114   : > { %3301 = vst [vmem:[#allocation178_spill] sm:$0xff] %v2486_v5  ;;  %v2507_v5 = vld [vmem:[%s1904_s5 + $0x630] sm:$0xff] }
 0x115   : > { %3302 = vst [vmem:[#allocation179_spill] sm:$0xff] %v2489_v28 }
 0x116   : > { %3303 = vst [vmem:[#allocation180_spill] sm:$0xff] %v2495_v50  ;;  %v2516_v50 = vld [vmem:[%s1904_s5 + $0x648] sm:$0xff] }
 0x117   : > { %3304 = vst [vmem:[#allocation181_spill] sm:$0xff] %v2498_v58  ;;  %v2519_v58 = vld [vmem:[%s1904_s5 + $0x650] sm:$0xff] }
 0x118   : > { %3305 = vst [vmem:[#allocation182_spill] sm:$0xff] %v2501_v15  ;;  %v2522_v15 = vld [vmem:[%s1904_s5 + $0x658] sm:$0xff] }
 0x119   : > { %3306 = vst [vmem:[#allocation183_spill] sm:$0xff] %v2504_v47  ;;  %v2525_v47 = vld [vmem:[%s1904_s5 + $0x660] sm:$0xff] }
 0x11a   : > { %3307 = vst [vmem:[#allocation184_spill] sm:$0xff] %v2507_v5  ;;  %v2528_v5 = vld [vmem:[%s1904_s5 + $0x668] sm:$0xff] }
 0x11b   : > { %3308 = vst [vmem:[#allocation185_spill] sm:$0xff] %v2510_v29  ;;  %v2531_v29 = vld [vmem:[%s1904_s5 + $0x670] sm:$0xff] }
 0x11c   : > { %3309 = vst [vmem:[#allocation186_spill] sm:$0xff] %v2519_v58  ;;  %v2540_v58 = vld [vmem:[%s1904_s5 + $0x688] sm:$0xff] }
 0x11d   : > { %3310 = vst [vmem:[#allocation187_spill] sm:$0xff] %v2522_v15  ;;  %v2543_v15 = vld [vmem:[%s1904_s5 + $0x690] sm:$0xff] }
 0x11e   : > { %3311 = vst [vmem:[#allocation188_spill] sm:$0xff] %v2525_v47  ;;  %v2546_v47 = vld [vmem:[%s1904_s5 + $0x698] sm:$0xff] }
 0x11f   : > { %3312 = vst [vmem:[#allocation189_spill] sm:$0xff] %v2528_v5  ;;  %v2549_v5 = vld [vmem:[%s1904_s5 + $0x6a0] sm:$0xff] }
 0x120   : > { %3313 = vst [vmem:[#allocation190_spill] sm:$0xff] %v2531_v29  ;;  %v2552_v29 = vld [vmem:[%s1904_s5 + $0x6a8] sm:$0xff] }
 0x121   : > { %3314 = vst [vmem:[#allocation191_spill] sm:$0xff] %v2534_v53  ;;  %v2555_v53 = vld [vmem:[%s1904_s5 + $0x6b0] sm:$0xff] }
 0x122   : > { %3315 = vst [vmem:[#allocation192_spill] sm:$0xff] %v2543_v15  ;;  %v2564_v15 = vld [vmem:[%s1904_s5 + $0x6c8] sm:$0xff] }
 0x123   : > { %3316 = vst [vmem:[#allocation193_spill] sm:$0xff] %v2546_v47  ;;  %v2567_v47 = vld [vmem:[%s1904_s5 + $0x6d0] sm:$0xff] }
 0x124   : > { %3317 = vst [vmem:[#allocation194_spill] sm:$0xff] %v2549_v5  ;;  %v2570_v5 = vld [vmem:[%s1904_s5 + $0x6d8] sm:$0xff] }
 0x125   : > { %3318 = vst [vmem:[#allocation195_spill] sm:$0xff] %v2552_v29  ;;  %v2573_v29 = vld [vmem:[%s1904_s5 + $0x6e0] sm:$0xff] }
 0x126   : > { %3319 = vst [vmem:[#allocation196_spill] sm:$0xff] %v2555_v53  ;;  %v2576_v53 = vld [vmem:[%s1904_s5 + $0x6e8] sm:$0xff] }
 0x127   : > { %3320 = vst [vmem:[#allocation197_spill] sm:$0xff] %v2558_v54  ;;  %v2579_v54 = vld [vmem:[%s1904_s5 + $0x6f0] sm:$0xff] }
 0x128   : > { %3321 = vst [vmem:[#allocation198_spill] sm:$0xff] %v2564_v15 }
 0x129   : > { %3322 = vst [vmem:[#allocation199_spill] sm:$0xff] %v2567_v47  ;;  %v2588_v47 = vld [vmem:[%s1904_s5 + $0x708] sm:$0xff] }
 0x12a   : > { %3323 = vst [vmem:[#allocation200_spill] sm:$0xff] %v2570_v5  ;;  %v2591_v5 = vld [vmem:[%s1904_s5 + $0x710] sm:$0xff] }
 0x12b   : > { %3324 = vst [vmem:[#allocation201_spill] sm:$0xff] %v2573_v29  ;;  %v2594_v29 = vld [vmem:[%s1904_s5 + $0x718] sm:$0xff] }
 0x12c   : > { %3325 = vst [vmem:[#allocation202_spill] sm:$0xff] %v2576_v53  ;;  %v2597_v53 = vld [vmem:[%s1904_s5 + $0x720] sm:$0xff] }
 0x12d   : > { %3326 = vst [vmem:[#allocation203_spill] sm:$0xff] %v2579_v54  ;;  %v2600_v54 = vld [vmem:[%s1904_s5 + $0x728] sm:$0xff] }
 0x12e   : > { %3327 = vst [vmem:[#allocation204_spill] sm:$0xff] %v2582_v12  ;;  %v2603_v12 = vld [vmem:[%s1904_s5 + $0x730] sm:$0xff] }
 0x12f   : > { %3328 = vst [vmem:[#allocation205_spill] sm:$0xff] %v2591_v5  ;;  %v2612_v5 = vld [vmem:[%s1904_s5 + $0x748] sm:$0xff] }
 0x130   : > { %3329 = vst [vmem:[#allocation206_spill] sm:$0xff] %v2594_v29  ;;  %v2615_v29 = vld [vmem:[%s1904_s5 + $0x750] sm:$0xff] }
 0x131   : > { %3330 = vst [vmem:[#allocation207_spill] sm:$0xff] %v2597_v53  ;;  %v2618_v53 = vld [vmem:[%s1904_s5 + $0x758] sm:$0xff] }
 0x132   : > { %3331 = vst [vmem:[#allocation208_spill] sm:$0xff] %v2600_v54  ;;  %v2621_v54 = vld [vmem:[%s1904_s5 + $0x760] sm:$0xff] }
 0x133   : > { %3332 = vst [vmem:[#allocation209_spill] sm:$0xff] %v2603_v12  ;;  %v2624_v12 = vld [vmem:[%s1904_s5 + $0x768] sm:$0xff] }
 0x134   : > { %3333 = vst [vmem:[#allocation210_spill] sm:$0xff] %v2606_v11  ;;  %v2627_v11 = vld [vmem:[%s1904_s5 + $0x770] sm:$0xff] }
 0x135   : > { %3334 = vst [vmem:[#allocation211_spill] sm:$0xff] %v2609_v18 }
 0x136   : > { %3335 = vst [vmem:[#allocation212_spill] sm:$0xff] %v2612_v5 }
 0x137   : > { %3336 = vst [vmem:[#allocation213_spill] sm:$0xff] %v2615_v29  ;;  %v2639_v29 = vld [vmem:[%s1904_s5 + $0x790] sm:$0xff] }
 0x138   : > { %3337 = vst [vmem:[#allocation214_spill] sm:$0xff] %v2618_v53  ;;  %v2642_v53 = vld [vmem:[%s1904_s5 + $0x798] sm:$0xff] }
 0x139   : > { %3338 = vst [vmem:[#allocation215_spill] sm:$0xff] %v2621_v54  ;;  %v2645_v54 = vld [vmem:[%s1904_s5 + $0x7a0] sm:$0xff] }
 0x13a   : > { %3339 = vst [vmem:[#allocation216_spill] sm:$0xff] %v2624_v12  ;;  %v2651_v12 = vld [vmem:[%s1904_s5 + $0x7b0] sm:$0xff] }
 0x13b   : > { %3340 = vst [vmem:[#allocation217_spill] sm:$0xff] %v2627_v11  ;;  %v2654_v11 = vld [vmem:[%s1904_s5 + $0x7b8] sm:$0xff] }
 0x13c   : > { %3341 = vst [vmem:[#allocation218_spill] sm:$0xff] %v2630_v1  ;;  %v2660_v1 = vld [vmem:[%s1904_s5 + $0x7c8] sm:$0xff] }
 0x13d   : > { %3342 = vst [vmem:[#allocation219_spill] sm:$0xff] %v2633_v19 }
 0x13e   : > { %3343 = vst [vmem:[#allocation220_spill] sm:$0xff] %v2636_v0 }
 0x13f   : > { %3344 = vst [vmem:[#allocation221_spill] sm:$0xff] %v2639_v29  ;;  %v2672_v29 = vld [vmem:[%s1904_s5 + $0x7e8] sm:$0xff] }
 0x140   : > { %3345 = vst [vmem:[#allocation222_spill] sm:$0xff] %v2642_v53  ;;  %v2675_v53 = vld [vmem:[%s1904_s5 + $0x7f0] sm:$0xff] }
 0x141   : > { %3346 = vst [vmem:[#allocation223_spill] sm:$0xff] %v2645_v54  ;;  %v2678_v54 = vld [vmem:[%s1904_s5 + $0x7f8] sm:$0xff] }
 0x142   : > { %3347 = vst [vmem:[#allocation224_spill] sm:$0xff] %v2648_v27  ;;  %v2691_v27 = vmov 0.0  }
 0x143   : > { %3348 = vst [vmem:[#allocation225_spill] sm:$0xff] %v2651_v12  ;;  %v2689_v12 = vmov 0.0  }
 0x144   : > { %3349 = vst [vmem:[#allocation226_spill] sm:$0xff] %v2654_v11  ;;  %v2683_v11 = vld [vmem:[%s3125_s0] sm:$0xff] }
 0x145   : > { %3350 = vst [vmem:[#allocation227_spill] sm:$0xff] %v2657_v9 }
 0x146   : > { %3351 = vst [vmem:[#allocation228_spill] sm:$0xff] %v2660_v1 }
 0x147   : > { %3352 = vst [vmem:[#allocation229_spill] sm:$0xff] %v2666_v8  ;;  %v2693_v8 = vmov 0.0  }
 0x148   : > { %3353 = vst [vmem:[#allocation230_spill] sm:$0xff] %v2669_v60  ;;  %v2695_v60 = vmov 0.0  }
 0x149   : > { %3354 = vst [vmem:[#allocation231_spill] sm:$0xff] %v2672_v29 }
 0x14a   : > { %3355 = vst [vmem:[#allocation232_spill] sm:$0xff] %v2683_v11 }
 0x14b LB: >> { %v3356_v3 = vld [vmem:[#allocation113_spill] sm:$0xff]  ;;  %v3358_v2 = vld [vmem:[#allocation114_spill] sm:$0xff]  ;;  %v3360_v19 = vld [vmem:[#allocation219_spill] sm:$0xff]  ;;  %s697_s11 = ssub.s32 7, %s1667_s10  ;;  %s696_s12 = smul.u32 %s1667_s10, %s676_s23  ;;  %s1667_s10 = sphi %s2697_s10, %s691_s10   ;;  %v1663_v60 = vphi %v2695_v60, %v1185_v60   ;;  %v1659_v8 = vphi %v2693_v8, %v1186_v8   ;;  %v1655_v27 = vphi %v2691_v27, %v3057_v27   ;;  %v1651_v12 = vphi %v2689_v12, %v3060_v12  }
 0x14c   : >> { %711 = vmatpush.msra.mxu0 %v3356_v3  ;;  %v3357_v9 = vld [vmem:[#allocation227_spill] sm:$0xff]  ;;  %751 = vmatpush.msra.mxu2 %v3358_v2  ;;  %v3361_v0 = vld [vmem:[#allocation220_spill] sm:$0xff]  ;;  %v3366_v21 = vld [vmem:[#allocation85_spill] sm:$0xff]  ;;  %s698_s18 = smul.u32 %s1639_s15, %s697_s11  ;;  %s691_s10 = sadd.s32 1, %s1667_s10  }
 0x14d   : >> { %731 = vmatpush.msra.mxu1 %v3357_v9  ;;  %v3359_v1 = vld [vmem:[#allocation228_spill] sm:$0xff]  ;;  %v3362_v22 = vld [vmem:[#allocation99_spill] sm:$0xff]  ;;  %v3367_v20 = vld [vmem:[#allocation86_spill] sm:$0xff]  ;;  %p688_p0 = scmp.ge.s32.totalorder %s691_s10, 8  }
 0x14e   : >> { %771 = vmatpush.msra.mxu3 %v3359_v1  ;;  %712 = vmatpush.msra.mxu0 %v2249_v62  ;;  %v3363_v18 = vld [vmem:[#allocation211_spill] sm:$0xff]  ;;  %v3364_v23 = vld [vmem:[#allocation100_spill] sm:$0xff]  ;;  %v3368_v15 = vld [vmem:[#allocation198_spill] sm:$0xff]  ;;  %s2939_s20 = sadd.s32 %s698_s18, %s696_s12 }
 0x14f   : >> { %732 = vmatpush.msra.mxu1 %v3360_v19  ;;  %752 = vmatpush.msra.mxu2 %v2252_v37  ;;  %v3365_v5 = vld [vmem:[#allocation212_spill] sm:$0xff]  ;;  %v3369_v7 = vld [vmem:[#allocation65_spill] sm:$0xff]  ;;  %v3370_v28 = vld [vmem:[#allocation179_spill] sm:$0xff]  ;;  %s1418_s22 = sshll.u32 %s2939_s20, 6  ;;  %s1419_s27 = sshll.u32 %s2939_s20, 4 }
 0x150   : >> { %772 = vmatpush.msra.mxu3 %v3361_v0  ;;  %713 = vmatpush.msra.mxu0 %v3362_v22  ;;  %v3371_v6 = vld [vmem:[#allocation66_spill] sm:$0xff]  ;;  %v3372_v4 = vld [vmem:[#allocation172_spill] sm:$0xff]  ;;  %v3373_v26 = vld [vmem:[#allocation165_spill] sm:$0xff]  ;;  %s2997_s26 = scalar_lea.vmem %s1901_s4, %s1418_s22 [#allocation4]  ;;  %s1195_s28 = scalar_lea.vmem %s2687_s9, %s1419_s27 [#allocation7] }
 0x151   : >> { %733 = vmatpush.msra.mxu1 %v3363_v18  ;;  %753 = vmatpush.msra.mxu2 %v3364_v23  ;;  %v3374_v14 = vld [vmem:[#allocation157_spill] sm:$0xff]  ;;  %v3375_v10 = vld [vmem:[#allocation158_spill] sm:$0xff]  ;;  %v3378_v13 = vld [vmem:[#allocation144_spill] sm:$0xff] }
 0x152   : >> { %773 = vmatpush.msra.mxu3 %v3365_v5  ;;  %714 = vmatpush.msra.mxu0 %v2201_v45  ;;  %v3376_v24 = vld [vmem:[#allocation33_spill] sm:$0xff]  ;;  %v3377_v25 = vld [vmem:[#allocation34_spill] sm:$0xff]  ;;  %v3456_v29 = vld [vmem:[#allocation231_spill] sm:$0xff] }
 0x153   : >> { %734 = vmatpush.msra.mxu1 %v2585_v36  ;;  %754 = vmatpush.msra.mxu2 %v2204_v44  ;;  %v3379_v16 = vld [vmem:[#allocation25_spill] sm:$0xff]  ;;  %v3380_v17 = vld [vmem:[#allocation26_spill] sm:$0xff]  ;;  %v3543_v11 = vld [vmem:[#allocation232_spill] sm:$0xff] }
 0x154   : >> { %774 = vmatpush.msra.mxu3 %v2588_v47  ;;  %715 = vmatpush.msra.mxu0 %v3366_v21  ;;  %v3381_v0 = vld [vmem:[#allocation137_spill] sm:$0xff]  ;;  %v3384_v3 = vld [vmem:[#allocation18_spill] sm:$0xff] }
 0x155   : >> { %735 = vmatpush.msra.mxu1 %v2561_v61  ;;  %755 = vmatpush.msra.mxu2 %v3367_v20  ;;  %v3382_v1 = vld [vmem:[#allocation17_spill] sm:$0xff]  ;;  %v3389_v9 = vld [vmem:[#allocation122_spill] sm:$0xff] }
 0x156   : >> { %775 = vmatpush.msra.mxu3 %v3368_v15  ;;  %716 = vmatpush.msra.mxu0 %v2153_v30  ;;  %v3383_v2 = vld [vmem:[#allocation129_spill] sm:$0xff] }
 0x157   : >> { %736 = vmatpush.msra.mxu1 %v2537_v55  ;;  %756 = vmatpush.msra.mxu2 %v2156_v31  ;;  %v3386_v5 = vld [vmem:[#allocation9_spill] sm:$0xff] }
 0x158   : >> { %776 = vmatpush.msra.mxu3 %v2540_v58  ;;  %717 = vmatpush.msra.mxu0 %v2129_v39 }
 0x159   : >> { %737 = vmatpush.msra.mxu1 %v2513_v52  ;;  %757 = vmatpush.msra.mxu2 %v2132_v38 }
 0x15a   : >> { %777 = vmatpush.msra.mxu3 %v2516_v50  ;;  %718 = vmatpush.msra.mxu0 %v3369_v7  ;;  %v3388_v7 = vld [vmem:[#allocation10_spill] sm:$0xff] }
 0x15b   : >> { %738 = vmatpush.msra.mxu1 %v3370_v28  ;;  %758 = vmatpush.msra.mxu2 %v3371_v6  ;;  %v3387_v6 = vld [vmem:[#allocation121_spill] sm:$0xff] }
 0x15c   : >> { %778 = vmatpush.msra.mxu3 %v2492_v42  ;;  %719 = vmatpush.msra.mxu0 %v2081_v56 }
 0x15d   : >> { %739 = vmatpush.msra.mxu1 %v3372_v4  ;;  %759 = vmatpush.msra.mxu2 %v2084_v57  ;;  %v3385_v4 = vld [vmem:[#allocation130_spill] sm:$0xff] }
 0x15e   : >> { %779 = vmatpush.msra.mxu3 %v2468_v34  ;;  %720 = vmatpush.msra.mxu0 %v2057_v48 }
 0x15f   : >> { %740 = vmatpush.msra.mxu1 %v2441_v46  ;;  %760 = vmatpush.msra.mxu2 %v2060_v49 }
 0x160   : >> { %780 = vmatpush.msra.mxu3 %v3373_v26  ;;  %721 = vmatpush.msra.mxu0 %v2033_v40 }
 0x161   : >> { %741 = vmatpush.msra.mxu1 %v3374_v14  ;;  %761 = vmatpush.msra.mxu2 %v2036_v41  ;;  %v3550_v14 = vld [vmem:[#allocation64_spill] sm:$0xff] }
 0x162   : >> { %781 = vmatpush.msra.mxu3 %v3375_v10  ;;  %722 = vmatpush.msra.mxu0 %v2009_v32  ;;  %v3390_v10 = vld [vmem:[#allocation115_spill] sm:$0xff] }
 0x163   : >> { %742 = vmatpush.msra.mxu1 %v2393_v59  ;;  %762 = vmatpush.msra.mxu2 %v2012_v33 }
 0x164   : >> { %782 = vmatpush.msra.mxu3 %v2396_v63  ;;  %723 = vmatpush.msra.mxu0 %v3376_v24 }
 0x165   : >> { %743 = vmatpush.msra.mxu1 %v2369_v51  ;;  %763 = vmatpush.msra.mxu2 %v3377_v25 }
 0x166   : >> { %783 = vmatpush.msra.mxu3 %v3378_v13  ;;  %724 = vmatpush.msra.mxu0 %v3379_v16  ;;  %v3401_v13 = vld [vmem:[#allocation93_spill] sm:$0xff]  ;;  %v705_v16 = vld [vmem:[%s2997_s26 + $0x10] sm:$0xff] }
 0x167   : >> { %744 = vmatpush.msra.mxu1 %v2345_v43  ;;  %764 = vmatpush.msra.mxu2 %v3380_v17 }
 0x168   : >> { %784 = vmatpush.msra.mxu3 %v3381_v0  ;;  %725 = vmatpush.msra.mxu0 %v3382_v1  ;;  %v3391_v0 = vld [vmem:[#allocation116_spill] sm:$0xff]  ;;  %v3392_v1 = vld [vmem:[#allocation229_spill] sm:$0xff] }
 0x169   : >> { %745 = vmatpush.msra.mxu1 %v3383_v2  ;;  %765 = vmatpush.msra.mxu2 %v3384_v3  ;;  %v3393_v2 = vld [vmem:[#allocation107_spill] sm:$0xff]  ;;  %v3394_v3 = vld [vmem:[#allocation221_spill] sm:$0xff] }
 0x16a   : >> { %785 = vmatpush.msra.mxu3 %v3385_v4  ;;  %726 = vmatpush.msra.mxu0 %v3386_v5  ;;  %v3395_v4 = vld [vmem:[#allocation108_spill] sm:$0xff]  ;;  %v3396_v5 = vld [vmem:[#allocation222_spill] sm:$0xff] }
 0x16b   : >> { %746 = vmatpush.msra.mxu1 %v3387_v6  ;;  %766 = vmatpush.msra.mxu2 %v3388_v7  ;;  %v3397_v6 = vld [vmem:[#allocation101_spill] sm:$0xff] }
 0x16c   : >> { %786 = vmatpush.msra.mxu3 %v3389_v9  ;;  %791 = vmatpush.msrb.mxu0 %v3390_v10  ;;  %v3398_v7 = vld [vmem:[#allocation213_spill] sm:$0xff]  ;;  %v3399_v9 = vld [vmem:[#allocation102_spill] sm:$0xff] }
 0x16d   : >> { %811 = vmatpush.msrb.mxu1 %v2663_v35  ;;  %831 = vmatpush.msrb.mxu2 %v3391_v0  ;;  %v3400_v10 = vld [vmem:[#allocation214_spill] sm:$0xff]  ;;  %v3402_v0 = vld [vmem:[#allocation205_spill] sm:$0xff] }
 0x16e   : >> { %851 = vmatpush.msrb.mxu3 %v3392_v1  ;;  %792 = vmatpush.msrb.mxu0 %v3393_v2  ;;  %v3403_v1 = vld [vmem:[#allocation94_spill] sm:$0xff] }
 0x16f   : >> { %812 = vmatpush.msrb.mxu1 %v3394_v3  ;;  %832 = vmatpush.msrb.mxu2 %v3395_v4  ;;  %v3404_v2 = vld [vmem:[#allocation206_spill] sm:$0xff]  ;;  %v3405_v3 = vld [vmem:[#allocation87_spill] sm:$0xff] }
 0x170   : >> { %852 = vmatpush.msrb.mxu3 %v3396_v5  ;;  %793 = vmatpush.msrb.mxu0 %v3397_v6  ;;  %v3406_v4 = vld [vmem:[#allocation199_spill] sm:$0xff]  ;;  %v3407_v5 = vld [vmem:[#allocation88_spill] sm:$0xff] }
 0x171   : >> { %813 = vmatpush.msrb.mxu1 %v3398_v7  ;;  %833 = vmatpush.msrb.mxu2 %v3399_v9  ;;  %v3408_v6 = vld [vmem:[#allocation200_spill] sm:$0xff]  ;;  %v3409_v7 = vld [vmem:[#allocation79_spill] sm:$0xff] }
 0x172   : >> { %853 = vmatpush.msrb.mxu3 %v3400_v10  ;;  %794 = vmatpush.msrb.mxu0 %v3401_v13  ;;  %v3410_v9 = vld [vmem:[#allocation192_spill] sm:$0xff]  ;;  %v3412_v13 = vld [vmem:[#allocation193_spill] sm:$0xff] }
 0x173   : >> { %814 = vmatpush.msrb.mxu1 %v3402_v0  ;;  %834 = vmatpush.msrb.mxu2 %v3403_v1  ;;  %v3411_v10 = vld [vmem:[#allocation80_spill] sm:$0xff]  ;;  %v3413_v0 = vld [vmem:[#allocation73_spill] sm:$0xff]  ;;  %v3414_v1 = vld [vmem:[#allocation186_spill] sm:$0xff] }
 0x174   : >> { %854 = vmatpush.msrb.mxu3 %v3404_v2  ;;  %795 = vmatpush.msrb.mxu0 %v3405_v3  ;;  %v3415_v2 = vld [vmem:[#allocation74_spill] sm:$0xff]  ;;  %v3416_v3 = vld [vmem:[#allocation187_spill] sm:$0xff] }
 0x175   : >> { %815 = vmatpush.msrb.mxu1 %v3406_v4  ;;  %835 = vmatpush.msrb.mxu2 %v3407_v5  ;;  %v3417_v4 = vld [vmem:[#allocation67_spill] sm:$0xff]  ;;  %v3418_v5 = vld [vmem:[#allocation180_spill] sm:$0xff] }
 0x176   : >> { %855 = vmatpush.msrb.mxu3 %v3408_v6  ;;  %796 = vmatpush.msrb.mxu0 %v3409_v7  ;;  %v3419_v6 = vld [vmem:[#allocation68_spill] sm:$0xff]  ;;  %v3420_v7 = vld [vmem:[#allocation181_spill] sm:$0xff] }
 0x177   : >> { %816 = vmatpush.msrb.mxu1 %v3410_v9  ;;  %836 = vmatpush.msrb.mxu2 %v3411_v10  ;;  %v3421_v9 = vld [vmem:[#allocation59_spill] sm:$0xff]  ;;  %v3422_v10 = vld [vmem:[#allocation173_spill] sm:$0xff] }
 0x178   : >> { %856 = vmatpush.msrb.mxu3 %v3412_v13  ;;  %797 = vmatpush.msrb.mxu0 %v3413_v0  ;;  %v3423_v13 = vld [vmem:[#allocation60_spill] sm:$0xff]  ;;  %v3424_v0 = vld [vmem:[#allocation174_spill] sm:$0xff] }
 0x179   : >> { %817 = vmatpush.msrb.mxu1 %v3414_v1  ;;  %837 = vmatpush.msrb.mxu2 %v3415_v2  ;;  %v3425_v1 = vld [vmem:[#allocation53_spill] sm:$0xff]  ;;  %v3426_v2 = vld [vmem:[#allocation166_spill] sm:$0xff] }
 0x17a   : >> { %857 = vmatpush.msrb.mxu3 %v3416_v3  ;;  %798 = vmatpush.msrb.mxu0 %v3417_v4  ;;  %v3427_v3 = vld [vmem:[#allocation54_spill] sm:$0xff]  ;;  %v3428_v4 = vld [vmem:[#allocation167_spill] sm:$0xff] }
 0x17b   : >> { %818 = vmatpush.msrb.mxu1 %v3418_v5  ;;  %838 = vmatpush.msrb.mxu2 %v3419_v6  ;;  %v3429_v5 = vld [vmem:[#allocation47_spill] sm:$0xff] }
 0x17c   : >> { %858 = vmatpush.msrb.mxu3 %v3420_v7  ;;  %799 = vmatpush.msrb.mxu0 %v3421_v9  ;;  %v3430_v6 = vld [vmem:[#allocation159_spill] sm:$0xff]  ;;  %v3431_v7 = vld [vmem:[#allocation48_spill] sm:$0xff] }
 0x17d   : >> { %819 = vmatpush.msrb.mxu1 %v3422_v10  ;;  %839 = vmatpush.msrb.mxu2 %v3423_v13  ;;  %v3432_v9 = vld [vmem:[#allocation160_spill] sm:$0xff]  ;;  %v3433_v10 = vld [vmem:[#allocation41_spill] sm:$0xff]  ;;  %v3434_v13 = vld [vmem:[#allocation151_spill] sm:$0xff] }
 0x17e   : >> { %859 = vmatpush.msrb.mxu3 %v3424_v0  ;;  %767 = vmatmul.f32.vlgmr.msra.gmra.mxu2 %v1663_v60  ;;  %v3435_v0 = vld [vmem:[#allocation42_spill] sm:$0xff] }
 0x17f   : >> { %787 = vmatmul.f32.vlgmr.msra.gmra.mxu3 %v1659_v8  ;;  %800 = vmatpush.msrb.mxu0 %v3425_v1  ;;  %v3436_v1 = vld [vmem:[#allocation152_spill] sm:$0xff] }
 0x180   : >> { %820 = vmatpush.msrb.mxu1 %v3426_v2  ;;  %840 = vmatpush.msrb.mxu2 %v3427_v3  ;;  %v3437_v2 = vld [vmem:[#allocation35_spill] sm:$0xff]  ;;  %v3438_v3 = vld [vmem:[#allocation145_spill] sm:$0xff] }
 0x181   : >> { %860 = vmatpush.msrb.mxu3 %v3428_v4  ;;  %801 = vmatpush.msrb.mxu0 %v3429_v5  ;;  %v3439_v4 = vld [vmem:[#allocation36_spill] sm:$0xff]  ;;  %v3440_v5 = vld [vmem:[#allocation146_spill] sm:$0xff] }
 0x182   : >> { %821 = vmatpush.msrb.mxu1 %v3430_v6  ;;  %841 = vmatpush.msrb.mxu2 %v3431_v7  ;;  %v3441_v6 = vld [vmem:[#allocation27_spill] sm:$0xff]  ;;  %v3442_v7 = vld [vmem:[#allocation138_spill] sm:$0xff] }
 0x183   : >> { %861 = vmatpush.msrb.mxu3 %v3432_v9  ;;  %802 = vmatpush.msrb.mxu0 %v3433_v10  ;;  %v3443_v9 = vld [vmem:[#allocation28_spill] sm:$0xff]  ;;  %v3444_v10 = vld [vmem:[#allocation139_spill] sm:$0xff] }
 0x184   : >> { %822 = vmatpush.msrb.mxu1 %v3434_v13  ;;  %842 = vmatpush.msrb.mxu2 %v3435_v0  ;;  %v3445_v13 = vld [vmem:[#allocation19_spill] sm:$0xff] }
 0x185   : >> { %862 = vmatpush.msrb.mxu3 %v3436_v1  ;;  %727 = vmatmul.f32.vlgmr.msra.gmra.mxu0 %v1663_v60  ;;  %v3446_v0 = vld [vmem:[#allocation131_spill] sm:$0xff]  ;;  %v3447_v1 = vld [vmem:[#allocation20_spill] sm:$0xff] }
 0x186   : >> { %747 = vmatmul.f32.vlgmr.msra.gmra.mxu1 %v1659_v8  ;;  %803 = vmatpush.msrb.mxu0 %v3437_v2  ;;  %v3448_v2 = vld [vmem:[#allocation132_spill] sm:$0xff] }
 0x187   : >> { %823 = vmatpush.msrb.mxu1 %v3438_v3  ;;  %843 = vmatpush.msrb.mxu2 %v3439_v4  ;;  %v3449_v3 = vld [vmem:[#allocation11_spill] sm:$0xff] }
 0x188   : >> { %863 = vmatpush.msrb.mxu3 %v3440_v5  ;;  %804 = vmatpush.msrb.mxu0 %v3441_v6  ;;  %v3450_v4 = vld [vmem:[#allocation123_spill] sm:$0xff]  ;;  %v3451_v5 = vld [vmem:[#allocation12_spill] sm:$0xff] }
 0x189   : >> { %824 = vmatpush.msrb.mxu1 %v3442_v7  ;;  %844 = vmatpush.msrb.mxu2 %v3443_v9  ;;  %v3452_v6 = vld [vmem:[#allocation124_spill] sm:$0xff]  ;;  %v3453_v7 = vld [vmem:[#allocation117_spill] sm:$0xff]  ;;  %v3454_v9 = vld [vmem:[#allocation230_spill] sm:$0xff] }
 0x18a   : >> { %864 = vmatpush.msrb.mxu3 %v3444_v10  ;;  %805 = vmatpush.msrb.mxu0 %v3445_v13  ;;  %v3455_v10 = vld [vmem:[#allocation118_spill] sm:$0xff]  ;;  %v3457_v13 = vld [vmem:[#allocation109_spill] sm:$0xff] }
 0x18b   : >> { %825 = vmatpush.msrb.mxu1 %v3446_v0  ;;  %845 = vmatpush.msrb.mxu2 %v3447_v1  ;;  %v3458_v0 = vld [vmem:[#allocation223_spill] sm:$0xff]  ;;  %v3459_v1 = vld [vmem:[#allocation110_spill] sm:$0xff] }
 0x18c   : >> { %865 = vmatpush.msrb.mxu3 %v3448_v2  ;;  %806 = vmatpush.msrb.mxu0 %v3449_v3  ;;  %v3460_v2 = vld [vmem:[#allocation224_spill] sm:$0xff]  ;;  %v3461_v3 = vld [vmem:[#allocation103_spill] sm:$0xff] }
 0x18d   : >> { %826 = vmatpush.msrb.mxu1 %v3450_v4  ;;  %846 = vmatpush.msrb.mxu2 %v3451_v5  ;;  %v3462_v4 = vld [vmem:[#allocation215_spill] sm:$0xff]  ;;  %v3463_v5 = vld [vmem:[#allocation104_spill] sm:$0xff] }
 0x18e   : >> { %866 = vmatpush.msrb.mxu3 %v3452_v6  ;;  %871 = vmatpush.msra.mxu0 %v3453_v7  ;;  %v3464_v6 = vld [vmem:[#allocation216_spill] sm:$0xff]  ;;  %v3465_v7 = vld [vmem:[#allocation95_spill] sm:$0xff] }
 0x18f   : >> { %891 = vmatpush.msra.mxu1 %v3454_v9  ;;  %911 = vmatpush.msra.mxu2 %v3455_v10  ;;  %v3466_v9 = vld [vmem:[#allocation207_spill] sm:$0xff]  ;;  %v3467_v10 = vld [vmem:[#allocation96_spill] sm:$0xff] }
 0x190   : >> { %931 = vmatpush.msra.mxu3 %v3456_v29  ;;  %872 = vmatpush.msra.mxu0 %v3457_v13  ;;  %v3468_v13 = vld [vmem:[#allocation208_spill] sm:$0xff] }
 0x191   : >> { %892 = vmatpush.msra.mxu1 %v3458_v0  ;;  %912 = vmatpush.msra.mxu2 %v3459_v1  ;;  %v3469_v0 = vld [vmem:[#allocation89_spill] sm:$0xff] }
 0x192   : >> { %932 = vmatpush.msra.mxu3 %v3460_v2  ;;  %873 = vmatpush.msra.mxu0 %v3461_v3  ;;  %v3470_v1 = vld [vmem:[#allocation201_spill] sm:$0xff]  ;;  %v3471_v2 = vld [vmem:[#allocation90_spill] sm:$0xff] }
 0x193   : >> { %893 = vmatpush.msra.mxu1 %v3462_v4  ;;  %913 = vmatpush.msra.mxu2 %v3463_v5  ;;  %v3472_v3 = vld [vmem:[#allocation202_spill] sm:$0xff]  ;;  %v3473_v4 = vld [vmem:[#allocation81_spill] sm:$0xff] }
 0x194   : >> { %933 = vmatpush.msra.mxu3 %v3464_v6  ;;  %874 = vmatpush.msra.mxu0 %v3465_v7  ;;  %v3474_v5 = vld [vmem:[#allocation194_spill] sm:$0xff]  ;;  %v3476_v7 = vld [vmem:[#allocation195_spill] sm:$0xff] }
 0x195   : >> { %894 = vmatpush.msra.mxu1 %v3466_v9  ;;  %914 = vmatpush.msra.mxu2 %v3467_v10  ;;  %v3475_v6 = vld [vmem:[#allocation82_spill] sm:$0xff]  ;;  %v3477_v9 = vld [vmem:[#allocation75_spill] sm:$0xff]  ;;  %v3478_v10 = vld [vmem:[#allocation188_spill] sm:$0xff] }
 0x196   : >> { %934 = vmatpush.msra.mxu3 %v3468_v13  ;;  %875 = vmatpush.msra.mxu0 %v3469_v0  ;;  %v3479_v13 = vld [vmem:[#allocation76_spill] sm:$0xff]  ;;  %v3480_v0 = vld [vmem:[#allocation189_spill] sm:$0xff] }
 0x197   : >> { %895 = vmatpush.msra.mxu1 %v3470_v1  ;;  %915 = vmatpush.msra.mxu2 %v3471_v2  ;;  %v3481_v1 = vld [vmem:[#allocation69_spill] sm:$0xff]  ;;  %v3482_v2 = vld [vmem:[#allocation182_spill] sm:$0xff] }
 0x198   : >> { %935 = vmatpush.msra.mxu3 %v3472_v3  ;;  %807 = vmatmul.f32.vlgmr.msrb.gmra.mxu0 %v1663_v60  ;;  %v3483_v3 = vld [vmem:[#allocation70_spill] sm:$0xff] }
 0x199   : >> { %827 = vmatmul.f32.vlgmr.msrb.gmra.mxu1 %v1659_v8  ;;  %847 = vmatmul.f32.vlgmr.msrb.gmra.mxu2 %v1663_v60 }
 0x19a   : >> { %867 = vmatmul.f32.vlgmr.msrb.gmra.mxu3 %v1659_v8  ;;  %876 = vmatpush.msra.mxu0 %v3473_v4  ;;  %v3484_v4 = vld [vmem:[#allocation183_spill] sm:$0xff] }
 0x19b   : >> { %896 = vmatpush.msra.mxu1 %v3474_v5  ;;  %916 = vmatpush.msra.mxu2 %v3475_v6  ;;  %v3485_v5 = vld [vmem:[#allocation61_spill] sm:$0xff]  ;;  %v3486_v6 = vld [vmem:[#allocation175_spill] sm:$0xff] }
 0x19c   : >> { %936 = vmatpush.msra.mxu3 %v3476_v7  ;;  %877 = vmatpush.msra.mxu0 %v3477_v9  ;;  %v3487_v7 = vld [vmem:[#allocation62_spill] sm:$0xff]  ;;  %v3488_v9 = vld [vmem:[#allocation176_spill] sm:$0xff] }
 0x19d   : >> { %897 = vmatpush.msra.mxu1 %v3478_v10  ;;  %917 = vmatpush.msra.mxu2 %v3479_v13  ;;  %v3489_v10 = vld [vmem:[#allocation55_spill] sm:$0xff]  ;;  %v3490_v13 = vld [vmem:[#allocation168_spill] sm:$0xff] }
 0x19e   : >> { %937 = vmatpush.msra.mxu3 %v3480_v0  ;;  %878 = vmatpush.msra.mxu0 %v3481_v1  ;;  %v3491_v0 = vld [vmem:[#allocation56_spill] sm:$0xff]  ;;  %v3492_v1 = vld [vmem:[#allocation169_spill] sm:$0xff] }
 0x19f   : >> { %898 = vmatpush.msra.mxu1 %v3482_v2  ;;  %918 = vmatpush.msra.mxu2 %v3483_v3  ;;  %v3493_v2 = vld [vmem:[#allocation49_spill] sm:$0xff] }
 0x1a0   : >> { %938 = vmatpush.msra.mxu3 %v3484_v4  ;;  %879 = vmatpush.msra.mxu0 %v3485_v5  ;;  %v3494_v3 = vld [vmem:[#allocation161_spill] sm:$0xff]  ;;  %v3495_v4 = vld [vmem:[#allocation50_spill] sm:$0xff] }
 0x1a1   : >> { %899 = vmatpush.msra.mxu1 %v3486_v6  ;;  %919 = vmatpush.msra.mxu2 %v3487_v7  ;;  %v3496_v5 = vld [vmem:[#allocation162_spill] sm:$0xff]  ;;  %v3497_v6 = vld [vmem:[#allocation43_spill] sm:$0xff]  ;;  %v3498_v7 = vld [vmem:[#allocation153_spill] sm:$0xff] }
 0x1a2   : >> { %939 = vmatpush.msra.mxu3 %v3488_v9  ;;  %880 = vmatpush.msra.mxu0 %v3489_v10  ;;  %v3499_v9 = vld [vmem:[#allocation44_spill] sm:$0xff]  ;;  %v3500_v10 = vld [vmem:[#allocation154_spill] sm:$0xff] }
 0x1a3   : >> { %900 = vmatpush.msra.mxu1 %v3490_v13  ;;  %920 = vmatpush.msra.mxu2 %v3491_v0  ;;  %v3501_v13 = vld [vmem:[#allocation37_spill] sm:$0xff]  ;;  %v3502_v0 = vld [vmem:[#allocation147_spill] sm:$0xff] }
 0x1a4   : >> { %940 = vmatpush.msra.mxu3 %v3492_v1  ;;  %881 = vmatpush.msra.mxu0 %v3493_v2  ;;  %v3503_v1 = vld [vmem:[#allocation38_spill] sm:$0xff]  ;;  %v3504_v2 = vld [vmem:[#allocation148_spill] sm:$0xff] }
 0x1a5   : >> { %901 = vmatpush.msra.mxu1 %v3494_v3  ;;  %921 = vmatpush.msra.mxu2 %v3495_v4  ;;  %v3505_v3 = vld [vmem:[#allocation29_spill] sm:$0xff]  ;;  %v3506_v4 = vld [vmem:[#allocation140_spill] sm:$0xff] }
 0x1a6   : >> { %941 = vmatpush.msra.mxu3 %v3496_v5  ;;  %882 = vmatpush.msra.mxu0 %v3497_v6  ;;  %v3507_v5 = vld [vmem:[#allocation30_spill] sm:$0xff]  ;;  %v3508_v6 = vld [vmem:[#allocation141_spill] sm:$0xff] }
 0x1a7   : >> { %902 = vmatpush.msra.mxu1 %v3498_v7  ;;  %922 = vmatpush.msra.mxu2 %v3499_v9  ;;  %v3509_v7 = vld [vmem:[#allocation21_spill] sm:$0xff] }
 0x1a8   : >> { %942 = vmatpush.msra.mxu3 %v3500_v10  ;;  %883 = vmatpush.msra.mxu0 %v3501_v13  ;;  %v3510_v9 = vld [vmem:[#allocation133_spill] sm:$0xff]  ;;  %v3511_v10 = vld [vmem:[#allocation22_spill] sm:$0xff] }
 0x1a9   : >> { %903 = vmatpush.msra.mxu1 %v3502_v0  ;;  %923 = vmatpush.msra.mxu2 %v3503_v1  ;;  %v3512_v13 = vld [vmem:[#allocation134_spill] sm:$0xff]  ;;  %v3513_v0 = vld [vmem:[#allocation13_spill] sm:$0xff] }
 0x1aa   : >> { %943 = vmatpush.msra.mxu3 %v3504_v2  ;;  %884 = vmatpush.msra.mxu0 %v3505_v3  ;;  %v3514_v1 = vld [vmem:[#allocation125_spill] sm:$0xff]  ;;  %v3515_v2 = vld [vmem:[#allocation14_spill] sm:$0xff] }
 0x1ab   : >> { %904 = vmatpush.msra.mxu1 %v3506_v4  ;;  %924 = vmatpush.msra.mxu2 %v3507_v5  ;;  %v3516_v3 = vld [vmem:[#allocation126_spill] sm:$0xff]  ;;  %v3517_v4 = vld [vmem:[#allocation119_spill] sm:$0xff]  ;;  %v3518_v5 = vld [vmem:[#allocation120_spill] sm:$0xff] }
 0x1ac   : >> { %944 = vmatpush.msra.mxu3 %v3508_v6  ;;  %885 = vmatpush.msra.mxu0 %v3509_v7  ;;  %v3519_v6 = vld [vmem:[#allocation111_spill] sm:$0xff]  ;;  %v3520_v7 = vld [vmem:[#allocation225_spill] sm:$0xff] }
 0x1ad   : >> { %905 = vmatpush.msra.mxu1 %v3510_v9  ;;  %925 = vmatpush.msra.mxu2 %v3511_v10  ;;  %v3521_v9 = vld [vmem:[#allocation112_spill] sm:$0xff]  ;;  %v3522_v10 = vld [vmem:[#allocation226_spill] sm:$0xff] }
 0x1ae   : >> { %945 = vmatpush.msra.mxu3 %v3512_v13  ;;  %886 = vmatpush.msra.mxu0 %v3513_v0  ;;  %v3523_v13 = vld [vmem:[#allocation105_spill] sm:$0xff] }
 0x1af   : >> { %906 = vmatpush.msra.mxu1 %v3514_v1  ;;  %926 = vmatpush.msra.mxu2 %v3515_v2  ;;  %v3524_v0 = vld [vmem:[#allocation217_spill] sm:$0xff]  ;;  %v3525_v1 = vld [vmem:[#allocation106_spill] sm:$0xff] }
 0x1b0   : >> { %946 = vmatpush.msra.mxu3 %v3516_v3  ;;  %887 = vmatmul.f32.vlgmr.msra.gmra.mxu0 %v1663_v60  ;;  %v3526_v2 = vld [vmem:[#allocation218_spill] sm:$0xff]  ;;  %v3527_v3 = vld [vmem:[#allocation97_spill] sm:$0xff] }
 0x1b1   : >> { %907 = vmatmul.f32.vlgmr.msra.gmra.mxu1 %v1659_v8  ;;  %927 = vmatmul.f32.vlgmr.msra.gmra.mxu2 %v1663_v60 }
 0x1b2   : >> { %947 = vmatmul.f32.vlgmr.msra.gmra.mxu3 %v1659_v8  ;;  %951 = vmatpush.msrb.mxu0 %v3517_v4  ;;  %v3528_v4 = vld [vmem:[#allocation209_spill] sm:$0xff] }
 0x1b3   : >> { %971 = vmatpush.msrb.mxu1 %v2675_v53  ;;  %991 = vmatpush.msrb.mxu2 %v3518_v5  ;;  %v3529_v5 = vld [vmem:[#allocation98_spill] sm:$0xff] }
 0x1b4   : >> { %1011 = vmatpush.msrb.mxu3 %v2678_v54  ;;  %952 = vmatpush.msrb.mxu0 %v3519_v6  ;;  %v3530_v6 = vld [vmem:[#allocation210_spill] sm:$0xff] }
 0x1b5   : >> { %972 = vmatpush.msrb.mxu1 %v3520_v7  ;;  %992 = vmatpush.msrb.mxu2 %v3521_v9  ;;  %v3531_v7 = vld [vmem:[#allocation91_spill] sm:$0xff] }
 0x1b6   : >> { %1012 = vmatpush.msrb.mxu3 %v3522_v10  ;;  %953 = vmatpush.msrb.mxu0 %v3523_v13  ;;  %v3532_v9 = vld [vmem:[#allocation203_spill] sm:$0xff]  ;;  %v3533_v10 = vld [vmem:[#allocation92_spill] sm:$0xff] }
 0x1b7   : >> { %973 = vmatpush.msrb.mxu1 %v3524_v0  ;;  %993 = vmatpush.msrb.mxu2 %v3525_v1  ;;  %v3534_v13 = vld [vmem:[#allocation204_spill] sm:$0xff]  ;;  %v3535_v0 = vld [vmem:[#allocation83_spill] sm:$0xff] }
 0x1b8   : >> { %1013 = vmatpush.msrb.mxu3 %v3526_v2  ;;  %954 = vmatpush.msrb.mxu0 %v3527_v3  ;;  %v3536_v1 = vld [vmem:[#allocation196_spill] sm:$0xff]  ;;  %v1166_v2 = vstv %s2939_s20 }
 0x1b9   : >> { %974 = vmatpush.msrb.mxu1 %v3528_v4  ;;  %994 = vmatpush.msrb.mxu2 %v3529_v5  ;;  %v3537_v3 = vld [vmem:[#allocation84_spill] sm:$0xff]  ;;  %v3538_v4 = vld [vmem:[#allocation197_spill] sm:$0xff]  ;;  %vm1167_vm0 = vcmp.lt.s32.totalorder %v1166_v2, %v3543_v11 }
 0x1ba   : >> { %1014 = vmatpush.msrb.mxu3 %v3530_v6  ;;  %955 = vmatpush.msrb.mxu0 %v3531_v7  ;;  %v3539_v5 = vld [vmem:[#allocation77_spill] sm:$0xff]  ;;  %v3540_v6 = vld [vmem:[#allocation190_spill] sm:$0xff] }
 0x1bb   : >> { %975 = vmatpush.msrb.mxu1 %v3532_v9  ;;  %995 = vmatpush.msrb.mxu2 %v3533_v10  ;;  %v3541_v7 = vld [vmem:[#allocation78_spill] sm:$0xff]  ;;  %v3542_v9 = vld [vmem:[#allocation191_spill] sm:$0xff]  ;;  %v3552_v2 = vld [vmem:[#allocation57_spill] sm:$0xff] }
 0x1bc   : >> { %1015 = vmatpush.msrb.mxu3 %v3534_v13  ;;  %956 = vmatpush.msrb.mxu0 %v3535_v0  ;;  %v3544_v10 = vld [vmem:[#allocation71_spill] sm:$0xff]  ;;  %v3545_v13 = vld [vmem:[#allocation184_spill] sm:$0xff] }
 0x1bd   : >> { %976 = vmatpush.msrb.mxu1 %v3536_v1  ;;  %996 = vmatpush.msrb.mxu2 %v3537_v3  ;;  %v3546_v0 = vld [vmem:[#allocation72_spill] sm:$0xff]  ;;  %v3547_v1 = vld [vmem:[#allocation185_spill] sm:$0xff]  ;;  %v3548_v3 = vld [vmem:[#allocation63_spill] sm:$0xff] }
 0x1be   : >> { %1016 = vmatpush.msrb.mxu3 %v3538_v4  ;;  %957 = vmatpush.msrb.mxu0 %v3539_v5  ;;  %v3549_v4 = vld [vmem:[#allocation177_spill] sm:$0xff]  ;;  %v1671_v5 = vmov 0.0  }
 0x1bf   : >> { %977 = vmatpush.msrb.mxu1 %v3540_v6  ;;  %997 = vmatpush.msrb.mxu2 %v3541_v7  ;;  %v1408_v6 = vsel %vm1167_vm0, 1.0, %v1671_v5  ;;  %v3551_v7 = vld [vmem:[#allocation178_spill] sm:$0xff] }
 0x1c0   : >> { %1017 = vmatpush.msrb.mxu3 %v3542_v9  ;;  %958 = vmatpush.msrb.mxu0 %v3544_v10  ;;  %v1672_v9 = vmov 0   ;;  %v3553_v10 = vld [vmem:[#allocation170_spill] sm:$0xff]  ;;  %v1177_v5 = vsub.f32 1.0, %v1408_v6 }
 0x1c1   : >> { %978 = vmatpush.msrb.mxu1 %v3545_v13  ;;  %998 = vmatpush.msrb.mxu2 %v3546_v0  ;;  %v3554_v13 = vld [vmem:[#allocation58_spill] sm:$0xff]  ;;  %v3555_v0 = vld [vmem:[#allocation171_spill] sm:$0xff] }
 0x1c2   : >> { %1018 = vmatpush.msrb.mxu3 %v3547_v1  ;;  %959 = vmatpush.msrb.mxu0 %v3548_v3  ;;  %v3556_v1 = vld [vmem:[#allocation51_spill] sm:$0xff] }
 0x1c3   : >> { %979 = vmatpush.msrb.mxu1 %v3549_v4  ;;  %999 = vmatpush.msrb.mxu2 %v3550_v14  ;;  %v3557_v3 = vld [vmem:[#allocation163_spill] sm:$0xff]  ;;  %v3558_v4 = vld [vmem:[#allocation52_spill] sm:$0xff] }
 0x1c4   : >> { %1019 = vmatpush.msrb.mxu3 %v3551_v7  ;;  %1516 = vset.pattern.permute.xlu0 %v1672_v9  ;;  %v3559_v14 = vld [vmem:[#allocation164_spill] sm:$0xff]  ;;  %v3560_v7 = vld [vmem:[#allocation45_spill] sm:$0xff]  ;;  %v3561_v9 = vld [vmem:[#allocation155_spill] sm:$0xff] }
 0x1c5   : >> { %960 = vmatpush.msrb.mxu0 %v3552_v2  ;;  %1172 = vperm.xlu0 %1516, %v1408_v6   ;;  %v3562_v2 = vld [vmem:[#allocation46_spill] sm:$0xff] }
 0x1c6   : >> { %980 = vmatpush.msrb.mxu1 %v3553_v10  ;;  %1000 = vmatpush.msrb.mxu2 %v3554_v13  ;;  %v3563_v10 = vld [vmem:[#allocation156_spill] sm:$0xff]  ;;  %v3564_v13 = vld [vmem:[#allocation39_spill] sm:$0xff]  ;;  %v3569_v6 = vld [vmem:[#allocation142_spill] sm:$0xff] }
 0x1c7   : >> { %1020 = vmatpush.msrb.mxu3 %v3555_v0  ;;  %961 = vmatpush.msrb.mxu0 %v3556_v1  ;;  %v3565_v0 = vld [vmem:[#allocation149_spill] sm:$0xff]  ;;  %v3566_v1 = vld [vmem:[#allocation40_spill] sm:$0xff] }
 0x1c8   : >> { %981 = vmatpush.msrb.mxu1 %v3557_v3  ;;  %1001 = vmatpush.msrb.mxu2 %v3558_v4  ;;  %v3567_v3 = vld [vmem:[#allocation150_spill] sm:$0xff]  ;;  %v3568_v4 = vld [vmem:[#allocation31_spill] sm:$0xff] }
 0x1c9   : >> { %1021 = vmatpush.msrb.mxu3 %v3559_v14  ;;  %962 = vmatpush.msrb.mxu0 %v3560_v7  ;;  %v3570_v14 = vld [vmem:[#allocation32_spill] sm:$0xff]  ;;  %v3571_v7 = vld [vmem:[#allocation143_spill] sm:$0xff] }
 0x1ca   : >> { %982 = vmatpush.msrb.mxu1 %v3561_v9  ;;  %1002 = vmatpush.msrb.mxu2 %v3562_v2  ;;  %v3572_v9 = vld [vmem:[#allocation23_spill] sm:$0xff] }
 0x1cb   : >> { %1022 = vmatpush.msrb.mxu3 %v3563_v10  ;;  %963 = vmatpush.msrb.mxu0 %v3564_v13  ;;  %v3573_v2 = vld [vmem:[#allocation135_spill] sm:$0xff]  ;;  %v3574_v10 = vld [vmem:[#allocation24_spill] sm:$0xff] }
 0x1cc   : >> { %983 = vmatpush.msrb.mxu1 %v3565_v0  ;;  %1003 = vmatpush.msrb.mxu2 %v3566_v1  ;;  %v3575_v13 = vld [vmem:[#allocation136_spill] sm:$0xff]  ;;  %v3576_v0 = vld [vmem:[#allocation15_spill] sm:$0xff] }
 0x1cd   : >> { %1023 = vmatpush.msrb.mxu3 %v3567_v3  ;;  %1180 = vperm.xlu0 %1516, %v1177_v5   ;;  %v3577_v5 = vld [vmem:[#allocation127_spill] sm:$0xff]  ;;  %v3578_v1 = vld [vmem:[#allocation16_spill] sm:$0xff] }
 0x1ce   : >> { %964 = vmatpush.msrb.mxu0 %v3568_v4  ;;  %984 = vmatpush.msrb.mxu1 %v3569_v6  ;;  %v3579_v3 = vld [vmem:[#allocation128_spill] sm:$0xff]  ;;  %v703_v6 = vld [vmem:[%s2997_s26] sm:$0xff] }
 0x1cf   : >> { %1004 = vmatpush.msrb.mxu2 %v3570_v14  ;;  %1024 = vmatpush.msrb.mxu3 %v3571_v7 }
 0x1d0   : >> { %965 = vmatpush.msrb.mxu0 %v3572_v9  ;;  %985 = vmatpush.msrb.mxu1 %v3573_v2 }
 0x1d1   : >> { %1005 = vmatpush.msrb.mxu2 %v3574_v10  ;;  %1025 = vmatpush.msrb.mxu3 %v3575_v13 }
 0x1d2   : >> { %966 = vmatpush.msrb.mxu0 %v3576_v0  ;;  %986 = vmatpush.msrb.mxu1 %v3577_v5  ;;  %v704_v5 = vld [vmem:[%s2997_s26 + $0x8] sm:$0xff] }
 0x1d3   : >> { %1006 = vmatpush.msrb.mxu2 %v3578_v1  ;;  %1026 = vmatpush.msrb.mxu3 %v3579_v3 }
 0x1d4   : >> { %967 = vmatmul.f32.vlgmr.msrb.gmra.mxu0 %v1663_v60  ;;  %987 = vmatmul.f32.vlgmr.msrb.gmra.mxu1 %v1659_v8 }
 0x1d5   : >> { %1007 = vmatmul.f32.vlgmr.msrb.gmra.mxu2 %v1663_v60  ;;  %1027 = vmatmul.f32.vlgmr.msrb.gmra.mxu3 %v1659_v8 }
 0x201   : >> { %v768_v2 = vpop.f32.mrf.mxu2 }
 0x202   : >> { %v728_v4 = vpop.f32.mrf.mxu0  ;;  %v788_v10 = vpop.f32.mrf.mxu3 }
 0x203   : >> { %v748_v14 = vpop.f32.mrf.mxu1  ;;  %v789_v0 = vadd.f32 %v788_v10, %v768_v2 }
 0x204   : >> { %v749_v7 = vadd.f32 %v748_v14, %v728_v4 }
 0x205   : >> { %v1032_v1 = vadd.f32 %v789_v0, %v704_v5 }
 0x206   : >> { %v1031_v9 = vadd.f32 %v749_v7, %v703_v6  ;;  %v706_v7 = vld [vmem:[%s2997_s26 + $0x18] sm:$0xff] }
 0x207   : >> { %v1403_v3 = vmul.f32 -1.442695, %v1032_v1 }
 0x208   : >> { %v1402_v13 = vmul.f32 -1.442695, %v1031_v9 }
 0x20a   : >> { %1517 = vpow2.f32 %v1402_v13 }
 0x20b   : >> { %1519 = vpow2.f32 %v1403_v3 }
 0x210   : >> { %v1518_v11 = vpop.eup %1517 }
 0x211   : >> { %v1045_v18 = vadd.f32 1.0, %v1518_v11  ;;  %v1520_v6 = vpop.eup %1519 }
 0x212   : >> { %v3003_v10 = vadd.f32 1.0, %v1520_v6 }
 0x213   : >> { %1521 = vrcp.f32 %v1045_v18  ;;  %vm1052_vm1 = vweird.f32 %v1045_v18 }
 0x214   : >> { %vm1067_vm11 = vweird.f32 %v3003_v10  ;;  %v1073_v24 = vand.u32 2147483648, %v3003_v10 }
 0x215   : >> { %v808_v15 = vpop.f32.mrf.mxu0 }
 0x216   : >> { %v828_v17 = vpop.f32.mrf.mxu1 }
 0x217   : >> { %v829_v19 = vadd.f32 %v828_v17, %v808_v15 }
 0x219   : >> { %v1033_v20 = vadd.f32 %v829_v19, %v705_v16  ;;  %v3005_v0 = vpop.eup %1521 }
 0x21a   : >> { %v1048_v11 = vmul.f32 %v3005_v0, %v1045_v18  ;;  %vm1053_vm2 = vweird.f32 %v3005_v0 }
 0x21b   : >> { %v1404_v4 = vmul.f32 -1.442695, %v1033_v20  ;;  %vm3018_vm5 = vmor %vm1052_vm1, %vm1053_vm2 }
 0x21c   : >> { %v848_v14 = vpop.f32.mrf.mxu2  ;;  %v1049_v16 = vsub.f32 1.0, %v1048_v11 }
 0x21d   : >> { %1523 = vpow2.f32 %v1404_v4  ;;  %v868_v9 = vpop.f32.mrf.mxu3 }
 0x21e   : >> { %v869_v2 = vadd.f32 %v868_v9, %v848_v14  ;;  %1525 = vrcp.f32 %v3003_v10  ;;  %v1050_v6 = vmul.f32 %v3005_v0, %v1049_v16  ;;  %v1056_v14 = vand.u32 2147483647, %v1045_v18 }
 0x220   : >> { %v1034_v13 = vadd.f32 %v869_v2, %v706_v7  ;;  %v707_v2 = vld [vmem:[%s2997_s26 + $0x20] sm:$0xff]  ;;  %v1051_v23 = vadd.f32 %v3005_v0, %v1050_v6  ;;  %vm3022_vm6 = vcmp.eq.f32.partialorder %v1056_v14, 8.507059e+37 }
 0x222   : >> { %v1405_v5 = vmul.f32 -1.442695, %v1034_v13 }
 0x223   : >> { %v1524_v1 = vpop.eup %1523 }
 0x224   : >> { %v1083_v15 = vadd.f32 1.0, %v1524_v1  ;;  %1527 = vpow2.f32 %v1405_v5  ;;  %v3009_v17 = vpop.eup %1525  ;;  %v1058_v5 = vand.u32 2147483648, %v1045_v18  ;;  %v1055_v18 = vsel %vm3018_vm5, %v3005_v0, %v1051_v23 }
 0x225   : >> { %v1063_v4 = vmul.f32 %v3009_v17, %v3003_v10  ;;  %vm1068_vm12 = vweird.f32 %v3009_v17 }
 0x226   : >> { %1529 = vrcp.f32 %v1083_v15  ;;  %vm1090_vm3 = vweird.f32 %v1083_v15  ;;  %v1096_v1 = vand.u32 2147483648, %v1083_v15  ;;  %v1094_v21 = vand.u32 2147483647, %v1083_v15  ;;  %vm1069_vm14 = vmor %vm1067_vm11, %vm1068_vm12 }
 0x227   : >> { %v1064_v22 = vsub.f32 1.0, %v1063_v4  ;;  %v1059_v6 = vor.u32 1.1754944e-38, %v1058_v5 }
 0x228   : >> { %vm1095_vm8 = vcmp.eq.f32.partialorder %v1094_v21, 8.507059e+37  ;;  %v1071_v21 = vand.u32 2147483647, %v3003_v10 }
 0x22a   : >> { %v1528_v19 = vpop.eup %1527  ;;  %vm1072_vm0 = vcmp.eq.f32.partialorder %v1071_v21, 8.507059e+37 }
 0x22b   : >> { %v1084_v20 = vadd.f32 1.0, %v1528_v19 }
 0x22c   : >> { %v1530_v3 = vpop.eup %1529 }
 0x22d   : >> { %1531 = vrcp.f32 %v1084_v20  ;;  %v1086_v7 = vmul.f32 %v1530_v3, %v1083_v15  ;;  %v888_v9 = vpop.f32.mrf.mxu0  ;;  %vm1091_vm4 = vweird.f32 %v1530_v3  ;;  %v1097_v15 = vor.u32 1.1754944e-38, %v1096_v1 }
 0x22e   : >> { %v908_v13 = vpop.f32.mrf.mxu1  ;;  %vm3026_vm7 = vmor %vm1090_vm3, %vm1091_vm4  ;;  %vm1105_vm9 = vweird.f32 %v1084_v20  ;;  %v1109_v1 = vand.u32 2147483647, %v1084_v20  ;;  %v1111_v29 = vand.u32 2147483648, %v1084_v20 }
 0x22f   : >> { %v909_v11 = vadd.f32 %v908_v13, %v888_v9  ;;  %v1087_v19 = vsub.f32 1.0, %v1086_v7 }
 0x230   : >> { %vm1110_vm15 = vcmp.eq.f32.partialorder %v1109_v1, 8.507059e+37 }
 0x231   : >> { %v1035_v16 = vadd.f32 %v909_v11, %v707_v2  ;;  %v1088_v25 = vmul.f32 %v1530_v3, %v1087_v19  ;;  %v1065_v2 = vmul.f32 %v3009_v17, %v1064_v22  ;;  %v708_v11 = vld [vmem:[%s2997_s26 + $0x28] sm:$0xff] }
 0x233   : >> { %v1532_v4 = vpop.eup %1531  ;;  %1533 = vtanh.f32 %v1035_v16  ;;  %v1089_v7 = vadd.f32 %v1530_v3, %v1088_v25 }
 0x234   : >> { %v1101_v14 = vmul.f32 %v1532_v4, %v1084_v20  ;;  %v928_v13 = vpop.f32.mrf.mxu2  ;;  %vm1106_vm10 = vweird.f32 %v1532_v4 }
 0x235   : >> { %v948_v19 = vpop.f32.mrf.mxu3  ;;  %v1093_v28 = vsel %vm3026_vm7, %v1530_v3, %v1089_v7  ;;  %vm1107_vm13 = vmor %vm1105_vm9, %vm1106_vm10  ;;  %v1112_v7 = vor.u32 1.1754944e-38, %v1111_v29 }
 0x236   : >> { %v949_v16 = vadd.f32 %v948_v19, %v928_v13  ;;  %v1098_v5 = vsel %vm1095_vm8, %v1097_v15, %v1093_v28  ;;  %v1102_v25 = vsub.f32 1.0, %v1101_v14  ;;  %v1060_v28 = vsel %vm3022_vm6, %v1059_v6, %v1055_v18 }
 0x237   : >> { %v3040_v23 = vpop.permute.xlu0 %1172  ;;  %v1155_v3 = vmul.f32 %v1655_v27, %v1098_v5  ;;  %v1066_v15 = vadd.f32 %v3009_v17, %v1065_v2 }
 0x238   : >> { %v1036_v22 = vadd.f32 %v949_v16, %v708_v11  ;;  %v1103_v0 = vmul.f32 %v1532_v4, %v1102_v25  ;;  %v1074_v11 = vor.u32 1.1754944e-38, %v1073_v24 }
 0x239   : >> { %v1534_v9 = vpop.eup %1533  ;;  %v1070_v16 = vsel %vm1069_vm14, %v3009_v17, %v1066_v15  ;;  %v710_v15 = vld [vmem:[%s2997_s26 + $0x38] sm:$0xff] }
 0x23a   : >> { %1535 = vtanh.f32 %v1036_v22  ;;  %v1104_v14 = vadd.f32 %v1532_v4, %v1103_v0  ;;  %v1157_v13 = vmul.f32 %v1534_v9, %v1060_v28  ;;  %v1075_v29 = vsel %vm1072_vm0, %v1074_v11, %v1070_v16  ;;  %v709_v22 = vld [vmem:[%s2997_s26 + $0x30] sm:$0xff] }
 0x23c   : >> { %v1108_v19 = vsel %vm1107_vm13, %v1532_v4, %v1104_v14  ;;  %v1159_v10 = vadd.f32 %v1157_v13, %v1155_v3 }
 0x23d   : >> { %v1113_v5 = vsel %vm1110_vm15, %v1112_v7, %v1108_v19 }
 0x23e   : >> { %v1156_v26 = vmul.f32 %v1651_v12, %v1113_v5  ;;  %v1187_v6 = vmul.f32 %v3040_v23, %v1159_v10 }
 0x23f   : >> { %v3051_v18 = vpop.permute.xlu0 %1180 }
 0x240   : >> { %v1536_v20 = vpop.eup %1535  ;;  %v1189_v1 = vmul.f32 %v1655_v27, %v3051_v18  ;;  %v1190_v17 = vmul.f32 %v1651_v12, %v3051_v18 }
 0x241   : >> { %v1158_v2 = vmul.f32 %v1536_v20, %v1075_v29 }
 0x242   : >> { %v3057_v27 = vadd.f32 %v1189_v1, %v1187_v6  }
 0x243   : >> { %v1160_v4 = vadd.f32 %v1158_v2, %v1156_v26 }
 0x245   : >> { %v1188_v25 = vmul.f32 %v3040_v23, %v1160_v4 }
 0x247   : >> { %v3060_v12 = vadd.f32 %v1190_v17, %v1188_v25  }
 0x251   : >> { %v968_v21 = vpop.f32.mrf.mxu0  ;;  %v988_v24 = vpop.f32.mrf.mxu1 }
 0x252   : >> { %v989_v0 = vadd.f32 %v988_v24, %v968_v21 }
 0x254   : >> { %v1037_v3 = vadd.f32 %v989_v0, %v709_v22 }
 0x256   : >> { %v1406_v9 = vmul.f32 -1.442695, %v1037_v3 }
 0x258   : >> { %v1008_v28 = vpop.f32.mrf.mxu2  ;;  %1537 = vpow2.f32 %v1406_v9  ;;  %v1028_v7 = vpop.f32.mrf.mxu3 }
 0x259   : >> { %v1029_v14 = vadd.f32 %v1028_v7, %v1008_v28 }
 0x25b   : >> { %v1038_v13 = vadd.f32 %v1029_v14, %v710_v15 }
 0x25d   : >> { %v1407_v11 = vmul.f32 -1.442695, %v1038_v13  ;;  %v1183_v13 = vmul.f32 %v1663_v60, %v3051_v18 }
 0x25e   : >> { %v1538_v19 = vpop.eup %1537 }
 0x25f   : >> { %v1123_v16 = vadd.f32 1.0, %v1538_v19  ;;  %1539 = vpow2.f32 %v1407_v11 }
 0x261   : >> { %1541 = vrcp.f32 %v1123_v16  ;;  %v1136_v2 = vand.u32 2147483648, %v1123_v16  ;;  %vm1130_vm1 = vweird.f32 %v1123_v16  ;;  %v1134_v17 = vand.u32 2147483647, %v1123_v16 }
 0x263   : >> { %v1137_v22 = vor.u32 1.1754944e-38, %v1136_v2  ;;  %vm1135_vm4 = vcmp.eq.f32.partialorder %v1134_v17, 8.507059e+37 }
 0x265   : >> { %v1540_v5 = vpop.eup %1539 }
 0x266   : >> { %v1124_v26 = vadd.f32 1.0, %v1540_v5 }
 0x267   : >> { %v1542_v6 = vpop.eup %1541 }
 0x268   : >> { %v1126_v20 = vmul.f32 %v1542_v6, %v1123_v16  ;;  %1543 = vrcp.f32 %v1124_v26  ;;  %vm1131_vm2 = vweird.f32 %v1542_v6  ;;  %v1149_v14 = vand.u32 2147483647, %v1124_v26 }
 0x269   : >> { %1545 = vtanh.f32 %v1159_v10  ;;  %vm1132_vm3 = vmor %vm1130_vm1, %vm1131_vm2  ;;  %v1151_v10 = vand.u32 2147483648, %v1124_v26  ;;  %vm1145_vm6 = vweird.f32 %v1124_v26 }
 0x26a   : >> { %v1127_v29 = vsub.f32 1.0, %v1126_v20  ;;  %1547 = vtanh.f32 %v1160_v4  ;;  %vm1150_vm8 = vcmp.eq.f32.partialorder %v1149_v14, 8.507059e+37 }
 0x26b   : >> { %v1152_v16 = vor.u32 1.1754944e-38, %v1151_v10 }
 0x26c   : >> { %v1128_v1 = vmul.f32 %v1542_v6, %v1127_v29  ;;  %v1184_v29 = vmul.f32 %v1659_v8, %v3051_v18 }
 0x26e   : >> { %v1544_v25 = vpop.eup %1543  ;;  %v1129_v21 = vadd.f32 %v1542_v6, %v1128_v1 }
 0x26f   : >> { %v1141_v24 = vmul.f32 %v1544_v25, %v1124_v26  ;;  %v1546_v3 = vpop.eup %1545  ;;  %vm1146_vm5 = vweird.f32 %v1544_v25 }
 0x270   : >> { %v1133_v0 = vsel %vm1132_vm3, %v1542_v6, %v1129_v21  ;;  %vm1147_vm7 = vmor %vm1145_vm6, %vm1146_vm5  ;;  %v1548_v4 = vpop.eup %1547 }
 0x271   : >> { %v1138_v9 = vsel %vm1135_vm4, %v1137_v22, %v1133_v0  ;;  %v1142_v28 = vsub.f32 1.0, %v1141_v24 }
 0x272   : >> { %v1163_v15 = vmul.f32 %v1546_v3, %v1138_v9 }
 0x273   : >> { %v1143_v7 = vmul.f32 %v1544_v25, %v1142_v28 }
 0x274   : >> { %v1175_v11 = vmul.f32 %v3040_v23, %v1163_v15 }
 0x275   : >> { %v1144_v19 = vadd.f32 %v1544_v25, %v1143_v7 }
 0x276   : >> { %v1185_v60 = vadd.f32 %v1183_v13, %v1175_v11   ;;  %1196 = vst [vmem:[%s1195_s28] sm:$0xff] %v1175_v11 }
 0x277   : >> { %v1148_v5 = vsel %vm1147_vm7, %v1544_v25, %v1144_v19 }
 0x278   : >> { %v1153_v6 = vsel %vm1150_vm8, %v1152_v16, %v1148_v5 }
 0x279   : >> { %v1164_v20 = vmul.f32 %v1548_v4, %v1153_v6  ;;  %690 = sbr.rel (!%p688_p0) target bundleno = 331 (0x14b), region = 139 }
 0x27b   : >> { %v1176_v2 = vmul.f32 %v3040_v23, %v1164_v20 }
 0x27d   : >> { %v1186_v8 = vadd.f32 %v1184_v29, %v1176_v2   ;;  %1197 = vst [vmem:[%s1195_s28 + $0x8] sm:$0xff] %v1176_v2 }
 0x27e   : > { %1208 = sbr.rel (!%p1743_p9) target bundleno = 661 (0x295), region = 74  ;;  %s1420_s29 = sshll.u32 (%p1743_p9), %s1639_s15, 4 }
 0x27f   : > { %s1219_s4 = scalar_lea.vmem (%p1743_p9), %s3128_s3, %s1420_s29 }
 0x284   : > { %v1232_v23 = vld [vmem:[%s2687_s9] sm:$0xff]  ;;  %v1234_v18 = vld [vmem:[%s2687_s9 + $0x8] sm:$0xff]  ;;  %v1236_v8 = vld [vmem:[%s2687_s9 + $0x10] sm:$0xff] }
 0x285   : > { %1233 = vst [vmem:[%s1219_s4] sm:$0xff] %v1232_v23  ;;  %v1238_v12 = vld [vmem:[%s2687_s9 + $0x18] sm:$0xff]  ;;  %v1240_v27 = vld [vmem:[%s2687_s9 + $0x20] sm:$0xff]  ;;  %v1242_v30 = vld [vmem:[%s2687_s9 + $0x28] sm:$0xff] }
 0x286   : > { %1235 = vst [vmem:[%s1219_s4 + $0x8] sm:$0xff] %v1234_v18  ;;  %v1244_v31 = vld [vmem:[%s2687_s9 + $0x30] sm:$0xff]  ;;  %v1246_v32 = vld [vmem:[%s2687_s9 + $0x38] sm:$0xff]  ;;  %v1248_v33 = vld [vmem:[%s2687_s9 + $0x40] sm:$0xff] }
 0x287   : > { %1237 = vst [vmem:[%s1219_s4 + $0x20] sm:$0xff] %v1236_v8  ;;  %v1250_v34 = vld [vmem:[%s2687_s9 + $0x48] sm:$0xff]  ;;  %v1252_v35 = vld [vmem:[%s2687_s9 + $0x50] sm:$0xff]  ;;  %v1254_v36 = vld [vmem:[%s2687_s9 + $0x58] sm:$0xff] }
 0x288   : > { %1239 = vst [vmem:[%s1219_s4 + $0x28] sm:$0xff] %v1238_v12  ;;  %v1256_v37 = vld [vmem:[%s2687_s9 + $0x60] sm:$0xff]  ;;  %v1258_v38 = vld [vmem:[%s2687_s9 + $0x68] sm:$0xff]  ;;  %v1260_v39 = vld [vmem:[%s2687_s9 + $0x70] sm:$0xff] }
 0x289   : > { %1241 = vst [vmem:[%s1219_s4 + $0x40] sm:$0xff] %v1240_v27  ;;  %v1262_v40 = vld [vmem:[%s2687_s9 + $0x78] sm:$0xff] }
 0x28a   : > { %1243 = vst [vmem:[%s1219_s4 + $0x48] sm:$0xff] %v1242_v30 }
 0x28b   : > { %1245 = vst [vmem:[%s1219_s4 + $0x60] sm:$0xff] %v1244_v31 }
 0x28c   : > { %1247 = vst [vmem:[%s1219_s4 + $0x68] sm:$0xff] %v1246_v32 }
 0x28d   : > { %1249 = vst [vmem:[%s1219_s4 + $0x80] sm:$0xff] %v1248_v33 }
 0x28e   : > { %1251 = vst [vmem:[%s1219_s4 + $0x88] sm:$0xff] %v1250_v34 }
 0x28f   : > { %1253 = vst [vmem:[%s1219_s4 + $0xa0] sm:$0xff] %v1252_v35 }
 0x290   : > { %1255 = vst [vmem:[%s1219_s4 + $0xa8] sm:$0xff] %v1254_v36 }
 0x291   : > { %1257 = vst [vmem:[%s1219_s4 + $0xc0] sm:$0xff] %v1256_v37 }
 0x292   : > { %1259 = vst [vmem:[%s1219_s4 + $0xc8] sm:$0xff] %v1258_v38 }
 0x293   : > { %1261 = vst [vmem:[%s1219_s4 + $0xe0] sm:$0xff] %v1260_v39 }
 0x294   : > { %1263 = vst [vmem:[%s1219_s4 + $0xe8] sm:$0xff] %v1262_v40 }
 0x295 PF: > { %s16_s17 = sadd.s32 1, %s1647_s17   ;;  %s3586_s12 = smov %s1631_s13 }
 0x296   : > { %p13_p1 = scmp.ge.s32.totalorder %s16_s17, 4   ;;  %s3587_s13 = smov %s1635_s14 }
 0x297   : > { %s3588_s14 = smov %s1741_s24  ;;  %s3589_s15 = smov %s1643_s16 }
 0x298   : > { %s3590_s16 = smov %s3592_s19  ;;  %15 = sbr.rel (!%p13_p1) target bundleno = 4 (0x4), region = 150 }
 0x29d   :  { %1279 = vsyncpa [#allocation6], 1 }
 0x29e   :  { %1281 = vsyncpa [#allocation6 + $0x1], 1 }

// kernel: bilstm_crf_forward.3
= control target key start
LH: loop header
LB: loop body
LE: loop exit
PB: predicated region body
PF: predicated region fallthrough
CT: control target
= control target key end

     0   :  { %8 = vsyncpa [#allocation4], 0  ;;  %s14788_s0 = inlined_call_operand.vmem [shape: bf16[64,3200], index: 0, kind: input, shape index: {}]   ;;  %s14789_s1 = inlined_call_operand.hbm [shape: bf16[3200,2048], index: 1, kind: input, shape index: {}]   ;;  %s14790_s2 = inlined_call_operand.hbm [shape: f32[1,2048], index: 2, kind: input, shape index: {}]   ;;  %s14791_s3 = inlined_call_operand.vmem [shape: f32[64,2048], index: 3, kind: output, shape index: {}]  }
   0x1   :  { %10 = vsyncpa [#allocation4 + $0x1], 0 }
   0x2   :  { %11 = vsyncpa [#allocation6], 0  ;;  %s10816_s12 = smov 0   ;;  %s10818_s13 = smov 0  }
   0x3   :  { %s10820_s14 = smov 0   ;;  %s10822_s15 = smov 0  }
   0x4   :  { %s10824_s16 = smov 0   ;;  %s10826_s17 = smov 0  }
   0x5 LB: > { %s7278_s18 = sadd.s32 4294967295, %s10791_s17   ;;  %s26_s19 = sadd.s32 1, %s10787_s16  ;;  %s10791_s17 = sphi %s10826_s17, %s17_s17   ;;  %s10787_s16 = sphi %s10824_s16, %s14810_s16   ;;  %s10783_s15 = sphi %s10822_s15, %s14809_s15   ;;  %s10779_s14 = sphi %s10820_s14, %s14808_s14   ;;  %s10775_s13 = sphi %s10818_s13, %s14807_s13   ;;  %s10771_s12 = sphi %s10816_s12, %s14806_s12  }
   0x6   : > { %p27_p0 = scmp.ge.s32.totalorder %s26_s19, 5  ;;  %s38_s20 = sadd.s32 1, %s10779_s14 }
   0x7   : > { %p45_p1 = scmp.ne.s32.totalorder %s10779_s14, %s10775_s13  ;;  %p46_p2 = scmp.eq.s32.totalorder %s10791_s17, 0 }
   0x8   : > { %s14812_s19 = smov (%p27_p0, %s26_s19), 0  ;;  %p77_p4 = scmp.ne.s32.totalorder %s10775_s13, %s10771_s12 }
   0x9   : > { %p10852_p3 = por %p46_p2, %p45_p1  ;;  %s34_s22 = ssub.s32 %s10787_s16, %s14812_s19 }
   0xa   : > { %p10859_p5 = scmp.eq.s32.totalorder %s7278_s18, 0  ;;  %p36_p6 = scmp.eq.s32.totalorder %s34_s22, 0 }
   0xb   : > { %p7279_p7 = scmp.ge.s32.totalorder %s10791_s17, 1  ;;  %p135_p9 = scmp.lt.s32.totalorder %s10791_s17, 6 }
   0xc   : > { %p10866_p8 = por %p10859_p5, %p77_p4  ;;  %s147_s29 = sshll.u32 %s14790_s2, 4  ;;  %s148_s29 = int_to_ptr.hbm [resolvable:$true] %s147_s29 }
   0xd   : > { %s10872_s25 = scalar_select %p36_p6, %s10779_s14, %s38_s20  }
   0xe   : > { %p10874_p10 = pnand %p7279_p7, %p135_p9  ;;  %s10793_s30 = smov [#allocation5]  }
   0xf   : > { %s149_s4 = sshll.u32 %s10793_s30, 4  ;;  %p7281_p13 = scmp.ge.s32.totalorder %s10791_s17, 5  ;;  %s150_s4 = int_to_ptr.vmem [resolvable:$true] %s149_s4 }
  0x10   : > { %p10622_p11 = pneg %p10874_p10 }
  0x11   : > { %156 = sbr.rel (%p7281_p13) target bundleno = 57 (0x39), region = 20 }
  0x12   : > { %p10623_p12 = pnand %p10622_p11, %p10859_p5 }
  0x14   : > { %10625 = dma.hbm_to_vmem [thread:$0]  (!%p10623_p12), %s148_s29, 256, %s150_s4, [#allocation6]  }
  0x16   : > { %159 = sbr.rel (!%p10852_p3) target bundleno = 51 (0x33), region = 24  ;;  %s161_s5 = sand.u32 (%p10852_p3), 1, %s10779_s14  }
  0x17   : > { %s9948_s6 = smul.u32 (%p10852_p3), 20, %s10787_s16 }
  0x18   : > { %s10612_s7 = smul.u32 (%p10852_p3), 160, %s161_s5 }
  0x19   : > { %s10893_s10 = scalar_lea.vmem (%p10852_p3), %s14788_s0, %s9948_s6 }
  0x1a   : > { %v184_v0 = vld [vmem:[%s10893_s10] sm:$0xff] (%p10852_p3)  ;;  %v186_v1 = vld [vmem:[%s10893_s10 + $0x8] sm:$0xff] (%p10852_p3)  ;;  %s10898_s11 = scalar_lea.vmem (%p10852_p3), [#allocation2], %s10612_s7  ;;  %v194_v5 = vld [vmem:[%s10893_s10 + $0xd0] sm:$0xff] (%p10852_p3) }
  0x1b   : > { %v188_v2 = vld [vmem:[%s10893_s10 + $0x64] sm:$0xff]  ;;  %185 = vst [vmem:[%s10898_s11] sm:$0xff] %v184_v0  ;;  %v190_v3 = vld [vmem:[%s10893_s10 + $0x6c] sm:$0xff]  ;;  %v198_v7 = vld [vmem:[%s10893_s10 + $0x134] sm:$0xff] }
  0x1c   : > { %187 = vst [vmem:[%s10898_s11 + $0x8] sm:$0xff] %v186_v1  ;;  %v192_v4 = vld [vmem:[%s10893_s10 + $0xc8] sm:$0xff]  ;;  %v200_v8 = vld [vmem:[%s10893_s10 + $0x190] sm:$0xff]  ;;  %v202_v9 = vld [vmem:[%s10893_s10 + $0x198] sm:$0xff] }
  0x1d   : > { %189 = vst [vmem:[%s10898_s11 + $0x14] sm:$0xff] %v188_v2  ;;  %v196_v6 = vld [vmem:[%s10893_s10 + $0x12c] sm:$0xff]  ;;  %v204_v10 = vld [vmem:[%s10893_s10 + $0x1f4] sm:$0xff]  ;;  %v206_v11 = vld [vmem:[%s10893_s10 + $0x1fc] sm:$0xff] }
  0x1e   : > { %191 = vst [vmem:[%s10898_s11 + $0x1c] sm:$0xff] %v190_v3  ;;  %v208_v12 = vld [vmem:[%s10893_s10 + $0x258] sm:$0xff]  ;;  %v210_v13 = vld [vmem:[%s10893_s10 + $0x260] sm:$0xff]  ;;  %v7283_v16 = vld [vmem:[%s10893_s10 + $0x10] sm:$0xf] }
  0x1f   : > { %193 = vst [vmem:[%s10898_s11 + $0x28] sm:$0xff] %v192_v4  ;;  %v212_v14 = vld [vmem:[%s10893_s10 + $0x2bc] sm:$0xff]  ;;  %v214_v15 = vld [vmem:[%s10893_s10 + $0x2c4] sm:$0xff]  ;;  %v7285_v17 = vld [vmem:[%s10893_s10 + $0x74] sm:$0xf] }
  0x20   : > { %195 = vst [vmem:[%s10898_s11 + $0x30] sm:$0xff] %v194_v5  ;;  %v7287_v18 = vld [vmem:[%s10893_s10 + $0xd8] sm:$0xf]  ;;  %v7289_v19 = vld [vmem:[%s10893_s10 + $0x13c] sm:$0xf] }
  0x21   : > { %197 = vst [vmem:[%s10898_s11 + $0x3c] sm:$0xff] %v196_v6  ;;  %v7291_v20 = vld [vmem:[%s10893_s10 + $0x1a0] sm:$0xf]  ;;  %v7293_v21 = vld [vmem:[%s10893_s10 + $0x204] sm:$0xf] }
  0x22   : > { %199 = vst [vmem:[%s10898_s11 + $0x44] sm:$0xff] %v198_v7  ;;  %v7295_v22 = vld [vmem:[%s10893_s10 + $0x268] sm:$0xf]  ;;  %v7297_v23 = vld [vmem:[%s10893_s10 + $0x2cc] sm:$0xf] }
  0x23   : > { %201 = vst [vmem:[%s10898_s11 + $0x50] sm:$0xff] %v200_v8 }
  0x24   : > { %203 = vst [vmem:[%s10898_s11 + $0x58] sm:$0xff] %v202_v9 }
  0x25   : > { %205 = vst [vmem:[%s10898_s11 + $0x64] sm:$0xff] %v204_v10 }
  0x26   : > { %207 = vst [vmem:[%s10898_s11 + $0x6c] sm:$0xff] %v206_v11 }
  0x27   : > { %209 = vst [vmem:[%s10898_s11 + $0x78] sm:$0xff] %v208_v12 }
  0x28   : > { %211 = vst [vmem:[%s10898_s11 + $0x80] sm:$0xff] %v210_v13 }
  0x29   : > { %213 = vst [vmem:[%s10898_s11 + $0x8c] sm:$0xff] %v212_v14 }
  0x2a   : > { %215 = vst [vmem:[%s10898_s11 + $0x94] sm:$0xff] %v214_v15 }
  0x2b   : > { %7284 = vst [vmem:[%s10898_s11 + $0x10] sm:$0xf] %v7283_v16 }
  0x2c   : > { %7286 = vst [vmem:[%s10898_s11 + $0x24] sm:$0xf] %v7285_v17 }
  0x2d   : > { %7288 = vst [vmem:[%s10898_s11 + $0x38] sm:$0xf] %v7287_v18 }
  0x2e   : > { %7290 = vst [vmem:[%s10898_s11 + $0x4c] sm:$0xf] %v7289_v19 }
  0x2f   : > { %7292 = vst [vmem:[%s10898_s11 + $0x60] sm:$0xf] %v7291_v20 }
  0x30   : > { %7294 = vst [vmem:[%s10898_s11 + $0x74] sm:$0xf] %v7293_v21 }
  0x31   : > { %7296 = vst [vmem:[%s10898_s11 + $0x88] sm:$0xf] %v7295_v22 }
  0x32   : > { %7298 = vst [vmem:[%s10898_s11 + $0x9c] sm:$0xf] %v7297_v23 }
  0x33 PF: > { %s246_s12 = sand.u32 1, %s10779_s14   ;;  %s10611_s18 = smul.u32 5120, %s10787_s16 }
  0x34   : > { %s10613_s20 = smul.u32 5120, %s246_s12  ;;  %s247_s5 = scalar_lea.sflag [#allocation4], %s246_s12 }
  0x35   : > { %s256_s28 = scalar_lea.hbm %s14789_s1, %s10611_s18  ;;  %s10794_s6 = smov 1024  }
  0x36   : > { %s257_s29 = sshll.u32 %s256_s28, 4  ;;  %s250_s30 = scalar_lea.vmem [#allocation3], %s10613_s20  ;;  %s258_s29 = int_to_ptr.hbm [resolvable:$true] %s257_s29 }
  0x37   : > { %s259_s4 = sshll.u32 %s250_s30, 4  ;;  %s10795_s7 = smov 64   ;;  %s260_s4 = int_to_ptr.vmem [resolvable:$true] %s259_s4 }
  0x38   : > { %10618 = dma.hbm_to_vmem [thread:$0]  (%p10852_p3), %s258_s29, 81920, %s260_s4, %s247_s5, %s10794_s6, %s10794_s6, %s10795_s7  }
  0x39 PF: > { %271 = sbr.rel (%p10874_p10) target bundleno = 1686 (0x696), region = 54 }
  0x3e   : > { %s274_s8 = sand.u32 1, %s10775_s13  }
  0x3f   : > { %s10614_s9 = smul.u32 160, %s274_s8  ;;  %s281_s18 = scalar_lea.sflag [#allocation4], %s274_s8 }
  0x40   : > { %s10615_s10 = smul.u32 5120, %s274_s8 }
  0x41   : > { %s10955_s11 = scalar_lea.vmem [#allocation2], %s10614_s9 }
  0x42   : > { %s10957_s20 = scalar_lea.vmem [#allocation3], %s10615_s10 }
  0x43   : > { %10762 = dma.done.wait (%p10866_p8), %s281_s18, 81920  }
  0x44   : > { %10764 = vsyncadd (%p10866_p8), %s281_s18, 4294885376 }
  0x45   : > { %10766 = dma.done.wait (%p10859_p5), [#allocation6], 256  }
  0x46   : > { %10768 = vsyncadd (%p10859_p5), [#allocation6], 4294967040  ;;  %p7303_p0 = scmp.ne.s32.totalorder %s10783_s15, 0 }
  0x48   : > { %331 = sbr.rel (%p7303_p0) target bundleno = 208 (0xd0), region = 70 }
  0x4d   : > { %v332_v24 = vld [vmem:[#allocation5] sm:$0xff]  ;;  %v11142_v33 = vld [vmem:[#allocation5 + $0x8] sm:$0xff] }
  0x4e   : > { %v336_v25 = vperm.slane %v332_v24, 0  ;;  %v337_v26 = vperm.slane %v332_v24, 1  ;;  %v338_v27 = vperm.slane %v332_v24, 2  ;;  %v339_v28 = vperm.slane %v332_v24, 3 }
  0x4f   : > { %v340_v29 = vperm.slane %v332_v24, 4  ;;  %v341_v30 = vperm.slane %v332_v24, 5  ;;  %v342_v31 = vperm.slane %v332_v24, 6  ;;  %v343_v32 = vperm.slane %v332_v24, 7 }
  0x50   : > { %368 = vst [vmem:[%s14791_s3] sm:$0xff] %v336_v25  ;;  %v344_v34 = vperm.slane %v11142_v33, 0  ;;  %v345_v35 = vperm.slane %v11142_v33, 1  ;;  %v346_v36 = vperm.slane %v11142_v33, 2  ;;  %v347_v37 = vperm.slane %v11142_v33, 3 }
  0x51   : > { %384 = vst [vmem:[%s14791_s3 + $0x80] sm:$0xff] %v336_v25  ;;  %v348_v38 = vperm.slane %v11142_v33, 4  ;;  %v349_v39 = vperm.slane %v11142_v33, 5  ;;  %v350_v40 = vperm.slane %v11142_v33, 6  ;;  %v351_v41 = vperm.slane %v11142_v33, 7 }
  0x52   : > { %400 = vst [vmem:[%s14791_s3 + $0x100] sm:$0xff] %v336_v25 }
  0x53   : > { %416 = vst [vmem:[%s14791_s3 + $0x180] sm:$0xff] %v336_v25 }
  0x54   : > { %432 = vst [vmem:[%s14791_s3 + $0x200] sm:$0xff] %v336_v25 }
  0x55   : > { %448 = vst [vmem:[%s14791_s3 + $0x280] sm:$0xff] %v336_v25 }
  0x56   : > { %464 = vst [vmem:[%s14791_s3 + $0x300] sm:$0xff] %v336_v25 }
  0x57   : > { %480 = vst [vmem:[%s14791_s3 + $0x380] sm:$0xff] %v336_v25 }
  0x58   : > { %369 = vst [vmem:[%s14791_s3 + $0x8] sm:$0xff] %v337_v26 }
  0x59   : > { %385 = vst [vmem:[%s14791_s3 + $0x88] sm:$0xff] %v337_v26 }
  0x5a   : > { %401 = vst [vmem:[%s14791_s3 + $0x108] sm:$0xff] %v337_v26 }
  0x5b   : > { %417 = vst [vmem:[%s14791_s3 + $0x188] sm:$0xff] %v337_v26 }
  0x5c   : > { %433 = vst [vmem:[%s14791_s3 + $0x208] sm:$0xff] %v337_v26 }
  0x5d   : > { %449 = vst [vmem:[%s14791_s3 + $0x288] sm:$0xff] %v337_v26 }
  0x5e   : > { %465 = vst [vmem:[%s14791_s3 + $0x308] sm:$0xff] %v337_v26 }
  0x5f   : > { %481 = vst [vmem:[%s14791_s3 + $0x388] sm:$0xff] %v337_v26 }
  0x60   : > { %370 = vst [vmem:[%s14791_s3 + $0x10] sm:$0xff] %v338_v27 }
  0x61   : > { %386 = vst [vmem:[%s14791_s3 + $0x90] sm:$0xff] %v338_v27 }
  0x62   : > { %402 = vst [vmem:[%s14791_s3 + $0x110] sm:$0xff] %v338_v27 }
  0x63   : > { %418 = vst [vmem:[%s14791_s3 + $0x190] sm:$0xff] %v338_v27 }
  0x64   : > { %434 = vst [vmem:[%s14791_s3 + $0x210] sm:$0xff] %v338_v27 }
  0x65   : > { %450 = vst [vmem:[%s14791_s3 + $0x290] sm:$0xff] %v338_v27 }
  0x66   : > { %466 = vst [vmem:[%s14791_s3 + $0x310] sm:$0xff] %v338_v27 }
  0x67   : > { %482 = vst [vmem:[%s14791_s3 + $0x390] sm:$0xff] %v338_v27 }
  0x68   : > { %371 = vst [vmem:[%s14791_s3 + $0x18] sm:$0xff] %v339_v28 }
  0x69   : > { %387 = vst [vmem:[%s14791_s3 + $0x98] sm:$0xff] %v339_v28 }
  0x6a   : > { %403 = vst [vmem:[%s14791_s3 + $0x118] sm:$0xff] %v339_v28 }
  0x6b   : > { %419 = vst [vmem:[%s14791_s3 + $0x198] sm:$0xff] %v339_v28 }
  0x6c   : > { %435 = vst [vmem:[%s14791_s3 + $0x218] sm:$0xff] %v339_v28 }
  0x6d   : > { %451 = vst [vmem:[%s14791_s3 + $0x298] sm:$0xff] %v339_v28 }
  0x6e   : > { %467 = vst [vmem:[%s14791_s3 + $0x318] sm:$0xff] %v339_v28 }
  0x6f   : > { %483 = vst [vmem:[%s14791_s3 + $0x398] sm:$0xff] %v339_v28 }
  0x70   : > { %372 = vst [vmem:[%s14791_s3 + $0x20] sm:$0xff] %v340_v29 }
  0x71   : > { %388 = vst [vmem:[%s14791_s3 + $0xa0] sm:$0xff] %v340_v29 }
  0x72   : > { %404 = vst [vmem:[%s14791_s3 + $0x120] sm:$0xff] %v340_v29 }
  0x73   : > { %420 = vst [vmem:[%s14791_s3 + $0x1a0] sm:$0xff] %v340_v29 }
  0x74   : > { %436 = vst [vmem:[%s14791_s3 + $0x220] sm:$0xff] %v340_v29 }
  0x75   : > { %452 = vst [vmem:[%s14791_s3 + $0x2a0] sm:$0xff] %v340_v29 }
  0x76   : > { %468 = vst [vmem:[%s14791_s3 + $0x320] sm:$0xff] %v340_v29 }
  0x77   : > { %484 = vst [vmem:[%s14791_s3 + $0x3a0] sm:$0xff] %v340_v29 }
  0x78   : > { %373 = vst [vmem:[%s14791_s3 + $0x28] sm:$0xff] %v341_v30 }
  0x79   : > { %389 = vst [vmem:[%s14791_s3 + $0xa8] sm:$0xff] %v341_v30 }
  0x7a   : > { %405 = vst [vmem:[%s14791_s3 + $0x128] sm:$0xff] %v341_v30 }
  0x7b   : > { %421 = vst [vmem:[%s14791_s3 + $0x1a8] sm:$0xff] %v341_v30 }
  0x7c   : > { %437 = vst [vmem:[%s14791_s3 + $0x228] sm:$0xff] %v341_v30 }
  0x7d   : > { %453 = vst [vmem:[%s14791_s3 + $0x2a8] sm:$0xff] %v341_v30 }
  0x7e   : > { %469 = vst [vmem:[%s14791_s3 + $0x328] sm:$0xff] %v341_v30 }
  0x7f   : > { %485 = vst [vmem:[%s14791_s3 + $0x3a8] sm:$0xff] %v341_v30 }
  0x80   : > { %374 = vst [vmem:[%s14791_s3 + $0x30] sm:$0xff] %v342_v31 }
  0x81   : > { %390 = vst [vmem:[%s14791_s3 + $0xb0] sm:$0xff] %v342_v31 }
  0x82   : > { %406 = vst [vmem:[%s14791_s3 + $0x130] sm:$0xff] %v342_v31 }
  0x83   : > { %422 = vst [vmem:[%s14791_s3 + $0x1b0] sm:$0xff] %v342_v31 }
  0x84   : > { %438 = vst [vmem:[%s14791_s3 + $0x230] sm:$0xff] %v342_v31 }
  0x85   : > { %454 = vst [vmem:[%s14791_s3 + $0x2b0] sm:$0xff] %v342_v31 }
  0x86   : > { %470 = vst [vmem:[%s14791_s3 + $0x330] sm:$0xff] %v342_v31 }
  0x87   : > { %486 = vst [vmem:[%s14791_s3 + $0x3b0] sm:$0xff] %v342_v31 }
  0x88   : > { %375 = vst [vmem:[%s14791_s3 + $0x38] sm:$0xff] %v343_v32 }
  0x89   : > { %391 = vst [vmem:[%s14791_s3 + $0xb8] sm:$0xff] %v343_v32 }
  0x8a   : > { %407 = vst [vmem:[%s14791_s3 + $0x138] sm:$0xff] %v343_v32 }
  0x8b   : > { %423 = vst [vmem:[%s14791_s3 + $0x1b8] sm:$0xff] %v343_v32 }
  0x8c   : > { %439 = vst [vmem:[%s14791_s3 + $0x238] sm:$0xff] %v343_v32 }
  0x8d   : > { %455 = vst [vmem:[%s14791_s3 + $0x2b8] sm:$0xff] %v343_v32 }
  0x8e   : > { %471 = vst [vmem:[%s14791_s3 + $0x338] sm:$0xff] %v343_v32 }
  0x8f   : > { %487 = vst [vmem:[%s14791_s3 + $0x3b8] sm:$0xff] %v343_v32 }
  0x90   : > { %376 = vst [vmem:[%s14791_s3 + $0x40] sm:$0xff] %v344_v34 }
  0x91   : > { %392 = vst [vmem:[%s14791_s3 + $0xc0] sm:$0xff] %v344_v34 }
  0x92   : > { %408 = vst [vmem:[%s14791_s3 + $0x140] sm:$0xff] %v344_v34 }
  0x93   : > { %424 = vst [vmem:[%s14791_s3 + $0x1c0] sm:$0xff] %v344_v34 }
  0x94   : > { %440 = vst [vmem:[%s14791_s3 + $0x240] sm:$0xff] %v344_v34 }
  0x95   : > { %456 = vst [vmem:[%s14791_s3 + $0x2c0] sm:$0xff] %v344_v34 }
  0x96   : > { %472 = vst [vmem:[%s14791_s3 + $0x340] sm:$0xff] %v344_v34 }
  0x97   : > { %488 = vst [vmem:[%s14791_s3 + $0x3c0] sm:$0xff] %v344_v34 }
  0x98   : > { %377 = vst [vmem:[%s14791_s3 + $0x48] sm:$0xff] %v345_v35 }
  0x99   : > { %393 = vst [vmem:[%s14791_s3 + $0xc8] sm:$0xff] %v345_v35 }
  0x9a   : > { %409 = vst [vmem:[%s14791_s3 + $0x148] sm:$0xff] %v345_v35 }
  0x9b   : > { %425 = vst [vmem:[%s14791_s3 + $0x1c8] sm:$0xff] %v345_v35 }
  0x9c   : > { %441 = vst [vmem:[%s14791_s3 + $0x248] sm:$0xff] %v345_v35 }
  0x9d   : > { %457 = vst [vmem:[%s14791_s3 + $0x2c8] sm:$0xff] %v345_v35 }
  0x9e   : > { %473 = vst [vmem:[%s14791_s3 + $0x348] sm:$0xff] %v345_v35 }
  0x9f   : > { %489 = vst [vmem:[%s14791_s3 + $0x3c8] sm:$0xff] %v345_v35 }
  0xa0   : > { %378 = vst [vmem:[%s14791_s3 + $0x50] sm:$0xff] %v346_v36 }
  0xa1   : > { %394 = vst [vmem:[%s14791_s3 + $0xd0] sm:$0xff] %v346_v36 }
  0xa2   : > { %410 = vst [vmem:[%s14791_s3 + $0x150] sm:$0xff] %v346_v36 }
  0xa3   : > { %426 = vst [vmem:[%s14791_s3 + $0x1d0] sm:$0xff] %v346_v36 }
  0xa4   : > { %442 = vst [vmem:[%s14791_s3 + $0x250] sm:$0xff] %v346_v36 }
  0xa5   : > { %458 = vst [vmem:[%s14791_s3 + $0x2d0] sm:$0xff] %v346_v36 }
  0xa6   : > { %474 = vst [vmem:[%s14791_s3 + $0x350] sm:$0xff] %v346_v36 }
  0xa7   : > { %490 = vst [vmem:[%s14791_s3 + $0x3d0] sm:$0xff] %v346_v36 }
  0xa8   : > { %379 = vst [vmem:[%s14791_s3 + $0x58] sm:$0xff] %v347_v37 }
  0xa9   : > { %395 = vst [vmem:[%s14791_s3 + $0xd8] sm:$0xff] %v347_v37 }
  0xaa   : > { %411 = vst [vmem:[%s14791_s3 + $0x158] sm:$0xff] %v347_v37 }
  0xab   : > { %427 = vst [vmem:[%s14791_s3 + $0x1d8] sm:$0xff] %v347_v37 }
  0xac   : > { %443 = vst [vmem:[%s14791_s3 + $0x258] sm:$0xff] %v347_v37 }
  0xad   : > { %459 = vst [vmem:[%s14791_s3 + $0x2d8] sm:$0xff] %v347_v37 }
  0xae   : > { %475 = vst [vmem:[%s14791_s3 + $0x358] sm:$0xff] %v347_v37 }
  0xaf   : > { %491 = vst [vmem:[%s14791_s3 + $0x3d8] sm:$0xff] %v347_v37 }
  0xb0   : > { %380 = vst [vmem:[%s14791_s3 + $0x60] sm:$0xff] %v348_v38 }
  0xb1   : > { %396 = vst [vmem:[%s14791_s3 + $0xe0] sm:$0xff] %v348_v38 }
  0xb2   : > { %412 = vst [vmem:[%s14791_s3 + $0x160] sm:$0xff] %v348_v38 }
  0xb3   : > { %428 = vst [vmem:[%s14791_s3 + $0x1e0] sm:$0xff] %v348_v38 }
  0xb4   : > { %444 = vst [vmem:[%s14791_s3 + $0x260] sm:$0xff] %v348_v38 }
  0xb5   : > { %460 = vst [vmem:[%s14791_s3 + $0x2e0] sm:$0xff] %v348_v38 }
  0xb6   : > { %476 = vst [vmem:[%s14791_s3 + $0x360] sm:$0xff] %v348_v38 }
  0xb7   : > { %492 = vst [vmem:[%s14791_s3 + $0x3e0] sm:$0xff] %v348_v38 }
  0xb8   : > { %381 = vst [vmem:[%s14791_s3 + $0x68] sm:$0xff] %v349_v39 }
  0xb9   : > { %397 = vst [vmem:[%s14791_s3 + $0xe8] sm:$0xff] %v349_v39 }
  0xba   : > { %413 = vst [vmem:[%s14791_s3 + $0x168] sm:$0xff] %v349_v39 }
  0xbb   : > { %429 = vst [vmem:[%s14791_s3 + $0x1e8] sm:$0xff] %v349_v39 }
  0xbc   : > { %445 = vst [vmem:[%s14791_s3 + $0x268] sm:$0xff] %v349_v39 }
  0xbd   : > { %461 = vst [vmem:[%s14791_s3 + $0x2e8] sm:$0xff] %v349_v39 }
  0xbe   : > { %477 = vst [vmem:[%s14791_s3 + $0x368] sm:$0xff] %v349_v39 }
  0xbf   : > { %493 = vst [vmem:[%s14791_s3 + $0x3e8] sm:$0xff] %v349_v39 }
  0xc0   : > { %382 = vst [vmem:[%s14791_s3 + $0x70] sm:$0xff] %v350_v40 }
  0xc1   : > { %398 = vst [vmem:[%s14791_s3 + $0xf0] sm:$0xff] %v350_v40 }
  0xc2   : > { %414 = vst [vmem:[%s14791_s3 + $0x170] sm:$0xff] %v350_v40 }
  0xc3   : > { %430 = vst [vmem:[%s14791_s3 + $0x1f0] sm:$0xff] %v350_v40 }
  0xc4   : > { %446 = vst [vmem:[%s14791_s3 + $0x270] sm:$0xff] %v350_v40 }
  0xc5   : > { %462 = vst [vmem:[%s14791_s3 + $0x2f0] sm:$0xff] %v350_v40 }
  0xc6   : > { %478 = vst [vmem:[%s14791_s3 + $0x370] sm:$0xff] %v350_v40 }
  0xc7   : > { %494 = vst [vmem:[%s14791_s3 + $0x3f0] sm:$0xff] %v350_v40 }
  0xc8   : > { %383 = vst [vmem:[%s14791_s3 + $0x78] sm:$0xff] %v351_v41 }
  0xc9   : > { %399 = vst [vmem:[%s14791_s3 + $0xf8] sm:$0xff] %v351_v41 }
  0xca   : > { %415 = vst [vmem:[%s14791_s3 + $0x178] sm:$0xff] %v351_v41 }
  0xcb   : > { %431 = vst [vmem:[%s14791_s3 + $0x1f8] sm:$0xff] %v351_v41 }
  0xcc   : > { %447 = vst [vmem:[%s14791_s3 + $0x278] sm:$0xff] %v351_v41 }
  0xcd   : > { %463 = vst [vmem:[%s14791_s3 + $0x2f8] sm:$0xff] %v351_v41 }
  0xce   : > { %479 = vst [vmem:[%s14791_s3 + $0x378] sm:$0xff] %v351_v41 }
  0xcf   : > { %495 = vst [vmem:[%s14791_s3 + $0x3f8] sm:$0xff] %v351_v41 }
  0xd0 PF: > { %v7834_v42 = vld [vmem:[%s10957_s20 + $0x380] sm:$0xf] }
  0xd1   : > { %v10091_v43 = vld [vmem:[%s10957_s20 + $0x3bc] sm:$0xf0] }
  0xd2   : > { %v8346_v44 = vld [vmem:[%s10957_s20 + $0x780] sm:$0xf]  ;;  %v7835_v45 = vor.u32 %v10091_v43, %v7834_v42 }
  0xd3   : > { %v10219_v46 = vld [vmem:[%s10957_s20 + $0x7bc] sm:$0xf0] }
  0xd4   : > { %v8858_v47 = vld [vmem:[%s10957_s20 + $0xb80] sm:$0xf]  ;;  %v8347_v49 = vor.u32 %v10219_v46, %v8346_v44  ;;  %4592 = vmatpush.bf16.msra.mxu0 %v7835_v45 }
  0xd5   : > { %v10347_v48 = vld [vmem:[%s10957_s20 + $0xbbc] sm:$0xf0] }
  0xd6   : > { %v8859_v50 = vor.u32 %v10347_v48, %v8858_v47  ;;  %v9370_v51 = vld [vmem:[%s10957_s20 + $0xf80] sm:$0xf]  ;;  %4621 = vmatpush.bf16.msra.mxu1 %v8347_v49 }
  0xd7   : > { %v10475_v52 = vld [vmem:[%s10957_s20 + $0xfbc] sm:$0xf0] }
  0xd8   : > { %v7770_v53 = vld [vmem:[%s10957_s20 + $0x300] sm:$0xf]  ;;  %v9371_v54 = vor.u32 %v10475_v52, %v9370_v51  ;;  %4650 = vmatpush.bf16.msra.mxu2 %v8859_v50 }
  0xd9   : > { %v10075_v55 = vld [vmem:[%s10957_s20 + $0x33c] sm:$0xf0] }
  0xda   : > { %v8282_v56 = vld [vmem:[%s10957_s20 + $0x700] sm:$0xf]  ;;  %v7771_v58 = vor.u32 %v10075_v55, %v7770_v53  ;;  %4679 = vmatpush.bf16.msra.mxu3 %v9371_v54 }
  0xdb   : > { %v10203_v57 = vld [vmem:[%s10957_s20 + $0x73c] sm:$0xf0] }
  0xdc   : > { %v8283_v59 = vor.u32 %v10203_v57, %v8282_v56  ;;  %v8794_v60 = vld [vmem:[%s10957_s20 + $0xb00] sm:$0xf]  ;;  %4593 = vmatpush.bf16.msra.mxu0 %v7771_v58 }
  0xdd   : > { %v10331_v61 = vld [vmem:[%s10957_s20 + $0xb3c] sm:$0xf0] }
  0xde   : > { %v9306_v62 = vld [vmem:[%s10957_s20 + $0xf00] sm:$0xf]  ;;  %v8795_v63 = vor.u32 %v10331_v61, %v8794_v60  ;;  %4622 = vmatpush.bf16.msra.mxu1 %v8283_v59 }
  0xdf   : > { %v10459_v0 = vld [vmem:[%s10957_s20 + $0xf3c] sm:$0xf0] }
  0xe0   : > { %v7706_v1 = vld [vmem:[%s10957_s20 + $0x280] sm:$0xf]  ;;  %v9307_v3 = vor.u32 %v10459_v0, %v9306_v62  ;;  %4651 = vmatpush.bf16.msra.mxu2 %v8795_v63 }
  0xe1   : > { %v10059_v2 = vld [vmem:[%s10957_s20 + $0x2bc] sm:$0xf0] }
  0xe2   : > { %v8218_v4 = vld [vmem:[%s10957_s20 + $0x680] sm:$0xf]  ;;  %v7707_v7 = vor.u32 %v10059_v2, %v7706_v1  ;;  %4680 = vmatpush.bf16.msra.mxu3 %v9307_v3 }
  0xe3   : > { %v10187_v5 = vld [vmem:[%s10957_s20 + $0x6bc] sm:$0xf0] }
  0xe4   : > { %v8730_v6 = vld [vmem:[%s10957_s20 + $0xa80] sm:$0xf]  ;;  %v8219_v11 = vor.u32 %v10187_v5, %v8218_v4  ;;  %4594 = vmatpush.bf16.msra.mxu0 %v7707_v7  ;;  %v9953_v7 = vld [vmem:[%s10955_s11 + $0x10] sm:$0xf0] }
  0xe5   : > { %v10315_v8 = vld [vmem:[%s10957_s20 + $0xabc] sm:$0xf0] }
  0xe6   : > { %v9242_v9 = vld [vmem:[%s10957_s20 + $0xe80] sm:$0xf]  ;;  %v8731_v12 = vor.u32 %v10315_v8, %v8730_v6  ;;  %4623 = vmatpush.bf16.msra.mxu1 %v8219_v11  ;;  %v9951_v8 = vld [vmem:[%s10955_s11 + $0x4] sm:$0xf] }
  0xe7   : > { %v10443_v10 = vld [vmem:[%s10957_s20 + $0xebc] sm:$0xf0]  ;;  %v8348_v11 = vld [vmem:[%s10957_s20 + $0x7c0] sm:$0xf0] }
  0xe8   : > { %v7642_v13 = vld [vmem:[%s10957_s20 + $0x200] sm:$0xf]  ;;  %v9243_v16 = vor.u32 %v10443_v10, %v9242_v9  ;;  %4652 = vmatpush.bf16.msra.mxu2 %v8731_v12  ;;  %v7308_v9 = vld [vmem:[%s10955_s11 + $0x14] sm:$0xf0]  ;;  %v10211_v10 = vld [vmem:[%s10957_s20 + $0x784] sm:$0xf] }
  0xe9   : > { %v10043_v14 = vld [vmem:[%s10957_s20 + $0x23c] sm:$0xf0] }
  0xea   : > { %v8154_v15 = vld [vmem:[%s10957_s20 + $0x600] sm:$0xf]  ;;  %v7643_v22 = vor.u32 %v10043_v14, %v7642_v13  ;;  %4681 = vmatpush.bf16.msra.mxu3 %v9243_v16  ;;  %v7314_v13 = vld [vmem:[%s10955_s11 + $0x8] sm:$0xf]  ;;  %v10339_v14 = vld [vmem:[%s10957_s20 + $0xb84] sm:$0xf] }
  0xeb   : > { %v10171_v17 = vld [vmem:[%s10957_s20 + $0x63c] sm:$0xf0] }
  0xec   : > { %v8666_v18 = vld [vmem:[%s10957_s20 + $0xa00] sm:$0xf]  ;;  %v8155_v23 = vor.u32 %v10171_v17, %v8154_v15  ;;  %4595 = vmatpush.bf16.msra.mxu0 %v7643_v22  ;;  %v8860_v15 = vld [vmem:[%s10957_s20 + $0xbc0] sm:$0xf0]  ;;  %v8351_v22 = vor.u32 %v10211_v10, %v8348_v11  ;;  %v7334_v10 = vld [vmem:[%s10955_s11 + $0x30] sm:$0xf] }
  0xed   : > { %v10299_v19 = vld [vmem:[%s10957_s20 + $0xa3c] sm:$0xf0]  ;;  %v10275_v11 = vld [vmem:[%s10957_s20 + $0x984] sm:$0xf] }
  0xee   : > { %v9178_v20 = vld [vmem:[%s10957_s20 + $0xe00] sm:$0xf]  ;;  %v8667_v24 = vor.u32 %v10299_v19, %v8666_v18  ;;  %4624 = vmatpush.bf16.msra.mxu1 %v8155_v23  ;;  %v9954_v18 = vld [vmem:[%s10955_s11 + $0x18] sm:$0xf0]  ;;  %v9952_v19 = vld [vmem:[%s10955_s11 + $0xc] sm:$0xf] }
  0xef   : > { %v10427_v21 = vld [vmem:[%s10957_s20 + $0xe3c] sm:$0xf0] }
  0xf0   : > { %v7578_v25 = vld [vmem:[%s10957_s20 + $0x180] sm:$0xf]  ;;  %v9179_v28 = vor.u32 %v10427_v21, %v9178_v20  ;;  %4653 = vmatpush.bf16.msra.mxu2 %v8667_v24 }
  0xf1   : > { %v10027_v26 = vld [vmem:[%s10957_s20 + $0x1bc] sm:$0xf0] }
  0xf2   : > { %v8090_v27 = vld [vmem:[%s10957_s20 + $0x580] sm:$0xf]  ;;  %v7579_v34 = vor.u32 %v10027_v26, %v7578_v25  ;;  %4682 = vmatpush.bf16.msra.mxu3 %v9179_v28  ;;  %v10083_v25 = vld [vmem:[%s10957_s20 + $0x384] sm:$0xf] }
  0xf3   : > { %v10155_v29 = vld [vmem:[%s10957_s20 + $0x5bc] sm:$0xf0]  ;;  %v7836_v28 = vld [vmem:[%s10957_s20 + $0x3c0] sm:$0xf0] }
  0xf4   : > { %v8602_v30 = vld [vmem:[%s10957_s20 + $0x980] sm:$0xf]  ;;  %v8091_v35 = vor.u32 %v10155_v29, %v8090_v27  ;;  %4596 = vmatpush.bf16.msra.mxu0 %v7579_v34  ;;  %v8863_v27 = vor.u32 %v10339_v14, %v8860_v15  ;;  %v10195_v29 = vld [vmem:[%s10957_s20 + $0x704] sm:$0xf]  ;;  %v9957_v14 = vld [vmem:[%s10955_s11 + $0x34] sm:$0xf] }
  0xf5   : > { %v10283_v31 = vld [vmem:[%s10957_s20 + $0x9bc] sm:$0xf0]  ;;  %v8796_v34 = vld [vmem:[%s10957_s20 + $0xb40] sm:$0xf0]  ;;  %v7336_v15 = vld [vmem:[%s10955_s11 + $0x44] sm:$0xf0] }
  0xf6   : > { %v9114_v32 = vld [vmem:[%s10957_s20 + $0xd80] sm:$0xf]  ;;  %v8603_v36 = vor.u32 %v10283_v31, %v8602_v30  ;;  %4625 = vmatpush.bf16.msra.mxu1 %v8091_v35  ;;  %v8284_v30 = vld [vmem:[%s10957_s20 + $0x740] sm:$0xf0]  ;;  %v11446_v31 = vor.u32 %v9951_v8, %v7308_v9 }
  0xf7   : > { %v10411_v33 = vld [vmem:[%s10957_s20 + $0xdbc] sm:$0xf0]  ;;  %v10147_v8 = vld [vmem:[%s10957_s20 + $0x584] sm:$0xf] }
  0xf8   : > { %v7514_v37 = vld [vmem:[%s10957_s20 + $0x100] sm:$0xf]  ;;  %v9115_v40 = vor.u32 %v10411_v33, %v9114_v32  ;;  %4654 = vmatpush.bf16.msra.mxu2 %v8603_v36  ;;  %v11448_v32 = vor.u32 %v9954_v18, %v7314_v13  ;;  %v10323_v33 = vld [vmem:[%s10957_s20 + $0xb04] sm:$0xf] }
  0xf9   : > { %v10011_v38 = vld [vmem:[%s10957_s20 + $0x13c] sm:$0xf0]  ;;  %v8092_v9 = vld [vmem:[%s10957_s20 + $0x5c0] sm:$0xf0] }
  0xfa   : > { %v8026_v39 = vld [vmem:[%s10957_s20 + $0x500] sm:$0xf]  ;;  %v7515_v46 = vor.u32 %v10011_v38, %v7514_v37  ;;  %4683 = vmatpush.bf16.msra.mxu3 %v9115_v40  ;;  %v7839_v37 = vor.u32 %v10083_v25, %v7836_v28  ;;  %v8287_v38 = vor.u32 %v10195_v29, %v8284_v30  ;;  %v9959_v13 = vld [vmem:[%s10955_s11 + $0x40] sm:$0xf0]  ;;  %v8095_v18 = vor.u32 %v10147_v8, %v8092_v9  ;;  %v7354_v8 = vld [vmem:[%s10955_s11 + $0x58] sm:$0xf] }
  0xfb   : > { %v10139_v41 = vld [vmem:[%s10957_s20 + $0x53c] sm:$0xf0]  ;;  %v10131_v25 = vld [vmem:[%s10957_s20 + $0x504] sm:$0xf]  ;;  %v11500_v29 = vor.u32 %v9959_v13, %v7334_v10  ;;  %v9964_v9 = vld [vmem:[%s10955_s11 + $0x68] sm:$0xf0] }
  0xfc   : > { %v8538_v42 = vld [vmem:[%s10957_s20 + $0x900] sm:$0xf]  ;;  %v8027_v47 = vor.u32 %v10139_v41, %v8026_v39  ;;  %4597 = vmatpush.bf16.msra.mxu0 %v7515_v46  ;;  %v10067_v41 = vld [vmem:[%s10957_s20 + $0x304] sm:$0xf] }
  0xfd   : > { %v10267_v43 = vld [vmem:[%s10957_s20 + $0x93c] sm:$0xf0]  ;;  %v10307_v46 = vld [vmem:[%s10957_s20 + $0xa84] sm:$0xf] }
  0xfe   : > { %v9050_v44 = vld [vmem:[%s10957_s20 + $0xd00] sm:$0xf]  ;;  %v8539_v48 = vor.u32 %v10267_v43, %v8538_v42  ;;  %4626 = vmatpush.bf16.msra.mxu1 %v8027_v47  ;;  %v8799_v42 = vor.u32 %v10323_v33, %v8796_v34  ;;  %v7772_v43 = vld [vmem:[%s10957_s20 + $0x340] sm:$0xf0]  ;;  %v11504_v34 = vor.u32 %v9957_v14, %v7336_v15 }
  0xff   : > { %v10395_v45 = vld [vmem:[%s10957_s20 + $0xd3c] sm:$0xf0]  ;;  %v8732_v47 = vld [vmem:[%s10957_s20 + $0xac0] sm:$0xf0] }
 0x100   : > { %v7450_v49 = vld [vmem:[%s10957_s20 + $0x80] sm:$0xf]  ;;  %v9051_v52 = vor.u32 %v10395_v45, %v9050_v44  ;;  %4655 = vmatpush.bf16.msra.mxu2 %v8539_v48  ;;  %v10179_v44 = vld [vmem:[%s10957_s20 + $0x684] sm:$0xf] }
 0x101   : > { %v9995_v50 = vld [vmem:[%s10957_s20 + $0xbc] sm:$0xf0]  ;;  %v8220_v45 = vld [vmem:[%s10957_s20 + $0x6c0] sm:$0xf0] }
 0x102   : > { %v7962_v51 = vld [vmem:[%s10957_s20 + $0x480] sm:$0xf]  ;;  %v7451_v59 = vor.u32 %v9995_v50, %v7450_v49  ;;  %4684 = vmatpush.bf16.msra.mxu3 %v9051_v52  ;;  %v7775_v49 = vor.u32 %v10067_v41, %v7772_v43  ;;  %v8223_v50 = vor.u32 %v10179_v44, %v8220_v45  ;;  %v10259_v30 = vld [vmem:[%s10957_s20 + $0x904] sm:$0xf] }
 0x103   : > { %v10123_v53 = vld [vmem:[%s10957_s20 + $0x4bc] sm:$0xf0]  ;;  %v8540_v33 = vld [vmem:[%s10957_s20 + $0x940] sm:$0xf0] }
 0x104   : > { %v8474_v54 = vld [vmem:[%s10957_s20 + $0x880] sm:$0xf]  ;;  %v7963_v63 = vor.u32 %v10123_v53, %v7962_v51  ;;  %4598 = vmatpush.bf16.msra.mxu0 %v7451_v59  ;;  %v10051_v53 = vld [vmem:[%s10957_s20 + $0x284] sm:$0xf]  ;;  %v8543_v41 = vor.u32 %v10259_v30, %v8540_v33 }
 0x105   : > { %v10251_v55 = vld [vmem:[%s10957_s20 + $0x8bc] sm:$0xf0]  ;;  %v8668_v59 = vld [vmem:[%s10957_s20 + $0xa40] sm:$0xf0] }
 0x106   : > { %v8986_v56 = vld [vmem:[%s10957_s20 + $0xc80] sm:$0xf]  ;;  %v8475_v0 = vor.u32 %v10251_v55, %v8474_v54  ;;  %4627 = vmatpush.bf16.msra.mxu1 %v7963_v63  ;;  %v8735_v54 = vor.u32 %v10307_v46, %v8732_v47  ;;  %v7708_v55 = vld [vmem:[%s10957_s20 + $0x2c0] sm:$0xf0] }
 0x107   : > { %v10379_v57 = vld [vmem:[%s10957_s20 + $0xcbc] sm:$0xf0]  ;;  %v7711_v63 = vor.u32 %v10051_v53, %v7708_v55  ;;  %v7516_v43 = vld [vmem:[%s10957_s20 + $0x140] sm:$0xf0] }
 0x108   : > { %v7386_v58 = vld [vmem:[%s10957_s20] sm:$0xf]  ;;  %v8987_v4 = vor.u32 %v10379_v57, %v8986_v56  ;;  %4656 = vmatpush.bf16.msra.mxu2 %v8475_v0  ;;  %v10163_v56 = vld [vmem:[%s10957_s20 + $0x604] sm:$0xf] }
 0x109   : > { %v9979_v60 = vld [vmem:[%s10957_s20 + $0x3c] sm:$0xf0]  ;;  %v8156_v57 = vld [vmem:[%s10957_s20 + $0x640] sm:$0xf0] }
 0x10a   : > { %v7898_v61 = vld [vmem:[%s10957_s20 + $0x400] sm:$0xf]  ;;  %v7387_v12 = vor.u32 %v9979_v60, %v7386_v58  ;;  %4685 = vmatpush.bf16.msra.mxu3 %v8987_v4  ;;  %v10291_v58 = vld [vmem:[%s10957_s20 + $0xa04] sm:$0xf]  ;;  %v8159_v0 = vor.u32 %v10163_v56, %v8156_v57  ;;  %v9956_v4 = vld [vmem:[%s10955_s11 + $0x2c] sm:$0xf] }
 0x10b   : > { %v10107_v62 = vld [vmem:[%s10957_s20 + $0x43c] sm:$0xf0]  ;;  %v10115_v45 = vld [vmem:[%s10957_s20 + $0x484] sm:$0xf] }
 0x10c   : > { %v8410_v1 = vld [vmem:[%s10957_s20 + $0x800] sm:$0xf]  ;;  %v7899_v16 = vor.u32 %v10107_v62, %v7898_v61  ;;  %4599 = vmatpush.bf16.msra.mxu0 %v7387_v12  ;;  %v7326_v61 = vld [vmem:[%s10955_s11 + $0x28] sm:$0xf]  ;;  %v9958_v62 = vld [vmem:[%s10955_s11 + $0x38] sm:$0xf0] }
 0x10d   : > { %v10235_v2 = vld [vmem:[%s10957_s20 + $0x83c] sm:$0xf0]  ;;  %v8604_v12 = vld [vmem:[%s10957_s20 + $0x9c0] sm:$0xf0] }
 0x10e   : > { %v8922_v3 = vld [vmem:[%s10957_s20 + $0xc00] sm:$0xf]  ;;  %v8411_v17 = vor.u32 %v10235_v2, %v8410_v1  ;;  %4628 = vmatpush.bf16.msra.mxu1 %v7899_v16  ;;  %v7964_v46 = vld [vmem:[%s10957_s20 + $0x4c0] sm:$0xf0] }
 0x10f   : > { %v10363_v5 = vld [vmem:[%s10957_s20 + $0xc3c] sm:$0xf0]  ;;  %v7452_v55 = vld [vmem:[%s10957_s20 + $0xc0] sm:$0xf0] }
 0x110   : > { %v7306_v6 = vld [vmem:[%s10955_s11] sm:$0xf]  ;;  %v8923_v21 = vor.u32 %v10363_v5, %v8922_v3  ;;  %4657 = vmatpush.bf16.msra.mxu2 %v8411_v17  ;;  %v10035_v3 = vld [vmem:[%s10957_s20 + $0x204] sm:$0xf] }
 0x111   : > { %v7316_v20 = vld [vmem:[%s10955_s11 + $0x1c] sm:$0xf0]  ;;  %v11441_v26 = vor.u32 %v9953_v7, %v7306_v6  ;;  %4629 = vmatmul.bf16.vlgmr.msra.gmra.mxu1 %v11446_v31  ;;  %v8671_v6 = vor.u32 %v10291_v58, %v8668_v59  ;;  %v7644_v7 = vld [vmem:[%s10957_s20 + $0x240] sm:$0xf0] }
 0x112   : > { %v9882_v23 = vld [vmem:[%s10957_s20 + $0x1380] sm:$0xf]  ;;  %v11452_v35 = vor.u32 %v9952_v19, %v7316_v20  ;;  %4686 = vmatpush.bf16.msra.mxu3 %v8923_v21  ;;  %4737 = vmatpush.bf16.msrb.mxu1 %v7839_v37  ;;  %v7647_v17 = vor.u32 %v10035_v3, %v7644_v7  ;;  %v10019_v21 = vld [vmem:[%s10957_s20 + $0x184] sm:$0xf]  ;;  %v7348_v7 = vld [vmem:[%s10955_s11 + $0x64] sm:$0xf0] }
 0x113   : > { %v10603_v24 = vld [vmem:[%s10957_s20 + $0x13bc] sm:$0xf0]  ;;  %4600 = vmatmul.bf16.vlgmr.msra.gmra.mxu0 %v11441_v26  ;;  %4658 = vmatmul.bf16.vlgmr.msra.gmra.mxu2 %v11448_v32  ;;  %v10099_v56 = vld [vmem:[%s10957_s20 + $0x404] sm:$0xf] }
 0x114   : > { %v9883_v36 = vor.u32 %v10603_v24, %v9882_v23  ;;  %4766 = vmatpush.bf16.msrb.mxu2 %v8351_v22  ;;  %v9818_v39 = vld [vmem:[%s10957_s20 + $0x1300] sm:$0xf]  ;;  %v11493_v22 = vor.u32 %v9958_v62, %v7326_v61  ;;  %v8607_v23 = vor.u32 %v10275_v11, %v8604_v12  ;;  %v7580_v24 = vld [vmem:[%s10957_s20 + $0x1c0] sm:$0xf0]  ;;  %v9962_v11 = vld [vmem:[%s10955_s11 + $0x5c] sm:$0xf] }
 0x115   : > { %v10587_v40 = vld [vmem:[%s10957_s20 + $0x133c] sm:$0xf0]  ;;  %4687 = vmatmul.bf16.vlgmr.msra.gmra.mxu3 %v11452_v35  ;;  %v7583_v37 = vor.u32 %v10019_v21, %v7580_v24  ;;  %v7900_v57 = vld [vmem:[%s10957_s20 + $0x440] sm:$0xf0]  ;;  %v7356_v12 = vld [vmem:[%s10955_s11 + $0x6c] sm:$0xf0] }
 0x116   : > { %4795 = vmatpush.bf16.msrb.mxu3 %v8863_v27  ;;  %4708 = vmatpush.bf16.msrb.mxu0 %v9883_v36  ;;  %v9819_v48 = vor.u32 %v10587_v40, %v9818_v39  ;;  %v9754_v51 = vld [vmem:[%s10957_s20 + $0x1280] sm:$0xf]  ;;  %v8028_v27 = vld [vmem:[%s10957_s20 + $0x540] sm:$0xf0]  ;;  %v7903_v62 = vor.u32 %v10099_v56, %v7900_v57  ;;  %v8354_v24 = vld [vmem:[%s10957_s20 + $0x788] sm:$0xf] }
 0x117   : > { %v10571_v52 = vld [vmem:[%s10957_s20 + $0x12bc] sm:$0xf0]  ;;  %4738 = vmatpush.bf16.msrb.mxu1 %v7775_v49  ;;  %v7967_v49 = vor.u32 %v10115_v45, %v7964_v46  ;;  %v10227_v59 = vld [vmem:[%s10957_s20 + $0x804] sm:$0xf]  ;;  %v10204_v45 = vld [vmem:[%s10957_s20 + $0x744] sm:$0xf0] }
 0x118   : > { %4767 = vmatpush.bf16.msrb.mxu2 %v8287_v38  ;;  %v9755_v60 = vor.u32 %v10571_v52, %v9754_v51  ;;  %v9690_v1 = vld [vmem:[%s10957_s20 + $0x1200] sm:$0xf]  ;;  %v8031_v38 = vor.u32 %v10131_v25, %v8028_v27  ;;  %v10243_v51 = vld [vmem:[%s10957_s20 + $0x884] sm:$0xf]  ;;  %v10220_v25 = vld [vmem:[%s10957_s20 + $0x7c4] sm:$0xf0] }
 0x119   : > { %v10555_v2 = vld [vmem:[%s10957_s20 + $0x123c] sm:$0xf0]  ;;  %v8476_v52 = vld [vmem:[%s10957_s20 + $0x8c0] sm:$0xf0]  ;;  %v8355_v30 = vor.u32 %v10220_v25, %v8354_v24  ;;  %v7376_v57 = vld [vmem:[%s10955_s11 + $0x94] sm:$0xf0] }
 0x11a   : > { %4796 = vmatpush.bf16.msrb.mxu3 %v8799_v42  ;;  %4709 = vmatpush.bf16.msrb.mxu0 %v9819_v48  ;;  %v7328_v5 = vld [vmem:[%s10955_s11 + $0x3c] sm:$0xf0]  ;;  %v9691_v16 = vor.u32 %v10555_v2, %v9690_v1  ;;  %v10003_v42 = vld [vmem:[%s10957_s20 + $0x104] sm:$0xf]  ;;  %v8479_v53 = vor.u32 %v10243_v51, %v8476_v52  ;;  %v9968_v51 = vld [vmem:[%s10955_s11 + $0x88] sm:$0xf0] }
 0x11b   : > { %4739 = vmatpush.bf16.msrb.mxu1 %v7711_v63  ;;  %v9626_v19 = vld [vmem:[%s10957_s20 + $0x1180] sm:$0xf]  ;;  %v11498_v28 = vor.u32 %v9956_v4, %v7328_v5  ;;  %v7519_v48 = vor.u32 %v10003_v42, %v7516_v43  ;;  %v9971_v2 = vld [vmem:[%s10957_s20 + $0x4] sm:$0xf]  ;;  %v7346_v4 = vld [vmem:[%s10955_s11 + $0x50] sm:$0xf] }
 0x11c   : > { %4768 = vmatpush.bf16.msrb.mxu2 %v8223_v50  ;;  %v10539_v20 = vld [vmem:[%s10957_s20 + $0x11bc] sm:$0xf0]  ;;  %v7388_v3 = vld [vmem:[%s10957_s20 + $0x40] sm:$0xf0]  ;;  %v9966_v52 = vld [vmem:[%s10955_s11 + $0x7c] sm:$0xf] }
 0x11d   : > { %v9627_v36 = vor.u32 %v10539_v20, %v9626_v19  ;;  %v9562_v39 = vld [vmem:[%s10957_s20 + $0x1100] sm:$0xf]  ;;  %v9963_v5 = vld [vmem:[%s10955_s11 + $0x60] sm:$0xf0]  ;;  %v7391_v13 = vor.u32 %v9971_v2, %v7388_v3  ;;  %v10092_v19 = vld [vmem:[%s10957_s20 + $0x3c4] sm:$0xf0] }
 0x11e   : > { %4797 = vmatpush.bf16.msrb.mxu3 %v8735_v54  ;;  %4710 = vmatpush.bf16.msrb.mxu0 %v9755_v60  ;;  %v10523_v40 = vld [vmem:[%s10957_s20 + $0x113c] sm:$0xf0]  ;;  %v9987_v54 = vld [vmem:[%s10957_s20 + $0x84] sm:$0xf]  ;;  %v11538_v14 = vor.u32 %v9963_v5, %v7346_v4  ;;  %v8226_v3 = vld [vmem:[%s10957_s20 + $0x688] sm:$0xf] }
 0x11f   : > { %4740 = vmatpush.bf16.msrb.mxu1 %v7647_v17  ;;  %v9563_v44 = vor.u32 %v10523_v40, %v9562_v39  ;;  %v9498_v47 = vld [vmem:[%s10957_s20 + $0x1080] sm:$0xf]  ;;  %v8412_v60 = vld [vmem:[%s10957_s20 + $0x840] sm:$0xf0]  ;;  %v7455_v61 = vor.u32 %v9987_v54, %v7452_v55  ;;  %v11544_v17 = vor.u32 %v9962_v11, %v7356_v12  ;;  %v10076_v39 = vld [vmem:[%s10957_s20 + $0x344] sm:$0xf0] }
 0x120   : > { %4769 = vmatpush.bf16.msrb.mxu2 %v8159_v0  ;;  %v10507_v50 = vld [vmem:[%s10957_s20 + $0x10bc] sm:$0xf0]  ;;  %v8415_v1 = vor.u32 %v10227_v59, %v8412_v60  ;;  %v10467_v20 = vld [vmem:[%s10957_s20 + $0xf84] sm:$0xf]  ;;  %v9969_v55 = vld [vmem:[%s10955_s11 + $0x90] sm:$0xf0] }
 0x121   : > { %4634 = vmatmul.bf16.gmra.mxu1 %v11498_v28  ;;  %v9499_v58 = vor.u32 %v10507_v50, %v9498_v47  ;;  %v9434_v63 = vld [vmem:[%s10957_s20 + $0x1000] sm:$0xf]  ;;  %v10595_v33 = vld [vmem:[%s10957_s20 + $0x1384] sm:$0xf]  ;;  %v7366_v50 = vld [vmem:[%s10955_s11 + $0x78] sm:$0xf] }
 0x122   : > { %4798 = vmatpush.bf16.msrb.mxu3 %v8671_v6  ;;  %4711 = vmatpush.bf16.msrb.mxu0 %v9691_v16  ;;  %v10491_v0 = vld [vmem:[%s10957_s20 + $0x103c] sm:$0xf0]  ;;  %v9961_v6 = vld [vmem:[%s10955_s11 + $0x54] sm:$0xf]  ;;  %v11542_v16 = vor.u32 %v9964_v9, %v7354_v8  ;;  %v10451_v40 = vld [vmem:[%s10957_s20 + $0xf04] sm:$0xf] }
 0x123   : > { %4605 = vmatmul.bf16.gmra.mxu0 %v11493_v22  ;;  %4663 = vmatmul.bf16.gmra.mxu2 %v11500_v29  ;;  %v9435_v10 = vor.u32 %v10491_v0, %v9434_v63  ;;  %v11540_v15 = vor.u32 %v9961_v6, %v7348_v7  ;;  %v10579_v46 = vld [vmem:[%s10957_s20 + $0x1304] sm:$0xf]  ;;  %v7374_v54 = vld [vmem:[%s10955_s11 + $0x80] sm:$0xf]  ;;  %v10060_v63 = vld [vmem:[%s10957_s20 + $0x2c4] sm:$0xf0] }
 0x124   : > { %4770 = vmatpush.bf16.msrb.mxu2 %v8095_v18  ;;  %4741 = vmatpush.bf16.msrb.mxu1 %v7583_v37  ;;  %v7842_v18 = vld [vmem:[%s10957_s20 + $0x388] sm:$0xf]  ;;  %v9967_v56 = vld [vmem:[%s10955_s11 + $0x84] sm:$0xf]  ;;  %v11578_v60 = vor.u32 %v9969_v55, %v7374_v54 }
 0x125   : > { %4692 = vmatmul.bf16.gmra.mxu3 %v11504_v34  ;;  %v7843_v21 = vor.u32 %v10092_v19, %v7842_v18  ;;  %v7778_v37 = vld [vmem:[%s10957_s20 + $0x308] sm:$0xf]  ;;  %v10435_v0 = vld [vmem:[%s10957_s20 + $0xe84] sm:$0xf] }
 0x126   : > { %4799 = vmatpush.bf16.msrb.mxu3 %v8607_v23  ;;  %4712 = vmatpush.bf16.msrb.mxu0 %v9627_v36  ;;  %v9372_v23 = vld [vmem:[%s10957_s20 + $0xfc0] sm:$0xf0]  ;;  %v7779_v42 = vor.u32 %v10076_v39, %v7778_v37  ;;  %v10188_v4 = vld [vmem:[%s10957_s20 + $0x6c4] sm:$0xf0] }
 0x127   : > { %v9375_v27 = vor.u32 %v10467_v20, %v9372_v23  ;;  %v9884_v36 = vld [vmem:[%s10957_s20 + $0x13c0] sm:$0xf0]  ;;  %v8227_v6 = vor.u32 %v10188_v4, %v8226_v3  ;;  %v7650_v9 = vld [vmem:[%s10957_s20 + $0x208] sm:$0xf] }
 0x128   : > { %4771 = vmatpush.bf16.msrb.mxu2 %v8031_v38  ;;  %4742 = vmatpush.bf16.msrb.mxu1 %v7519_v48  ;;  %v9887_v38 = vor.u32 %v10595_v33, %v9884_v36  ;;  %v9820_v48 = vld [vmem:[%s10957_s20 + $0x1340] sm:$0xf0]  ;;  %v10044_v11 = vld [vmem:[%s10957_s20 + $0x244] sm:$0xf0] }
 0x129   : > { %v9244_v2 = vld [vmem:[%s10957_s20 + $0xec0] sm:$0xf0]  ;;  %v7651_v18 = vor.u32 %v10044_v11, %v7650_v9  ;;  %v8162_v20 = vld [vmem:[%s10957_s20 + $0x608] sm:$0xf] }
 0x12a   : > { %4800 = vmatpush.bf16.msrb.mxu3 %v8543_v41  ;;  %4713 = vmatpush.bf16.msrb.mxu0 %v9563_v44  ;;  %v9308_v41 = vld [vmem:[%s10957_s20 + $0xf40] sm:$0xf0]  ;;  %v8290_v44 = vld [vmem:[%s10957_s20 + $0x708] sm:$0xf]  ;;  %v9247_v5 = vor.u32 %v10435_v0, %v9244_v2  ;;  %v9960_v2 = vld [vmem:[%s10955_s11 + $0x48] sm:$0xf0] }
 0x12b   : > { %v9311_v43 = vor.u32 %v10451_v40, %v9308_v41  ;;  %v8291_v47 = vor.u32 %v10204_v45, %v8290_v44  ;;  %v10563_v7 = vld [vmem:[%s10957_s20 + $0x1284] sm:$0xf]  ;;  %v7586_v37 = vld [vmem:[%s10957_s20 + $0x188] sm:$0xf] }
 0x12c   : > { %4772 = vmatpush.bf16.msrb.mxu2 %v7967_v49  ;;  %4743 = vmatpush.bf16.msrb.mxu1 %v7455_v61  ;;  %v9823_v49 = vor.u32 %v10579_v46, %v9820_v48  ;;  %v11580_v61 = vor.u32 %v9967_v56, %v7376_v57  ;;  %v9756_v8 = vld [vmem:[%s10957_s20 + $0x12c0] sm:$0xf0]  ;;  %v7522_v48 = vld [vmem:[%s10957_s20 + $0x108] sm:$0xf] }
 0x12d   : > { %v10419_v12 = vld [vmem:[%s10957_s20 + $0xe04] sm:$0xf]  ;;  %v8034_v55 = vld [vmem:[%s10957_s20 + $0x508] sm:$0xf] }
 0x12e   : > { %4801 = vmatpush.bf16.msrb.mxu3 %v8479_v53  ;;  %4714 = vmatpush.bf16.msrb.mxu0 %v9499_v58  ;;  %v7368_v53 = vld [vmem:[%s10955_s11 + $0x8c] sm:$0xf0]  ;;  %v11574_v58 = vor.u32 %v9968_v51, %v7366_v50  ;;  %v10547_v23 = vld [vmem:[%s10957_s20 + $0x1204] sm:$0xf]  ;;  %v10012_v50 = vld [vmem:[%s10957_s20 + $0x144] sm:$0xf0] }
 0x12f   : > { %v11576_v59 = vor.u32 %v9966_v52, %v7368_v53  ;;  %v9692_v25 = vld [vmem:[%s10957_s20 + $0x1240] sm:$0xf0]  ;;  %v7523_v53 = vor.u32 %v10012_v50, %v7522_v48  ;;  %v10140_v56 = vld [vmem:[%s10957_s20 + $0x544] sm:$0xf0]  ;;  %v7844_v50 = vld [vmem:[%s10957_s20 + $0x3c8] sm:$0xf0] }
 0x130   : > { %4773 = vmatpush.bf16.msrb.mxu2 %v7903_v62  ;;  %4744 = vmatpush.bf16.msrb.mxu1 %v7391_v13  ;;  %v7714_v62 = vld [vmem:[%s10957_s20 + $0x288] sm:$0xf]  ;;  %v9180_v13 = vld [vmem:[%s10957_s20 + $0xe40] sm:$0xf0] }
 0x131   : > { %4639 = vmatmul.bf16.gmra.mxu1 %v11540_v15  ;;  %14801 = vst [vmem:[#allocation9_spill] sm:$0xff] %v11576_v59  ;;  %v9183_v19 = vor.u32 %v10419_v12, %v9180_v13  ;;  %v9955_v33 = vld [vmem:[%s10955_s11 + $0x20] sm:$0xf0]  ;;  %v7458_v4 = vld [vmem:[%s10957_s20 + $0x88] sm:$0xf] }
 0x132   : > { %4802 = vmatpush.bf16.msrb.mxu3 %v8415_v1  ;;  %4715 = vmatpush.bf16.msrb.mxu0 %v9435_v10  ;;  %v7715_v1 = vor.u32 %v10060_v63, %v7714_v62  ;;  %v9759_v10 = vor.u32 %v10563_v7, %v9756_v8  ;;  %v10403_v39 = vld [vmem:[%s10957_s20 + $0xd84] sm:$0xf]  ;;  %v8035_v62 = vor.u32 %v10140_v56, %v8034_v55  ;;  %v7970_v9 = vld [vmem:[%s10957_s20 + $0x488] sm:$0xf] }
 0x133   : > { %4610 = vmatmul.bf16.gmra.mxu0 %v11538_v14  ;;  %4668 = vmatmul.bf16.gmra.mxu2 %v11542_v16  ;;  %v9116_v41 = vld [vmem:[%s10957_s20 + $0xdc0] sm:$0xf0]  ;;  %v10348_v48 = vld [vmem:[%s10957_s20 + $0xbc4] sm:$0xf0] }
 0x134   : > { %4882 = vmatpush.bf16.msra.mxu2 %v7843_v21  ;;  %4853 = vmatpush.bf16.msra.mxu1 %v9887_v38  ;;  %v10172_v21 = vld [vmem:[%s10957_s20 + $0x644] sm:$0xf0]  ;;  %v9119_v44 = vor.u32 %v10403_v39, %v9116_v41  ;;  %v10531_v46 = vld [vmem:[%s10957_s20 + $0x1184] sm:$0xf]  ;;  %v7362_v41 = vld [vmem:[%s10955_s11 + $0x60] sm:$0xf] }
 0x135   : > { %4697 = vmatmul.bf16.gmra.mxu3 %v11544_v17  ;;  %v8163_v24 = vor.u32 %v10172_v21, %v8162_v20  ;;  %v10028_v38 = vld [vmem:[%s10957_s20 + $0x1c4] sm:$0xf0]  ;;  %v10387_v51 = vld [vmem:[%s10957_s20 + $0xd04] sm:$0xf] }
 0x136   : > { %4824 = vmatpush.bf16.msra.mxu0 %v9375_v27  ;;  %4911 = vmatpush.bf16.msra.mxu3 %v8355_v30  ;;  %v9695_v27 = vor.u32 %v10547_v23, %v9692_v25  ;;  %v7322_v30 = vld [vmem:[%s10955_s11 + $0x10] sm:$0xf]  ;;  %v7587_v40 = vor.u32 %v10028_v38, %v7586_v37  ;;  %v9052_v52 = vld [vmem:[%s10957_s20 + $0xd40] sm:$0xf0]  ;;  %v9980_v21 = vld [vmem:[%s10957_s20 + $0x44] sm:$0xf0] }
 0x137   : > { %v11604_v36 = vor.u32 %v9955_v33, %v7322_v30  ;;  %v9055_v54 = vor.u32 %v10387_v51, %v9052_v52  ;;  %v10515_v57 = vld [vmem:[%s10957_s20 + $0x1104] sm:$0xf]  ;;  %v7906_v30 = vld [vmem:[%s10957_s20 + $0x408] sm:$0xf] }
 0x138   : > { %4883 = vmatpush.bf16.msra.mxu2 %v7779_v42  ;;  %4854 = vmatpush.bf16.msra.mxu1 %v9823_v49  ;;  %v8098_v42 = vld [vmem:[%s10957_s20 + $0x588] sm:$0xf]  ;;  %v9564_v63 = vld [vmem:[%s10957_s20 + $0x1140] sm:$0xf0] }
 0x139   : > { %v9567_v0 = vor.u32 %v10515_v57, %v9564_v63  ;;  %v8988_v8 = vld [vmem:[%s10957_s20 + $0xcc0] sm:$0xf0]  ;;  %v10108_v33 = vld [vmem:[%s10957_s20 + $0x444] sm:$0xf0] }
 0x13a   : > { %4825 = vmatpush.bf16.msra.mxu0 %v9311_v43  ;;  %4912 = vmatpush.bf16.msra.mxu3 %v8291_v47  ;;  %v10156_v43 = vld [vmem:[%s10957_s20 + $0x5c4] sm:$0xf0]  ;;  %v9628_v47 = vld [vmem:[%s10957_s20 + $0x11c0] sm:$0xf0]  ;;  %v7907_v38 = vor.u32 %v10108_v33, %v7906_v30 }
 0x13b   : > { %v8099_v45 = vor.u32 %v10156_v43, %v8098_v42  ;;  %v9631_v49 = vor.u32 %v10531_v46, %v9628_v47  ;;  %v10499_v13 = vld [vmem:[%s10957_s20 + $0x1084] sm:$0xf]  ;;  %v9965_v42 = vld [vmem:[%s10955_s11 + $0x70] sm:$0xf0]  ;;  %v8866_v46 = vld [vmem:[%s10957_s20 + $0xb88] sm:$0xf] }
 0x13c   : > { %4884 = vmatpush.bf16.msra.mxu2 %v7715_v1  ;;  %4855 = vmatpush.bf16.msra.mxu1 %v9759_v10  ;;  %v7342_v1 = vld [vmem:[%s10955_s11 + $0x38] sm:$0xf]  ;;  %v10124_v10 = vld [vmem:[%s10957_s20 + $0x4c4] sm:$0xf0]  ;;  %v10355_v23 = vld [vmem:[%s10957_s20 + $0xc04] sm:$0xf]  ;;  %v11652_v43 = vor.u32 %v9965_v42, %v7362_v41  ;;  %v8867_v51 = vor.u32 %v10348_v48, %v8866_v46 }
 0x13d   : > { %v11628_v3 = vor.u32 %v9960_v2, %v7342_v1  ;;  %v7971_v12 = vor.u32 %v10124_v10, %v7970_v9  ;;  %v10483_v37 = vld [vmem:[%s10957_s20 + $0x1004] sm:$0xf]  ;;  %v10476_v55 = vld [vmem:[%s10957_s20 + $0xfc4] sm:$0xf0]  ;;  %v9970_v1 = vld [vmem:[%s10955_s11 + $0x98] sm:$0xf0] }
 0x13e   : > { %4826 = vmatpush.bf16.msra.mxu0 %v9247_v5  ;;  %4913 = vmatpush.bf16.msra.mxu3 %v8227_v6  ;;  %v9996_v5 = vld [vmem:[%s10957_s20 + $0xc4] sm:$0xf0]  ;;  %v10371_v6 = vld [vmem:[%s10957_s20 + $0xc84] sm:$0xf] }
 0x13f   : > { %v7459_v7 = vor.u32 %v9996_v5, %v7458_v4  ;;  %v8991_v11 = vor.u32 %v10371_v6, %v8988_v8  ;;  %v9436_v39 = vld [vmem:[%s10957_s20 + $0x1040] sm:$0xf0]  ;;  %v9826_v56 = vld [vmem:[%s10957_s20 + $0x1308] sm:$0xf]  ;;  %v10068_v5 = vld [vmem:[%s10957_s20 + $0x30c] sm:$0xf] }
 0x140   : > { %4885 = vmatpush.bf16.msra.mxu2 %v7651_v18  ;;  %4856 = vmatpush.bf16.msra.mxu1 %v9695_v27  ;;  %v9500_v18 = vld [vmem:[%s10957_s20 + $0x10c0] sm:$0xf0]  ;;  %v8802_v63 = vld [vmem:[%s10957_s20 + $0xb08] sm:$0xf]  ;;  %v7780_v6 = vld [vmem:[%s10957_s20 + $0x348] sm:$0xf0] }
 0x141   : > { %4644 = vmatmul.bf16.gmra.mxu1 %v11576_v59  ;;  %v9503_v20 = vor.u32 %v10499_v13, %v9500_v18  ;;  %v9314_v9 = vld [vmem:[%s10957_s20 + $0xf08] sm:$0xf] }
 0x142   : > { %4827 = vmatpush.bf16.msra.mxu0 %v9183_v19  ;;  %4914 = vmatpush.bf16.msra.mxu3 %v8163_v24  ;;  %v7394_v19 = vld [vmem:[%s10957_s20 + $0x8] sm:$0xf]  ;;  %v8924_v24 = vld [vmem:[%s10957_s20 + $0xc40] sm:$0xf0] }
 0x143   : > { %4615 = vmatmul.bf16.gmra.mxu0 %v11574_v58  ;;  %4673 = vmatmul.bf16.gmra.mxu2 %v11578_v60  ;;  %v7395_v25 = vor.u32 %v9980_v21, %v7394_v19  ;;  %v8927_v27 = vor.u32 %v10355_v23, %v8924_v24  ;;  %v10460_v10 = vld [vmem:[%s10957_s20 + $0xf44] sm:$0xf0]  ;;  %v10052_v21 = vld [vmem:[%s10957_s20 + $0x28c] sm:$0xf] }
 0x144   : > { %4886 = vmatpush.bf16.msra.mxu2 %v7587_v40  ;;  %4857 = vmatpush.bf16.msra.mxu1 %v9631_v49  ;;  %v9439_v40 = vor.u32 %v10483_v37, %v9436_v39  ;;  %v10084_v49 = vld [vmem:[%s10957_s20 + $0x38c] sm:$0xf]  ;;  %v10572_v13 = vld [vmem:[%s10957_s20 + $0x12c4] sm:$0xf0] }
 0x145   : > { %4702 = vmatmul.bf16.gmra.mxu3 %v11580_v61  ;;  %v7847_v52 = vor.u32 %v10084_v49, %v7844_v50  ;;  %v8738_v18 = vld [vmem:[%s10957_s20 + $0xa88] sm:$0xf]  ;;  %v7716_v23 = vld [vmem:[%s10957_s20 + $0x2c8] sm:$0xf0] }
 0x146   : > { %4828 = vmatpush.bf16.msra.mxu0 %v9119_v44  ;;  %4915 = vmatpush.bf16.msra.mxu3 %v8099_v45  ;;  %v9890_v44 = vld [vmem:[%s10957_s20 + $0x1388] sm:$0xf] }
 0x147   : > { %v10604_v45 = vld [vmem:[%s10957_s20 + $0x13c4] sm:$0xf0] }
 0x148   : > { %4887 = vmatpush.bf16.msra.mxu2 %v7523_v53  ;;  %4858 = vmatpush.bf16.msra.mxu1 %v9567_v0  ;;  %v9891_v47 = vor.u32 %v10604_v45, %v9890_v44  ;;  %v7382_v53 = vld [vmem:[%s10955_s11 + $0x88] sm:$0xf]  ;;  %v10036_v44 = vld [vmem:[%s10957_s20 + $0x20c] sm:$0xf] }
 0x149   : > { %v10332_v0 = vld [vmem:[%s10957_s20 + $0xb44] sm:$0xf0]  ;;  %v11674_v8 = vor.u32 %v9970_v1, %v7382_v53  ;;  %v7652_v45 = vld [vmem:[%s10957_s20 + $0x248] sm:$0xf0] }
 0x14a   : > { %4829 = vmatpush.bf16.msra.mxu0 %v9055_v54  ;;  %4916 = vmatpush.bf16.msra.mxu3 %v8035_v62  ;;  %v9378_v54 = vld [vmem:[%s10957_s20 + $0xf88] sm:$0xf]  ;;  %v8803_v4 = vor.u32 %v10332_v0, %v8802_v63  ;;  %v7655_v46 = vor.u32 %v10036_v44, %v7652_v45  ;;  %v9988_v45 = vld [vmem:[%s10957_s20 + $0x8c] sm:$0xf] }
 0x14b   : > { %v9379_v57 = vor.u32 %v10476_v55, %v9378_v54  ;;  %v10588_v62 = vld [vmem:[%s10957_s20 + $0x1344] sm:$0xf0] }
 0x14c   : > { %4888 = vmatpush.bf16.msra.mxu2 %v7459_v7  ;;  %4859 = vmatpush.bf16.msra.mxu1 %v9503_v20  ;;  %v9827_v2 = vor.u32 %v10588_v62, %v9826_v56  ;;  %v7783_v7 = vor.u32 %v10068_v5, %v7780_v6  ;;  %v10316_v20 = vld [vmem:[%s10957_s20 + $0xac4] sm:$0xf0]  ;;  %v7588_v62 = vld [vmem:[%s10957_s20 + $0x1c8] sm:$0xf0] }
 0x14d   : > { %v8739_v24 = vor.u32 %v10316_v20, %v8738_v18  ;;  %v10444_v30 = vld [vmem:[%s10957_s20 + $0xec4] sm:$0xf0]  ;;  %v10004_v20 = vld [vmem:[%s10957_s20 + $0x10c] sm:$0xf] }
 0x14e   : > { %4830 = vmatpush.bf16.msra.mxu0 %v8991_v11  ;;  %4917 = vmatpush.bf16.msra.mxu3 %v7971_v12  ;;  %v9315_v11 = vor.u32 %v10460_v10, %v9314_v9  ;;  %v9762_v12 = vld [vmem:[%s10957_s20 + $0x1288] sm:$0xf] }
 0x14f   : > { %v9763_v19 = vor.u32 %v10572_v13, %v9762_v12  ;;  %v9698_v33 = vld [vmem:[%s10957_s20 + $0x1208] sm:$0xf] }
 0x150   : > { %4889 = vmatpush.bf16.msra.mxu2 %v7395_v25  ;;  %4860 = vmatpush.bf16.msra.mxu1 %v9439_v40  ;;  %v7719_v25 = vor.u32 %v10052_v21, %v7716_v23  ;;  %v8674_v39 = vld [vmem:[%s10957_s20 + $0xa08] sm:$0xf]  ;;  %v7524_v21 = vld [vmem:[%s10957_s20 + $0x148] sm:$0xf0] }
 0x151   : > { %4745 = vmatmul.bf16.vlgmr.msrb.gmra.mxu1 %v11441_v26  ;;  %v10300_v40 = vld [vmem:[%s10957_s20 + $0xa44] sm:$0xf0]  ;;  %v7527_v23 = vor.u32 %v10004_v20, %v7524_v21 }
 0x152   : > { %4831 = vmatpush.bf16.msra.mxu0 %v8927_v27  ;;  %4918 = vmatpush.bf16.msra.mxu3 %v7907_v38  ;;  %v9250_v27 = vld [vmem:[%s10957_s20 + $0xe88] sm:$0xf]  ;;  %v8675_v42 = vor.u32 %v10300_v40, %v8674_v39 }
 0x153   : > { %4716 = vmatmul.bf16.vlgmr.msrb.gmra.mxu0 %v11604_v36  ;;  %4774 = vmatmul.bf16.vlgmr.msrb.gmra.mxu2 %v11446_v31  ;;  %v9251_v37 = vor.u32 %v10444_v30, %v9250_v27  ;;  %v10556_v38 = vld [vmem:[%s10957_s20 + $0x1244] sm:$0xf0] }
 0x154   : > { %4998 = vmatpush.bf16.msrb.mxu2 %v9891_v47  ;;  %4969 = vmatpush.bf16.msrb.mxu1 %v9379_v57  ;;  %v9699_v41 = vor.u32 %v10556_v38, %v9698_v33  ;;  %v9186_v49 = vld [vmem:[%s10957_s20 + $0xe08] sm:$0xf]  ;;  %v10020_v57 = vld [vmem:[%s10957_s20 + $0x18c] sm:$0xf] }
 0x155   : > { %4803 = vmatmul.bf16.vlgmr.msrb.gmra.mxu3 %v11448_v32  ;;  %v10428_v50 = vld [vmem:[%s10957_s20 + $0xe44] sm:$0xf0]  ;;  %v7591_v1 = vor.u32 %v10020_v57, %v7588_v62 }
 0x156   : > { %4940 = vmatpush.bf16.msrb.mxu0 %v8867_v51  ;;  %5027 = vmatpush.bf16.msrb.mxu3 %v7847_v52  ;;  %v9187_v51 = vor.u32 %v10428_v50, %v9186_v49  ;;  %v9634_v52 = vld [vmem:[%s10957_s20 + $0x1188] sm:$0xf] }
 0x157   : > { %v10540_v53 = vld [vmem:[%s10957_s20 + $0x11c4] sm:$0xf0] }
 0x158   : > { %4999 = vmatpush.bf16.msrb.mxu2 %v9827_v2  ;;  %4970 = vmatpush.bf16.msrb.mxu1 %v9315_v11  ;;  %v8610_v54 = vld [vmem:[%s10957_s20 + $0x988] sm:$0xf]  ;;  %v9635_v55 = vor.u32 %v10540_v53, %v9634_v52 }
 0x159   : > { %v10284_v56 = vld [vmem:[%s10957_s20 + $0x9c4] sm:$0xf0] }
 0x15a   : > { %4941 = vmatpush.bf16.msrb.mxu0 %v8803_v4  ;;  %5028 = vmatpush.bf16.msrb.mxu3 %v7783_v7  ;;  %v8611_v0 = vor.u32 %v10284_v56, %v8610_v54  ;;  %v9122_v6 = vld [vmem:[%s10957_s20 + $0xd88] sm:$0xf] }
 0x15b   : > { %v10412_v7 = vld [vmem:[%s10957_s20 + $0xdc4] sm:$0xf0] }
 0x15c   : > { %5000 = vmatpush.bf16.msrb.mxu2 %v9763_v19  ;;  %4971 = vmatpush.bf16.msrb.mxu1 %v9251_v37  ;;  %v9570_v9 = vld [vmem:[%s10957_s20 + $0x1108] sm:$0xf]  ;;  %v9123_v10 = vor.u32 %v10412_v7, %v9122_v6 }
 0x15d   : > { %v10524_v11 = vld [vmem:[%s10957_s20 + $0x1144] sm:$0xf0] }
 0x15e   : > { %4942 = vmatpush.bf16.msrb.mxu0 %v8739_v24  ;;  %5029 = vmatpush.bf16.msrb.mxu3 %v7719_v25  ;;  %v8546_v12 = vld [vmem:[%s10957_s20 + $0x908] sm:$0xf]  ;;  %v9571_v18 = vor.u32 %v10524_v11, %v9570_v9  ;;  %v7396_v11 = vld [vmem:[%s10957_s20 + $0x48] sm:$0xf0] }
 0x15f   : > { %v10268_v13 = vld [vmem:[%s10957_s20 + $0x944] sm:$0xf0] }
 0x160   : > { %5001 = vmatpush.bf16.msrb.mxu2 %v9699_v41  ;;  %4972 = vmatpush.bf16.msrb.mxu1 %v9187_v51  ;;  %v8547_v19 = vor.u32 %v10268_v13, %v8546_v12  ;;  %v9058_v33 = vld [vmem:[%s10957_s20 + $0xd08] sm:$0xf] }
 0x161   : > { %4750 = vmatmul.bf16.gmra.mxu1 %v11493_v22  ;;  %v10396_v37 = vld [vmem:[%s10957_s20 + $0xd44] sm:$0xf0] }
 0x162   : > { %4943 = vmatpush.bf16.msrb.mxu0 %v8675_v42  ;;  %5030 = vmatpush.bf16.msrb.mxu3 %v7655_v46  ;;  %v9059_v38 = vor.u32 %v10396_v37, %v9058_v33  ;;  %v9506_v39 = vld [vmem:[%s10957_s20 + $0x1088] sm:$0xf]  ;;  %v7460_v46 = vld [vmem:[%s10957_s20 + $0xc8] sm:$0xf0] }
 0x163   : > { %4721 = vmatmul.bf16.gmra.mxu0 %v11628_v3  ;;  %4779 = vmatmul.bf16.gmra.mxu2 %v11498_v28  ;;  %v10508_v40 = vld [vmem:[%s10957_s20 + $0x10c4] sm:$0xf0]  ;;  %v7463_v51 = vor.u32 %v9988_v45, %v7460_v46  ;;  %v10468_v37 = vld [vmem:[%s10957_s20 + $0xf8c] sm:$0xf] }
 0x164   : > { %5002 = vmatpush.bf16.msrb.mxu2 %v9635_v55  ;;  %4973 = vmatpush.bf16.msrb.mxu1 %v9123_v10  ;;  %v8482_v41 = vld [vmem:[%s10957_s20 + $0x888] sm:$0xf]  ;;  %v9507_v42 = vor.u32 %v10508_v40, %v9506_v39  ;;  %v9972_v10 = vld [vmem:[%s10957_s20 + $0xc] sm:$0xf] }
 0x165   : > { %4808 = vmatmul.bf16.gmra.mxu3 %v11500_v29  ;;  %v10252_v44 = vld [vmem:[%s10957_s20 + $0x8c4] sm:$0xf0]  ;;  %v7399_v12 = vor.u32 %v9972_v10, %v7396_v11  ;;  %v10212_v39 = vld [vmem:[%s10957_s20 + $0x78c] sm:$0xf] }
 0x166   : > { %4944 = vmatpush.bf16.msrb.mxu0 %v8611_v0  ;;  %5031 = vmatpush.bf16.msrb.mxu3 %v7591_v1  ;;  %v8483_v50 = vor.u32 %v10252_v44, %v8482_v41  ;;  %v8994_v55 = vld [vmem:[%s10957_s20 + $0xc88] sm:$0xf]  ;;  %v8356_v41 = vld [vmem:[%s10957_s20 + $0x7c8] sm:$0xf0] }
 0x167   : > { %v10380_v56 = vld [vmem:[%s10957_s20 + $0xcc4] sm:$0xf0]  ;;  %v9892_v44 = vld [vmem:[%s10957_s20 + $0x13c8] sm:$0xf0]  ;;  %v8359_v46 = vor.u32 %v10212_v39, %v8356_v41 }
 0x168   : > { %5003 = vmatpush.bf16.msrb.mxu2 %v9571_v18  ;;  %4974 = vmatpush.bf16.msrb.mxu1 %v9059_v38  ;;  %v9442_v57 = vld [vmem:[%s10957_s20 + $0x1008] sm:$0xf]  ;;  %v8995_v62 = vor.u32 %v10380_v56, %v8994_v55  ;;  %v9380_v38 = vld [vmem:[%s10957_s20 + $0xfc8] sm:$0xf0] }
 0x169   : > { %v10492_v0 = vld [vmem:[%s10957_s20 + $0x1044] sm:$0xf0]  ;;  %v9383_v40 = vor.u32 %v10468_v37, %v9380_v38  ;;  %v8292_v10 = vld [vmem:[%s10957_s20 + $0x748] sm:$0xf0] }
 0x16a   : > { %4945 = vmatpush.bf16.msrb.mxu0 %v8547_v19  ;;  %5032 = vmatpush.bf16.msrb.mxu3 %v7527_v23  ;;  %v8418_v1 = vld [vmem:[%s10957_s20 + $0x808] sm:$0xf]  ;;  %v9443_v7 = vor.u32 %v10492_v0, %v9442_v57  ;;  %v10340_v57 = vld [vmem:[%s10957_s20 + $0xb8c] sm:$0xf] }
 0x16b   : > { %v10236_v6 = vld [vmem:[%s10957_s20 + $0x844] sm:$0xf0]  ;;  %v10580_v11 = vld [vmem:[%s10957_s20 + $0x130c] sm:$0xf] }
 0x16c   : > { %5004 = vmatpush.bf16.msrb.mxu2 %v9507_v42  ;;  %v8419_v9 = vor.u32 %v10236_v6, %v8418_v1  ;;  %4975 = vmatpush.bf16.msrb.mxu1 %v8995_v62  ;;  %v8930_v18 = vld [vmem:[%s10957_s20 + $0xc08] sm:$0xf]  ;;  %v10596_v42 = vld [vmem:[%s10957_s20 + $0x138c] sm:$0xf] }
 0x16d   : > { %v10364_v19 = vld [vmem:[%s10957_s20 + $0xc44] sm:$0xf0]  ;;  %v8868_v62 = vld [vmem:[%s10957_s20 + $0xbc8] sm:$0xf0] }
 0x16e   : > { %4946 = vmatpush.bf16.msrb.mxu0 %v8483_v50  ;;  %5033 = vmatpush.bf16.msrb.mxu3 %v7463_v51  ;;  %v8931_v23 = vor.u32 %v10364_v19, %v8930_v18  ;;  %v9895_v50 = vor.u32 %v10596_v42, %v9892_v44  ;;  %v8871_v0 = vor.u32 %v10340_v57, %v8868_v62  ;;  %v10452_v1 = vld [vmem:[%s10957_s20 + $0xf0c] sm:$0xf] }
 0x16f   : > { %v9316_v6 = vld [vmem:[%s10957_s20 + $0xf48] sm:$0xf0] }
 0x170   : > { %5005 = vmatpush.bf16.msrb.mxu2 %v9443_v7  ;;  %4976 = vmatpush.bf16.msrb.mxu1 %v8931_v23  ;;  %v10196_v7 = vld [vmem:[%s10957_s20 + $0x70c] sm:$0xf] }
 0x171   : > { %4755 = vmatmul.bf16.gmra.mxu1 %v11538_v14  ;;  %v8295_v19 = vor.u32 %v10196_v7, %v8292_v10  ;;  %v8804_v41 = vld [vmem:[%s10957_s20 + $0xb48] sm:$0xf0] }
 0x172   : > { %4947 = vmatpush.bf16.msrb.mxu0 %v8419_v9  ;;  %5034 = vmatpush.bf16.msrb.mxu3 %v7399_v12  ;;  %v9319_v9 = vor.u32 %v10452_v1, %v9316_v6  ;;  %v9828_v12 = vld [vmem:[%s10957_s20 + $0x1348] sm:$0xf0] }
 0x173   : > { %4726 = vmatmul.bf16.gmra.mxu0 %v11652_v43  ;;  %4784 = vmatmul.bf16.gmra.mxu2 %v11540_v15  ;;  %v9831_v23 = vor.u32 %v10580_v11, %v9828_v12  ;;  %v10436_v44 = vld [vmem:[%s10957_s20 + $0xe8c] sm:$0xf] }
 0x174   : > { %v8228_v62 = vld [vmem:[%s10957_s20 + $0x6c8] sm:$0xf0] }
 0x175   : > { %4813 = vmatmul.bf16.gmra.mxu3 %v11542_v16  ;;  %v9764_v1 = vld [vmem:[%s10957_s20 + $0x12c8] sm:$0xf0] }
 0x181   : > { %4760 = vmatmul.bf16.gmra.mxu1 %v11574_v58 }
 0x183   : > { %4731 = vmatmul.bf16.gmra.mxu0 %v11674_v8  ;;  %4789 = vmatmul.bf16.gmra.mxu2 %v11576_v59 }
 0x185   : > { %4818 = vmatmul.bf16.gmra.mxu3 %v11578_v60 }
 0x18e   : > { %v11698_v48 = vpop.f32.mrf.mxu1 }
 0x190   : > { %v11696_v47 = vpop.f32.mrf.mxu0 }
 0x191   : > { %4861 = vmatmul.bf16.vlgmr.msra.gmra.mxu1 %v11604_v36  ;;  %v4631_v12 = vadd.f32 %v11698_v48, %v11696_v47 }
 0x192   : > { %5085 = vmatpush.bf16.msra.mxu1 %v8871_v0  ;;  %v10564_v0 = vld [vmem:[%s10957_s20 + $0x128c] sm:$0xf] }
 0x193   : > { %4832 = vmatmul.bf16.vlgmr.msra.gmra.mxu0 %v11452_v35  ;;  %4890 = vmatmul.bf16.vlgmr.msra.gmra.mxu2 %v11441_v26 }
 0x194   : > { %5114 = vmatpush.bf16.msra.mxu2 %v9383_v40  ;;  %5056 = vmatpush.bf16.msra.mxu0 %v8359_v46  ;;  %v10324_v40 = vld [vmem:[%s10957_s20 + $0xb0c] sm:$0xf] }
 0x195   : > { %4919 = vmatmul.bf16.vlgmr.msra.gmra.mxu3 %v11446_v31  ;;  %v8807_v42 = vor.u32 %v10324_v40, %v8804_v41  ;;  %v9252_v46 = vld [vmem:[%s10957_s20 + $0xec8] sm:$0xf0] }
 0x196   : > { %v11712_v63 = vpop.f32.mrf.mxu2  ;;  %v11718_v5 = vpop.f32.mrf.mxu1  ;;  %5143 = vmatpush.bf16.msra.mxu3 %v9895_v50  ;;  %v10180_v50 = vld [vmem:[%s10957_s20 + $0x68c] sm:$0xf]  ;;  %v9255_v57 = vor.u32 %v10436_v44, %v9252_v46 }
 0x197   : > { %5086 = vmatpush.bf16.msra.mxu1 %v8807_v42  ;;  %v8231_v7 = vor.u32 %v10180_v50, %v8228_v62  ;;  %v8740_v40 = vld [vmem:[%s10957_s20 + $0xac8] sm:$0xf0]  ;;  %v4660_v41 = vadd.f32 %v11712_v63, %v4631_v12  ;;  %v496_v63 = vld [vmem:[%s14791_s3] sm:$0xff] }
 0x198   : > { %v11714_v2 = vpop.f32.mrf.mxu3  ;;  %v11716_v4 = vpop.f32.mrf.mxu0  ;;  %5115 = vmatpush.bf16.msra.mxu2 %v9319_v9  ;;  %5057 = vmatpush.bf16.msra.mxu0 %v8295_v19  ;;  %v9767_v9 = vor.u32 %v10564_v0, %v9764_v1  ;;  %v10420_v44 = vld [vmem:[%s10957_s20 + $0xe0c] sm:$0xf] }
 0x199   : > { %v9188_v46 = vld [vmem:[%s10957_s20 + $0xe48] sm:$0xf0]  ;;  %v4689_v47 = vadd.f32 %v11714_v2, %v4660_v41 }
 0x19a   : > { %5144 = vmatpush.bf16.msra.mxu3 %v9831_v23  ;;  %v10308_v23 = vld [vmem:[%s10957_s20 + $0xa8c] sm:$0xf]  ;;  %v9191_v62 = vor.u32 %v10420_v44, %v9188_v46 }
 0x19b   : > { %v8743_v42 = vor.u32 %v10308_v23, %v8740_v40  ;;  %v10164_v50 = vld [vmem:[%s10957_s20 + $0x60c] sm:$0xf]  ;;  %v4633_v23 = vadd.f32 %v11718_v5, %v11716_v4 }
 0x19c   : > { %5116 = vmatpush.bf16.msra.mxu2 %v9255_v57  ;;  %5058 = vmatpush.bf16.msra.mxu0 %v8231_v7  ;;  %v8164_v0 = vld [vmem:[%s10957_s20 + $0x648] sm:$0xf0] }
 0x19d   : > { %5087 = vmatpush.bf16.msra.mxu1 %v8743_v42  ;;  %v10548_v57 = vld [vmem:[%s10957_s20 + $0x120c] sm:$0xf]  ;;  %v8167_v7 = vor.u32 %v10164_v50, %v8164_v0 }
 0x19e   : > { %v11728_v24 = vpop.f32.mrf.mxu2  ;;  %v11734_v30 = vpop.f32.mrf.mxu1  ;;  %5145 = vmatpush.bf16.msra.mxu3 %v9767_v9  ;;  %v9700_v1 = vld [vmem:[%s10957_s20 + $0x1248] sm:$0xf0] }
 0x19f   : > { %v9703_v9 = vor.u32 %v10548_v57, %v9700_v1  ;;  %v10292_v2 = vld [vmem:[%s10957_s20 + $0xa0c] sm:$0xf]  ;;  %v4662_v44 = vadd.f32 %v11728_v24, %v4633_v23  ;;  %v512_v23 = vld [vmem:[%s14791_s3 + $0x80] sm:$0xff] }
 0x1a0   : > { %v11730_v25 = vpop.f32.mrf.mxu3  ;;  %v11732_v27 = vpop.f32.mrf.mxu0  ;;  %5117 = vmatpush.bf16.msra.mxu2 %v9191_v62  ;;  %5059 = vmatpush.bf16.msra.mxu0 %v8167_v7  ;;  %v8676_v41 = vld [vmem:[%s10957_s20 + $0xa48] sm:$0xf0] }
 0x1a1   : > { %4866 = vmatmul.bf16.gmra.mxu1 %v11628_v3  ;;  %v8679_v50 = vor.u32 %v10292_v2, %v8676_v41  ;;  %v10404_v4 = vld [vmem:[%s10957_s20 + $0xd8c] sm:$0xf]  ;;  %v4636_v2 = vadd.f32 %v11734_v30, %v11732_v27 }
 0x1a2   : > { %5146 = vmatpush.bf16.msra.mxu3 %v9703_v9  ;;  %v9124_v5 = vld [vmem:[%s10957_s20 + $0xdc8] sm:$0xf0] }
 0x1a3   : > { %4837 = vmatmul.bf16.gmra.mxu0 %v11504_v34  ;;  %4895 = vmatmul.bf16.gmra.mxu2 %v11493_v22  ;;  %v10148_v62 = vld [vmem:[%s10957_s20 + $0x58c] sm:$0xf]  ;;  %v9127_v0 = vor.u32 %v10404_v4, %v9124_v5 }
 0x1a4   : > { %5088 = vmatpush.bf16.msra.mxu1 %v8679_v50  ;;  %v8100_v24 = vld [vmem:[%s10957_s20 + $0x5c8] sm:$0xf0] }
 0x1a5   : > { %4924 = vmatmul.bf16.gmra.mxu3 %v11498_v28  ;;  %v10532_v57 = vld [vmem:[%s10957_s20 + $0x118c] sm:$0xf]  ;;  %v8103_v9 = vor.u32 %v10148_v62, %v8100_v24  ;;  %5118 = vmatpush.bf16.msra.mxu2 %v9127_v0 }
 0x1a6   : > { %v11748_v49 = vpop.f32.mrf.mxu2  ;;  %v11754_v54 = vpop.f32.mrf.mxu1  ;;  %v9636_v1 = vld [vmem:[%s10957_s20 + $0x11c8] sm:$0xf0] }
 0x1a7   : > { %5060 = vmatpush.bf16.msra.mxu0 %v8103_v9  ;;  %v4665_v50 = vadd.f32 %v11748_v49, %v4636_v2  ;;  %v10388_v27 = vld [vmem:[%s10957_s20 + $0xd0c] sm:$0xf] }
 0x1a8   : > { %v11750_v52 = vpop.f32.mrf.mxu3  ;;  %v11752_v53 = vpop.f32.mrf.mxu0  ;;  %v9060_v30 = vld [vmem:[%s10957_s20 + $0xd48] sm:$0xf0] }
 0x1a9   : > { %v9063_v62 = vor.u32 %v10388_v27, %v9060_v30  ;;  %v10132_v0 = vld [vmem:[%s10957_s20 + $0x50c] sm:$0xf] }
 0x1aa   : > { %v8036_v24 = vld [vmem:[%s10957_s20 + $0x548] sm:$0xf0] }
 0x1ab   : > { %v8039_v49 = vor.u32 %v10132_v0, %v8036_v24  ;;  %v9572_v9 = vld [vmem:[%s10957_s20 + $0x1148] sm:$0xf0]  ;;  %5119 = vmatpush.bf16.msra.mxu2 %v9063_v62 }
 0x1ac   : > { %v7972_v62 = vld [vmem:[%s10957_s20 + $0x4c8] sm:$0xf0] }
 0x1ad   : > { %5061 = vmatpush.bf16.msra.mxu0 %v8039_v49  ;;  %v10500_v0 = vld [vmem:[%s10957_s20 + $0x108c] sm:$0xf] }
 0x1ae   : > { %v11764_v13 = vpop.f32.mrf.mxu2  ;;  %v11772_v33 = vpop.f32.mrf.mxu1  ;;  %v9508_v49 = vld [vmem:[%s10957_s20 + $0x10c8] sm:$0xf0] }
 0x1b0   : > { %v11768_v20 = vpop.f32.mrf.mxu3  ;;  %v11770_v21 = vpop.f32.mrf.mxu0 }
 0x1b1   : > { %4871 = vmatmul.bf16.gmra.mxu1 %v11652_v43 }
 0x1b3   : > { %4842 = vmatmul.bf16.gmra.mxu0 %v11544_v17  ;;  %4900 = vmatmul.bf16.gmra.mxu2 %v11538_v14 }
 0x1b5   : > { %4929 = vmatmul.bf16.gmra.mxu3 %v11540_v15 }
 0x1b6   : > { %v11784_v45 = vpop.f32.mrf.mxu2  ;;  %v11790_v56 = vpop.f32.mrf.mxu1 }
 0x1b8   : > { %v11786_v51 = vpop.f32.mrf.mxu3  ;;  %v11788_v55 = vpop.f32.mrf.mxu0 }
 0x1be   : > { %v11800_v18 = vpop.f32.mrf.mxu2  ;;  %v11806_v39 = vpop.f32.mrf.mxu1 }
 0x1c0   : > { %v11802_v37 = vpop.f32.mrf.mxu3  ;;  %v11804_v38 = vpop.f32.mrf.mxu0 }
 0x1c1   : > { %4876 = vmatmul.bf16.gmra.mxu1 %v11674_v8 }
 0x1c3   : > { %4847 = vmatmul.bf16.gmra.mxu0 %v11580_v61  ;;  %4905 = vmatmul.bf16.gmra.mxu2 %v11574_v58 }
 0x1c5   : > { %4934 = vmatmul.bf16.gmra.mxu3 %v11576_v59 }
 0x1c6   : > { %v11820_v6 = vpop.f32.mrf.mxu2  ;;  %v11828_v19 = vpop.f32.mrf.mxu1 }
 0x1c8   : > { %v11822_v10 = vpop.f32.mrf.mxu3  ;;  %v11824_v11 = vpop.f32.mrf.mxu0 }
 0x1ce   : > { %v11840_v48 = vpop.f32.mrf.mxu2  ;;  %v11849_v42 = vpop.f32.mrf.mxu1 }
 0x1d0   : > { %v11842_v59 = vpop.f32.mrf.mxu3  ;;  %v4717_v12 = vpop.f32.mrf.mxu0 }
 0x1d1   : > { %v4718_v40 = vadd.f32 %v4717_v12, %v4689_v47  ;;  %4977 = vmatmul.bf16.vlgmr.msrb.gmra.mxu1 %v11452_v35  ;;  %v4691_v47 = vadd.f32 %v11730_v25, %v4662_v44  ;;  %v10276_v44 = vld [vmem:[%s10957_s20 + $0x98c] sm:$0xf] }
 0x1d3   : > { %v6912_v46 = vadd.f32 %v4718_v40, %v496_v63  ;;  %4948 = vmatmul.bf16.vlgmr.msrb.gmra.mxu0 %v11448_v32  ;;  %5006 = vmatmul.bf16.vlgmr.msrb.gmra.mxu2 %v11604_v36  ;;  %v9639_v63 = vor.u32 %v10532_v57, %v9636_v1  ;;  %v10516_v57 = vld [vmem:[%s10957_s20 + $0x110c] sm:$0xf]  ;;  %v4694_v1 = vadd.f32 %v11750_v52, %v4665_v50 }
 0x1d4   : > { %v9575_v2 = vor.u32 %v10516_v57, %v9572_v9  ;;  %v8548_v50 = vld [vmem:[%s10957_s20 + $0x948] sm:$0xf0] }
 0x1d5   : > { %7040 = vst [vmem:[%s14791_s3] sm:$0xff] %v6912_v46  ;;  %5035 = vmatmul.bf16.vlgmr.msrb.gmra.mxu3 %v11441_v26  ;;  %v8612_v46 = vld [vmem:[%s10957_s20 + $0x9c8] sm:$0xf0] }
 0x1d6   : > { %v11868_v7 = vpop.f32.mrf.mxu2  ;;  %v11877_v41 = vpop.f32.mrf.mxu1  ;;  %5147 = vmatpush.bf16.msra.mxu3 %v9639_v63  ;;  %v8615_v5 = vor.u32 %v10276_v44, %v8612_v46  ;;  %v10260_v46 = vld [vmem:[%s10957_s20 + $0x90c] sm:$0xf] }
 0x1d7   : > { %v8551_v27 = vor.u32 %v10260_v46, %v8548_v50  ;;  %v10244_v46 = vld [vmem:[%s10957_s20 + $0x88c] sm:$0xf] }
 0x1d8   : > { %v11870_v12 = vpop.f32.mrf.mxu3  ;;  %v4719_v40 = vpop.f32.mrf.mxu0  ;;  %5089 = vmatpush.bf16.msra.mxu1 %v8615_v5  ;;  %v8484_v50 = vld [vmem:[%s10957_s20 + $0x8c8] sm:$0xf0] }
 0x1d9   : > { %v4720_v25 = vadd.f32 %v4719_v40, %v4691_v47 }
 0x1da   : > { %5148 = vmatpush.bf16.msra.mxu3 %v9575_v2  ;;  %v9511_v2 = vor.u32 %v10500_v0, %v9508_v49  ;;  %v8420_v49 = vld [vmem:[%s10957_s20 + $0x848] sm:$0xf0] }
 0x1db   : > { %v6928_v4 = vadd.f32 %v4720_v25, %v512_v23  ;;  %v528_v23 = vld [vmem:[%s14791_s3 + $0x100] sm:$0xff]  ;;  %v4638_v25 = vadd.f32 %v11754_v54, %v11752_v53  ;;  %v10372_v53 = vld [vmem:[%s10957_s20 + $0xc8c] sm:$0xf] }
 0x1dc   : > { %5090 = vmatpush.bf16.msra.mxu1 %v8551_v27  ;;  %v8996_v54 = vld [vmem:[%s10957_s20 + $0xcc8] sm:$0xf0]  ;;  %v8487_v27 = vor.u32 %v10244_v46, %v8484_v50  ;;  %v4643_v46 = vadd.f32 %v11790_v56, %v11788_v55  ;;  %v576_v55 = vld [vmem:[%s14791_s3 + $0x280] sm:$0xff] }
 0x1dd   : > { %7056 = vst [vmem:[%s14791_s3 + $0x80] sm:$0xff] %v6928_v4  ;;  %v4667_v4 = vadd.f32 %v11764_v13, %v4638_v25  ;;  %v8999_v30 = vor.u32 %v10372_v53, %v8996_v54  ;;  %v10116_v13 = vld [vmem:[%s10957_s20 + $0x48c] sm:$0xf]  ;;  %v4641_v25 = vadd.f32 %v11772_v33, %v11770_v21 }
 0x1de   : > { %v11891_v47 = vpop.f32.mrf.mxu2  ;;  %v11901_v52 = vpop.f32.mrf.mxu1  ;;  %5149 = vmatpush.bf16.msra.mxu3 %v9511_v2  ;;  %v10356_v21 = vld [vmem:[%s10957_s20 + $0xc0c] sm:$0xf] }
 0x1df   : > { %v4696_v24 = vadd.f32 %v11768_v20, %v4667_v4  ;;  %5120 = vmatpush.bf16.msra.mxu2 %v8999_v30  ;;  %v4670_v4 = vadd.f32 %v11784_v45, %v4641_v25  ;;  %v8932_v33 = vld [vmem:[%s10957_s20 + $0xc48] sm:$0xf0] }
 0x1e0   : > { %v11894_v63 = vpop.f32.mrf.mxu3  ;;  %v4722_v40 = vpop.f32.mrf.mxu0  ;;  %5091 = vmatpush.bf16.msra.mxu1 %v8487_v27  ;;  %v8935_v53 = vor.u32 %v10356_v21, %v8932_v33  ;;  %v10100_v54 = vld [vmem:[%s10957_s20 + $0x40c] sm:$0xf]  ;;  %v8874_v27 = vld [vmem:[%s10957_s20 + $0xb90] sm:$0xf] }
 0x1e1   : > { %v4723_v44 = vadd.f32 %v4722_v40, %v4694_v1  ;;  %4982 = vmatmul.bf16.gmra.mxu1 %v11504_v34  ;;  %v7975_v1 = vor.u32 %v10116_v13, %v7972_v62  ;;  %v7908_v30 = vld [vmem:[%s10957_s20 + $0x448] sm:$0xf0]  ;;  %v4699_v62 = vadd.f32 %v11786_v51, %v4670_v4  ;;  %v4672_v4 = vadd.f32 %v11800_v18, %v4643_v46  ;;  %v10349_v21 = vld [vmem:[%s10957_s20 + $0xbcc] sm:$0xf0] }
 0x1e2   : > { %v10484_v13 = vld [vmem:[%s10957_s20 + $0x100c] sm:$0xf]  ;;  %v7850_v33 = vld [vmem:[%s10957_s20 + $0x390] sm:$0xf] }
 0x1e3   : > { %v6944_v5 = vadd.f32 %v4723_v44, %v528_v23  ;;  %4953 = vmatmul.bf16.gmra.mxu0 %v11500_v29  ;;  %5011 = vmatmul.bf16.gmra.mxu2 %v11628_v3  ;;  %v544_v23 = vld [vmem:[%s14791_s3 + $0x180] sm:$0xff]  ;;  %v9444_v45 = vld [vmem:[%s10957_s20 + $0x1048] sm:$0xf0]  ;;  %v4701_v56 = vadd.f32 %v11802_v37, %v4672_v4 }
 0x1e4   : > { %5062 = vmatpush.bf16.msra.mxu0 %v7975_v1  ;;  %v10228_v1 = vld [vmem:[%s10957_s20 + $0x80c] sm:$0xf]  ;;  %5121 = vmatpush.bf16.msra.mxu2 %v8935_v53  ;;  %v9447_v25 = vor.u32 %v10484_v13, %v9444_v45  ;;  %v10093_v13 = vld [vmem:[%s10957_s20 + $0x3cc] sm:$0xf0]  ;;  %v4646_v45 = vadd.f32 %v11806_v39, %v11804_v38  ;;  %v592_v38 = vld [vmem:[%s14791_s3 + $0x300] sm:$0xff] }
 0x1e5   : > { %7072 = vst [vmem:[%s14791_s3 + $0x100] sm:$0xff] %v6944_v5  ;;  %5040 = vmatmul.bf16.gmra.mxu3 %v11493_v22  ;;  %v7851_v37 = vor.u32 %v10093_v13, %v7850_v33  ;;  %v10077_v33 = vld [vmem:[%s10957_s20 + $0x34c] sm:$0xf0]  ;;  %v4648_v13 = vadd.f32 %v11828_v19, %v11824_v11  ;;  %v608_v11 = vld [vmem:[%s14791_s3 + $0x380] sm:$0xff] }
 0x1e6   : > { %v11919_v57 = vpop.f32.mrf.mxu2  ;;  %v11929_v44 = vpop.f32.mrf.mxu1  ;;  %5150 = vmatpush.bf16.msra.mxu3 %v9447_v25  ;;  %v10221_v25 = vld [vmem:[%s10957_s20 + $0x7cc] sm:$0xf0]  ;;  %v4675_v46 = vadd.f32 %v11820_v6, %v4646_v45 }
 0x1e7   : > { %v8810_v6 = vld [vmem:[%s10957_s20 + $0xb10] sm:$0xf] }
 0x1e8   : > { %v11922_v9 = vpop.f32.mrf.mxu3  ;;  %v4724_v40 = vpop.f32.mrf.mxu0  ;;  %v4704_v39 = vadd.f32 %v11822_v10, %v4675_v46  ;;  %v10317_v46 = vld [vmem:[%s10957_s20 + $0xacc] sm:$0xf0] }
 0x1e9   : > { %v4725_v20 = vadd.f32 %v4724_v40, %v4696_v24  ;;  %v7911_v24 = vor.u32 %v10100_v54, %v7908_v30  ;;  %v560_v40 = vld [vmem:[%s14791_s3 + $0x200] sm:$0xff]  ;;  %v8875_v30 = vor.u32 %v10349_v21, %v8874_v27 }
 0x1eb   : > { %v6960_v5 = vadd.f32 %v4725_v20, %v544_v23  ;;  %v8423_v20 = vor.u32 %v10228_v1, %v8420_v49  ;;  %5063 = vmatpush.bf16.msra.mxu0 %v7911_v24  ;;  %v10477_v24 = vld [vmem:[%s10957_s20 + $0xfcc] sm:$0xf0]  ;;  %5230 = vmatpush.bf16.msrb.mxu2 %v8875_v30 }
 0x1ec   : > { %v10461_v30 = vld [vmem:[%s10957_s20 + $0xf4c] sm:$0xf0] }
 0x1ed   : > { %7088 = vst [vmem:[%s14791_s3 + $0x180] sm:$0xff] %v6960_v5  ;;  %5092 = vmatpush.bf16.msra.mxu1 %v8423_v20 }
 0x1ee   : > { %v11943_v0 = vpop.f32.mrf.mxu2  ;;  %v11955_v50 = vpop.f32.mrf.mxu1 }
 0x1ef   : > { %5172 = vmatpush.bf16.msrb.mxu0 %v7851_v37  ;;  %v10205_v37 = vld [vmem:[%s10957_s20 + $0x74c] sm:$0xf0] }
 0x1f0   : > { %v11948_v23 = vpop.f32.mrf.mxu3  ;;  %v4727_v2 = vpop.f32.mrf.mxu0 }
 0x1f1   : > { %v4728_v51 = vadd.f32 %v4727_v2, %v4699_v62  ;;  %4987 = vmatmul.bf16.gmra.mxu1 %v11544_v17  ;;  %v9386_v62 = vld [vmem:[%s10957_s20 + $0xf90] sm:$0xf] }
 0x1f2   : > { %v8362_v2 = vld [vmem:[%s10957_s20 + $0x790] sm:$0xf] }
 0x1f3   : > { %v6976_v5 = vadd.f32 %v4728_v51, %v560_v40  ;;  %4958 = vmatmul.bf16.gmra.mxu0 %v11542_v16  ;;  %5016 = vmatmul.bf16.gmra.mxu2 %v11652_v43  ;;  %v9387_v40 = vor.u32 %v10477_v24, %v9386_v62  ;;  %v8363_v20 = vor.u32 %v10221_v25, %v8362_v2 }
 0x1f4   : > { %v4677_v2 = vadd.f32 %v11840_v48, %v4648_v13  ;;  %v10189_v13 = vld [vmem:[%s10957_s20 + $0x6cc] sm:$0xf0] }
 0x1f5   : > { %7104 = vst [vmem:[%s14791_s3 + $0x200] sm:$0xff] %v6976_v5  ;;  %5045 = vmatmul.bf16.gmra.mxu3 %v11538_v14  ;;  %5201 = vmatpush.bf16.msrb.mxu1 %v8363_v20  ;;  %v10333_v5 = vld [vmem:[%s10957_s20 + $0xb4c] sm:$0xf0] }
 0x1f6   : > { %v11969_v18 = vpop.f32.mrf.mxu2  ;;  %v11981_v49 = vpop.f32.mrf.mxu1  ;;  %5259 = vmatpush.bf16.msrb.mxu3 %v9387_v40  ;;  %v8811_v21 = vor.u32 %v10333_v5, %v8810_v6  ;;  %v4706_v19 = vadd.f32 %v11842_v59, %v4677_v2  ;;  %v8746_v20 = vld [vmem:[%s10957_s20 + $0xa90] sm:$0xf] }
 0x1f7   : > { %v8747_v6 = vor.u32 %v10317_v46, %v8746_v20  ;;  %v10061_v5 = vld [vmem:[%s10957_s20 + $0x2cc] sm:$0xf0] }
 0x1f8   : > { %v11974_v53 = vpop.f32.mrf.mxu3  ;;  %v4729_v54 = vpop.f32.mrf.mxu0  ;;  %5231 = vmatpush.bf16.msrb.mxu2 %v8811_v21  ;;  %v10301_v2 = vld [vmem:[%s10957_s20 + $0xa4c] sm:$0xf0] }
 0x1f9   : > { %v4730_v1 = vadd.f32 %v4729_v54, %v4701_v56  ;;  %v9322_v54 = vld [vmem:[%s10957_s20 + $0xf10] sm:$0xf] }
 0x1fa   : > { %v9323_v45 = vor.u32 %v10461_v30, %v9322_v54  ;;  %v8234_v30 = vld [vmem:[%s10957_s20 + $0x690] sm:$0xf] }
 0x1fb   : > { %v6992_v51 = vadd.f32 %v4730_v1, %v576_v55  ;;  %v7786_v55 = vld [vmem:[%s10957_s20 + $0x310] sm:$0xf] }
 0x1fc   : > { %v7787_v10 = vor.u32 %v10077_v33, %v7786_v55  ;;  %v8298_v1 = vld [vmem:[%s10957_s20 + $0x710] sm:$0xf]  ;;  %5260 = vmatpush.bf16.msrb.mxu3 %v9323_v45  ;;  %5232 = vmatpush.bf16.msrb.mxu2 %v8747_v6 }
 0x1fd   : > { %7120 = vst [vmem:[%s14791_s3 + $0x280] sm:$0xff] %v6992_v51  ;;  %v8299_v40 = vor.u32 %v10205_v37, %v8298_v1  ;;  %v7722_v51 = vld [vmem:[%s10957_s20 + $0x290] sm:$0xf] }
 0x1fe   : > { %v11993_v4 = vpop.f32.mrf.mxu2  ;;  %v12005_v24 = vpop.f32.mrf.mxu1  ;;  %5173 = vmatpush.bf16.msrb.mxu0 %v7787_v10  ;;  %v9258_v55 = vld [vmem:[%s10957_s20 + $0xe90] sm:$0xf]  ;;  %v7723_v54 = vor.u32 %v10061_v5, %v7722_v51  ;;  %v4776_v10 = vadd.f32 %v11868_v7, %v11849_v42 }
 0x1ff   : > { %5202 = vmatpush.bf16.msrb.mxu1 %v8299_v40  ;;  %v8682_v40 = vld [vmem:[%s10957_s20 + $0xa10] sm:$0xf] }
 0x200   : > { %v11998_v56 = vpop.f32.mrf.mxu3  ;;  %v4732_v27 = vpop.f32.mrf.mxu0  ;;  %v4805_v1 = vadd.f32 %v11870_v12, %v4776_v10  ;;  %v8683_v7 = vor.u32 %v10301_v2, %v8682_v40  ;;  %v9194_v20 = vld [vmem:[%s10957_s20 + $0xe10] sm:$0xf]  ;;  %v497_v12 = vld [vmem:[%s14791_s3 + $0x8] sm:$0xff] }
 0x201   : > { %v4733_v62 = vadd.f32 %v4732_v27, %v4704_v39  ;;  %4992 = vmatmul.bf16.gmra.mxu1 %v11580_v61  ;;  %v10445_v27 = vld [vmem:[%s10957_s20 + $0xecc] sm:$0xf0] }
 0x202   : > { %v9259_v59 = vor.u32 %v10445_v27, %v9258_v55  ;;  %5174 = vmatpush.bf16.msrb.mxu0 %v7723_v54  ;;  %v10429_v46 = vld [vmem:[%s10957_s20 + $0xe4c] sm:$0xf0]  ;;  %5233 = vmatpush.bf16.msrb.mxu2 %v8683_v7  ;;  %v4778_v54 = vadd.f32 %v11891_v47, %v11877_v41 }
 0x203   : > { %v7008_v25 = vadd.f32 %v4733_v62, %v592_v38  ;;  %4963 = vmatmul.bf16.gmra.mxu0 %v11578_v60  ;;  %5021 = vmatmul.bf16.gmra.mxu2 %v11674_v8  ;;  %v8235_v62 = vor.u32 %v10189_v13, %v8234_v30  ;;  %v9195_v5 = vor.u32 %v10429_v46, %v9194_v20  ;;  %v8170_v55 = vld [vmem:[%s10957_s20 + $0x610] sm:$0xf] }
 0x204   : > { %5261 = vmatpush.bf16.msrb.mxu3 %v9259_v59  ;;  %v10173_v27 = vld [vmem:[%s10957_s20 + $0x64c] sm:$0xf0]  ;;  %v4807_v41 = vadd.f32 %v11894_v63, %v4778_v54 }
 0x205   : > { %7136 = vst [vmem:[%s14791_s3 + $0x300] sm:$0xff] %v7008_v25  ;;  %5050 = vmatmul.bf16.gmra.mxu3 %v11574_v58  ;;  %5203 = vmatpush.bf16.msrb.mxu1 %v8235_v62  ;;  %v7658_v25 = vld [vmem:[%s10957_s20 + $0x210] sm:$0xf] }
 0x206   : > { %v12021_v48 = vpop.f32.mrf.mxu2  ;;  %v12031_v33 = vpop.f32.mrf.mxu1  ;;  %v8618_v13 = vld [vmem:[%s10957_s20 + $0x990] sm:$0xf] }
 0x207   : > { %v10285_v62 = vld [vmem:[%s10957_s20 + $0x9cc] sm:$0xf0] }
 0x208   : > { %v12026_v38 = vpop.f32.mrf.mxu3  ;;  %v4734_v39 = vpop.f32.mrf.mxu0  ;;  %5262 = vmatpush.bf16.msrb.mxu3 %v9195_v5  ;;  %v7594_v40 = vld [vmem:[%s10957_s20 + $0x190] sm:$0xf]  ;;  %v4781_v5 = vadd.f32 %v11919_v57, %v11901_v52 }
 0x209   : > { %v4735_v21 = vadd.f32 %v4734_v39, %v4706_v19  ;;  %v10029_v2 = vld [vmem:[%s10957_s20 + $0x1cc] sm:$0xf0] }
 0x20a   : > { %v10413_v63 = vld [vmem:[%s10957_s20 + $0xdcc] sm:$0xf0] }
 0x20b   : > { %v7024_v45 = vadd.f32 %v4735_v21, %v608_v11  ;;  %v10045_v11 = vld [vmem:[%s10957_s20 + $0x24c] sm:$0xf0]  ;;  %v8171_v21 = vor.u32 %v10173_v27, %v8170_v55 }
 0x20c   : > { %v7659_v6 = vor.u32 %v10045_v11, %v7658_v25  ;;  %v9130_v25 = vld [vmem:[%s10957_s20 + $0xd90] sm:$0xf]  ;;  %v7595_v11 = vor.u32 %v10029_v2, %v7594_v40 }
 0x20d   : > { %7152 = vst [vmem:[%s14791_s3 + $0x380] sm:$0xff] %v7024_v45  ;;  %5204 = vmatpush.bf16.msrb.mxu1 %v8171_v21  ;;  %v8106_v20 = vld [vmem:[%s10957_s20 + $0x590] sm:$0xf] }
 0x20e   : > { %v12041_v37 = vpop.f32.mrf.mxu2  ;;  %v4862_v39 = vpop.f32.mrf.mxu1  ;;  %5175 = vmatpush.bf16.msrb.mxu0 %v7659_v6  ;;  %v10157_v46 = vld [vmem:[%s10957_s20 + $0x5cc] sm:$0xf0] }
 0x20f   : > { %v8107_v6 = vor.u32 %v10157_v46, %v8106_v20  ;;  %v8554_v54 = vld [vmem:[%s10957_s20 + $0x910] sm:$0xf] }
 0x210   : > { %v12046_v19 = vpop.f32.mrf.mxu3  ;;  %v4833_v42 = vpop.f32.mrf.mxu0  ;;  %v8042_v2 = vld [vmem:[%s10957_s20 + $0x510] sm:$0xf] }
 0x211   : > { %v4834_v51 = vadd.f32 %v4833_v42, %v4805_v1  ;;  %5093 = vmatmul.bf16.vlgmr.msra.gmra.mxu1 %v11448_v32  ;;  %v8619_v1 = vor.u32 %v10285_v62, %v8618_v13  ;;  %v10013_v13 = vld [vmem:[%s10957_s20 + $0x14c] sm:$0xf0] }
 0x212   : > { %5176 = vmatpush.bf16.msrb.mxu0 %v7595_v11  ;;  %5205 = vmatpush.bf16.msrb.mxu1 %v8107_v6  ;;  %v9066_v62 = vld [vmem:[%s10957_s20 + $0xd10] sm:$0xf] }
 0x213   : > { %v4863_v59 = vadd.f32 %v4862_v39, %v4834_v51  ;;  %5064 = vmatmul.bf16.vlgmr.msra.gmra.mxu0 %v11446_v31  ;;  %5122 = vmatmul.bf16.vlgmr.msra.gmra.mxu2 %v11452_v35  ;;  %v513_v51 = vld [vmem:[%s14791_s3 + $0x88] sm:$0xff]  ;;  %v9131_v39 = vor.u32 %v10413_v63, %v9130_v25  ;;  %v10141_v25 = vld [vmem:[%s10957_s20 + $0x54c] sm:$0xf0]  ;;  %v4783_v63 = vadd.f32 %v11943_v0, %v11929_v44 }
 0x214   : > { %5234 = vmatpush.bf16.msrb.mxu2 %v8619_v1  ;;  %v8043_v11 = vor.u32 %v10141_v25, %v8042_v2 }
 0x215   : > { %v6913_v30 = vadd.f32 %v4863_v59, %v497_v12  ;;  %5151 = vmatmul.bf16.vlgmr.msra.gmra.mxu3 %v11604_v36  ;;  %v4810_v12 = vadd.f32 %v11922_v9, %v4781_v5  ;;  %v10269_v59 = vld [vmem:[%s10957_s20 + $0x94c] sm:$0xf0]  ;;  %v4812_v44 = vadd.f32 %v11948_v23, %v4783_v63 }
 0x216   : > { %v12066_v47 = vpop.f32.mrf.mxu2  ;;  %v4864_v7 = vpop.f32.mrf.mxu1  ;;  %5263 = vmatpush.bf16.msrb.mxu3 %v9131_v39  ;;  %v10397_v9 = vld [vmem:[%s10957_s20 + $0xd4c] sm:$0xf0]  ;;  %5206 = vmatpush.bf16.msrb.mxu1 %v8043_v11 }
 0x217   : > { %7041 = vst [vmem:[%s14791_s3 + $0x8] sm:$0xff] %v6913_v30  ;;  %v8555_v30 = vor.u32 %v10269_v59, %v8554_v54  ;;  %v10253_v39 = vld [vmem:[%s10957_s20 + $0x8cc] sm:$0xf0] }
 0x218   : > { %v12070_v10 = vpop.f32.mrf.mxu3  ;;  %v4835_v45 = vpop.f32.mrf.mxu0  ;;  %v9002_v54 = vld [vmem:[%s10957_s20 + $0xc90] sm:$0xf] }
 0x219   : > { %v4836_v42 = vadd.f32 %v4835_v45, %v4807_v41  ;;  %v7530_v41 = vld [vmem:[%s10957_s20 + $0x110] sm:$0xf]  ;;  %5235 = vmatpush.bf16.msrb.mxu2 %v8555_v30 }
 0x21a   : > { %v7531_v40 = vor.u32 %v10013_v13, %v7530_v41  ;;  %v10381_v23 = vld [vmem:[%s10957_s20 + $0xccc] sm:$0xf0] }
 0x21b   : > { %v4865_v55 = vadd.f32 %v4864_v7, %v4836_v42  ;;  %v529_v42 = vld [vmem:[%s14791_s3 + $0x108] sm:$0xff]  ;;  %v9067_v7 = vor.u32 %v10397_v9, %v9066_v62  ;;  %v7978_v41 = vld [vmem:[%s10957_s20 + $0x490] sm:$0xf] }
 0x21c   : > { %5177 = vmatpush.bf16.msrb.mxu0 %v7531_v40  ;;  %v10125_v13 = vld [vmem:[%s10957_s20 + $0x4cc] sm:$0xf0]  ;;  %v545_v62 = vld [vmem:[%s14791_s3 + $0x188] sm:$0xff]  ;;  %v4786_v40 = vadd.f32 %v11969_v18, %v11955_v50 }
 0x21d   : > { %v6929_v27 = vadd.f32 %v4865_v55, %v513_v51  ;;  %5264 = vmatpush.bf16.msrb.mxu3 %v9067_v7  ;;  %v8490_v51 = vld [vmem:[%s10957_s20 + $0x890] sm:$0xf] }
 0x21e   : > { %v12087_v21 = vpop.f32.mrf.mxu2  ;;  %v4867_v1 = vpop.f32.mrf.mxu1  ;;  %v8491_v55 = vor.u32 %v10253_v39, %v8490_v51  ;;  %v4815_v25 = vadd.f32 %v11974_v53, %v4786_v40  ;;  %v8426_v7 = vld [vmem:[%s10957_s20 + $0x810] sm:$0xf] }
 0x21f   : > { %7057 = vst [vmem:[%s14791_s3 + $0x88] sm:$0xff] %v6929_v27  ;;  %v7466_v27 = vld [vmem:[%s10957_s20 + $0x90] sm:$0xf] }
 0x220   : > { %v12091_v52 = vpop.f32.mrf.mxu3  ;;  %v4838_v57 = vpop.f32.mrf.mxu0  ;;  %5236 = vmatpush.bf16.msrb.mxu2 %v8491_v55  ;;  %v10237_v11 = vld [vmem:[%s10957_s20 + $0x84c] sm:$0xf0] }
 0x221   : > { %v4839_v45 = vadd.f32 %v4838_v57, %v4810_v12  ;;  %5098 = vmatmul.bf16.gmra.mxu1 %v11500_v29  ;;  %v9997_v12 = vld [vmem:[%s10957_s20 + $0xcc] sm:$0xf0]  ;;  %v8427_v63 = vor.u32 %v10237_v11, %v8426_v7 }
 0x222   : > { %v7467_v30 = vor.u32 %v9997_v12, %v7466_v27  ;;  %v10365_v53 = vld [vmem:[%s10957_s20 + $0xc4c] sm:$0xf0]  ;;  %v561_v12 = vld [vmem:[%s14791_s3 + $0x208] sm:$0xff] }
 0x223   : > { %v4868_v20 = vadd.f32 %v4867_v1, %v4839_v45  ;;  %5069 = vmatmul.bf16.gmra.mxu0 %v11498_v28  ;;  %5127 = vmatmul.bf16.gmra.mxu2 %v11504_v34  ;;  %v9003_v45 = vor.u32 %v10381_v23, %v9002_v54  ;;  %v7979_v1 = vor.u32 %v10125_v13, %v7978_v41  ;;  %v7914_v55 = vld [vmem:[%s10957_s20 + $0x410] sm:$0xf]  ;;  %v10213_v41 = vld [vmem:[%s10957_s20 + $0x794] sm:$0xf] }
 0x224   : > { %5178 = vmatpush.bf16.msrb.mxu0 %v7467_v30  ;;  %v10109_v27 = vld [vmem:[%s10957_s20 + $0x44c] sm:$0xf0]  ;;  %5237 = vmatpush.bf16.msrb.mxu2 %v8427_v63  ;;  %v8364_v13 = vld [vmem:[%s10957_s20 + $0x7d0] sm:$0xf0] }
 0x225   : > { %v6945_v46 = vadd.f32 %v4868_v20, %v529_v42  ;;  %5156 = vmatmul.bf16.gmra.mxu3 %v11628_v3  ;;  %5207 = vmatpush.bf16.msrb.mxu1 %v7979_v1  ;;  %v7402_v20 = vld [vmem:[%s10957_s20 + $0x10] sm:$0xf] }
 0x226   : > { %v12112_v0 = vpop.f32.mrf.mxu2  ;;  %v4869_v57 = vpop.f32.mrf.mxu1  ;;  %5265 = vmatpush.bf16.msrb.mxu3 %v9003_v45  ;;  %v8367_v45 = vor.u32 %v10213_v41, %v8364_v13  ;;  %v10605_v1 = vld [vmem:[%s10957_s20 + $0x13cc] sm:$0xf0] }
 0x227   : > { %7073 = vst [vmem:[%s14791_s3 + $0x108] sm:$0xff] %v6945_v46  ;;  %v9981_v46 = vld [vmem:[%s10957_s20 + $0x4c] sm:$0xf0] }
 0x228   : > { %v12116_v6 = vpop.f32.mrf.mxu3  ;;  %v4840_v5 = vpop.f32.mrf.mxu0  ;;  %5346 = vmatpush.bf16.msra.mxu2 %v8367_v45  ;;  %v593_v45 = vld [vmem:[%s14791_s3 + $0x308] sm:$0xff] }
 0x229   : > { %v4841_v59 = vadd.f32 %v4840_v5, %v4812_v44  ;;  %v8938_v44 = vld [vmem:[%s10957_s20 + $0xc10] sm:$0xf]  ;;  %v7403_v5 = vor.u32 %v9981_v46, %v7402_v20  ;;  %v4791_v20 = vadd.f32 %v12021_v48, %v12005_v24 }
 0x22a   : > { %v8939_v54 = vor.u32 %v10365_v53, %v8938_v44  ;;  %v10085_v44 = vld [vmem:[%s10957_s20 + $0x394] sm:$0xf] }
 0x22b   : > { %v4870_v9 = vadd.f32 %v4869_v57, %v4841_v59  ;;  %v7915_v59 = vor.u32 %v10109_v27, %v7914_v55  ;;  %v4788_v57 = vadd.f32 %v11993_v4, %v11981_v49  ;;  %5179 = vmatpush.bf16.msrb.mxu0 %v7403_v5  ;;  %v10341_v49 = vld [vmem:[%s10957_s20 + $0xb94] sm:$0xf]  ;;  %v9834_v27 = vld [vmem:[%s10957_s20 + $0x1310] sm:$0xf] }
 0x22c   : > { %5266 = vmatpush.bf16.msrb.mxu3 %v8939_v54  ;;  %v8876_v4 = vld [vmem:[%s10957_s20 + $0xbd0] sm:$0xf0] }
 0x22d   : > { %v6961_v2 = vadd.f32 %v4870_v9, %v545_v62  ;;  %v9898_v62 = vld [vmem:[%s10957_s20 + $0x1390] sm:$0xf]  ;;  %5208 = vmatpush.bf16.msrb.mxu1 %v7915_v59  ;;  %v4817_v40 = vadd.f32 %v11998_v56, %v4788_v57  ;;  %v577_v56 = vld [vmem:[%s14791_s3 + $0x288] sm:$0xff]  ;;  %v8300_v55 = vld [vmem:[%s10957_s20 + $0x750] sm:$0xf0] }
 0x22e   : > { %v12133_v42 = vpop.f32.mrf.mxu2  ;;  %v4872_v39 = vpop.f32.mrf.mxu1  ;;  %v10325_v57 = vld [vmem:[%s10957_s20 + $0xb14] sm:$0xf] }
 0x22f   : > { %7089 = vst [vmem:[%s14791_s3 + $0x188] sm:$0xff] %v6961_v2  ;;  %v9899_v2 = vor.u32 %v10605_v1, %v9898_v62  ;;  %v4793_v1 = vadd.f32 %v12041_v37, %v12031_v33  ;;  %v10309_v33 = vld [vmem:[%s10957_s20 + $0xa94] sm:$0xf] }
 0x230   : > { %v12137_v50 = vpop.f32.mrf.mxu3  ;;  %v4843_v18 = vpop.f32.mrf.mxu0  ;;  %v8748_v37 = vld [vmem:[%s10957_s20 + $0xad0] sm:$0xf0] }
 0x231   : > { %v4844_v51 = vadd.f32 %v4843_v18, %v4815_v25  ;;  %5103 = vmatmul.bf16.gmra.mxu1 %v11542_v16  ;;  %v8879_v25 = vor.u32 %v10341_v49, %v8876_v4  ;;  %5288 = vmatpush.bf16.msra.mxu0 %v9899_v2  ;;  %v14802_v4 = vld [vmem:[#allocation9_spill] sm:$0xff] }
 0x232   : > { %v7788_v2 = vld [vmem:[%s10957_s20 + $0x350] sm:$0xf0] }
 0x233   : > { %v4873_v30 = vadd.f32 %v4872_v39, %v4844_v51  ;;  %5074 = vmatmul.bf16.gmra.mxu0 %v11540_v15  ;;  %5132 = vmatmul.bf16.gmra.mxu2 %v11544_v17  ;;  %v7852_v51 = vld [vmem:[%s10957_s20 + $0x3d0] sm:$0xf0] }
 0x234   : > { %5375 = vmatpush.bf16.msra.mxu3 %v8879_v25  ;;  %v10197_v39 = vld [vmem:[%s10957_s20 + $0x714] sm:$0xf]  ;;  %v7855_v53 = vor.u32 %v10085_v44, %v7852_v51  ;;  %v4822_v44 = vadd.f32 %v12046_v19, %v4793_v1 }
 0x235   : > { %v6977_v23 = vadd.f32 %v4873_v30, %v561_v12  ;;  %5161 = vmatmul.bf16.gmra.mxu3 %v11652_v43  ;;  %v10589_v12 = vld [vmem:[%s10957_s20 + $0x134c] sm:$0xf0]  ;;  %v8303_v54 = vor.u32 %v10197_v39, %v8300_v55  ;;  %v8812_v30 = vld [vmem:[%s10957_s20 + $0xb50] sm:$0xf0] }
 0x236   : > { %v12164_v9 = vpop.f32.mrf.mxu2  ;;  %v4874_v63 = vpop.f32.mrf.mxu1  ;;  %v9835_v59 = vor.u32 %v10589_v12, %v9834_v27  ;;  %5317 = vmatpush.bf16.msra.mxu1 %v7855_v53  ;;  %v8815_v48 = vor.u32 %v10325_v57, %v8812_v30  ;;  %v609_v12 = vld [vmem:[%s14791_s3 + $0x388] sm:$0xff]  ;;  %v7724_v57 = vld [vmem:[%s10957_s20 + $0x2d0] sm:$0xf0] }
 0x237   : > { %7105 = vst [vmem:[%s14791_s3 + $0x208] sm:$0xff] %v6977_v23  ;;  %v4820_v23 = vadd.f32 %v12026_v38, %v4791_v20  ;;  %5347 = vmatpush.bf16.msra.mxu2 %v8303_v54  ;;  %v10165_v30 = vld [vmem:[%s10957_s20 + $0x614] sm:$0xf] }
 0x238   : > { %v12166_v7 = vpop.f32.mrf.mxu3  ;;  %v4845_v11 = vpop.f32.mrf.mxu0  ;;  %5289 = vmatpush.bf16.msra.mxu0 %v9835_v59  ;;  %5376 = vmatpush.bf16.msra.mxu3 %v8815_v48  ;;  %v10053_v59 = vld [vmem:[%s10957_s20 + $0x294] sm:$0xf] }
 0x239   : > { %v4846_v18 = vadd.f32 %v4845_v11, %v4817_v40  ;;  %v10069_v40 = vld [vmem:[%s10957_s20 + $0x314] sm:$0xf]  ;;  %v7727_v48 = vor.u32 %v10053_v59, %v7724_v57 }
 0x23a   : > { %v7791_v11 = vor.u32 %v10069_v40, %v7788_v2  ;;  %v8684_v40 = vld [vmem:[%s10957_s20 + $0xa50] sm:$0xf0] }
 0x23b   : > { %v4875_v46 = vadd.f32 %v4874_v63, %v4846_v18  ;;  %v10181_v18 = vld [vmem:[%s10957_s20 + $0x694] sm:$0xf] }
 0x23c   : > { %v8236_v63 = vld [vmem:[%s10957_s20 + $0x6d0] sm:$0xf0]  ;;  %5318 = vmatpush.bf16.msra.mxu1 %v7791_v11  ;;  %v4921_v11 = vadd.f32 %v12070_v10, %v12066_v47 }
 0x23d   : > { %v6993_v5 = vadd.f32 %v4875_v46, %v577_v56  ;;  %v9770_v56 = vld [vmem:[%s10957_s20 + $0x1290] sm:$0xf]  ;;  %v8239_v20 = vor.u32 %v10181_v18, %v8236_v63  ;;  %v10037_v47 = vld [vmem:[%s10957_s20 + $0x214] sm:$0xf] }
 0x23e   : > { %v12185_v24 = vpop.f32.mrf.mxu2  ;;  %v4877_v38 = vpop.f32.mrf.mxu1  ;;  %v10573_v46 = vld [vmem:[%s10957_s20 + $0x12cc] sm:$0xf0]  ;;  %v7660_v10 = vld [vmem:[%s10957_s20 + $0x250] sm:$0xf0] }
 0x23f   : > { %7121 = vst [vmem:[%s14791_s3 + $0x288] sm:$0xff] %v6993_v5  ;;  %v9771_v39 = vor.u32 %v10573_v46, %v9770_v56  ;;  %v8751_v5 = vor.u32 %v10309_v33, %v8748_v37  ;;  %5348 = vmatpush.bf16.msra.mxu2 %v8239_v20  ;;  %v7663_v46 = vor.u32 %v10037_v47, %v7660_v10  ;;  %v10149_v33 = vld [vmem:[%s10957_s20 + $0x594] sm:$0xf] }
 0x240   : > { %v12187_v41 = vpop.f32.mrf.mxu3  ;;  %v4848_v13 = vpop.f32.mrf.mxu0  ;;  %5319 = vmatpush.bf16.msra.mxu1 %v7727_v48  ;;  %v8108_v37 = vld [vmem:[%s10957_s20 + $0x5d0] sm:$0xf0] }
 0x241   : > { %v4849_v62 = vadd.f32 %v4848_v13, %v4820_v23  ;;  %5108 = vmatmul.bf16.gmra.mxu1 %v11578_v60  ;;  %5290 = vmatpush.bf16.msra.mxu0 %v9771_v39  ;;  %v8172_v13 = vld [vmem:[%s10957_s20 + $0x650] sm:$0xf0] }
 0x242   : > { %5377 = vmatpush.bf16.msra.mxu3 %v8751_v5  ;;  %v8111_v5 = vor.u32 %v10149_v33, %v8108_v37  ;;  %v8556_v47 = vld [vmem:[%s10957_s20 + $0x950] sm:$0xf0] }
 0x243   : > { %v4878_v49 = vadd.f32 %v4877_v38, %v4849_v62  ;;  %5079 = vmatmul.bf16.gmra.mxu0 %v14802_v4  ;;  %5137 = vmatmul.bf16.gmra.mxu2 %v11580_v61  ;;  %v9706_v62 = vld [vmem:[%s10957_s20 + $0x1210] sm:$0xf] }
 0x244   : > { %v10557_v38 = vld [vmem:[%s10957_s20 + $0x124c] sm:$0xf0]  ;;  %5320 = vmatpush.bf16.msra.mxu1 %v7663_v46 }
 0x245   : > { %v7009_v25 = vadd.f32 %v4878_v49, %v593_v45  ;;  %5166 = vmatmul.bf16.gmra.mxu3 %v11674_v8  ;;  %v8175_v45 = vor.u32 %v10165_v30, %v8172_v13  ;;  %v9707_v1 = vor.u32 %v10557_v38, %v9706_v62  ;;  %v10293_v49 = vld [vmem:[%s10957_s20 + $0xa14] sm:$0xf]  ;;  %v4923_v30 = vadd.f32 %v12091_v52, %v12087_v21 }
 0x246   : > { %v12210_v51 = vpop.f32.mrf.mxu2  ;;  %v4879_v19 = vpop.f32.mrf.mxu1  ;;  %v7596_v21 = vld [vmem:[%s10957_s20 + $0x1d0] sm:$0xf0] }
 0x247   : > { %7137 = vst [vmem:[%s14791_s3 + $0x308] sm:$0xff] %v7009_v25  ;;  %v8687_v25 = vor.u32 %v10293_v49, %v8684_v40  ;;  %5349 = vmatpush.bf16.msra.mxu2 %v8175_v45  ;;  %5291 = vmatpush.bf16.msra.mxu0 %v9707_v1  ;;  %v10021_v1 = vld [vmem:[%s10957_s20 + $0x194] sm:$0xf] }
 0x248   : > { %v12212_v53 = vpop.f32.mrf.mxu3  ;;  %v4850_v55 = vpop.f32.mrf.mxu0  ;;  %v7599_v52 = vor.u32 %v10021_v1, %v7596_v21  ;;  %v10133_v49 = vld [vmem:[%s10957_s20 + $0x514] sm:$0xf] }
 0x249   : > { %v4851_v27 = vadd.f32 %v4850_v55, %v4822_v44  ;;  %5378 = vmatpush.bf16.msra.mxu3 %v8687_v25  ;;  %v9642_v44 = vld [vmem:[%s10957_s20 + $0x1190] sm:$0xf]  ;;  %v8044_v40 = vld [vmem:[%s10957_s20 + $0x550] sm:$0xf0] }
 0x24a   : > { %v10541_v55 = vld [vmem:[%s10957_s20 + $0x11cc] sm:$0xf0]  ;;  %5321 = vmatpush.bf16.msra.mxu1 %v7599_v52 }
 0x24b   : > { %v4880_v54 = vadd.f32 %v4879_v19, %v4851_v27  ;;  %v10277_v27 = vld [vmem:[%s10957_s20 + $0x994] sm:$0xf]  ;;  %v9643_v59 = vor.u32 %v10541_v55, %v9642_v44  ;;  %5350 = vmatpush.bf16.msra.mxu2 %v8111_v5  ;;  %v9578_v25 = vld [vmem:[%s10957_s20 + $0x1110] sm:$0xf]  ;;  %v4926_v44 = vadd.f32 %v12116_v6, %v12112_v0 }
 0x24c   : > { %v8620_v19 = vld [vmem:[%s10957_s20 + $0x9d0] sm:$0xf0] }
 0x24d   : > { %v7025_v23 = vadd.f32 %v4880_v54, %v609_v12  ;;  %v498_v12 = vld [vmem:[%s14791_s3 + $0x10] sm:$0xff]  ;;  %v8623_v57 = vor.u32 %v10277_v27, %v8620_v19  ;;  %5292 = vmatpush.bf16.msra.mxu0 %v9643_v59 }
 0x24e   : > { %v12228_v2 = vpop.f32.mrf.mxu2  ;;  %v4978_v56 = vpop.f32.mrf.mxu1  ;;  %v514_v10 = vld [vmem:[%s14791_s3 + $0x90] sm:$0xff] }
 0x24f   : > { %7153 = vst [vmem:[%s14791_s3 + $0x388] sm:$0xff] %v7025_v23  ;;  %5379 = vmatpush.bf16.msra.mxu3 %v8623_v57  ;;  %v10005_v0 = vld [vmem:[%s10957_s20 + $0x114] sm:$0xf] }
 0x250   : > { %v12232_v18 = vpop.f32.mrf.mxu3  ;;  %v4949_v63 = vpop.f32.mrf.mxu0  ;;  %v7532_v6 = vld [vmem:[%s10957_s20 + $0x150] sm:$0xf0] }
 0x251   : > { %v4950_v20 = vadd.f32 %v4949_v63, %v4921_v11  ;;  %5209 = vmatmul.bf16.vlgmr.msrb.gmra.mxu1 %v11446_v31  ;;  %v8047_v63 = vor.u32 %v10133_v49, %v8044_v40  ;;  %v10117_v59 = vld [vmem:[%s10957_s20 + $0x494] sm:$0xf]  ;;  %v4928_v40 = vadd.f32 %v12137_v50, %v12133_v42 }
 0x252   : > { %v7980_v57 = vld [vmem:[%s10957_s20 + $0x4d0] sm:$0xf0] }
 0x253   : > { %5180 = vmatmul.bf16.vlgmr.msrb.gmra.mxu0 %v11441_v26  ;;  %5238 = vmatmul.bf16.vlgmr.msrb.gmra.mxu2 %v11448_v32  ;;  %v4979_v39 = vadd.f32 %v4978_v56, %v4950_v20  ;;  %v10525_v56 = vld [vmem:[%s10957_s20 + $0x114c] sm:$0xf0]  ;;  %v10261_v20 = vld [vmem:[%s10957_s20 + $0x914] sm:$0xf] }
 0x254   : > { %v9579_v33 = vor.u32 %v10525_v56, %v9578_v25  ;;  %v8559_v37 = vor.u32 %v10261_v20, %v8556_v47  ;;  %5351 = vmatpush.bf16.msra.mxu2 %v8047_v63  ;;  %v530_v1 = vld [vmem:[%s14791_s3 + $0x110] sm:$0xff] }
 0x255   : > { %5267 = vmatmul.bf16.vlgmr.msrb.gmra.mxu3 %v11452_v35  ;;  %v10101_v50 = vld [vmem:[%s10957_s20 + $0x414] sm:$0xf] }
 0x256   : > { %v5007_v54 = vpop.f32.mrf.mxu2  ;;  %v4980_v62 = vpop.f32.mrf.mxu1  ;;  %5293 = vmatpush.bf16.msra.mxu0 %v9579_v33  ;;  %5380 = vmatpush.bf16.msra.mxu3 %v8559_v37  ;;  %v7916_v33 = vld [vmem:[%s10957_s20 + $0x450] sm:$0xf0] }
 0x257   : > { %v5008_v23 = vadd.f32 %v5007_v54, %v4979_v39  ;;  %v7535_v54 = vor.u32 %v10005_v0, %v7532_v6  ;;  %v7919_v37 = vor.u32 %v10101_v50, %v7916_v33  ;;  %v546_v0 = vld [vmem:[%s14791_s3 + $0x190] sm:$0xff] }
 0x258   : > { %v12251_v48 = vpop.f32.mrf.mxu3  ;;  %v4951_v13 = vpop.f32.mrf.mxu0 }
 0x259   : > { %v6914_v38 = vadd.f32 %v5008_v23, %v498_v12  ;;  %v4952_v45 = vadd.f32 %v4951_v13, %v4923_v30  ;;  %v9514_v30 = vld [vmem:[%s10957_s20 + $0x1090] sm:$0xf]  ;;  %v7983_v13 = vor.u32 %v10117_v59, %v7980_v57  ;;  %5322 = vmatpush.bf16.msra.mxu1 %v7535_v54  ;;  %v9973_v59 = vld [vmem:[%s10957_s20 + $0x14] sm:$0xf] }
 0x25a   : > { %v7404_v57 = vld [vmem:[%s10957_s20 + $0x50] sm:$0xf0] }
 0x25b   : > { %7042 = vst [vmem:[%s14791_s3 + $0x10] sm:$0xff] %v6914_v38  ;;  %v4981_v11 = vadd.f32 %v4980_v62, %v4952_v45  ;;  %v10509_v62 = vld [vmem:[%s10957_s20 + $0x10cc] sm:$0xf0]  ;;  %v10245_v38 = vld [vmem:[%s10957_s20 + $0x894] sm:$0xf]  ;;  %5352 = vmatpush.bf16.msra.mxu2 %v7983_v13 }
 0x25c   : > { %v8492_v45 = vld [vmem:[%s10957_s20 + $0x8d0] sm:$0xf0]  ;;  %v9515_v52 = vor.u32 %v10509_v62, %v9514_v30  ;;  %v4931_v30 = vadd.f32 %v12166_v7, %v12164_v9  ;;  %v7858_v9 = vld [vmem:[%s10957_s20 + $0x398] sm:$0xf] }
 0x25d   : > { %v8495_v49 = vor.u32 %v10245_v38, %v8492_v45  ;;  %v7407_v38 = vor.u32 %v9973_v59, %v7404_v57  ;;  %v10094_v7 = vld [vmem:[%s10957_s20 + $0x3d4] sm:$0xf0]  ;;  %v10453_v59 = vld [vmem:[%s10957_s20 + $0xf14] sm:$0xf] }
 0x25e   : > { %v5009_v46 = vpop.f32.mrf.mxu2  ;;  %v4983_v27 = vpop.f32.mrf.mxu1  ;;  %5294 = vmatpush.bf16.msra.mxu0 %v9515_v52  ;;  %v10469_v52 = vld [vmem:[%s10957_s20 + $0xf94] sm:$0xf] }
 0x25f   : > { %v5010_v39 = vadd.f32 %v5009_v46, %v4981_v11  ;;  %5381 = vmatpush.bf16.msra.mxu3 %v8495_v49  ;;  %v7468_v46 = vld [vmem:[%s10957_s20 + $0xd0] sm:$0xf0]  ;;  %5353 = vmatpush.bf16.msra.mxu2 %v7919_v37 }
 0x260   : > { %v12269_v5 = vpop.f32.mrf.mxu3  ;;  %v4954_v55 = vpop.f32.mrf.mxu0  ;;  %v9324_v57 = vld [vmem:[%s10957_s20 + $0xf50] sm:$0xf0] }
 0x261   : > { %v6930_v19 = vadd.f32 %v5010_v39, %v514_v10  ;;  %v4955_v12 = vadd.f32 %v4954_v55, %v4926_v44  ;;  %5214 = vmatmul.bf16.gmra.mxu1 %v11498_v28  ;;  %v9989_v10 = vld [vmem:[%s10957_s20 + $0x94] sm:$0xf]  ;;  %v9450_v44 = vld [vmem:[%s10957_s20 + $0x1010] sm:$0xf] }
 0x262   : > { %v7471_v42 = vor.u32 %v9989_v10, %v7468_v46  ;;  %v10493_v39 = vld [vmem:[%s10957_s20 + $0x104c] sm:$0xf0]  ;;  %v10229_v55 = vld [vmem:[%s10957_s20 + $0x814] sm:$0xf] }
 0x263   : > { %5185 = vmatmul.bf16.gmra.mxu0 %v11493_v22  ;;  %7058 = vst [vmem:[%s14791_s3 + $0x90] sm:$0xff] %v6930_v19  ;;  %5243 = vmatmul.bf16.gmra.mxu2 %v11500_v29  ;;  %v4984_v23 = vadd.f32 %v4983_v27, %v4955_v12  ;;  %v9451_v19 = vor.u32 %v10493_v39, %v9450_v44  ;;  %v8428_v12 = vld [vmem:[%s10957_s20 + $0x850] sm:$0xf0] }
 0x264   : > { %5323 = vmatpush.bf16.msra.mxu1 %v7471_v42  ;;  %v8431_v54 = vor.u32 %v10229_v55, %v8428_v12  ;;  %v4933_v42 = vadd.f32 %v12187_v41, %v12185_v24  ;;  %v578_v24 = vld [vmem:[%s14791_s3 + $0x290] sm:$0xff]  ;;  %v7794_v12 = vld [vmem:[%s10957_s20 + $0x318] sm:$0xf] }
 0x265   : > { %5272 = vmatmul.bf16.gmra.mxu3 %v11504_v34  ;;  %5295 = vmatpush.bf16.msra.mxu0 %v9451_v19  ;;  %v9900_v19 = vld [vmem:[%s10957_s20 + $0x13d0] sm:$0xf0] }
 0x266   : > { %v5012_v21 = vpop.f32.mrf.mxu2  ;;  %v4985_v56 = vpop.f32.mrf.mxu1  ;;  %5382 = vmatpush.bf16.msra.mxu3 %v8431_v54  ;;  %v10078_v54 = vld [vmem:[%s10957_s20 + $0x354] sm:$0xf0] }
 0x267   : > { %v5013_v25 = vadd.f32 %v5012_v21, %v4984_v23 }
 0x268   : > { %v12291_v11 = vpop.f32.mrf.mxu3  ;;  %v4956_v63 = vpop.f32.mrf.mxu0  ;;  %5324 = vmatpush.bf16.msra.mxu1 %v7407_v38 }
 0x269   : > { %v6946_v20 = vadd.f32 %v5013_v25, %v530_v1  ;;  %v4957_v47 = vadd.f32 %v4956_v63, %v4928_v40  ;;  %v7859_v40 = vor.u32 %v10094_v7, %v7858_v9  ;;  %v9388_v25 = vld [vmem:[%s10957_s20 + $0xfd0] sm:$0xf0]  ;;  %v8370_v63 = vld [vmem:[%s10957_s20 + $0x798] sm:$0xf] }
 0x26a   : > { %v9391_v10 = vor.u32 %v10469_v52, %v9388_v25  ;;  %v10206_v9 = vld [vmem:[%s10957_s20 + $0x754] sm:$0xf0]  ;;  %v10581_v25 = vld [vmem:[%s10957_s20 + $0x1314] sm:$0xf] }
 0x26b   : > { %7074 = vst [vmem:[%s14791_s3 + $0x110] sm:$0xff] %v6946_v20  ;;  %v4986_v27 = vadd.f32 %v4985_v56, %v4957_v47  ;;  %v10222_v56 = vld [vmem:[%s10957_s20 + $0x7d4] sm:$0xf0]  ;;  %v562_v20 = vld [vmem:[%s14791_s3 + $0x210] sm:$0xff]  ;;  %5462 = vmatpush.bf16.msrb.mxu2 %v7859_v40 }
 0x26c   : > { %v8371_v46 = vor.u32 %v10222_v56, %v8370_v63  ;;  %5404 = vmatpush.bf16.msrb.mxu0 %v9391_v10  ;;  %v9836_v63 = vld [vmem:[%s10957_s20 + $0x1350] sm:$0xf0]  ;;  %v7730_v56 = vld [vmem:[%s10957_s20 + $0x298] sm:$0xf] }
 0x26d   : > { %v10062_v10 = vld [vmem:[%s10957_s20 + $0x2d4] sm:$0xf0] }
 0x26e   : > { %v5014_v6 = vpop.f32.mrf.mxu2  ;;  %v4988_v45 = vpop.f32.mrf.mxu1  ;;  %5491 = vmatpush.bf16.msrb.mxu3 %v8371_v46  ;;  %v10437_v46 = vld [vmem:[%s10957_s20 + $0xe94] sm:$0xf] }
 0x26f   : > { %v5015_v23 = vadd.f32 %v5014_v6, %v4986_v27  ;;  %v10597_v27 = vld [vmem:[%s10957_s20 + $0x1394] sm:$0xf] }
 0x270   : > { %v12311_v13 = vpop.f32.mrf.mxu3  ;;  %v4959_v62 = vpop.f32.mrf.mxu0  ;;  %v9903_v6 = vor.u32 %v10597_v27, %v9900_v19  ;;  %v10190_v27 = vld [vmem:[%s10957_s20 + $0x6d4] sm:$0xf0] }
 0x271   : > { %v6962_v1 = vadd.f32 %v5015_v23, %v546_v0  ;;  %v4960_v21 = vadd.f32 %v4959_v62, %v4931_v30  ;;  %5219 = vmatmul.bf16.gmra.mxu1 %v11540_v15  ;;  %v4936_v30 = vadd.f32 %v12212_v53, %v12210_v51  ;;  %v594_v51 = vld [vmem:[%s14791_s3 + $0x310] sm:$0xff] }
 0x272   : > { %5433 = vmatpush.bf16.msrb.mxu1 %v9903_v6 }
 0x273   : > { %5190 = vmatmul.bf16.gmra.mxu0 %v11538_v14  ;;  %7090 = vst [vmem:[%s14791_s3 + $0x190] sm:$0xff] %v6962_v1  ;;  %5248 = vmatmul.bf16.gmra.mxu2 %v11542_v16  ;;  %v4989_v49 = vadd.f32 %v4988_v45, %v4960_v21  ;;  %v7795_v45 = vor.u32 %v10078_v54, %v7794_v12  ;;  %v8306_v21 = vld [vmem:[%s10957_s20 + $0x718] sm:$0xf]  ;;  %v10565_v54 = vld [vmem:[%s10957_s20 + $0x1294] sm:$0xf] }
 0x274   : > { %v9327_v1 = vor.u32 %v10453_v59, %v9324_v57  ;;  %v8307_v52 = vor.u32 %v10206_v9, %v8306_v21  ;;  %v9772_v59 = vld [vmem:[%s10957_s20 + $0x12d0] sm:$0xf0]  ;;  %v7666_v57 = vld [vmem:[%s10957_s20 + $0x218] sm:$0xf] }
 0x275   : > { %5277 = vmatmul.bf16.gmra.mxu3 %v11544_v17  ;;  %5463 = vmatpush.bf16.msrb.mxu2 %v7795_v45  ;;  %v10421_v45 = vld [vmem:[%s10957_s20 + $0xe14] sm:$0xf] }
 0x276   : > { %v5017_v47 = vpop.f32.mrf.mxu2  ;;  %v4990_v44 = vpop.f32.mrf.mxu1  ;;  %5405 = vmatpush.bf16.msrb.mxu0 %v9327_v1  ;;  %5492 = vmatpush.bf16.msrb.mxu3 %v8307_v52  ;;  %v9196_v1 = vld [vmem:[%s10957_s20 + $0xe50] sm:$0xf0] }
 0x277   : > { %v5018_v50 = vadd.f32 %v5017_v47, %v4989_v49  ;;  %v9839_v47 = vor.u32 %v10581_v25, %v9836_v63 }
 0x278   : > { %v12331_v33 = vpop.f32.mrf.mxu3  ;;  %v4961_v37 = vpop.f32.mrf.mxu0 }
 0x279   : > { %v6978_v39 = vadd.f32 %v5018_v50, %v562_v20  ;;  %v4962_v55 = vadd.f32 %v4961_v37, %v4933_v42  ;;  %v9260_v42 = vld [vmem:[%s10957_s20 + $0xed0] sm:$0xf0]  ;;  %v4938_v50 = vadd.f32 %v12232_v18, %v12228_v2  ;;  %5434 = vmatpush.bf16.msrb.mxu1 %v9839_v47 }
 0x27a   : > { %v610_v2 = vld [vmem:[%s14791_s3 + $0x390] sm:$0xff] }
 0x27b   : > { %7106 = vst [vmem:[%s14791_s3 + $0x210] sm:$0xff] %v6978_v39  ;;  %v4991_v41 = vadd.f32 %v4990_v44, %v4962_v55  ;;  %v7731_v55 = vor.u32 %v10062_v10, %v7730_v56  ;;  %v9708_v47 = vld [vmem:[%s10957_s20 + $0x1250] sm:$0xf0]  ;;  %v7602_v10 = vld [vmem:[%s10957_s20 + $0x198] sm:$0xf] }
 0x27d   : > { %5464 = vmatpush.bf16.msrb.mxu2 %v7731_v55 }
 0x27e   : > { %v5019_v0 = vpop.f32.mrf.mxu2  ;;  %v4993_v7 = vpop.f32.mrf.mxu1 }
 0x27f   : > { %v5020_v23 = vadd.f32 %v5019_v0, %v4991_v41  ;;  %v8242_v41 = vld [vmem:[%s10957_s20 + $0x698] sm:$0xf] }
 0x280   : > { %v12347_v62 = vpop.f32.mrf.mxu3  ;;  %v4964_v38 = vpop.f32.mrf.mxu0  ;;  %v8243_v12 = vor.u32 %v10190_v27, %v8242_v41 }
 0x281   : > { %v6994_v49 = vadd.f32 %v5020_v23, %v578_v24  ;;  %v4965_v40 = vadd.f32 %v4964_v38, %v4936_v30  ;;  %5224 = vmatmul.bf16.gmra.mxu1 %v14802_v4  ;;  %v9263_v24 = vor.u32 %v10437_v46, %v9260_v42  ;;  %v9775_v23 = vor.u32 %v10565_v54, %v9772_v59  ;;  %v10046_v38 = vld [vmem:[%s10957_s20 + $0x254] sm:$0xf0] }
 0x282   : > { %5493 = vmatpush.bf16.msrb.mxu3 %v8243_v12  ;;  %v7667_v52 = vor.u32 %v10046_v38, %v7666_v57  ;;  %v8114_v12 = vld [vmem:[%s10957_s20 + $0x598] sm:$0xf]  ;;  %v9644_v38 = vld [vmem:[%s10957_s20 + $0x11d0] sm:$0xf0] }
 0x283   : > { %5195 = vmatmul.bf16.gmra.mxu0 %v11574_v58  ;;  %7122 = vst [vmem:[%s14791_s3 + $0x290] sm:$0xff] %v6994_v49  ;;  %5253 = vmatmul.bf16.gmra.mxu2 %v11578_v60  ;;  %v4994_v53 = vadd.f32 %v4993_v7, %v4965_v40  ;;  %v9199_v49 = vor.u32 %v10421_v45, %v9196_v1  ;;  %v8178_v40 = vld [vmem:[%s10957_s20 + $0x618] sm:$0xf] }
 0x284   : > { %5406 = vmatpush.bf16.msrb.mxu0 %v9263_v24  ;;  %5435 = vmatpush.bf16.msrb.mxu1 %v9775_v23  ;;  %v10533_v23 = vld [vmem:[%s10957_s20 + $0x1194] sm:$0xf] }
 0x285   : > { %5282 = vmatmul.bf16.gmra.mxu3 %v11580_v61  ;;  %5465 = vmatpush.bf16.msrb.mxu2 %v7667_v52  ;;  %v9647_v1 = vor.u32 %v10533_v23, %v9644_v38  ;;  %v10389_v52 = vld [vmem:[%s10957_s20 + $0xd14] sm:$0xf] }
 0x286   : > { %v5022_v20 = vpop.f32.mrf.mxu2  ;;  %v4995_v19 = vpop.f32.mrf.mxu1 }
 0x287   : > { %v5023_v37 = vadd.f32 %v5022_v20, %v4994_v53  ;;  %v10549_v20 = vld [vmem:[%s10957_s20 + $0x1214] sm:$0xf] }
 0x288   : > { %v12369_v44 = vpop.f32.mrf.mxu3  ;;  %v4966_v39 = vpop.f32.mrf.mxu0  ;;  %5407 = vmatpush.bf16.msrb.mxu0 %v9199_v49  ;;  %v9711_v42 = vor.u32 %v10549_v20, %v9708_v47 }
 0x289   : > { %v7010_v0 = vadd.f32 %v5023_v37, %v594_v51  ;;  %v4967_v6 = vadd.f32 %v4966_v39, %v4938_v50  ;;  %v10174_v51 = vld [vmem:[%s10957_s20 + $0x654] sm:$0xf0]  ;;  %v10405_v37 = vld [vmem:[%s10957_s20 + $0xd94] sm:$0xf] }
 0x28a   : > { %v8179_v25 = vor.u32 %v10174_v51, %v8178_v40  ;;  %v10030_v50 = vld [vmem:[%s10957_s20 + $0x1d4] sm:$0xf0]  ;;  %v9132_v39 = vld [vmem:[%s10957_s20 + $0xdd0] sm:$0xf0]  ;;  %5436 = vmatpush.bf16.msrb.mxu1 %v9711_v42 }
 0x28b   : > { %7138 = vst [vmem:[%s14791_s3 + $0x310] sm:$0xff] %v7010_v0  ;;  %v4996_v18 = vadd.f32 %v4995_v19, %v4967_v6  ;;  %v7603_v27 = vor.u32 %v10030_v50, %v7602_v10  ;;  %v9135_v19 = vor.u32 %v10405_v37, %v9132_v39  ;;  %v10158_v0 = vld [vmem:[%s10957_s20 + $0x5d4] sm:$0xf0]  ;;  %v10517_v50 = vld [vmem:[%s10957_s20 + $0x1114] sm:$0xf] }
 0x28c   : > { %5494 = vmatpush.bf16.msrb.mxu3 %v8179_v25  ;;  %v499_v6 = vld [vmem:[%s14791_s3 + $0x18] sm:$0xff]  ;;  %v9580_v37 = vld [vmem:[%s10957_s20 + $0x1150] sm:$0xf0] }
 0x28d   : > { %5466 = vmatpush.bf16.msrb.mxu2 %v7603_v27  ;;  %5408 = vmatpush.bf16.msrb.mxu0 %v9135_v19  ;;  %v8050_v25 = vld [vmem:[%s10957_s20 + $0x518] sm:$0xf]  ;;  %v10373_v27 = vld [vmem:[%s10957_s20 + $0xc94] sm:$0xf] }
 0x28e   : > { %v5024_v30 = vpop.f32.mrf.mxu2  ;;  %v5094_v53 = vpop.f32.mrf.mxu1  ;;  %5437 = vmatpush.bf16.msrb.mxu1 %v9647_v1  ;;  %v10501_v1 = vld [vmem:[%s10957_s20 + $0x1094] sm:$0xf] }
 0x28f   : > { %v5025_v21 = vadd.f32 %v5024_v30, %v4996_v18  ;;  %v8115_v18 = vor.u32 %v10158_v0, %v8114_v12 }
 0x290   : > { %v12385_v9 = vpop.f32.mrf.mxu3  ;;  %v5065_v7 = vpop.f32.mrf.mxu0 }
 0x291   : > { %v7026_v63 = vadd.f32 %v5025_v21, %v610_v2  ;;  %v5066_v56 = vadd.f32 %v5065_v7, %v12251_v48  ;;  %5325 = vmatmul.bf16.vlgmr.msra.gmra.mxu1 %v11441_v26  ;;  %5495 = vmatpush.bf16.msrb.mxu3 %v8115_v18  ;;  %v7538_v21 = vld [vmem:[%s10957_s20 + $0x118] sm:$0xf] }
 0x292   : > { %v10014_v7 = vld [vmem:[%s10957_s20 + $0x154] sm:$0xf0] }
 0x293   : > { %5296 = vmatmul.bf16.vlgmr.msra.gmra.mxu0 %v11604_v36  ;;  %7154 = vst [vmem:[%s14791_s3 + $0x390] sm:$0xff] %v7026_v63  ;;  %5354 = vmatmul.bf16.vlgmr.msra.gmra.mxu2 %v11446_v31  ;;  %v5095_v48 = vadd.f32 %v5094_v53, %v5066_v56  ;;  %v7539_v51 = vor.u32 %v10014_v7, %v7538_v21  ;;  %v9068_v53 = vld [vmem:[%s10957_s20 + $0xd50] sm:$0xf0]  ;;  %v10142_v63 = vld [vmem:[%s10957_s20 + $0x554] sm:$0xf0] }
 0x294   : > { %v515_v56 = vld [vmem:[%s14791_s3 + $0x98] sm:$0xff]  ;;  %v9071_v20 = vor.u32 %v10389_v52, %v9068_v53  ;;  %v8051_v47 = vor.u32 %v10142_v63, %v8050_v25  ;;  %v9516_v21 = vld [vmem:[%s10957_s20 + $0x10d0] sm:$0xf0] }
 0x295   : > { %5383 = vmatmul.bf16.vlgmr.msra.gmra.mxu3 %v11448_v32  ;;  %5467 = vmatpush.bf16.msrb.mxu2 %v7539_v51  ;;  %v7986_v18 = vld [vmem:[%s10957_s20 + $0x498] sm:$0xf]  ;;  %v9519_v52 = vor.u32 %v10501_v1, %v9516_v21  ;;  %v10357_v53 = vld [vmem:[%s10957_s20 + $0xc14] sm:$0xf] }
 0x296   : > { %v5123_v46 = vpop.f32.mrf.mxu2  ;;  %v5096_v2 = vpop.f32.mrf.mxu1  ;;  %5496 = vmatpush.bf16.msrb.mxu3 %v8051_v47  ;;  %5409 = vmatpush.bf16.msrb.mxu0 %v9071_v20  ;;  %v8940_v25 = vld [vmem:[%s10957_s20 + $0xc50] sm:$0xf0]  ;;  %v7922_v63 = vld [vmem:[%s10957_s20 + $0x418] sm:$0xf] }
 0x297   : > { %v5124_v55 = vadd.f32 %v5123_v46, %v5095_v48  ;;  %v8943_v47 = vor.u32 %v10357_v53, %v8940_v25  ;;  %v10334_v53 = vld [vmem:[%s10957_s20 + $0xb54] sm:$0xf0] }
 0x298   : > { %v5152_v24 = vpop.f32.mrf.mxu3  ;;  %v5067_v41 = vpop.f32.mrf.mxu0 }
 0x299   : > { %v5153_v54 = vadd.f32 %v5152_v24, %v5124_v55  ;;  %v5068_v59 = vadd.f32 %v5067_v41, %v12269_v5  ;;  %v9583_v55 = vor.u32 %v10517_v50, %v9580_v37  ;;  %v7474_v24 = vld [vmem:[%s10957_s20 + $0x98] sm:$0xf]  ;;  %v9452_v37 = vld [vmem:[%s10957_s20 + $0x1050] sm:$0xf0] }
 0x29a   : > { %v9998_v41 = vld [vmem:[%s10957_s20 + $0xd4] sm:$0xf0] }
 0x29b   : > { %v6915_v57 = vadd.f32 %v5153_v54, %v499_v6  ;;  %v5097_v30 = vadd.f32 %v5096_v2, %v5068_v59  ;;  %v7475_v6 = vor.u32 %v9998_v41, %v7474_v24  ;;  %v9004_v2 = vld [vmem:[%s10957_s20 + $0xcd0] sm:$0xf0]  ;;  %v10126_v54 = vld [vmem:[%s10957_s20 + $0x4d4] sm:$0xf0]  ;;  %5438 = vmatpush.bf16.msrb.mxu1 %v9583_v55 }
 0x29c   : > { %v531_v59 = vld [vmem:[%s14791_s3 + $0x118] sm:$0xff]  ;;  %v7987_v23 = vor.u32 %v10126_v54, %v7986_v18 }
 0x29d   : > { %7043 = vst [vmem:[%s14791_s3 + $0x18] sm:$0xff] %v6915_v57  ;;  %5468 = vmatpush.bf16.msrb.mxu2 %v7475_v6  ;;  %v8882_v6 = vld [vmem:[%s10957_s20 + $0xb98] sm:$0xf]  ;;  %v10086_v18 = vld [vmem:[%s10957_s20 + $0x39c] sm:$0xf] }
 0x29e   : > { %v5125_v45 = vpop.f32.mrf.mxu2  ;;  %v5099_v48 = vpop.f32.mrf.mxu1  ;;  %5497 = vmatpush.bf16.msrb.mxu3 %v7987_v23  ;;  %v7860_v23 = vld [vmem:[%s10957_s20 + $0x3d8] sm:$0xf0] }
 0x29f   : > { %v5126_v5 = vadd.f32 %v5125_v45, %v5097_v30  ;;  %v9007_v30 = vor.u32 %v10373_v27, %v9004_v2  ;;  %5439 = vmatpush.bf16.msrb.mxu1 %v9519_v52  ;;  %v9906_v27 = vld [vmem:[%s10957_s20 + $0x1398] sm:$0xf]  ;;  %v7863_v1 = vor.u32 %v10086_v18, %v7860_v23  ;;  %v10054_v18 = vld [vmem:[%s10957_s20 + $0x29c] sm:$0xf] }
 0x2a0   : > { %v5154_v49 = vpop.f32.mrf.mxu3  ;;  %v5070_v40 = vpop.f32.mrf.mxu0  ;;  %v10350_v2 = vld [vmem:[%s10957_s20 + $0xbd4] sm:$0xf0] }
 0x2a1   : > { %v5155_v10 = vadd.f32 %v5154_v49, %v5126_v5  ;;  %v5071_v46 = vadd.f32 %v5070_v40, %v12291_v11  ;;  %5330 = vmatmul.bf16.gmra.mxu1 %v11493_v22  ;;  %5410 = vmatpush.bf16.msrb.mxu0 %v9007_v30  ;;  %v7410_v49 = vld [vmem:[%s10957_s20 + $0x18] sm:$0xf]  ;;  %v8883_v30 = vor.u32 %v10350_v2, %v8882_v6 }
 0x2a2   : > { %v9982_v40 = vld [vmem:[%s10957_s20 + $0x54] sm:$0xf0] }
 0x2a3   : > { %5301 = vmatmul.bf16.gmra.mxu0 %v11628_v3  ;;  %v6931_v42 = vadd.f32 %v5155_v10, %v515_v56  ;;  %5359 = vmatmul.bf16.gmra.mxu2 %v11498_v28  ;;  %v5100_v11 = vadd.f32 %v5099_v48, %v5071_v46  ;;  %v7411_v51 = vor.u32 %v9982_v40, %v7410_v49  ;;  %v10110_v10 = vld [vmem:[%s10957_s20 + $0x454] sm:$0xf0]  ;;  %v10485_v46 = vld [vmem:[%s10957_s20 + $0x1014] sm:$0xf] }
 0x2a4   : > { %v7923_v50 = vor.u32 %v10110_v10, %v7922_v63  ;;  %v9455_v24 = vor.u32 %v10485_v46, %v9452_v37  ;;  %v9394_v52 = vld [vmem:[%s10957_s20 + $0xf98] sm:$0xf] }
 0x2a5   : > { %5388 = vmatmul.bf16.gmra.mxu3 %v11500_v29  ;;  %7059 = vst [vmem:[%s14791_s3 + $0x98] sm:$0xff] %v6931_v42  ;;  %v547_v42 = vld [vmem:[%s14791_s3 + $0x198] sm:$0xff]  ;;  %5469 = vmatpush.bf16.msrb.mxu2 %v7411_v51 }
 0x2a6   : > { %v5128_v39 = vpop.f32.mrf.mxu2  ;;  %v5101_v57 = vpop.f32.mrf.mxu1  ;;  %5411 = vmatpush.bf16.msrb.mxu0 %v8943_v47  ;;  %5498 = vmatpush.bf16.msrb.mxu3 %v7923_v50  ;;  %v9842_v49 = vld [vmem:[%s10957_s20 + $0x1318] sm:$0xf] }
 0x2a7   : > { %v5129_v19 = vadd.f32 %v5128_v39, %v5100_v11  ;;  %5440 = vmatpush.bf16.msrb.mxu1 %v9455_v24  ;;  %v8818_v51 = vld [vmem:[%s10957_s20 + $0xb18] sm:$0xf] }
 0x2a8   : > { %v5157_v12 = vpop.f32.mrf.mxu3  ;;  %v5072_v0 = vpop.f32.mrf.mxu0  ;;  %v579_v50 = vld [vmem:[%s14791_s3 + $0x298] sm:$0xff] }
 0x2a9   : > { %v5158_v38 = vadd.f32 %v5157_v12, %v5129_v19  ;;  %v5073_v45 = vadd.f32 %v5072_v0, %v12311_v13  ;;  %v10606_v19 = vld [vmem:[%s10957_s20 + $0x13d4] sm:$0xf0] }
 0x2aa   : > { %v9907_v0 = vor.u32 %v10606_v19, %v9906_v27  ;;  %5520 = vmatpush.bf16.msra.mxu0 %v8883_v30  ;;  %5607 = vmatpush.bf16.msra.mxu3 %v7863_v1  ;;  %v9330_v24 = vld [vmem:[%s10957_s20 + $0xf18] sm:$0xf] }
 0x2ab   : > { %v6947_v7 = vadd.f32 %v5158_v38, %v531_v59  ;;  %v5102_v5 = vadd.f32 %v5101_v57, %v5073_v45  ;;  %v563_v38 = vld [vmem:[%s14791_s3 + $0x218] sm:$0xff] }
 0x2ac   : > { %5578 = vmatpush.bf16.msra.mxu2 %v9907_v0  ;;  %v9778_v19 = vld [vmem:[%s10957_s20 + $0x1298] sm:$0xf] }
 0x2ad   : > { %7075 = vst [vmem:[%s14791_s3 + $0x118] sm:$0xff] %v6947_v7  ;;  %v8754_v0 = vld [vmem:[%s10957_s20 + $0xa98] sm:$0xf] }
 0x2ae   : > { %v5130_v13 = vpop.f32.mrf.mxu2  ;;  %v5104_v11 = vpop.f32.mrf.mxu1  ;;  %v10318_v2 = vld [vmem:[%s10957_s20 + $0xad4] sm:$0xf0] }
 0x2af   : > { %v5131_v56 = vadd.f32 %v5130_v13, %v5102_v5  ;;  %v10478_v5 = vld [vmem:[%s10957_s20 + $0xfd4] sm:$0xf0] }
 0x2b0   : > { %v5159_v48 = vpop.f32.mrf.mxu3  ;;  %v5075_v20 = vpop.f32.mrf.mxu0  ;;  %v9395_v40 = vor.u32 %v10478_v5, %v9394_v52  ;;  %v10590_v13 = vld [vmem:[%s10957_s20 + $0x1354] sm:$0xf0] }
 0x2b1   : > { %v5160_v39 = vadd.f32 %v5159_v48, %v5131_v56  ;;  %v5076_v55 = vadd.f32 %v5075_v20, %v12331_v33  ;;  %5335 = vmatmul.bf16.gmra.mxu1 %v11538_v14  ;;  %v9843_v63 = vor.u32 %v10590_v13, %v9842_v49  ;;  %v8819_v56 = vor.u32 %v10334_v53, %v8818_v51  ;;  %v10070_v48 = vld [vmem:[%s10957_s20 + $0x31c] sm:$0xf]  ;;  %v9266_v5 = vld [vmem:[%s10957_s20 + $0xe98] sm:$0xf] }
 0x2b2   : > { %v7796_v20 = vld [vmem:[%s10957_s20 + $0x358] sm:$0xf0]  ;;  %5549 = vmatpush.bf16.msra.mxu1 %v9395_v40  ;;  %v10446_v49 = vld [vmem:[%s10957_s20 + $0xed4] sm:$0xf0] }
 0x2b3   : > { %5306 = vmatmul.bf16.gmra.mxu0 %v11652_v43  ;;  %v6963_v41 = vadd.f32 %v5160_v39, %v547_v42  ;;  %5364 = vmatmul.bf16.gmra.mxu2 %v11540_v15  ;;  %v5105_v33 = vadd.f32 %v5104_v11, %v5076_v55  ;;  %v7799_v47 = vor.u32 %v10070_v48, %v7796_v20  ;;  %v595_v1 = vld [vmem:[%s14791_s3 + $0x318] sm:$0xff] }
 0x2b4   : > { %5579 = vmatpush.bf16.msra.mxu2 %v9843_v63  ;;  %5521 = vmatpush.bf16.msra.mxu0 %v8819_v56  ;;  %v9714_v40 = vld [vmem:[%s10957_s20 + $0x1218] sm:$0xf]  ;;  %v9267_v13 = vor.u32 %v10446_v49, %v9266_v5  ;;  %v10038_v20 = vld [vmem:[%s10957_s20 + $0x21c] sm:$0xf] }
 0x2b5   : > { %5393 = vmatmul.bf16.gmra.mxu3 %v11542_v16  ;;  %7091 = vst [vmem:[%s14791_s3 + $0x198] sm:$0xff] %v6963_v41  ;;  %v10462_v41 = vld [vmem:[%s10957_s20 + $0xf54] sm:$0xf0] }
 0x2b6   : > { %v5133_v12 = vpop.f32.mrf.mxu2  ;;  %v5106_v45 = vpop.f32.mrf.mxu1  ;;  %5608 = vmatpush.bf16.msra.mxu3 %v7799_v47  ;;  %v10558_v51 = vld [vmem:[%s10957_s20 + $0x1254] sm:$0xf0]  ;;  %v7668_v47 = vld [vmem:[%s10957_s20 + $0x258] sm:$0xf0] }
 0x2b7   : > { %v5134_v54 = vadd.f32 %v5133_v12, %v5105_v33  ;;  %v9331_v33 = vor.u32 %v10462_v41, %v9330_v24  ;;  %v10574_v12 = vld [vmem:[%s10957_s20 + $0x12d4] sm:$0xf0]  ;;  %v9715_v56 = vor.u32 %v10558_v51, %v9714_v40  ;;  %v7540_v51 = vld [vmem:[%s10957_s20 + $0x158] sm:$0xf0] }
 0x2b8   : > { %v5162_v59 = vpop.f32.mrf.mxu3  ;;  %v5077_v57 = vpop.f32.mrf.mxu0  ;;  %v9779_v6 = vor.u32 %v10574_v12, %v9778_v19  ;;  %v8690_v53 = vld [vmem:[%s10957_s20 + $0xa18] sm:$0xf] }
 0x2b9   : > { %v5163_v21 = vadd.f32 %v5162_v59, %v5134_v54  ;;  %v5078_v7 = vadd.f32 %v5077_v57, %v12347_v62  ;;  %5550 = vmatpush.bf16.msra.mxu1 %v9331_v33  ;;  %v8755_v59 = vor.u32 %v10318_v2, %v8754_v0  ;;  %v7732_v57 = vld [vmem:[%s10957_s20 + $0x2d8] sm:$0xf0]  ;;  %v10430_v24 = vld [vmem:[%s10957_s20 + $0xe54] sm:$0xf0] }
 0x2ba   : > { %5580 = vmatpush.bf16.msra.mxu2 %v9779_v6  ;;  %v10542_v19 = vld [vmem:[%s10957_s20 + $0x11d4] sm:$0xf0]  ;;  %v10022_v6 = vld [vmem:[%s10957_s20 + $0x19c] sm:$0xf] }
 0x2bb   : > { %v6979_v25 = vadd.f32 %v5163_v21, %v563_v38  ;;  %v5107_v62 = vadd.f32 %v5106_v45, %v5078_v7  ;;  %v7735_v45 = vor.u32 %v10054_v18, %v7732_v57  ;;  %5522 = vmatpush.bf16.msra.mxu0 %v8755_v59  ;;  %v8626_v12 = vld [vmem:[%s10957_s20 + $0x998] sm:$0xf] }
 0x2bc   : > { %v10270_v5 = vld [vmem:[%s10957_s20 + $0x954] sm:$0xf0] }
 0x2bd   : > { %7107 = vst [vmem:[%s14791_s3 + $0x218] sm:$0xff] %v6979_v25  ;;  %5609 = vmatpush.bf16.msra.mxu3 %v7735_v45  ;;  %v10302_v25 = vld [vmem:[%s10957_s20 + $0xa54] sm:$0xf0]  ;;  %5551 = vmatpush.bf16.msra.mxu1 %v9267_v13  ;;  %v10006_v13 = vld [vmem:[%s10957_s20 + $0x11c] sm:$0xf] }
 0x2be   : > { %v5135_v10 = vpop.f32.mrf.mxu2  ;;  %v5109_v37 = vpop.f32.mrf.mxu1  ;;  %v8691_v48 = vor.u32 %v10302_v25, %v8690_v53  ;;  %5581 = vmatpush.bf16.msra.mxu2 %v9715_v56  ;;  %v10414_v45 = vld [vmem:[%s10957_s20 + $0xdd4] sm:$0xf0]  ;;  %v7543_v53 = vor.u32 %v10006_v13, %v7540_v51 }
 0x2bf   : > { %v5136_v46 = vadd.f32 %v5135_v10, %v5107_v62  ;;  %v7671_v62 = vor.u32 %v10038_v20, %v7668_v47  ;;  %v9074_v20 = vld [vmem:[%s10957_s20 + $0xd18] sm:$0xf] }
 0x2c0   : > { %v5164_v42 = vpop.f32.mrf.mxu3  ;;  %v5080_v11 = vpop.f32.mrf.mxu0  ;;  %5523 = vmatpush.bf16.msra.mxu0 %v8691_v48  ;;  %v10398_v47 = vld [vmem:[%s10957_s20 + $0xd54] sm:$0xf0] }
 0x2c1   : > { %v5165_v39 = vadd.f32 %v5164_v42, %v5136_v46  ;;  %v5081_v55 = vadd.f32 %v5080_v11, %v12369_v44  ;;  %5340 = vmatmul.bf16.gmra.mxu1 %v11574_v58  ;;  %5610 = vmatpush.bf16.msra.mxu3 %v7671_v62  ;;  %v9075_v62 = vor.u32 %v10398_v47, %v9074_v20  ;;  %v10470_v47 = vld [vmem:[%s10957_s20 + $0xf9c] sm:$0xf] }
 0x2c3   : > { %5311 = vmatmul.bf16.gmra.mxu0 %v11674_v8  ;;  %v6995_v27 = vadd.f32 %v5165_v39, %v579_v50  ;;  %5369 = vmatmul.bf16.gmra.mxu2 %v14802_v4  ;;  %v5110_v44 = vadd.f32 %v5109_v37, %v5081_v55  ;;  %v611_v50 = vld [vmem:[%s14791_s3 + $0x398] sm:$0xff] }
 0x2c4   : > { %v9202_v55 = vld [vmem:[%s10957_s20 + $0xe18] sm:$0xf] }
 0x2c5   : > { %5398 = vmatmul.bf16.gmra.mxu3 %v11578_v60  ;;  %7123 = vst [vmem:[%s14791_s3 + $0x298] sm:$0xff] %v6995_v27  ;;  %v9203_v41 = vor.u32 %v10430_v24, %v9202_v55  ;;  %v9650_v27 = vld [vmem:[%s10957_s20 + $0x1198] sm:$0xf]  ;;  %v7476_v55 = vld [vmem:[%s10957_s20 + $0xd8] sm:$0xf0] }
 0x2c6   : > { %v5138_v54 = vpop.f32.mrf.mxu2  ;;  %v5111_v21 = vpop.f32.mrf.mxu1  ;;  %v9651_v0 = vor.u32 %v10542_v19, %v9650_v27 }
 0x2c7   : > { %v5139_v30 = vadd.f32 %v5138_v54, %v5110_v44  ;;  %5552 = vmatpush.bf16.msra.mxu1 %v9203_v41  ;;  %v10286_v44 = vld [vmem:[%s10957_s20 + $0x9d4] sm:$0xf0]  ;;  %v7604_v54 = vld [vmem:[%s10957_s20 + $0x1d8] sm:$0xf0] }
 0x2c8   : > { %v5167_v23 = vpop.f32.mrf.mxu3  ;;  %v5082_v38 = vpop.f32.mrf.mxu0  ;;  %v8627_v18 = vor.u32 %v10286_v44, %v8626_v12  ;;  %5582 = vmatpush.bf16.msra.mxu2 %v9651_v0  ;;  %v9010_v0 = vld [vmem:[%s10957_s20 + $0xc98] sm:$0xf] }
 0x2c9   : > { %v5168_v7 = vadd.f32 %v5167_v23, %v5139_v30  ;;  %v5083_v52 = vadd.f32 %v5082_v38, %v12385_v9  ;;  %v7607_v30 = vor.u32 %v10022_v6, %v7604_v54  ;;  %v9138_v38 = vld [vmem:[%s10957_s20 + $0xd98] sm:$0xf] }
 0x2ca   : > { %5524 = vmatpush.bf16.msra.mxu0 %v8627_v18  ;;  %v10382_v44 = vld [vmem:[%s10957_s20 + $0xcd4] sm:$0xf0] }
 0x2cb   : > { %v7011_v63 = vadd.f32 %v5168_v7, %v595_v1  ;;  %v5112_v9 = vadd.f32 %v5111_v21, %v5083_v52  ;;  %5611 = vmatpush.bf16.msra.mxu3 %v7607_v30  ;;  %v9586_v1 = vld [vmem:[%s10957_s20 + $0x1118] sm:$0xf]  ;;  %v9139_v21 = vor.u32 %v10414_v45, %v9138_v38  ;;  %v9011_v18 = vor.u32 %v10382_v44, %v9010_v0 }
 0x2cc   : > { %v10526_v7 = vld [vmem:[%s10957_s20 + $0x1154] sm:$0xf0] }
 0x2cd   : > { %7139 = vst [vmem:[%s14791_s3 + $0x318] sm:$0xff] %v7011_v63  ;;  %v8562_v52 = vld [vmem:[%s10957_s20 + $0x918] sm:$0xf]  ;;  %v9587_v49 = vor.u32 %v10526_v7, %v9586_v1  ;;  %5553 = vmatpush.bf16.msra.mxu1 %v9139_v21  ;;  %v9974_v21 = vld [vmem:[%s10957_s20 + $0x1c] sm:$0xf] }
 0x2ce   : > { %v5140_v10 = vpop.f32.mrf.mxu2  ;;  %v12527_v37 = vpop.f32.mrf.mxu1  ;;  %v8563_v40 = vor.u32 %v10270_v5, %v8562_v52  ;;  %v9458_v6 = vld [vmem:[%s10957_s20 + $0x1018] sm:$0xf]  ;;  %v7412_v7 = vld [vmem:[%s10957_s20 + $0x58] sm:$0xf0] }
 0x2cf   : > { %v5141_v46 = vadd.f32 %v5140_v10, %v5112_v9  ;;  %5583 = vmatpush.bf16.msra.mxu2 %v9587_v49  ;;  %5612 = vmatpush.bf16.msra.mxu3 %v7543_v53  ;;  %v9522_v9 = vld [vmem:[%s10957_s20 + $0x1098] sm:$0xf]  ;;  %v7415_v52 = vor.u32 %v9974_v21, %v7412_v7  ;;  %v8308_v21 = vld [vmem:[%s10957_s20 + $0x758] sm:$0xf0] }
 0x2d0   : > { %v5169_v42 = vpop.f32.mrf.mxu3  ;;  %v12522_v11 = vpop.f32.mrf.mxu0  ;;  %5525 = vmatpush.bf16.msra.mxu0 %v8563_v40  ;;  %v10510_v10 = vld [vmem:[%s10957_s20 + $0x10d4] sm:$0xf0]  ;;  %v10582_v7 = vld [vmem:[%s10957_s20 + $0x131c] sm:$0xf] }
 0x2d1   : > { %v5170_v39 = vadd.f32 %v5169_v42, %v5141_v46  ;;  %5441 = vmatmul.bf16.vlgmr.msrb.gmra.mxu1 %v11604_v36  ;;  %v8498_v46 = vld [vmem:[%s10957_s20 + $0x898] sm:$0xf]  ;;  %v9523_v42 = vor.u32 %v10510_v10, %v9522_v9  ;;  %v10214_v9 = vld [vmem:[%s10957_s20 + $0x79c] sm:$0xf] }
 0x2d2   : > { %5554 = vmatpush.bf16.msra.mxu1 %v9075_v62  ;;  %v10494_v54 = vld [vmem:[%s10957_s20 + $0x1054] sm:$0xf0]  ;;  %v9396_v62 = vld [vmem:[%s10957_s20 + $0xfd8] sm:$0xf0] }
 0x2d3   : > { %5412 = vmatmul.bf16.vlgmr.msrb.gmra.mxu0 %v11452_v35  ;;  %v7027_v33 = vadd.f32 %v5170_v39, %v611_v50  ;;  %5470 = vmatmul.bf16.vlgmr.msrb.gmra.mxu2 %v11441_v26  ;;  %v10254_v50 = vld [vmem:[%s10957_s20 + $0x8d4] sm:$0xf0]  ;;  %v9990_v39 = vld [vmem:[%s10957_s20 + $0x9c] sm:$0xf]  ;;  %v9459_v45 = vor.u32 %v10494_v54, %v9458_v6  ;;  %v9399_v10 = vor.u32 %v10470_v47, %v9396_v62 }
 0x2d4   : > { %v8499_v41 = vor.u32 %v10254_v50, %v8498_v46  ;;  %5584 = vmatpush.bf16.msra.mxu2 %v9523_v42  ;;  %v8434_v30 = vld [vmem:[%s10957_s20 + $0x818] sm:$0xf]  ;;  %v8372_v46 = vld [vmem:[%s10957_s20 + $0x7d8] sm:$0xf0] }
 0x2d5   : > { %5499 = vmatmul.bf16.vlgmr.msrb.gmra.mxu3 %v11446_v31  ;;  %7155 = vst [vmem:[%s14791_s3 + $0x398] sm:$0xff] %v7027_v33  ;;  %v7479_v33 = vor.u32 %v9990_v39, %v7476_v55  ;;  %v10238_v38 = vld [vmem:[%s10957_s20 + $0x854] sm:$0xf0]  ;;  %v10598_v42 = vld [vmem:[%s10957_s20 + $0x139c] sm:$0xf]  ;;  %v8375_v55 = vor.u32 %v10214_v9, %v8372_v46 }
 0x2d6   : > { %v12543_v2 = vpop.f32.mrf.mxu2  ;;  %v12550_v23 = vpop.f32.mrf.mxu1  ;;  %5526 = vmatpush.bf16.msra.mxu0 %v8499_v41  ;;  %v8435_v1 = vor.u32 %v10238_v38, %v8434_v30  ;;  %5555 = vmatpush.bf16.msra.mxu1 %v9011_v18  ;;  %v8946_v49 = vld [vmem:[%s10957_s20 + $0xc18] sm:$0xf]  ;;  %v9908_v50 = vld [vmem:[%s10957_s20 + $0x13d8] sm:$0xf0] }
 0x2d7   : > { %5613 = vmatpush.bf16.msra.mxu3 %v7479_v33  ;;  %v10366_v40 = vld [vmem:[%s10957_s20 + $0xc54] sm:$0xf0]  ;;  %v9911_v41 = vor.u32 %v10598_v42, %v9908_v50  ;;  %v10342_v6 = vld [vmem:[%s10957_s20 + $0xb9c] sm:$0xf] }
 0x2d8   : > { %v12546_v59 = vpop.f32.mrf.mxu3  ;;  %v12548_v57 = vpop.f32.mrf.mxu0  ;;  %5585 = vmatpush.bf16.msra.mxu2 %v9459_v45  ;;  %v8947_v53 = vor.u32 %v10366_v40, %v8946_v49  ;;  %v8884_v18 = vld [vmem:[%s10957_s20 + $0xbd8] sm:$0xf0] }
 0x2d9   : > { %v8887_v54 = vor.u32 %v10342_v6, %v8884_v18  ;;  %v10454_v30 = vld [vmem:[%s10957_s20 + $0xf1c] sm:$0xf] }
 0x2da   : > { %5527 = vmatpush.bf16.msra.mxu0 %v8435_v1  ;;  %5556 = vmatpush.bf16.msra.mxu1 %v8947_v53  ;;  %v9332_v38 = vld [vmem:[%s10957_s20 + $0xf58] sm:$0xf0] }
 0x2db   : > { %5614 = vmatpush.bf16.msra.mxu3 %v7415_v52  ;;  %v10198_v45 = vld [vmem:[%s10957_s20 + $0x71c] sm:$0xf]  ;;  %v9335_v1 = vor.u32 %v10454_v30, %v9332_v38 }
 0x2dc   : > { %5694 = vmatpush.bf16.msrb.mxu2 %v9399_v10  ;;  %v9844_v52 = vld [vmem:[%s10957_s20 + $0x1358] sm:$0xf0]  ;;  %v8311_v40 = vor.u32 %v10198_v45, %v8308_v21 }
 0x2dd   : > { %v9847_v53 = vor.u32 %v10582_v7, %v9844_v52  ;;  %v10326_v10 = vld [vmem:[%s10957_s20 + $0xb1c] sm:$0xf]  ;;  %v5211_v52 = vadd.f32 %v12527_v37, %v12522_v11 }
 0x2de   : > { %v12560_v25 = vpop.f32.mrf.mxu2  ;;  %v12566_v48 = vpop.f32.mrf.mxu1  ;;  %5636 = vmatpush.bf16.msrb.mxu0 %v8375_v55  ;;  %5665 = vmatpush.bf16.msrb.mxu1 %v8887_v54  ;;  %v8820_v46 = vld [vmem:[%s10957_s20 + $0xb58] sm:$0xf0] }
 0x2df   : > { %5723 = vmatpush.bf16.msrb.mxu3 %v9911_v41  ;;  %v8823_v42 = vor.u32 %v10326_v10, %v8820_v46  ;;  %v10438_v50 = vld [vmem:[%s10957_s20 + $0xe9c] sm:$0xf]  ;;  %v5240_v46 = vadd.f32 %v12543_v2, %v5211_v52  ;;  %v500_v2 = vld [vmem:[%s14791_s3 + $0x20] sm:$0xff] }
 0x2e0   : > { %v12562_v63 = vpop.f32.mrf.mxu3  ;;  %v12564_v56 = vpop.f32.mrf.mxu0  ;;  %5695 = vmatpush.bf16.msrb.mxu2 %v9335_v1  ;;  %v9268_v55 = vld [vmem:[%s10957_s20 + $0xed8] sm:$0xf0] }
 0x2e1   : > { %5446 = vmatmul.bf16.gmra.mxu1 %v11628_v3  ;;  %v10182_v41 = vld [vmem:[%s10957_s20 + $0x69c] sm:$0xf]  ;;  %v9271_v6 = vor.u32 %v10438_v50, %v9268_v55  ;;  %v5269_v11 = vadd.f32 %v12546_v59, %v5240_v46 }
 0x2e2   : > { %5637 = vmatpush.bf16.msrb.mxu0 %v8311_v40  ;;  %5666 = vmatpush.bf16.msrb.mxu1 %v8823_v42  ;;  %v8244_v18 = vld [vmem:[%s10957_s20 + $0x6d8] sm:$0xf0] }
 0x2e3   : > { %5417 = vmatmul.bf16.gmra.mxu0 %v11504_v34  ;;  %5475 = vmatmul.bf16.gmra.mxu2 %v11493_v22  ;;  %v10566_v54 = vld [vmem:[%s10957_s20 + $0x129c] sm:$0xf]  ;;  %v8247_v45 = vor.u32 %v10182_v41, %v8244_v18 }
 0x2e4   : > { %5724 = vmatpush.bf16.msrb.mxu3 %v9847_v53  ;;  %v9780_v30 = vld [vmem:[%s10957_s20 + $0x12d8] sm:$0xf0]  ;;  %5696 = vmatpush.bf16.msrb.mxu2 %v9271_v6 }
 0x2e5   : > { %5504 = vmatmul.bf16.gmra.mxu3 %v11498_v28  ;;  %v9783_v1 = vor.u32 %v10566_v54, %v9780_v30  ;;  %v10310_v53 = vld [vmem:[%s10957_s20 + $0xa9c] sm:$0xf] }
 0x2e6   : > { %v12580_v24 = vpop.f32.mrf.mxu2  ;;  %v12586_v12 = vpop.f32.mrf.mxu1  ;;  %5638 = vmatpush.bf16.msrb.mxu0 %v8247_v45  ;;  %v8756_v10 = vld [vmem:[%s10957_s20 + $0xad8] sm:$0xf0] }
 0x2e7   : > { %v8759_v42 = vor.u32 %v10310_v53, %v8756_v10  ;;  %v10422_v50 = vld [vmem:[%s10957_s20 + $0xe1c] sm:$0xf]  ;;  %v5213_v53 = vadd.f32 %v12550_v23, %v12548_v57 }
 0x2e8   : > { %v12582_v27 = vpop.f32.mrf.mxu3  ;;  %v12584_v19 = vpop.f32.mrf.mxu0  ;;  %5725 = vmatpush.bf16.msrb.mxu3 %v9783_v1  ;;  %v9204_v55 = vld [vmem:[%s10957_s20 + $0xe58] sm:$0xf0] }
 0x2e9   : > { %5667 = vmatpush.bf16.msrb.mxu1 %v8759_v42  ;;  %v10166_v41 = vld [vmem:[%s10957_s20 + $0x61c] sm:$0xf]  ;;  %v9207_v18 = vor.u32 %v10422_v50, %v9204_v55  ;;  %v5242_v50 = vadd.f32 %v12560_v25, %v5213_v53 }
 0x2ea   : > { %v8180_v54 = vld [vmem:[%s10957_s20 + $0x658] sm:$0xf0] }
 0x2eb   : > { %v10550_v6 = vld [vmem:[%s10957_s20 + $0x121c] sm:$0xf]  ;;  %v8183_v45 = vor.u32 %v10166_v41, %v8180_v54  ;;  %5697 = vmatpush.bf16.msrb.mxu2 %v9207_v18 }
 0x2ec   : > { %v9716_v30 = vld [vmem:[%s10957_s20 + $0x1258] sm:$0xf0] }
 0x2ed   : > { %v9719_v1 = vor.u32 %v10550_v6, %v9716_v30  ;;  %5639 = vmatpush.bf16.msrb.mxu0 %v8183_v45  ;;  %v10294_v59 = vld [vmem:[%s10957_s20 + $0xa1c] sm:$0xf]  ;;  %v5271_v30 = vadd.f32 %v12562_v63, %v5242_v50 }
 0x2ee   : > { %v12596_v5 = vpop.f32.mrf.mxu2  ;;  %v12604_v20 = vpop.f32.mrf.mxu1  ;;  %v8692_v46 = vld [vmem:[%s10957_s20 + $0xa58] sm:$0xf0] }
 0x2ef   : > { %5726 = vmatpush.bf16.msrb.mxu3 %v9719_v1  ;;  %v8695_v41 = vor.u32 %v10294_v59, %v8692_v46  ;;  %v10406_v57 = vld [vmem:[%s10957_s20 + $0xd9c] sm:$0xf]  ;;  %v5216_v59 = vadd.f32 %v12566_v48, %v12564_v56 }
 0x2f0   : > { %v12600_v13 = vpop.f32.mrf.mxu3  ;;  %v12602_v51 = vpop.f32.mrf.mxu0  ;;  %v9140_v23 = vld [vmem:[%s10957_s20 + $0xdd8] sm:$0xf0] }
 0x2f1   : > { %5451 = vmatmul.bf16.gmra.mxu1 %v11652_v43  ;;  %v9143_v18 = vor.u32 %v10406_v57, %v9140_v23  ;;  %v10150_v25 = vld [vmem:[%s10957_s20 + $0x59c] sm:$0xf] }
 0x2f2   : > { %5668 = vmatpush.bf16.msrb.mxu1 %v8695_v41  ;;  %v8116_v54 = vld [vmem:[%s10957_s20 + $0x5d8] sm:$0xf0]  ;;  %v5245_v41 = vadd.f32 %v12580_v24, %v5216_v59 }
 0x2f3   : > { %5422 = vmatmul.bf16.gmra.mxu0 %v11544_v17  ;;  %5480 = vmatmul.bf16.gmra.mxu2 %v11538_v14  ;;  %v10534_v6 = vld [vmem:[%s10957_s20 + $0x119c] sm:$0xf]  ;;  %v8119_v45 = vor.u32 %v10150_v25, %v8116_v54 }
 0x2f4   : > { %v9652_v1 = vld [vmem:[%s10957_s20 + $0x11d8] sm:$0xf0]  ;;  %5698 = vmatpush.bf16.msrb.mxu2 %v9143_v18 }
 0x2f5   : > { %5509 = vmatmul.bf16.gmra.mxu3 %v11540_v15  ;;  %5640 = vmatpush.bf16.msrb.mxu0 %v8119_v45  ;;  %v10278_v50 = vld [vmem:[%s10957_s20 + $0x99c] sm:$0xf] }
 0x2f6   : > { %v12616_v39 = vpop.f32.mrf.mxu2  ;;  %v12622_v44 = vpop.f32.mrf.mxu1  ;;  %v10390_v56 = vld [vmem:[%s10957_s20 + $0xd1c] sm:$0xf] }
 0x2f7   : > { %v9076_v48 = vld [vmem:[%s10957_s20 + $0xd58] sm:$0xf0] }
 0x2f8   : > { %v12618_v33 = vpop.f32.mrf.mxu3  ;;  %v12620_v0 = vpop.f32.mrf.mxu0  ;;  %v9079_v18 = vor.u32 %v10390_v56, %v9076_v48  ;;  %v10134_v25 = vld [vmem:[%s10957_s20 + $0x51c] sm:$0xf] }
 0x2f9   : > { %v8052_v54 = vld [vmem:[%s10957_s20 + $0x558] sm:$0xf0] }
 0x2fa   : > { %v8055_v24 = vor.u32 %v10134_v25, %v8052_v54  ;;  %5699 = vmatpush.bf16.msrb.mxu2 %v9079_v18  ;;  %v7988_v18 = vld [vmem:[%s10957_s20 + $0x4d8] sm:$0xf0] }
 0x2fb   : > { %v10502_v25 = vld [vmem:[%s10957_s20 + $0x109c] sm:$0xf] }
 0x2fc   : > { %5641 = vmatpush.bf16.msrb.mxu0 %v8055_v24  ;;  %v9524_v24 = vld [vmem:[%s10957_s20 + $0x10d8] sm:$0xf0] }
 0x2fe   : > { %v12632_v49 = vpop.f32.mrf.mxu2  ;;  %v12638_v9 = vpop.f32.mrf.mxu1 }
 0x300   : > { %v12634_v47 = vpop.f32.mrf.mxu3  ;;  %v12636_v62 = vpop.f32.mrf.mxu0 }
 0x301   : > { %5456 = vmatmul.bf16.gmra.mxu1 %v11674_v8 }
 0x303   : > { %5427 = vmatmul.bf16.gmra.mxu0 %v11580_v61  ;;  %5485 = vmatmul.bf16.gmra.mxu2 %v11574_v58 }
 0x305   : > { %5514 = vmatmul.bf16.gmra.mxu3 %v14802_v4 }
 0x306   : > { %v12652_v38 = vpop.f32.mrf.mxu2  ;;  %v12660_v40 = vpop.f32.mrf.mxu1 }
 0x308   : > { %v12654_v21 = vpop.f32.mrf.mxu3  ;;  %v12656_v7 = vpop.f32.mrf.mxu0 }
 0x30e   : > { %v12672_v37 = vpop.f32.mrf.mxu2  ;;  %v12681_v42 = vpop.f32.mrf.mxu1 }
 0x310   : > { %v12674_v4 = vpop.f32.mrf.mxu3  ;;  %v5297_v52 = vpop.f32.mrf.mxu0 }
 0x311   : > { %v5298_v10 = vadd.f32 %v5297_v52, %v5269_v11  ;;  %5557 = vmatmul.bf16.vlgmr.msra.gmra.mxu1 %v11452_v35  ;;  %v516_v52 = vld [vmem:[%s14791_s3 + $0xa0] sm:$0xff] }
 0x313   : > { %v6916_v55 = vadd.f32 %v5298_v10, %v500_v2  ;;  %5528 = vmatmul.bf16.vlgmr.msra.gmra.mxu0 %v11448_v32  ;;  %5586 = vmatmul.bf16.vlgmr.msra.gmra.mxu2 %v11604_v36  ;;  %v9655_v10 = vor.u32 %v10534_v6, %v9652_v1  ;;  %v10518_v6 = vld [vmem:[%s10957_s20 + $0x111c] sm:$0xf] }
 0x314   : > { %v9588_v1 = vld [vmem:[%s10957_s20 + $0x1158] sm:$0xf0] }
 0x315   : > { %7044 = vst [vmem:[%s14791_s3 + $0x20] sm:$0xff] %v6916_v55  ;;  %5615 = vmatmul.bf16.vlgmr.msra.gmra.mxu3 %v11441_v26  ;;  %v8628_v55 = vld [vmem:[%s10957_s20 + $0x9d8] sm:$0xf0]  ;;  %v9591_v59 = vor.u32 %v10518_v6, %v9588_v1 }
 0x316   : > { %v12699_v11 = vpop.f32.mrf.mxu2  ;;  %v12709_v46 = vpop.f32.mrf.mxu1  ;;  %5727 = vmatpush.bf16.msrb.mxu3 %v9655_v10  ;;  %v8631_v23 = vor.u32 %v10278_v50, %v8628_v55  ;;  %v10262_v55 = vld [vmem:[%s10957_s20 + $0x91c] sm:$0xf] }
 0x318   : > { %v12702_v2 = vpop.f32.mrf.mxu3  ;;  %v5299_v53 = vpop.f32.mrf.mxu0  ;;  %5669 = vmatpush.bf16.msrb.mxu1 %v8631_v23 }
 0x319   : > { %v5300_v63 = vadd.f32 %v5299_v53, %v5271_v30  ;;  %v5274_v30 = vadd.f32 %v12582_v27, %v5245_v41  ;;  %v532_v53 = vld [vmem:[%s14791_s3 + $0x120] sm:$0xff]  ;;  %v8564_v41 = vld [vmem:[%s10957_s20 + $0x958] sm:$0xf0] }
 0x31a   : > { %5728 = vmatpush.bf16.msrb.mxu3 %v9591_v59  ;;  %v8567_v56 = vor.u32 %v10262_v55, %v8564_v41  ;;  %v9527_v59 = vor.u32 %v10502_v25, %v9524_v24  ;;  %v10246_v55 = vld [vmem:[%s10957_s20 + $0x89c] sm:$0xf] }
 0x31b   : > { %v6932_v57 = vadd.f32 %v5300_v63, %v516_v52  ;;  %v5218_v63 = vadd.f32 %v12586_v12, %v12584_v19  ;;  %v10374_v19 = vld [vmem:[%s10957_s20 + $0xc9c] sm:$0xf] }
 0x31c   : > { %5670 = vmatpush.bf16.msrb.mxu1 %v8567_v56  ;;  %v9012_v12 = vld [vmem:[%s10957_s20 + $0xcd8] sm:$0xf0] }
 0x31d   : > { %7060 = vst [vmem:[%s14791_s3 + $0xa0] sm:$0xff] %v6932_v57  ;;  %v5247_v57 = vadd.f32 %v12596_v5, %v5218_v63  ;;  %v9015_v48 = vor.u32 %v10374_v19, %v9012_v12  ;;  %v10118_v5 = vld [vmem:[%s10957_s20 + $0x49c] sm:$0xf]  ;;  %v5221_v63 = vadd.f32 %v12604_v20, %v12602_v51 }
 0x31e   : > { %v12723_v45 = vpop.f32.mrf.mxu2  ;;  %v12733_v27 = vpop.f32.mrf.mxu1  ;;  %5729 = vmatpush.bf16.msrb.mxu3 %v9527_v59  ;;  %v8500_v41 = vld [vmem:[%s10957_s20 + $0x8d8] sm:$0xf0] }
 0x31f   : > { %v5276_v54 = vadd.f32 %v12600_v13, %v5247_v57  ;;  %5700 = vmatpush.bf16.msrb.mxu2 %v9015_v48  ;;  %v5250_v57 = vadd.f32 %v12616_v39, %v5221_v63  ;;  %v8503_v56 = vor.u32 %v10246_v55, %v8500_v41  ;;  %v10358_v51 = vld [vmem:[%s10957_s20 + $0xc1c] sm:$0xf]  ;;  %v5223_v55 = vadd.f32 %v12622_v44, %v12620_v0  ;;  %v580_v0 = vld [vmem:[%s14791_s3 + $0x2a0] sm:$0xff] }
 0x320   : > { %v12726_v52 = vpop.f32.mrf.mxu3  ;;  %v5302_v10 = vpop.f32.mrf.mxu0  ;;  %v8948_v20 = vld [vmem:[%s10957_s20 + $0xc58] sm:$0xf0] }
 0x321   : > { %v5303_v50 = vadd.f32 %v5302_v10, %v5274_v30  ;;  %5562 = vmatmul.bf16.gmra.mxu1 %v11504_v34  ;;  %v7991_v30 = vor.u32 %v10118_v5, %v7988_v18  ;;  %v8951_v19 = vor.u32 %v10358_v51, %v8948_v20  ;;  %v10102_v12 = vld [vmem:[%s10957_s20 + $0x41c] sm:$0xf]  ;;  %v5279_v18 = vadd.f32 %v12618_v33, %v5250_v57  ;;  %v10351_v51 = vld [vmem:[%s10957_s20 + $0xbdc] sm:$0xf0] }
 0x322   : > { %5671 = vmatpush.bf16.msrb.mxu1 %v8503_v56  ;;  %v7924_v48 = vld [vmem:[%s10957_s20 + $0x458] sm:$0xf0]  ;;  %v5252_v57 = vadd.f32 %v12632_v49, %v5223_v55  ;;  %v8890_v56 = vld [vmem:[%s10957_s20 + $0xba0] sm:$0xf] }
 0x323   : > { %v6948_v23 = vadd.f32 %v5303_v50, %v532_v53  ;;  %5533 = vmatmul.bf16.gmra.mxu0 %v11500_v29  ;;  %5591 = vmatmul.bf16.gmra.mxu2 %v11628_v3  ;;  %v548_v53 = vld [vmem:[%s14791_s3 + $0x1a0] sm:$0xff]  ;;  %v10486_v5 = vld [vmem:[%s10957_s20 + $0x101c] sm:$0xf] }
 0x324   : > { %5642 = vmatpush.bf16.msrb.mxu0 %v7991_v30  ;;  %v9460_v39 = vld [vmem:[%s10957_s20 + $0x1058] sm:$0xf0]  ;;  %5701 = vmatpush.bf16.msrb.mxu2 %v8951_v19  ;;  %v5281_v44 = vadd.f32 %v12634_v47, %v5252_v57  ;;  %v7866_v20 = vld [vmem:[%s10957_s20 + $0x3a0] sm:$0xf] }
 0x325   : > { %7076 = vst [vmem:[%s14791_s3 + $0x120] sm:$0xff] %v6948_v23  ;;  %5620 = vmatmul.bf16.gmra.mxu3 %v11493_v22  ;;  %v10230_v30 = vld [vmem:[%s10957_s20 + $0x81c] sm:$0xf]  ;;  %v9463_v63 = vor.u32 %v10486_v5, %v9460_v39  ;;  %v10095_v5 = vld [vmem:[%s10957_s20 + $0x3dc] sm:$0xf0]  ;;  %v5226_v39 = vadd.f32 %v12638_v9, %v12636_v62 }
 0x326   : > { %v12751_v6 = vpop.f32.mrf.mxu2  ;;  %v12761_v50 = vpop.f32.mrf.mxu1  ;;  %v8436_v24 = vld [vmem:[%s10957_s20 + $0x858] sm:$0xf0]  ;;  %v7867_v47 = vor.u32 %v10095_v5, %v7866_v20  ;;  %v596_v62 = vld [vmem:[%s14791_s3 + $0x320] sm:$0xff]  ;;  %v5228_v5 = vadd.f32 %v12660_v40, %v12656_v7 }
 0x327   : > { %5730 = vmatpush.bf16.msrb.mxu3 %v9463_v63  ;;  %v10223_v63 = vld [vmem:[%s10957_s20 + $0x7dc] sm:$0xf0]  ;;  %v5255_v55 = vadd.f32 %v12652_v38, %v5226_v39 }
 0x328   : > { %v12754_v1 = vpop.f32.mrf.mxu3  ;;  %v5304_v10 = vpop.f32.mrf.mxu0  ;;  %v8826_v38 = vld [vmem:[%s10957_s20 + $0xb20] sm:$0xf] }
 0x329   : > { %v5305_v13 = vadd.f32 %v5304_v10, %v5276_v54  ;;  %v7927_v54 = vor.u32 %v10102_v12, %v7924_v48  ;;  %v564_v10 = vld [vmem:[%s14791_s3 + $0x220] sm:$0xff]  ;;  %v8891_v48 = vor.u32 %v10351_v51, %v8890_v56  ;;  %v5284_v9 = vadd.f32 %v12654_v21, %v5255_v55 }
 0x32a   : > { %v10079_v20 = vld [vmem:[%s10957_s20 + $0x35c] sm:$0xf0] }
 0x32b   : > { %v6964_v23 = vadd.f32 %v5305_v13, %v548_v53  ;;  %v8439_v13 = vor.u32 %v10230_v30, %v8436_v24  ;;  %5643 = vmatpush.bf16.msrb.mxu0 %v7927_v54  ;;  %v10479_v54 = vld [vmem:[%s10957_s20 + $0xfdc] sm:$0xf0]  ;;  %5810 = vmatpush.bf16.msra.mxu2 %v8891_v48 }
 0x32c   : > { %v10463_v48 = vld [vmem:[%s10957_s20 + $0xf5c] sm:$0xf0] }
 0x32d   : > { %7092 = vst [vmem:[%s14791_s3 + $0x1a0] sm:$0xff] %v6964_v23  ;;  %5672 = vmatpush.bf16.msrb.mxu1 %v8439_v13  ;;  %v612_v7 = vld [vmem:[%s14791_s3 + $0x3a0] sm:$0xff] }
 0x32e   : > { %v12775_v25 = vpop.f32.mrf.mxu2  ;;  %v12787_v41 = vpop.f32.mrf.mxu1  ;;  %v10319_v55 = vld [vmem:[%s10957_s20 + $0xadc] sm:$0xf0] }
 0x32f   : > { %5752 = vmatpush.bf16.msra.mxu0 %v7867_v47  ;;  %v10207_v47 = vld [vmem:[%s10957_s20 + $0x75c] sm:$0xf0] }
 0x330   : > { %v12780_v53 = vpop.f32.mrf.mxu3  ;;  %v5307_v59 = vpop.f32.mrf.mxu0 }
 0x331   : > { %v5308_v33 = vadd.f32 %v5307_v59, %v5279_v18  ;;  %5567 = vmatmul.bf16.gmra.mxu1 %v11544_v17  ;;  %v9402_v18 = vld [vmem:[%s10957_s20 + $0xfa0] sm:$0xf] }
 0x332   : > { %v8378_v59 = vld [vmem:[%s10957_s20 + $0x7a0] sm:$0xf] }
 0x333   : > { %v6980_v23 = vadd.f32 %v5308_v33, %v564_v10  ;;  %5538 = vmatmul.bf16.gmra.mxu0 %v11542_v16  ;;  %5596 = vmatmul.bf16.gmra.mxu2 %v11652_v43  ;;  %v9403_v10 = vor.u32 %v10479_v54, %v9402_v18  ;;  %v8379_v13 = vor.u32 %v10223_v63, %v8378_v59 }
 0x334   : > { %v5257_v59 = vadd.f32 %v12672_v37, %v5228_v5  ;;  %v10191_v5 = vld [vmem:[%s10957_s20 + $0x6dc] sm:$0xf0] }
 0x335   : > { %7108 = vst [vmem:[%s14791_s3 + $0x220] sm:$0xff] %v6980_v23  ;;  %5625 = vmatmul.bf16.gmra.mxu3 %v11538_v14  ;;  %5781 = vmatpush.bf16.msra.mxu1 %v8379_v13  ;;  %v10335_v23 = vld [vmem:[%s10957_s20 + $0xb5c] sm:$0xf0] }
 0x336   : > { %v12801_v49 = vpop.f32.mrf.mxu2  ;;  %v12813_v24 = vpop.f32.mrf.mxu1  ;;  %5839 = vmatpush.bf16.msra.mxu3 %v9403_v10  ;;  %v8827_v51 = vor.u32 %v10335_v23, %v8826_v38  ;;  %v5286_v40 = vadd.f32 %v12674_v4, %v5257_v59  ;;  %v8762_v13 = vld [vmem:[%s10957_s20 + $0xaa0] sm:$0xf] }
 0x337   : > { %v8763_v38 = vor.u32 %v10319_v55, %v8762_v13  ;;  %v10063_v23 = vld [vmem:[%s10957_s20 + $0x2dc] sm:$0xf0] }
 0x338   : > { %v12806_v19 = vpop.f32.mrf.mxu3  ;;  %v5309_v12 = vpop.f32.mrf.mxu0  ;;  %5811 = vmatpush.bf16.msra.mxu2 %v8827_v51  ;;  %v10303_v59 = vld [vmem:[%s10957_s20 + $0xa5c] sm:$0xf0] }
 0x339   : > { %v5310_v30 = vadd.f32 %v5309_v12, %v5281_v44  ;;  %v9338_v12 = vld [vmem:[%s10957_s20 + $0xf20] sm:$0xf] }
 0x33a   : > { %v9339_v39 = vor.u32 %v10463_v48, %v9338_v12  ;;  %v8250_v48 = vld [vmem:[%s10957_s20 + $0x6a0] sm:$0xf] }
 0x33b   : > { %v6996_v33 = vadd.f32 %v5310_v30, %v580_v0  ;;  %v7802_v0 = vld [vmem:[%s10957_s20 + $0x320] sm:$0xf] }
 0x33c   : > { %v7803_v21 = vor.u32 %v10079_v20, %v7802_v0  ;;  %v8314_v30 = vld [vmem:[%s10957_s20 + $0x720] sm:$0xf]  ;;  %5840 = vmatpush.bf16.msra.mxu3 %v9339_v39  ;;  %5812 = vmatpush.bf16.msra.mxu2 %v8763_v38 }
 0x33d   : > { %7124 = vst [vmem:[%s14791_s3 + $0x2a0] sm:$0xff] %v6996_v33  ;;  %v8315_v10 = vor.u32 %v10207_v47, %v8314_v30  ;;  %v7738_v33 = vld [vmem:[%s10957_s20 + $0x2a0] sm:$0xf] }
 0x33e   : > { %v12825_v57 = vpop.f32.mrf.mxu2  ;;  %v12837_v54 = vpop.f32.mrf.mxu1  ;;  %5753 = vmatpush.bf16.msra.mxu0 %v7803_v21  ;;  %v9274_v0 = vld [vmem:[%s10957_s20 + $0xea0] sm:$0xf]  ;;  %v7739_v12 = vor.u32 %v10063_v23, %v7738_v33  ;;  %v5356_v21 = vadd.f32 %v12699_v11, %v12681_v42 }
 0x33f   : > { %5782 = vmatpush.bf16.msra.mxu1 %v8315_v10  ;;  %v8698_v10 = vld [vmem:[%s10957_s20 + $0xa20] sm:$0xf] }
 0x340   : > { %v12830_v44 = vpop.f32.mrf.mxu3  ;;  %v5312_v56 = vpop.f32.mrf.mxu0  ;;  %v5385_v30 = vadd.f32 %v12702_v2, %v5356_v21  ;;  %v8699_v11 = vor.u32 %v10303_v59, %v8698_v10  ;;  %v9210_v13 = vld [vmem:[%s10957_s20 + $0xe20] sm:$0xf]  ;;  %v501_v2 = vld [vmem:[%s14791_s3 + $0x28] sm:$0xff] }
 0x341   : > { %v5313_v18 = vadd.f32 %v5312_v56, %v5284_v9  ;;  %5572 = vmatmul.bf16.gmra.mxu1 %v11580_v61  ;;  %v10447_v56 = vld [vmem:[%s10957_s20 + $0xedc] sm:$0xf0] }
 0x342   : > { %v9275_v4 = vor.u32 %v10447_v56, %v9274_v0  ;;  %5754 = vmatpush.bf16.msra.mxu0 %v7739_v12  ;;  %v10431_v55 = vld [vmem:[%s10957_s20 + $0xe5c] sm:$0xf0]  ;;  %5813 = vmatpush.bf16.msra.mxu2 %v8699_v11  ;;  %v5358_v12 = vadd.f32 %v12723_v45, %v12709_v46 }
 0x343   : > { %v7012_v63 = vadd.f32 %v5313_v18, %v596_v62  ;;  %5543 = vmatmul.bf16.gmra.mxu0 %v11578_v60  ;;  %5601 = vmatmul.bf16.gmra.mxu2 %v11674_v8  ;;  %v8251_v18 = vor.u32 %v10191_v5, %v8250_v48  ;;  %v9211_v23 = vor.u32 %v10431_v55, %v9210_v13  ;;  %v8186_v0 = vld [vmem:[%s10957_s20 + $0x620] sm:$0xf] }
 0x344   : > { %5841 = vmatpush.bf16.msra.mxu3 %v9275_v4  ;;  %v10175_v56 = vld [vmem:[%s10957_s20 + $0x65c] sm:$0xf0]  ;;  %v5387_v46 = vadd.f32 %v12726_v52, %v5358_v12 }
 0x345   : > { %7140 = vst [vmem:[%s14791_s3 + $0x320] sm:$0xff] %v7012_v63  ;;  %5630 = vmatmul.bf16.gmra.mxu3 %v11574_v58  ;;  %5783 = vmatpush.bf16.msra.mxu1 %v8251_v18  ;;  %v7674_v63 = vld [vmem:[%s10957_s20 + $0x220] sm:$0xf] }
 0x346   : > { %v12853_v37 = vpop.f32.mrf.mxu2  ;;  %v12863_v20 = vpop.f32.mrf.mxu1  ;;  %v8634_v5 = vld [vmem:[%s10957_s20 + $0x9a0] sm:$0xf] }
 0x347   : > { %v10287_v18 = vld [vmem:[%s10957_s20 + $0x9dc] sm:$0xf0] }
 0x348   : > { %v12858_v62 = vpop.f32.mrf.mxu3  ;;  %v5314_v9 = vpop.f32.mrf.mxu0  ;;  %5842 = vmatpush.bf16.msra.mxu3 %v9211_v23  ;;  %v7610_v10 = vld [vmem:[%s10957_s20 + $0x1a0] sm:$0xf]  ;;  %v5361_v23 = vadd.f32 %v12751_v6, %v12733_v27 }
 0x349   : > { %v5315_v51 = vadd.f32 %v5314_v9, %v5286_v40  ;;  %v10031_v59 = vld [vmem:[%s10957_s20 + $0x1dc] sm:$0xf0] }
 0x34a   : > { %v10415_v52 = vld [vmem:[%s10957_s20 + $0xddc] sm:$0xf0] }
 0x34b   : > { %v7028_v39 = vadd.f32 %v5315_v51, %v612_v7  ;;  %v10047_v7 = vld [vmem:[%s10957_s20 + $0x25c] sm:$0xf0]  ;;  %v8187_v51 = vor.u32 %v10175_v56, %v8186_v0 }
 0x34c   : > { %v7675_v38 = vor.u32 %v10047_v7, %v7674_v63  ;;  %v9146_v63 = vld [vmem:[%s10957_s20 + $0xda0] sm:$0xf]  ;;  %v7611_v7 = vor.u32 %v10031_v59, %v7610_v10 }
 0x34d   : > { %7156 = vst [vmem:[%s14791_s3 + $0x3a0] sm:$0xff] %v7028_v39  ;;  %5784 = vmatpush.bf16.msra.mxu1 %v8187_v51  ;;  %v8122_v13 = vld [vmem:[%s10957_s20 + $0x5a0] sm:$0xf] }
 0x34e   : > { %v12873_v47 = vpop.f32.mrf.mxu2  ;;  %v5442_v9 = vpop.f32.mrf.mxu1  ;;  %5755 = vmatpush.bf16.msra.mxu0 %v7675_v38  ;;  %v10159_v55 = vld [vmem:[%s10957_s20 + $0x5dc] sm:$0xf0] }
 0x34f   : > { %v8123_v38 = vor.u32 %v10159_v55, %v8122_v13  ;;  %v8570_v12 = vld [vmem:[%s10957_s20 + $0x920] sm:$0xf] }
 0x350   : > { %v12878_v40 = vpop.f32.mrf.mxu3  ;;  %v5413_v42 = vpop.f32.mrf.mxu0  ;;  %v8058_v59 = vld [vmem:[%s10957_s20 + $0x520] sm:$0xf] }
 0x351   : > { %v5414_v33 = vadd.f32 %v5413_v42, %v5385_v30  ;;  %5673 = vmatmul.bf16.vlgmr.msrb.gmra.mxu1 %v11448_v32  ;;  %v8635_v30 = vor.u32 %v10287_v18, %v8634_v5  ;;  %v10015_v5 = vld [vmem:[%s10957_s20 + $0x15c] sm:$0xf0] }
 0x352   : > { %5756 = vmatpush.bf16.msra.mxu0 %v7611_v7  ;;  %5785 = vmatpush.bf16.msra.mxu1 %v8123_v38  ;;  %v9082_v18 = vld [vmem:[%s10957_s20 + $0xd20] sm:$0xf] }
 0x353   : > { %v5443_v4 = vadd.f32 %v5442_v9, %v5414_v33  ;;  %5644 = vmatmul.bf16.vlgmr.msrb.gmra.mxu0 %v11446_v31  ;;  %5702 = vmatmul.bf16.vlgmr.msrb.gmra.mxu2 %v11452_v35  ;;  %v517_v33 = vld [vmem:[%s14791_s3 + $0xa8] sm:$0xff]  ;;  %v9147_v9 = vor.u32 %v10415_v52, %v9146_v63  ;;  %v10143_v63 = vld [vmem:[%s10957_s20 + $0x55c] sm:$0xf0]  ;;  %v5363_v52 = vadd.f32 %v12775_v25, %v12761_v50 }
 0x354   : > { %5814 = vmatpush.bf16.msra.mxu2 %v8635_v30  ;;  %v8059_v7 = vor.u32 %v10143_v63, %v8058_v59 }
 0x355   : > { %v6917_v48 = vadd.f32 %v5443_v4, %v501_v2  ;;  %5731 = vmatmul.bf16.vlgmr.msrb.gmra.mxu3 %v11604_v36  ;;  %v5390_v2 = vadd.f32 %v12754_v1, %v5361_v23  ;;  %v10271_v4 = vld [vmem:[%s10957_s20 + $0x95c] sm:$0xf0]  ;;  %v5392_v50 = vadd.f32 %v12780_v53, %v5363_v52 }
 0x356   : > { %v12898_v45 = vpop.f32.mrf.mxu2  ;;  %v5444_v11 = vpop.f32.mrf.mxu1  ;;  %5843 = vmatpush.bf16.msra.mxu3 %v9147_v9  ;;  %v10399_v1 = vld [vmem:[%s10957_s20 + $0xd5c] sm:$0xf0]  ;;  %5786 = vmatpush.bf16.msra.mxu1 %v8059_v7 }
 0x357   : > { %7045 = vst [vmem:[%s14791_s3 + $0x28] sm:$0xff] %v6917_v48  ;;  %v8571_v48 = vor.u32 %v10271_v4, %v8570_v12  ;;  %v10255_v9 = vld [vmem:[%s10957_s20 + $0x8dc] sm:$0xf0] }
 0x358   : > { %v12902_v21 = vpop.f32.mrf.mxu3  ;;  %v5415_v39 = vpop.f32.mrf.mxu0  ;;  %v9018_v12 = vld [vmem:[%s10957_s20 + $0xca0] sm:$0xf] }
 0x359   : > { %v5416_v42 = vadd.f32 %v5415_v39, %v5387_v46  ;;  %v7546_v46 = vld [vmem:[%s10957_s20 + $0x120] sm:$0xf]  ;;  %5815 = vmatpush.bf16.msra.mxu2 %v8571_v48 }
 0x35a   : > { %v7547_v10 = vor.u32 %v10015_v5, %v7546_v46  ;;  %v10383_v53 = vld [vmem:[%s10957_s20 + $0xcdc] sm:$0xf0] }
 0x35b   : > { %v5445_v0 = vadd.f32 %v5444_v11, %v5416_v42  ;;  %v533_v42 = vld [vmem:[%s14791_s3 + $0x128] sm:$0xff]  ;;  %v9083_v11 = vor.u32 %v10399_v1, %v9082_v18  ;;  %v7994_v46 = vld [vmem:[%s10957_s20 + $0x4a0] sm:$0xf] }
 0x35c   : > { %5757 = vmatpush.bf16.msra.mxu0 %v7547_v10  ;;  %v10127_v5 = vld [vmem:[%s10957_s20 + $0x4dc] sm:$0xf0]  ;;  %v549_v18 = vld [vmem:[%s14791_s3 + $0x1a8] sm:$0xff]  ;;  %v5366_v10 = vadd.f32 %v12801_v49, %v12787_v41 }
 0x35d   : > { %v6933_v56 = vadd.f32 %v5445_v0, %v517_v33  ;;  %5844 = vmatpush.bf16.msra.mxu3 %v9083_v11  ;;  %v8506_v33 = vld [vmem:[%s10957_s20 + $0x8a0] sm:$0xf] }
 0x35e   : > { %v12919_v51 = vpop.f32.mrf.mxu2  ;;  %v5447_v30 = vpop.f32.mrf.mxu1  ;;  %v8507_v0 = vor.u32 %v10255_v9, %v8506_v33  ;;  %v5395_v63 = vadd.f32 %v12806_v19, %v5366_v10  ;;  %v8442_v11 = vld [vmem:[%s10957_s20 + $0x820] sm:$0xf] }
 0x35f   : > { %7061 = vst [vmem:[%s14791_s3 + $0xa8] sm:$0xff] %v6933_v56  ;;  %v7482_v56 = vld [vmem:[%s10957_s20 + $0xa0] sm:$0xf] }
 0x360   : > { %v12923_v27 = vpop.f32.mrf.mxu3  ;;  %v5418_v6 = vpop.f32.mrf.mxu0  ;;  %5816 = vmatpush.bf16.msra.mxu2 %v8507_v0  ;;  %v10239_v7 = vld [vmem:[%s10957_s20 + $0x85c] sm:$0xf0] }
 0x361   : > { %v5419_v39 = vadd.f32 %v5418_v6, %v5390_v2  ;;  %5678 = vmatmul.bf16.gmra.mxu1 %v11500_v29  ;;  %v9999_v2 = vld [vmem:[%s10957_s20 + $0xdc] sm:$0xf0]  ;;  %v8443_v52 = vor.u32 %v10239_v7, %v8442_v11 }
 0x362   : > { %v7483_v48 = vor.u32 %v9999_v2, %v7482_v56  ;;  %v10367_v19 = vld [vmem:[%s10957_s20 + $0xc5c] sm:$0xf0]  ;;  %v565_v2 = vld [vmem:[%s14791_s3 + $0x228] sm:$0xff] }
 0x363   : > { %v5448_v13 = vadd.f32 %v5447_v30, %v5419_v39  ;;  %5649 = vmatmul.bf16.gmra.mxu0 %v11498_v28  ;;  %5707 = vmatmul.bf16.gmra.mxu2 %v11504_v34  ;;  %v9019_v39 = vor.u32 %v10383_v53, %v9018_v12  ;;  %v7995_v30 = vor.u32 %v10127_v5, %v7994_v46  ;;  %v7930_v0 = vld [vmem:[%s10957_s20 + $0x420] sm:$0xf]  ;;  %v10215_v46 = vld [vmem:[%s10957_s20 + $0x7a4] sm:$0xf] }
 0x364   : > { %5758 = vmatpush.bf16.msra.mxu0 %v7483_v48  ;;  %v10111_v56 = vld [vmem:[%s10957_s20 + $0x45c] sm:$0xf0]  ;;  %5817 = vmatpush.bf16.msra.mxu2 %v8443_v52  ;;  %v8380_v5 = vld [vmem:[%s10957_s20 + $0x7e0] sm:$0xf0] }
 0x365   : > { %v6949_v55 = vadd.f32 %v5448_v13, %v533_v42  ;;  %5736 = vmatmul.bf16.gmra.mxu3 %v11628_v3  ;;  %5787 = vmatpush.bf16.msra.mxu1 %v7995_v30  ;;  %v7418_v13 = vld [vmem:[%s10957_s20 + $0x20] sm:$0xf] }
 0x366   : > { %v12944_v25 = vpop.f32.mrf.mxu2  ;;  %v5449_v6 = vpop.f32.mrf.mxu1  ;;  %5845 = vmatpush.bf16.msra.mxu3 %v9019_v39  ;;  %v8383_v39 = vor.u32 %v10215_v46, %v8380_v5  ;;  %v10607_v30 = vld [vmem:[%s10957_s20 + $0x13dc] sm:$0xf0] }
 0x367   : > { %7077 = vst [vmem:[%s14791_s3 + $0x128] sm:$0xff] %v6949_v55  ;;  %v9983_v55 = vld [vmem:[%s10957_s20 + $0x5c] sm:$0xf0] }
 0x368   : > { %v12948_v38 = vpop.f32.mrf.mxu3  ;;  %v5420_v23 = vpop.f32.mrf.mxu0  ;;  %5926 = vmatpush.bf16.msrb.mxu2 %v8383_v39  ;;  %v597_v39 = vld [vmem:[%s14791_s3 + $0x328] sm:$0xff] }
 0x369   : > { %v5421_v4 = vadd.f32 %v5420_v23, %v5392_v50  ;;  %v8954_v50 = vld [vmem:[%s10957_s20 + $0xc20] sm:$0xf]  ;;  %v7419_v23 = vor.u32 %v9983_v55, %v7418_v13  ;;  %v5371_v13 = vadd.f32 %v12853_v37, %v12837_v54 }
 0x36a   : > { %v8955_v12 = vor.u32 %v10367_v19, %v8954_v50  ;;  %v10087_v50 = vld [vmem:[%s10957_s20 + $0x3a4] sm:$0xf] }
 0x36b   : > { %v5450_v1 = vadd.f32 %v5449_v6, %v5421_v4  ;;  %v7931_v4 = vor.u32 %v10111_v56, %v7930_v0  ;;  %v5368_v6 = vadd.f32 %v12825_v57, %v12813_v24  ;;  %5759 = vmatpush.bf16.msra.mxu0 %v7419_v23  ;;  %v10343_v24 = vld [vmem:[%s10957_s20 + $0xba4] sm:$0xf]  ;;  %v9850_v56 = vld [vmem:[%s10957_s20 + $0x1320] sm:$0xf] }
 0x36c   : > { %5846 = vmatpush.bf16.msra.mxu3 %v8955_v12  ;;  %v8892_v57 = vld [vmem:[%s10957_s20 + $0xbe0] sm:$0xf0] }
 0x36d   : > { %v6965_v59 = vadd.f32 %v5450_v1, %v549_v18  ;;  %v9914_v18 = vld [vmem:[%s10957_s20 + $0x13a0] sm:$0xf]  ;;  %5788 = vmatpush.bf16.msra.mxu1 %v7931_v4  ;;  %v5397_v10 = vadd.f32 %v12830_v44, %v5368_v6  ;;  %v581_v44 = vld [vmem:[%s14791_s3 + $0x2a8] sm:$0xff]  ;;  %v8316_v0 = vld [vmem:[%s10957_s20 + $0x760] sm:$0xf0] }
 0x36e   : > { %v12965_v42 = vpop.f32.mrf.mxu2  ;;  %v5452_v9 = vpop.f32.mrf.mxu1  ;;  %v10327_v6 = vld [vmem:[%s10957_s20 + $0xb24] sm:$0xf] }
 0x36f   : > { %7093 = vst [vmem:[%s14791_s3 + $0x1a8] sm:$0xff] %v6965_v59  ;;  %v9915_v59 = vor.u32 %v10607_v30, %v9914_v18  ;;  %v5373_v30 = vadd.f32 %v12873_v47, %v12863_v20  ;;  %v10311_v20 = vld [vmem:[%s10957_s20 + $0xaa4] sm:$0xf] }
 0x370   : > { %v12969_v41 = vpop.f32.mrf.mxu3  ;;  %v5423_v49 = vpop.f32.mrf.mxu0  ;;  %v8764_v47 = vld [vmem:[%s10957_s20 + $0xae0] sm:$0xf0] }
 0x371   : > { %v5424_v33 = vadd.f32 %v5423_v49, %v5395_v63  ;;  %5683 = vmatmul.bf16.gmra.mxu1 %v11542_v16  ;;  %v8895_v63 = vor.u32 %v10343_v24, %v8892_v57  ;;  %5868 = vmatpush.bf16.msrb.mxu0 %v9915_v59  ;;  %v14803_v57 = vld [vmem:[#allocation9_spill] sm:$0xff]  ;;  %v7804_v59 = vld [vmem:[%s10957_s20 + $0x360] sm:$0xf0] }
 0x373   : > { %v5453_v48 = vadd.f32 %v5452_v9, %v5424_v33  ;;  %5654 = vmatmul.bf16.gmra.mxu0 %v11540_v15  ;;  %5712 = vmatmul.bf16.gmra.mxu2 %v11544_v17  ;;  %v7868_v33 = vld [vmem:[%s10957_s20 + $0x3e0] sm:$0xf0] }
 0x374   : > { %5955 = vmatpush.bf16.msrb.mxu3 %v8895_v63  ;;  %v10199_v9 = vld [vmem:[%s10957_s20 + $0x724] sm:$0xf]  ;;  %v7871_v19 = vor.u32 %v10087_v50, %v7868_v33  ;;  %v5402_v50 = vadd.f32 %v12878_v40, %v5373_v30 }
 0x375   : > { %v6981_v53 = vadd.f32 %v5453_v48, %v565_v2  ;;  %5741 = vmatmul.bf16.gmra.mxu3 %v11652_v43  ;;  %v10591_v2 = vld [vmem:[%s10957_s20 + $0x135c] sm:$0xf0]  ;;  %v8319_v12 = vor.u32 %v10199_v9, %v8316_v0  ;;  %v8828_v48 = vld [vmem:[%s10957_s20 + $0xb60] sm:$0xf0] }
 0x376   : > { %v12996_v1 = vpop.f32.mrf.mxu2  ;;  %v5454_v52 = vpop.f32.mrf.mxu1  ;;  %v9851_v4 = vor.u32 %v10591_v2, %v9850_v56  ;;  %5897 = vmatpush.bf16.msrb.mxu1 %v7871_v19  ;;  %v8831_v37 = vor.u32 %v10327_v6, %v8828_v48  ;;  %v613_v2 = vld [vmem:[%s14791_s3 + $0x3a8] sm:$0xff]  ;;  %v7740_v6 = vld [vmem:[%s10957_s20 + $0x2e0] sm:$0xf0] }
 0x377   : > { %7109 = vst [vmem:[%s14791_s3 + $0x228] sm:$0xff] %v6981_v53  ;;  %v5400_v53 = vadd.f32 %v12858_v62, %v5371_v13  ;;  %5927 = vmatpush.bf16.msrb.mxu2 %v8319_v12  ;;  %v10167_v48 = vld [vmem:[%s10957_s20 + $0x624] sm:$0xf] }
 0x378   : > { %v12998_v11 = vpop.f32.mrf.mxu3  ;;  %v5425_v7 = vpop.f32.mrf.mxu0  ;;  %5869 = vmatpush.bf16.msrb.mxu0 %v9851_v4  ;;  %5956 = vmatpush.bf16.msrb.mxu3 %v8831_v37  ;;  %v10055_v4 = vld [vmem:[%s10957_s20 + $0x2a4] sm:$0xf] }
 0x379   : > { %v5426_v49 = vadd.f32 %v5425_v7, %v5397_v10  ;;  %v10071_v10 = vld [vmem:[%s10957_s20 + $0x324] sm:$0xf]  ;;  %v7743_v37 = vor.u32 %v10055_v4, %v7740_v6 }
 0x37a   : > { %v7807_v7 = vor.u32 %v10071_v10, %v7804_v59  ;;  %v8700_v10 = vld [vmem:[%s10957_s20 + $0xa60] sm:$0xf0] }
 0x37b   : > { %v5455_v55 = vadd.f32 %v5454_v52, %v5426_v49  ;;  %v10183_v49 = vld [vmem:[%s10957_s20 + $0x6a4] sm:$0xf] }
 0x37c   : > { %v8252_v52 = vld [vmem:[%s10957_s20 + $0x6e0] sm:$0xf0]  ;;  %5898 = vmatpush.bf16.msrb.mxu1 %v7807_v7  ;;  %v5501_v7 = vadd.f32 %v12902_v21, %v12898_v45 }
 0x37d   : > { %v6997_v23 = vadd.f32 %v5455_v55, %v581_v44  ;;  %v9786_v44 = vld [vmem:[%s10957_s20 + $0x12a0] sm:$0xf]  ;;  %v8255_v13 = vor.u32 %v10183_v49, %v8252_v52  ;;  %v10039_v45 = vld [vmem:[%s10957_s20 + $0x224] sm:$0xf] }
 0x37e   : > { %v13017_v54 = vpop.f32.mrf.mxu2  ;;  %v5457_v62 = vpop.f32.mrf.mxu1  ;;  %v10575_v55 = vld [vmem:[%s10957_s20 + $0x12dc] sm:$0xf0]  ;;  %v7676_v21 = vld [vmem:[%s10957_s20 + $0x260] sm:$0xf0] }
 0x37f   : > { %7125 = vst [vmem:[%s14791_s3 + $0x2a8] sm:$0xff] %v6997_v23  ;;  %v9787_v9 = vor.u32 %v10575_v55, %v9786_v44  ;;  %v8767_v23 = vor.u32 %v10311_v20, %v8764_v47  ;;  %5928 = vmatpush.bf16.msrb.mxu2 %v8255_v13  ;;  %v7679_v55 = vor.u32 %v10039_v45, %v7676_v21  ;;  %v10151_v20 = vld [vmem:[%s10957_s20 + $0x5a4] sm:$0xf]  ;;  %v518_v21 = vld [vmem:[%s14791_s3 + $0xb0] sm:$0xff] }
 0x380   : > { %v13019_v46 = vpop.f32.mrf.mxu3  ;;  %v5428_v5 = vpop.f32.mrf.mxu0  ;;  %5899 = vmatpush.bf16.msrb.mxu1 %v7743_v37  ;;  %v8124_v47 = vld [vmem:[%s10957_s20 + $0x5e0] sm:$0xf0] }
 0x381   : > { %v5429_v18 = vadd.f32 %v5428_v5, %v5400_v53  ;;  %5688 = vmatmul.bf16.gmra.mxu1 %v11578_v60  ;;  %5870 = vmatpush.bf16.msrb.mxu0 %v9787_v9  ;;  %v8188_v5 = vld [vmem:[%s10957_s20 + $0x660] sm:$0xf0] }
 0x382   : > { %5957 = vmatpush.bf16.msrb.mxu3 %v8767_v23  ;;  %v8127_v23 = vor.u32 %v10151_v20, %v8124_v47  ;;  %v8572_v45 = vld [vmem:[%s10957_s20 + $0x960] sm:$0xf0] }
 0x383   : > { %v5458_v24 = vadd.f32 %v5457_v62, %v5429_v18  ;;  %5659 = vmatmul.bf16.gmra.mxu0 %v14803_v57  ;;  %5717 = vmatmul.bf16.gmra.mxu2 %v11580_v61  ;;  %v9722_v18 = vld [vmem:[%s10957_s20 + $0x1220] sm:$0xf] }
 0x384   : > { %v10559_v62 = vld [vmem:[%s10957_s20 + $0x125c] sm:$0xf0]  ;;  %5900 = vmatpush.bf16.msrb.mxu1 %v7679_v55 }
 0x385   : > { %v7013_v63 = vadd.f32 %v5458_v24, %v597_v39  ;;  %5746 = vmatmul.bf16.gmra.mxu3 %v11674_v8  ;;  %v8191_v39 = vor.u32 %v10167_v48, %v8188_v5  ;;  %v9723_v30 = vor.u32 %v10559_v62, %v9722_v18  ;;  %v10295_v24 = vld [vmem:[%s10957_s20 + $0xa24] sm:$0xf]  ;;  %v5503_v48 = vadd.f32 %v12923_v27, %v12919_v51 }
 0x386   : > { %v13042_v33 = vpop.f32.mrf.mxu2  ;;  %v5459_v40 = vpop.f32.mrf.mxu1  ;;  %v7612_v51 = vld [vmem:[%s10957_s20 + $0x1e0] sm:$0xf0] }
 0x387   : > { %7141 = vst [vmem:[%s14791_s3 + $0x328] sm:$0xff] %v7013_v63  ;;  %v8703_v63 = vor.u32 %v10295_v24, %v8700_v10  ;;  %5929 = vmatpush.bf16.msrb.mxu2 %v8191_v39  ;;  %5871 = vmatpush.bf16.msrb.mxu0 %v9723_v30  ;;  %v10023_v30 = vld [vmem:[%s10957_s20 + $0x1a4] sm:$0xf] }
 0x388   : > { %v13044_v19 = vpop.f32.mrf.mxu3  ;;  %v5430_v0 = vpop.f32.mrf.mxu0  ;;  %v7615_v27 = vor.u32 %v10023_v30, %v7612_v51  ;;  %v10135_v24 = vld [vmem:[%s10957_s20 + $0x524] sm:$0xf]  ;;  %v534_v30 = vld [vmem:[%s14791_s3 + $0x130] sm:$0xff] }
 0x389   : > { %v5431_v56 = vadd.f32 %v5430_v0, %v5402_v50  ;;  %5958 = vmatpush.bf16.msrb.mxu3 %v8703_v63  ;;  %v9658_v50 = vld [vmem:[%s10957_s20 + $0x11a0] sm:$0xf]  ;;  %v8060_v10 = vld [vmem:[%s10957_s20 + $0x560] sm:$0xf0] }
 0x38a   : > { %v10543_v0 = vld [vmem:[%s10957_s20 + $0x11dc] sm:$0xf0]  ;;  %5901 = vmatpush.bf16.msrb.mxu1 %v7615_v27 }
 0x38b   : > { %v5460_v12 = vadd.f32 %v5459_v40, %v5431_v56  ;;  %v10279_v56 = vld [vmem:[%s10957_s20 + $0x9a4] sm:$0xf]  ;;  %v9659_v4 = vor.u32 %v10543_v0, %v9658_v50  ;;  %5930 = vmatpush.bf16.msrb.mxu2 %v8127_v23  ;;  %v9594_v63 = vld [vmem:[%s10957_s20 + $0x1120] sm:$0xf]  ;;  %v5506_v50 = vadd.f32 %v12948_v38, %v12944_v25 }
 0x38c   : > { %v8636_v40 = vld [vmem:[%s10957_s20 + $0x9e0] sm:$0xf0] }
 0x38d   : > { %v7029_v53 = vadd.f32 %v5460_v12, %v613_v2  ;;  %v502_v2 = vld [vmem:[%s14791_s3 + $0x30] sm:$0xff]  ;;  %v8639_v6 = vor.u32 %v10279_v56, %v8636_v40  ;;  %5872 = vmatpush.bf16.msrb.mxu0 %v9659_v4  ;;  %v10007_v25 = vld [vmem:[%s10957_s20 + $0x124] sm:$0xf] }
 0x38e   : > { %v13060_v59 = vpop.f32.mrf.mxu2  ;;  %v5558_v44 = vpop.f32.mrf.mxu1  ;;  %v7548_v38 = vld [vmem:[%s10957_s20 + $0x160] sm:$0xf0] }
 0x38f   : > { %7157 = vst [vmem:[%s14791_s3 + $0x3a8] sm:$0xff] %v7029_v53  ;;  %5959 = vmatpush.bf16.msrb.mxu3 %v8639_v6  ;;  %v10119_v4 = vld [vmem:[%s10957_s20 + $0x4a4] sm:$0xf] }
 0x390   : > { %v13064_v49 = vpop.f32.mrf.mxu3  ;;  %v5529_v52 = vpop.f32.mrf.mxu0  ;;  %v7996_v6 = vld [vmem:[%s10957_s20 + $0x4e0] sm:$0xf0] }
 0x391   : > { %v5530_v13 = vadd.f32 %v5529_v52, %v5501_v7  ;;  %5789 = vmatmul.bf16.vlgmr.msra.gmra.mxu1 %v11446_v31  ;;  %v8063_v52 = vor.u32 %v10135_v24, %v8060_v10  ;;  %v5508_v10 = vadd.f32 %v12969_v41, %v12965_v42  ;;  %v10103_v41 = vld [vmem:[%s10957_s20 + $0x424] sm:$0xf] }
 0x393   : > { %5760 = vmatmul.bf16.vlgmr.msra.gmra.mxu0 %v11441_v26  ;;  %5818 = vmatmul.bf16.vlgmr.msra.gmra.mxu2 %v11448_v32  ;;  %v5559_v9 = vadd.f32 %v5558_v44, %v5530_v13  ;;  %v10527_v44 = vld [vmem:[%s10957_s20 + $0x115c] sm:$0xf0]  ;;  %v10263_v13 = vld [vmem:[%s10957_s20 + $0x924] sm:$0xf] }
 0x394   : > { %v9595_v20 = vor.u32 %v10527_v44, %v9594_v63  ;;  %v8575_v47 = vor.u32 %v10263_v13, %v8572_v45  ;;  %5931 = vmatpush.bf16.msrb.mxu2 %v8063_v52 }
 0x395   : > { %5847 = vmatmul.bf16.vlgmr.msra.gmra.mxu3 %v11452_v35 }
 0x396   : > { %v5587_v12 = vpop.f32.mrf.mxu2  ;;  %v5560_v18 = vpop.f32.mrf.mxu1  ;;  %5873 = vmatpush.bf16.msrb.mxu0 %v9595_v20  ;;  %5960 = vmatpush.bf16.msrb.mxu3 %v8575_v47  ;;  %v7932_v20 = vld [vmem:[%s10957_s20 + $0x460] sm:$0xf0] }
 0x397   : > { %v5588_v53 = vadd.f32 %v5587_v12, %v5559_v9  ;;  %v7551_v12 = vor.u32 %v10007_v25, %v7548_v38  ;;  %v7935_v47 = vor.u32 %v10103_v41, %v7932_v20  ;;  %v550_v25 = vld [vmem:[%s14791_s3 + $0x1b0] sm:$0xff] }
 0x398   : > { %v13083_v37 = vpop.f32.mrf.mxu3  ;;  %v5531_v5 = vpop.f32.mrf.mxu0 }
 0x399   : > { %v6918_v62 = vadd.f32 %v5588_v53, %v502_v2  ;;  %v5532_v39 = vadd.f32 %v5531_v5, %v5503_v48  ;;  %v9530_v48 = vld [vmem:[%s10957_s20 + $0x10a0] sm:$0xf]  ;;  %v7999_v5 = vor.u32 %v10119_v4, %v7996_v6  ;;  %5902 = vmatpush.bf16.msrb.mxu1 %v7551_v12  ;;  %v9975_v4 = vld [vmem:[%s10957_s20 + $0x24] sm:$0xf] }
 0x39a   : > { %v7420_v6 = vld [vmem:[%s10957_s20 + $0x60] sm:$0xf0] }
 0x39b   : > { %7046 = vst [vmem:[%s14791_s3 + $0x30] sm:$0xff] %v6918_v62  ;;  %v5561_v7 = vadd.f32 %v5560_v18, %v5532_v39  ;;  %v10511_v18 = vld [vmem:[%s10957_s20 + $0x10dc] sm:$0xf0]  ;;  %v10247_v62 = vld [vmem:[%s10957_s20 + $0x8a4] sm:$0xf]  ;;  %5932 = vmatpush.bf16.msrb.mxu2 %v7999_v5 }
 0x39c   : > { %v8508_v39 = vld [vmem:[%s10957_s20 + $0x8e0] sm:$0xf0]  ;;  %v9531_v27 = vor.u32 %v10511_v18, %v9530_v48  ;;  %v5511_v48 = vadd.f32 %v12998_v11, %v12996_v1  ;;  %v7874_v1 = vld [vmem:[%s10957_s20 + $0x3a8] sm:$0xf] }
 0x39d   : > { %v8511_v24 = vor.u32 %v10247_v62, %v8508_v39  ;;  %v7423_v62 = vor.u32 %v9975_v4, %v7420_v6  ;;  %v10096_v11 = vld [vmem:[%s10957_s20 + $0x3e4] sm:$0xf0]  ;;  %v10455_v4 = vld [vmem:[%s10957_s20 + $0xf24] sm:$0xf] }
 0x39e   : > { %v5589_v55 = vpop.f32.mrf.mxu2  ;;  %v5563_v56 = vpop.f32.mrf.mxu1  ;;  %5874 = vmatpush.bf16.msrb.mxu0 %v9531_v27  ;;  %v10471_v27 = vld [vmem:[%s10957_s20 + $0xfa4] sm:$0xf] }
 0x39f   : > { %v5590_v9 = vadd.f32 %v5589_v55, %v5561_v7  ;;  %5961 = vmatpush.bf16.msrb.mxu3 %v8511_v24  ;;  %v7484_v55 = vld [vmem:[%s10957_s20 + $0xe0] sm:$0xf0]  ;;  %5933 = vmatpush.bf16.msrb.mxu2 %v7935_v47 }
 0x3a0   : > { %v13101_v23 = vpop.f32.mrf.mxu3  ;;  %v5534_v0 = vpop.f32.mrf.mxu0  ;;  %v9340_v6 = vld [vmem:[%s10957_s20 + $0xf60] sm:$0xf0] }
 0x3a1   : > { %v6934_v40 = vadd.f32 %v5590_v9, %v518_v21  ;;  %v5535_v2 = vadd.f32 %v5534_v0, %v5506_v50  ;;  %5794 = vmatmul.bf16.gmra.mxu1 %v11498_v28  ;;  %v9991_v21 = vld [vmem:[%s10957_s20 + $0xa4] sm:$0xf]  ;;  %v9466_v50 = vld [vmem:[%s10957_s20 + $0x1020] sm:$0xf] }
 0x3a2   : > { %v7487_v42 = vor.u32 %v9991_v21, %v7484_v55  ;;  %v10495_v9 = vld [vmem:[%s10957_s20 + $0x105c] sm:$0xf0]  ;;  %v10231_v0 = vld [vmem:[%s10957_s20 + $0x824] sm:$0xf] }
 0x3a3   : > { %5765 = vmatmul.bf16.gmra.mxu0 %v11493_v22  ;;  %7062 = vst [vmem:[%s14791_s3 + $0xb0] sm:$0xff] %v6934_v40  ;;  %5823 = vmatmul.bf16.gmra.mxu2 %v11500_v29  ;;  %v5564_v53 = vadd.f32 %v5563_v56, %v5535_v2  ;;  %v9467_v40 = vor.u32 %v10495_v9, %v9466_v50  ;;  %v8444_v2 = vld [vmem:[%s10957_s20 + $0x860] sm:$0xf0] }
 0x3a4   : > { %5903 = vmatpush.bf16.msrb.mxu1 %v7487_v42  ;;  %v8447_v12 = vor.u32 %v10231_v0, %v8444_v2  ;;  %v5513_v42 = vadd.f32 %v13019_v46, %v13017_v54  ;;  %v582_v54 = vld [vmem:[%s14791_s3 + $0x2b0] sm:$0xff]  ;;  %v7810_v2 = vld [vmem:[%s10957_s20 + $0x328] sm:$0xf] }
 0x3a5   : > { %5852 = vmatmul.bf16.gmra.mxu3 %v11504_v34  ;;  %5875 = vmatpush.bf16.msrb.mxu0 %v9467_v40  ;;  %v9916_v40 = vld [vmem:[%s10957_s20 + $0x13e0] sm:$0xf0] }
 0x3a6   : > { %v5592_v51 = vpop.f32.mrf.mxu2  ;;  %v5565_v44 = vpop.f32.mrf.mxu1  ;;  %5962 = vmatpush.bf16.msrb.mxu3 %v8447_v12  ;;  %v10080_v12 = vld [vmem:[%s10957_s20 + $0x364] sm:$0xf0] }
 0x3a7   : > { %v5593_v63 = vadd.f32 %v5592_v51, %v5564_v53 }
 0x3a8   : > { %v13123_v7 = vpop.f32.mrf.mxu3  ;;  %v5536_v52 = vpop.f32.mrf.mxu0  ;;  %5904 = vmatpush.bf16.msrb.mxu1 %v7423_v62 }
 0x3a9   : > { %v6950_v13 = vadd.f32 %v5593_v63, %v534_v30  ;;  %v5537_v45 = vadd.f32 %v5536_v52, %v5508_v10  ;;  %v7875_v10 = vor.u32 %v10096_v11, %v7874_v1  ;;  %v9404_v63 = vld [vmem:[%s10957_s20 + $0xfe0] sm:$0xf0]  ;;  %v8386_v52 = vld [vmem:[%s10957_s20 + $0x7a8] sm:$0xf] }
 0x3aa   : > { %v9407_v21 = vor.u32 %v10471_v27, %v9404_v63  ;;  %v10208_v1 = vld [vmem:[%s10957_s20 + $0x764] sm:$0xf0]  ;;  %v10583_v63 = vld [vmem:[%s10957_s20 + $0x1324] sm:$0xf] }
 0x3ab   : > { %7078 = vst [vmem:[%s14791_s3 + $0x130] sm:$0xff] %v6950_v13  ;;  %v5566_v56 = vadd.f32 %v5565_v44, %v5537_v45  ;;  %v10224_v44 = vld [vmem:[%s10957_s20 + $0x7e4] sm:$0xf0]  ;;  %v566_v13 = vld [vmem:[%s14791_s3 + $0x230] sm:$0xff]  ;;  %6042 = vmatpush.bf16.msra.mxu2 %v7875_v10 }
 0x3ac   : > { %v8387_v55 = vor.u32 %v10224_v44, %v8386_v52  ;;  %5984 = vmatpush.bf16.msra.mxu0 %v9407_v21  ;;  %v9852_v52 = vld [vmem:[%s10957_s20 + $0x1360] sm:$0xf0]  ;;  %v7746_v44 = vld [vmem:[%s10957_s20 + $0x2a8] sm:$0xf] }
 0x3ad   : > { %v10064_v21 = vld [vmem:[%s10957_s20 + $0x2e4] sm:$0xf0] }
 0x3ae   : > { %v5594_v38 = vpop.f32.mrf.mxu2  ;;  %v5568_v39 = vpop.f32.mrf.mxu1  ;;  %6071 = vmatpush.bf16.msra.mxu3 %v8387_v55  ;;  %v10439_v55 = vld [vmem:[%s10957_s20 + $0xea4] sm:$0xf] }
 0x3af   : > { %v5595_v53 = vadd.f32 %v5594_v38, %v5566_v56  ;;  %v10599_v56 = vld [vmem:[%s10957_s20 + $0x13a4] sm:$0xf] }
 0x3b0   : > { %v13143_v5 = vpop.f32.mrf.mxu3  ;;  %v5539_v18 = vpop.f32.mrf.mxu0  ;;  %v9919_v38 = vor.u32 %v10599_v56, %v9916_v40  ;;  %v10192_v56 = vld [vmem:[%s10957_s20 + $0x6e4] sm:$0xf0] }
 0x3b1   : > { %v6966_v30 = vadd.f32 %v5595_v53, %v550_v25  ;;  %v5540_v51 = vadd.f32 %v5539_v18, %v5511_v48  ;;  %5799 = vmatmul.bf16.gmra.mxu1 %v11540_v15  ;;  %v5516_v48 = vadd.f32 %v13044_v19, %v13042_v33  ;;  %v598_v33 = vld [vmem:[%s14791_s3 + $0x330] sm:$0xff] }
 0x3b2   : > { %6013 = vmatpush.bf16.msra.mxu1 %v9919_v38 }
 0x3b3   : > { %5770 = vmatmul.bf16.gmra.mxu0 %v11538_v14  ;;  %7094 = vst [vmem:[%s14791_s3 + $0x1b0] sm:$0xff] %v6966_v30  ;;  %5828 = vmatmul.bf16.gmra.mxu2 %v11542_v16  ;;  %v5569_v24 = vadd.f32 %v5568_v39, %v5540_v51  ;;  %v7811_v39 = vor.u32 %v10080_v12, %v7810_v2  ;;  %v8322_v51 = vld [vmem:[%s10957_s20 + $0x728] sm:$0xf]  ;;  %v10567_v12 = vld [vmem:[%s10957_s20 + $0x12a4] sm:$0xf] }
 0x3b4   : > { %v9343_v30 = vor.u32 %v10455_v4, %v9340_v6  ;;  %v8323_v27 = vor.u32 %v10208_v1, %v8322_v51  ;;  %v9788_v4 = vld [vmem:[%s10957_s20 + $0x12e0] sm:$0xf0]  ;;  %v7682_v6 = vld [vmem:[%s10957_s20 + $0x228] sm:$0xf] }
 0x3b5   : > { %5857 = vmatmul.bf16.gmra.mxu3 %v11544_v17  ;;  %6043 = vmatpush.bf16.msra.mxu2 %v7811_v39  ;;  %v10423_v39 = vld [vmem:[%s10957_s20 + $0xe24] sm:$0xf] }
 0x3b6   : > { %v5597_v45 = vpop.f32.mrf.mxu2  ;;  %v5570_v50 = vpop.f32.mrf.mxu1  ;;  %5985 = vmatpush.bf16.msra.mxu0 %v9343_v30  ;;  %6072 = vmatpush.bf16.msra.mxu3 %v8323_v27  ;;  %v9212_v30 = vld [vmem:[%s10957_s20 + $0xe60] sm:$0xf0] }
 0x3b7   : > { %v5598_v41 = vadd.f32 %v5597_v45, %v5569_v24  ;;  %v9855_v45 = vor.u32 %v10583_v63, %v9852_v52 }
 0x3b8   : > { %v13163_v20 = vpop.f32.mrf.mxu3  ;;  %v5541_v47 = vpop.f32.mrf.mxu0 }
 0x3b9   : > { %v6982_v9 = vadd.f32 %v5598_v41, %v566_v13  ;;  %v5542_v0 = vadd.f32 %v5541_v47, %v5513_v42  ;;  %v9276_v42 = vld [vmem:[%s10957_s20 + $0xee0] sm:$0xf0]  ;;  %v5518_v41 = vadd.f32 %v13064_v49, %v13060_v59  ;;  %6014 = vmatpush.bf16.msra.mxu1 %v9855_v45  ;;  %v614_v59 = vld [vmem:[%s14791_s3 + $0x3b0] sm:$0xff] }
 0x3ba   : > { %v9724_v45 = vld [vmem:[%s10957_s20 + $0x1260] sm:$0xf0] }
 0x3bb   : > { %7110 = vst [vmem:[%s14791_s3 + $0x230] sm:$0xff] %v6982_v9  ;;  %v5571_v46 = vadd.f32 %v5570_v50, %v5542_v0  ;;  %v7747_v0 = vor.u32 %v10064_v21, %v7746_v44  ;;  %v7618_v21 = vld [vmem:[%s10957_s20 + $0x1a8] sm:$0xf] }
 0x3bd   : > { %6044 = vmatpush.bf16.msra.mxu2 %v7747_v0 }
 0x3be   : > { %v5599_v25 = vpop.f32.mrf.mxu2  ;;  %v5573_v11 = vpop.f32.mrf.mxu1 }
 0x3bf   : > { %v5600_v53 = vadd.f32 %v5599_v25, %v5571_v46  ;;  %v8258_v46 = vld [vmem:[%s10957_s20 + $0x6a8] sm:$0xf] }
 0x3c0   : > { %v13179_v18 = vpop.f32.mrf.mxu3  ;;  %v5544_v62 = vpop.f32.mrf.mxu0  ;;  %v8259_v2 = vor.u32 %v10192_v56, %v8258_v46 }
 0x3c1   : > { %v6998_v24 = vadd.f32 %v5600_v53, %v582_v54  ;;  %v5545_v10 = vadd.f32 %v5544_v62, %v5516_v48  ;;  %5804 = vmatmul.bf16.gmra.mxu1 %v14803_v57  ;;  %v9279_v54 = vor.u32 %v10439_v55, %v9276_v42  ;;  %v9791_v53 = vor.u32 %v10567_v12, %v9788_v4  ;;  %v10048_v62 = vld [vmem:[%s10957_s20 + $0x264] sm:$0xf0] }
 0x3c2   : > { %6073 = vmatpush.bf16.msra.mxu3 %v8259_v2  ;;  %v7683_v27 = vor.u32 %v10048_v62, %v7682_v6  ;;  %v8130_v2 = vld [vmem:[%s10957_s20 + $0x5a8] sm:$0xf]  ;;  %v9660_v62 = vld [vmem:[%s10957_s20 + $0x11e0] sm:$0xf0] }
 0x3c3   : > { %5775 = vmatmul.bf16.gmra.mxu0 %v11574_v58  ;;  %7126 = vst [vmem:[%s14791_s3 + $0x2b0] sm:$0xff] %v6998_v24  ;;  %5833 = vmatmul.bf16.gmra.mxu2 %v11578_v60  ;;  %v5574_v19 = vadd.f32 %v5573_v11, %v5545_v10  ;;  %v9215_v24 = vor.u32 %v10423_v39, %v9212_v30  ;;  %v8194_v10 = vld [vmem:[%s10957_s20 + $0x628] sm:$0xf] }
 0x3c4   : > { %5986 = vmatpush.bf16.msra.mxu0 %v9279_v54  ;;  %6015 = vmatpush.bf16.msra.mxu1 %v9791_v53  ;;  %v10535_v53 = vld [vmem:[%s10957_s20 + $0x11a4] sm:$0xf] }
 0x3c5   : > { %5862 = vmatmul.bf16.gmra.mxu3 %v11580_v61  ;;  %6045 = vmatpush.bf16.msra.mxu2 %v7683_v27  ;;  %v9663_v30 = vor.u32 %v10535_v53, %v9660_v62  ;;  %v10391_v27 = vld [vmem:[%s10957_s20 + $0xd24] sm:$0xf] }
 0x3c6   : > { %v5602_v13 = vpop.f32.mrf.mxu2  ;;  %v5575_v40 = vpop.f32.mrf.mxu1 }
 0x3c7   : > { %v5603_v47 = vadd.f32 %v5602_v13, %v5574_v19  ;;  %v10551_v13 = vld [vmem:[%s10957_s20 + $0x1224] sm:$0xf] }
 0x3c8   : > { %v13201_v50 = vpop.f32.mrf.mxu3  ;;  %v5546_v9 = vpop.f32.mrf.mxu0  ;;  %5987 = vmatpush.bf16.msra.mxu0 %v9215_v24  ;;  %v9727_v42 = vor.u32 %v10551_v13, %v9724_v45 }
 0x3c9   : > { %v7014_v25 = vadd.f32 %v5603_v47, %v598_v33  ;;  %v5547_v38 = vadd.f32 %v5546_v9, %v5518_v41  ;;  %v10176_v33 = vld [vmem:[%s10957_s20 + $0x664] sm:$0xf0]  ;;  %v10407_v47 = vld [vmem:[%s10957_s20 + $0xda4] sm:$0xf] }
 0x3ca   : > { %v8195_v63 = vor.u32 %v10176_v33, %v8194_v10  ;;  %v10032_v41 = vld [vmem:[%s10957_s20 + $0x1e4] sm:$0xf0]  ;;  %v9148_v9 = vld [vmem:[%s10957_s20 + $0xde0] sm:$0xf0]  ;;  %6016 = vmatpush.bf16.msra.mxu1 %v9727_v42 }
 0x3cb   : > { %7142 = vst [vmem:[%s14791_s3 + $0x330] sm:$0xff] %v7014_v25  ;;  %v5576_v49 = vadd.f32 %v5575_v40, %v5547_v38  ;;  %v7619_v56 = vor.u32 %v10032_v41, %v7618_v21  ;;  %v9151_v40 = vor.u32 %v10407_v47, %v9148_v9  ;;  %v10160_v25 = vld [vmem:[%s10957_s20 + $0x5e4] sm:$0xf0]  ;;  %v503_v38 = vld [vmem:[%s14791_s3 + $0x38] sm:$0xff]  ;;  %v10519_v41 = vld [vmem:[%s10957_s20 + $0x1124] sm:$0xf] }
 0x3cc   : > { %6074 = vmatpush.bf16.msra.mxu3 %v8195_v63  ;;  %v8066_v63 = vld [vmem:[%s10957_s20 + $0x528] sm:$0xf]  ;;  %v9596_v47 = vld [vmem:[%s10957_s20 + $0x1160] sm:$0xf0] }
 0x3cd   : > { %6046 = vmatpush.bf16.msra.mxu2 %v7619_v56  ;;  %5988 = vmatpush.bf16.msra.mxu0 %v9151_v40  ;;  %v10375_v56 = vld [vmem:[%s10957_s20 + $0xca4] sm:$0xf] }
 0x3ce   : > { %v5604_v48 = vpop.f32.mrf.mxu2  ;;  %v5674_v19 = vpop.f32.mrf.mxu1  ;;  %6017 = vmatpush.bf16.msra.mxu1 %v9663_v30  ;;  %v10503_v30 = vld [vmem:[%s10957_s20 + $0x10a4] sm:$0xf] }
 0x3cf   : > { %v5605_v51 = vadd.f32 %v5604_v48, %v5576_v49  ;;  %v8131_v49 = vor.u32 %v10160_v25, %v8130_v2 }
 0x3d0   : > { %v13217_v1 = vpop.f32.mrf.mxu3  ;;  %v5645_v11 = vpop.f32.mrf.mxu0 }
 0x3d1   : > { %v7030_v52 = vadd.f32 %v5605_v51, %v614_v59  ;;  %v5646_v44 = vadd.f32 %v5645_v11, %v13083_v37  ;;  %5905 = vmatmul.bf16.vlgmr.msrb.gmra.mxu1 %v11441_v26  ;;  %6075 = vmatpush.bf16.msra.mxu3 %v8131_v49  ;;  %v7554_v51 = vld [vmem:[%s10957_s20 + $0x128] sm:$0xf] }
 0x3d2   : > { %v10016_v11 = vld [vmem:[%s10957_s20 + $0x164] sm:$0xf0] }
 0x3d3   : > { %5876 = vmatmul.bf16.vlgmr.msrb.gmra.mxu0 %v11604_v36  ;;  %7158 = vst [vmem:[%s14791_s3 + $0x3b0] sm:$0xff] %v7030_v52  ;;  %5934 = vmatmul.bf16.vlgmr.msrb.gmra.mxu2 %v11446_v31  ;;  %v5675_v37 = vadd.f32 %v5674_v19, %v5646_v44  ;;  %v7555_v33 = vor.u32 %v10016_v11, %v7554_v51  ;;  %v9084_v19 = vld [vmem:[%s10957_s20 + $0xd60] sm:$0xf0]  ;;  %v10144_v52 = vld [vmem:[%s10957_s20 + $0x564] sm:$0xf0]  ;;  %v519_v44 = vld [vmem:[%s14791_s3 + $0xb8] sm:$0xff] }
 0x3d4   : > { %v9087_v13 = vor.u32 %v10391_v27, %v9084_v19  ;;  %v8067_v45 = vor.u32 %v10144_v52, %v8066_v63  ;;  %v8002_v49 = vld [vmem:[%s10957_s20 + $0x4a8] sm:$0xf]  ;;  %v9532_v51 = vld [vmem:[%s10957_s20 + $0x10e0] sm:$0xf0] }
 0x3d5   : > { %5963 = vmatmul.bf16.vlgmr.msrb.gmra.mxu3 %v11448_v32  ;;  %6047 = vmatpush.bf16.msra.mxu2 %v7555_v33  ;;  %v9535_v27 = vor.u32 %v10503_v30, %v9532_v51  ;;  %v10359_v19 = vld [vmem:[%s10957_s20 + $0xc24] sm:$0xf]  ;;  %v7938_v52 = vld [vmem:[%s10957_s20 + $0x428] sm:$0xf] }
 0x3d6   : > { %v5703_v55 = vpop.f32.mrf.mxu2  ;;  %v5676_v59 = vpop.f32.mrf.mxu1  ;;  %6076 = vmatpush.bf16.msra.mxu3 %v8067_v45  ;;  %5989 = vmatpush.bf16.msra.mxu0 %v9087_v13  ;;  %v8956_v63 = vld [vmem:[%s10957_s20 + $0xc60] sm:$0xf0] }
 0x3d7   : > { %v5704_v0 = vadd.f32 %v5703_v55, %v5675_v37  ;;  %v8959_v45 = vor.u32 %v10359_v19, %v8956_v63  ;;  %v10336_v19 = vld [vmem:[%s10957_s20 + $0xb64] sm:$0xf0] }
 0x3d8   : > { %v5732_v54 = vpop.f32.mrf.mxu3  ;;  %v5647_v46 = vpop.f32.mrf.mxu0 }
 0x3d9   : > { %v5733_v12 = vadd.f32 %v5732_v54, %v5704_v0  ;;  %v5648_v4 = vadd.f32 %v5647_v46, %v13101_v23  ;;  %v9599_v0 = vor.u32 %v10519_v41, %v9596_v47  ;;  %v7490_v54 = vld [vmem:[%s10957_s20 + $0xa8] sm:$0xf]  ;;  %v9468_v47 = vld [vmem:[%s10957_s20 + $0x1060] sm:$0xf0] }
 0x3da   : > { %v10000_v46 = vld [vmem:[%s10957_s20 + $0xe4] sm:$0xf0] }
 0x3db   : > { %v6919_v6 = vadd.f32 %v5733_v12, %v503_v38  ;;  %v5677_v48 = vadd.f32 %v5676_v59, %v5648_v4  ;;  %v7491_v38 = vor.u32 %v10000_v46, %v7490_v54  ;;  %v9020_v59 = vld [vmem:[%s10957_s20 + $0xce0] sm:$0xf0]  ;;  %v10128_v12 = vld [vmem:[%s10957_s20 + $0x4e4] sm:$0xf0]  ;;  %v535_v4 = vld [vmem:[%s14791_s3 + $0x138] sm:$0xff]  ;;  %6018 = vmatpush.bf16.msra.mxu1 %v9599_v0 }
 0x3dc   : > { %v8003_v53 = vor.u32 %v10128_v12, %v8002_v49  ;;  %v10088_v49 = vld [vmem:[%s10957_s20 + $0x3ac] sm:$0xf] }
 0x3dd   : > { %7047 = vst [vmem:[%s14791_s3 + $0x38] sm:$0xff] %v6919_v6  ;;  %6048 = vmatpush.bf16.msra.mxu2 %v7491_v38  ;;  %v8898_v38 = vld [vmem:[%s10957_s20 + $0xba8] sm:$0xf] }
 0x3de   : > { %v5705_v39 = vpop.f32.mrf.mxu2  ;;  %v5679_v37 = vpop.f32.mrf.mxu1  ;;  %6077 = vmatpush.bf16.msra.mxu3 %v8003_v53  ;;  %v7876_v53 = vld [vmem:[%s10957_s20 + $0x3e8] sm:$0xf0] }
 0x3df   : > { %v5706_v23 = vadd.f32 %v5705_v39, %v5677_v48  ;;  %v9023_v48 = vor.u32 %v10375_v56, %v9020_v59  ;;  %6019 = vmatpush.bf16.msra.mxu1 %v9535_v27  ;;  %v9922_v56 = vld [vmem:[%s10957_s20 + $0x13a8] sm:$0xf]  ;;  %v7879_v30 = vor.u32 %v10088_v49, %v7876_v53  ;;  %v10056_v49 = vld [vmem:[%s10957_s20 + $0x2ac] sm:$0xf] }
 0x3e0   : > { %v5734_v24 = vpop.f32.mrf.mxu3  ;;  %v5650_v10 = vpop.f32.mrf.mxu0  ;;  %v10352_v59 = vld [vmem:[%s10957_s20 + $0xbe4] sm:$0xf0] }
 0x3e1   : > { %v5735_v21 = vadd.f32 %v5734_v24, %v5706_v23  ;;  %v5651_v55 = vadd.f32 %v5650_v10, %v13123_v7  ;;  %5910 = vmatmul.bf16.gmra.mxu1 %v11493_v22  ;;  %5990 = vmatpush.bf16.msra.mxu0 %v9023_v48  ;;  %v7426_v24 = vld [vmem:[%s10957_s20 + $0x28] sm:$0xf]  ;;  %v8899_v48 = vor.u32 %v10352_v59, %v8898_v38 }
 0x3e2   : > { %v9984_v10 = vld [vmem:[%s10957_s20 + $0x64] sm:$0xf0] }
 0x3e3   : > { %5881 = vmatmul.bf16.gmra.mxu0 %v11628_v3  ;;  %v6935_v42 = vadd.f32 %v5735_v21, %v519_v44  ;;  %5939 = vmatmul.bf16.gmra.mxu2 %v11498_v28  ;;  %v5680_v7 = vadd.f32 %v5679_v37, %v5651_v55  ;;  %v7427_v33 = vor.u32 %v9984_v10, %v7426_v24  ;;  %v10112_v21 = vld [vmem:[%s10957_s20 + $0x464] sm:$0xf0]  ;;  %v10487_v55 = vld [vmem:[%s10957_s20 + $0x1024] sm:$0xf] }
 0x3e4   : > { %v7939_v41 = vor.u32 %v10112_v21, %v7938_v52  ;;  %v9471_v54 = vor.u32 %v10487_v55, %v9468_v47  ;;  %v9410_v27 = vld [vmem:[%s10957_s20 + $0xfa8] sm:$0xf] }
 0x3e5   : > { %5968 = vmatmul.bf16.gmra.mxu3 %v11500_v29  ;;  %7063 = vst [vmem:[%s14791_s3 + $0xb8] sm:$0xff] %v6935_v42  ;;  %v551_v42 = vld [vmem:[%s14791_s3 + $0x1b8] sm:$0xff]  ;;  %6049 = vmatpush.bf16.msra.mxu2 %v7427_v33  ;;  %v9858_v24 = vld [vmem:[%s10957_s20 + $0x1328] sm:$0xf] }
 0x3e6   : > { %v5708_v9 = vpop.f32.mrf.mxu2  ;;  %v5681_v6 = vpop.f32.mrf.mxu1  ;;  %5991 = vmatpush.bf16.msra.mxu0 %v8959_v45  ;;  %6078 = vmatpush.bf16.msra.mxu3 %v7939_v41  ;;  %v8834_v33 = vld [vmem:[%s10957_s20 + $0xb28] sm:$0xf]  ;;  %v583_v41 = vld [vmem:[%s14791_s3 + $0x2b8] sm:$0xff] }
 0x3e7   : > { %v5709_v40 = vadd.f32 %v5708_v9, %v5680_v7  ;;  %6020 = vmatpush.bf16.msra.mxu1 %v9471_v54  ;;  %v9346_v54 = vld [vmem:[%s10957_s20 + $0xf28] sm:$0xf] }
 0x3e8   : > { %v5737_v2 = vpop.f32.mrf.mxu3  ;;  %v5652_v25 = vpop.f32.mrf.mxu0  ;;  %v10320_v59 = vld [vmem:[%s10957_s20 + $0xae4] sm:$0xf0] }
 0x3e9   : > { %v5738_v62 = vadd.f32 %v5737_v2, %v5709_v40  ;;  %v5653_v39 = vadd.f32 %v5652_v25, %v13143_v5  ;;  %v10608_v40 = vld [vmem:[%s10957_s20 + $0x13e4] sm:$0xf0] }
 0x3ea   : > { %v9923_v25 = vor.u32 %v10608_v40, %v9922_v56  ;;  %6100 = vmatpush.bf16.msrb.mxu0 %v8899_v48  ;;  %6187 = vmatpush.bf16.msrb.mxu3 %v7879_v30  ;;  %v9794_v40 = vld [vmem:[%s10957_s20 + $0x12a8] sm:$0xf]  ;;  %v599_v30 = vld [vmem:[%s14791_s3 + $0x338] sm:$0xff] }
 0x3eb   : > { %v6951_v11 = vadd.f32 %v5738_v62, %v535_v4  ;;  %v5682_v23 = vadd.f32 %v5681_v6, %v5653_v39  ;;  %v567_v62 = vld [vmem:[%s14791_s3 + $0x238] sm:$0xff] }
 0x3ec   : > { %6158 = vmatpush.bf16.msrb.mxu2 %v9923_v25  ;;  %v8770_v25 = vld [vmem:[%s10957_s20 + $0xaa8] sm:$0xf] }
 0x3ed   : > { %7079 = vst [vmem:[%s14791_s3 + $0x138] sm:$0xff] %v6951_v11 }
 0x3ee   : > { %v5710_v5 = vpop.f32.mrf.mxu2  ;;  %v5684_v7 = vpop.f32.mrf.mxu1 }
 0x3ef   : > { %v5711_v44 = vadd.f32 %v5710_v5, %v5682_v23  ;;  %v10480_v23 = vld [vmem:[%s10957_s20 + $0xfe4] sm:$0xf0] }
 0x3f0   : > { %v5739_v37 = vpop.f32.mrf.mxu3  ;;  %v5655_v13 = vpop.f32.mrf.mxu0  ;;  %v9411_v10 = vor.u32 %v10480_v23, %v9410_v27  ;;  %v10592_v5 = vld [vmem:[%s10957_s20 + $0x1364] sm:$0xf0] }
 0x3f1   : > { %v5740_v9 = vadd.f32 %v5739_v37, %v5711_v44  ;;  %v5656_v0 = vadd.f32 %v5655_v13, %v13163_v20  ;;  %5915 = vmatmul.bf16.gmra.mxu1 %v11538_v14  ;;  %v9859_v52 = vor.u32 %v10592_v5, %v9858_v24  ;;  %v8835_v44 = vor.u32 %v10336_v19, %v8834_v33  ;;  %v10072_v37 = vld [vmem:[%s10957_s20 + $0x32c] sm:$0xf]  ;;  %v9282_v23 = vld [vmem:[%s10957_s20 + $0xea8] sm:$0xf] }
 0x3f2   : > { %v7812_v13 = vld [vmem:[%s10957_s20 + $0x368] sm:$0xf0]  ;;  %6129 = vmatpush.bf16.msrb.mxu1 %v9411_v10  ;;  %v10448_v24 = vld [vmem:[%s10957_s20 + $0xee4] sm:$0xf0] }
 0x3f3   : > { %5886 = vmatmul.bf16.gmra.mxu0 %v11652_v43  ;;  %v6967_v46 = vadd.f32 %v5740_v9, %v551_v42  ;;  %5944 = vmatmul.bf16.gmra.mxu2 %v11540_v15  ;;  %v5685_v20 = vadd.f32 %v5684_v7, %v5656_v0  ;;  %v7815_v45 = vor.u32 %v10072_v37, %v7812_v13  ;;  %v9730_v10 = vld [vmem:[%s10957_s20 + $0x1228] sm:$0xf]  ;;  %v10040_v13 = vld [vmem:[%s10957_s20 + $0x22c] sm:$0xf] }
 0x3f4   : > { %6159 = vmatpush.bf16.msrb.mxu2 %v9859_v52  ;;  %6101 = vmatpush.bf16.msrb.mxu0 %v8835_v44  ;;  %v9283_v5 = vor.u32 %v10448_v24, %v9282_v23  ;;  %v10560_v33 = vld [vmem:[%s10957_s20 + $0x1264] sm:$0xf0] }
 0x3f5   : > { %5973 = vmatmul.bf16.gmra.mxu3 %v11542_v16  ;;  %7095 = vst [vmem:[%s14791_s3 + $0x1b8] sm:$0xff] %v6967_v46  ;;  %v10464_v46 = vld [vmem:[%s10957_s20 + $0xf64] sm:$0xf0]  ;;  %v9731_v44 = vor.u32 %v10560_v33, %v9730_v10  ;;  %v7556_v33 = vld [vmem:[%s10957_s20 + $0x168] sm:$0xf0] }
 0x3f6   : > { %v5713_v2 = vpop.f32.mrf.mxu2  ;;  %v5686_v39 = vpop.f32.mrf.mxu1  ;;  %6188 = vmatpush.bf16.msrb.mxu3 %v7815_v45  ;;  %v8706_v19 = vld [vmem:[%s10957_s20 + $0xa28] sm:$0xf]  ;;  %v7684_v45 = vld [vmem:[%s10957_s20 + $0x268] sm:$0xf0] }
 0x3f7   : > { %v5714_v12 = vadd.f32 %v5713_v2, %v5685_v20  ;;  %v9347_v20 = vor.u32 %v10464_v46, %v9346_v54  ;;  %v10576_v2 = vld [vmem:[%s10957_s20 + $0x12e4] sm:$0xf0] }
 0x3f8   : > { %v5742_v4 = vpop.f32.mrf.mxu3  ;;  %v5657_v6 = vpop.f32.mrf.mxu0  ;;  %v9795_v38 = vor.u32 %v10576_v2, %v9794_v40  ;;  %v10432_v54 = vld [vmem:[%s10957_s20 + $0xe64] sm:$0xf0] }
 0x3f9   : > { %v5743_v51 = vadd.f32 %v5742_v4, %v5714_v12  ;;  %v5658_v11 = vadd.f32 %v5657_v6, %v13179_v18  ;;  %6130 = vmatpush.bf16.msrb.mxu1 %v9347_v20  ;;  %v8771_v4 = vor.u32 %v10320_v59, %v8770_v25  ;;  %v7748_v6 = vld [vmem:[%s10957_s20 + $0x2e8] sm:$0xf0]  ;;  %v10544_v40 = vld [vmem:[%s10957_s20 + $0x11e4] sm:$0xf0] }
 0x3fa   : > { %6160 = vmatpush.bf16.msrb.mxu2 %v9795_v38  ;;  %v8642_v2 = vld [vmem:[%s10957_s20 + $0x9a8] sm:$0xf]  ;;  %v10024_v38 = vld [vmem:[%s10957_s20 + $0x1ac] sm:$0xf] }
 0x3fb   : > { %v6983_v63 = vadd.f32 %v5743_v51, %v567_v62  ;;  %v5687_v18 = vadd.f32 %v5686_v39, %v5658_v11  ;;  %v7751_v39 = vor.u32 %v10056_v49, %v7748_v6  ;;  %6102 = vmatpush.bf16.msrb.mxu0 %v8771_v4  ;;  %v10272_v23 = vld [vmem:[%s10957_s20 + $0x964] sm:$0xf0] }
 0x3fd   : > { %7111 = vst [vmem:[%s14791_s3 + $0x238] sm:$0xff] %v6983_v63  ;;  %6189 = vmatpush.bf16.msrb.mxu3 %v7751_v39  ;;  %v10304_v63 = vld [vmem:[%s10957_s20 + $0xa64] sm:$0xf0]  ;;  %6131 = vmatpush.bf16.msrb.mxu1 %v9283_v5  ;;  %v10008_v5 = vld [vmem:[%s10957_s20 + $0x12c] sm:$0xf] }
 0x3fe   : > { %v5715_v21 = vpop.f32.mrf.mxu2  ;;  %v5689_v47 = vpop.f32.mrf.mxu1  ;;  %v8707_v37 = vor.u32 %v10304_v63, %v8706_v19  ;;  %6161 = vmatpush.bf16.msrb.mxu2 %v9731_v44  ;;  %v10416_v39 = vld [vmem:[%s10957_s20 + $0xde4] sm:$0xf0]  ;;  %v7559_v19 = vor.u32 %v10008_v5, %v7556_v33 }
 0x3ff   : > { %v5716_v55 = vadd.f32 %v5715_v21, %v5687_v18  ;;  %v7687_v18 = vor.u32 %v10040_v13, %v7684_v45  ;;  %v9090_v13 = vld [vmem:[%s10957_s20 + $0xd28] sm:$0xf] }
 0x400   : > { %v5744_v42 = vpop.f32.mrf.mxu3  ;;  %v5660_v7 = vpop.f32.mrf.mxu0  ;;  %6103 = vmatpush.bf16.msrb.mxu0 %v8707_v37  ;;  %v10400_v45 = vld [vmem:[%s10957_s20 + $0xd64] sm:$0xf0] }
 0x401   : > { %v5745_v9 = vadd.f32 %v5744_v42, %v5716_v55  ;;  %v5661_v0 = vadd.f32 %v5660_v7, %v13201_v50  ;;  %5920 = vmatmul.bf16.gmra.mxu1 %v11574_v58  ;;  %6190 = vmatpush.bf16.msrb.mxu3 %v7687_v18  ;;  %v9091_v18 = vor.u32 %v10400_v45, %v9090_v13  ;;  %v10472_v45 = vld [vmem:[%s10957_s20 + $0xfac] sm:$0xf] }
 0x403   : > { %5891 = vmatmul.bf16.gmra.mxu0 %v11674_v8  ;;  %v6999_v56 = vadd.f32 %v5745_v9, %v583_v41  ;;  %5949 = vmatmul.bf16.gmra.mxu2 %v14803_v57  ;;  %v5690_v50 = vadd.f32 %v5689_v47, %v5661_v0  ;;  %v615_v41 = vld [vmem:[%s14791_s3 + $0x3b8] sm:$0xff]  ;;  %v9218_v0 = vld [vmem:[%s10957_s20 + $0xe28] sm:$0xf] }
 0x404   : > { %v9219_v46 = vor.u32 %v10432_v54, %v9218_v0  ;;  %v7492_v0 = vld [vmem:[%s10957_s20 + $0xe8] sm:$0xf0] }
 0x405   : > { %5978 = vmatmul.bf16.gmra.mxu3 %v11578_v60  ;;  %7127 = vst [vmem:[%s14791_s3 + $0x2b8] sm:$0xff] %v6999_v56  ;;  %v9666_v56 = vld [vmem:[%s10957_s20 + $0x11a8] sm:$0xf] }
 0x406   : > { %v5718_v12 = vpop.f32.mrf.mxu2  ;;  %v5691_v51 = vpop.f32.mrf.mxu1  ;;  %6132 = vmatpush.bf16.msrb.mxu1 %v9219_v46  ;;  %v9667_v25 = vor.u32 %v10544_v40, %v9666_v56 }
 0x407   : > { %v5719_v48 = vadd.f32 %v5718_v12, %v5690_v50  ;;  %v10288_v50 = vld [vmem:[%s10957_s20 + $0x9e4] sm:$0xf0]  ;;  %v7620_v12 = vld [vmem:[%s10957_s20 + $0x1e8] sm:$0xf0] }
 0x408   : > { %v5747_v53 = vpop.f32.mrf.mxu3  ;;  %v5662_v62 = vpop.f32.mrf.mxu0  ;;  %v8643_v49 = vor.u32 %v10288_v50, %v8642_v2  ;;  %6162 = vmatpush.bf16.msrb.mxu2 %v9667_v25  ;;  %v9026_v25 = vld [vmem:[%s10957_s20 + $0xca8] sm:$0xf] }
 0x409   : > { %v5748_v11 = vadd.f32 %v5747_v53, %v5719_v48  ;;  %v5663_v27 = vadd.f32 %v5662_v62, %v13217_v1  ;;  %v7623_v48 = vor.u32 %v10024_v38, %v7620_v12  ;;  %v9154_v62 = vld [vmem:[%s10957_s20 + $0xda8] sm:$0xf] }
 0x40a   : > { %6104 = vmatpush.bf16.msrb.mxu0 %v8643_v49  ;;  %v10384_v50 = vld [vmem:[%s10957_s20 + $0xce4] sm:$0xf0] }
 0x40b   : > { %v7015_v52 = vadd.f32 %v5748_v11, %v599_v30  ;;  %v5692_v1 = vadd.f32 %v5691_v51, %v5663_v27  ;;  %6191 = vmatpush.bf16.msrb.mxu3 %v7623_v48  ;;  %v9602_v30 = vld [vmem:[%s10957_s20 + $0x1128] sm:$0xf]  ;;  %v9155_v51 = vor.u32 %v10416_v39, %v9154_v62  ;;  %v9027_v49 = vor.u32 %v10384_v50, %v9026_v25 }
 0x40c   : > { %v10528_v11 = vld [vmem:[%s10957_s20 + $0x1164] sm:$0xf0] }
 0x40d   : > { %7143 = vst [vmem:[%s14791_s3 + $0x338] sm:$0xff] %v7015_v52  ;;  %v8578_v27 = vld [vmem:[%s10957_s20 + $0x928] sm:$0xf]  ;;  %v9603_v24 = vor.u32 %v10528_v11, %v9602_v30  ;;  %6133 = vmatpush.bf16.msrb.mxu1 %v9155_v51  ;;  %v9976_v51 = vld [vmem:[%s10957_s20 + $0x2c] sm:$0xf] }
 0x40e   : > { %v5720_v21 = vpop.f32.mrf.mxu2  ;;  %v13359_v47 = vpop.f32.mrf.mxu1  ;;  %v8579_v10 = vor.u32 %v10272_v23, %v8578_v27  ;;  %v9474_v38 = vld [vmem:[%s10957_s20 + $0x1028] sm:$0xf]  ;;  %v7428_v11 = vld [vmem:[%s10957_s20 + $0x68] sm:$0xf0] }
 0x40f   : > { %v5721_v55 = vadd.f32 %v5720_v21, %v5692_v1  ;;  %6163 = vmatpush.bf16.msrb.mxu2 %v9603_v24  ;;  %6192 = vmatpush.bf16.msrb.mxu3 %v7559_v19  ;;  %v9538_v1 = vld [vmem:[%s10957_s20 + $0x10a8] sm:$0xf]  ;;  %v7431_v27 = vor.u32 %v9976_v51, %v7428_v11  ;;  %v8324_v51 = vld [vmem:[%s10957_s20 + $0x768] sm:$0xf0] }
 0x410   : > { %v5749_v42 = vpop.f32.mrf.mxu3  ;;  %v13354_v7 = vpop.f32.mrf.mxu0  ;;  %6105 = vmatpush.bf16.msrb.mxu0 %v8579_v10  ;;  %v10512_v21 = vld [vmem:[%s10957_s20 + $0x10e4] sm:$0xf0]  ;;  %v10584_v11 = vld [vmem:[%s10957_s20 + $0x132c] sm:$0xf] }
 0x411   : > { %v5750_v9 = vadd.f32 %v5749_v42, %v5721_v55  ;;  %6021 = vmatmul.bf16.vlgmr.msra.gmra.mxu1 %v11604_v36  ;;  %v8514_v55 = vld [vmem:[%s10957_s20 + $0x8a8] sm:$0xf]  ;;  %v9539_v42 = vor.u32 %v10512_v21, %v9538_v1  ;;  %v10216_v1 = vld [vmem:[%s10957_s20 + $0x7ac] sm:$0xf] }
 0x412   : > { %6134 = vmatpush.bf16.msrb.mxu1 %v9091_v18  ;;  %v10496_v12 = vld [vmem:[%s10957_s20 + $0x1064] sm:$0xf0]  ;;  %v9412_v18 = vld [vmem:[%s10957_s20 + $0xfe8] sm:$0xf0] }
 0x413   : > { %5992 = vmatmul.bf16.vlgmr.msra.gmra.mxu0 %v11452_v35  ;;  %v7031_v20 = vadd.f32 %v5750_v9, %v615_v41  ;;  %6050 = vmatmul.bf16.vlgmr.msra.gmra.mxu2 %v11441_v26  ;;  %v10256_v41 = vld [vmem:[%s10957_s20 + $0x8e4] sm:$0xf0]  ;;  %v9992_v9 = vld [vmem:[%s10957_s20 + $0xac] sm:$0xf]  ;;  %v9475_v39 = vor.u32 %v10496_v12, %v9474_v38  ;;  %v9415_v21 = vor.u32 %v10472_v45, %v9412_v18 }
 0x414   : > { %v8515_v46 = vor.u32 %v10256_v41, %v8514_v55  ;;  %6164 = vmatpush.bf16.msrb.mxu2 %v9539_v42  ;;  %v8450_v48 = vld [vmem:[%s10957_s20 + $0x828] sm:$0xf]  ;;  %v8388_v55 = vld [vmem:[%s10957_s20 + $0x7e8] sm:$0xf0] }
 0x415   : > { %6079 = vmatmul.bf16.vlgmr.msra.gmra.mxu3 %v11446_v31  ;;  %7159 = vst [vmem:[%s14791_s3 + $0x3b8] sm:$0xff] %v7031_v20  ;;  %v7495_v20 = vor.u32 %v9992_v9, %v7492_v0  ;;  %v10240_v62 = vld [vmem:[%s10957_s20 + $0x864] sm:$0xf0]  ;;  %v10600_v42 = vld [vmem:[%s10957_s20 + $0x13ac] sm:$0xf]  ;;  %v8391_v0 = vor.u32 %v10216_v1, %v8388_v55 }
 0x416   : > { %v13375_v59 = vpop.f32.mrf.mxu2  ;;  %v13382_v53 = vpop.f32.mrf.mxu1  ;;  %6106 = vmatpush.bf16.msrb.mxu0 %v8515_v46  ;;  %v8451_v30 = vor.u32 %v10240_v62, %v8450_v48  ;;  %6135 = vmatpush.bf16.msrb.mxu1 %v9027_v49  ;;  %v8962_v24 = vld [vmem:[%s10957_s20 + $0xc28] sm:$0xf]  ;;  %v9924_v41 = vld [vmem:[%s10957_s20 + $0x13e8] sm:$0xf0] }
 0x417   : > { %6193 = vmatpush.bf16.msrb.mxu3 %v7495_v20  ;;  %v10368_v10 = vld [vmem:[%s10957_s20 + $0xc64] sm:$0xf0]  ;;  %v9927_v46 = vor.u32 %v10600_v42, %v9924_v41  ;;  %v10344_v38 = vld [vmem:[%s10957_s20 + $0xbac] sm:$0xf] }
 0x418   : > { %v13378_v4 = vpop.f32.mrf.mxu3  ;;  %v13380_v6 = vpop.f32.mrf.mxu0  ;;  %6165 = vmatpush.bf16.msrb.mxu2 %v9475_v39  ;;  %v8963_v19 = vor.u32 %v10368_v10, %v8962_v24  ;;  %v8900_v49 = vld [vmem:[%s10957_s20 + $0xbe8] sm:$0xf0] }
 0x419   : > { %v8903_v12 = vor.u32 %v10344_v38, %v8900_v49  ;;  %v10456_v48 = vld [vmem:[%s10957_s20 + $0xf2c] sm:$0xf] }
 0x41a   : > { %6107 = vmatpush.bf16.msrb.mxu0 %v8451_v30  ;;  %6136 = vmatpush.bf16.msrb.mxu1 %v8963_v19  ;;  %v9348_v62 = vld [vmem:[%s10957_s20 + $0xf68] sm:$0xf0] }
 0x41b   : > { %6194 = vmatpush.bf16.msrb.mxu3 %v7431_v27  ;;  %v10200_v39 = vld [vmem:[%s10957_s20 + $0x72c] sm:$0xf]  ;;  %v9351_v30 = vor.u32 %v10456_v48, %v9348_v62 }
 0x41c   : > { %6274 = vmatpush.bf16.msra.mxu2 %v9415_v21  ;;  %v9860_v27 = vld [vmem:[%s10957_s20 + $0x1368] sm:$0xf0]  ;;  %v8327_v10 = vor.u32 %v10200_v39, %v8324_v51 }
 0x41d   : > { %v9863_v19 = vor.u32 %v10584_v11, %v9860_v27  ;;  %v10328_v21 = vld [vmem:[%s10957_s20 + $0xb2c] sm:$0xf]  ;;  %v5791_v27 = vadd.f32 %v13359_v47, %v13354_v7 }
 0x41e   : > { %v13392_v63 = vpop.f32.mrf.mxu2  ;;  %v13398_v37 = vpop.f32.mrf.mxu1  ;;  %6216 = vmatpush.bf16.msra.mxu0 %v8391_v0  ;;  %6245 = vmatpush.bf16.msra.mxu1 %v8903_v12  ;;  %v8836_v55 = vld [vmem:[%s10957_s20 + $0xb68] sm:$0xf0] }
 0x41f   : > { %6303 = vmatpush.bf16.msra.mxu3 %v9927_v46  ;;  %v8839_v42 = vor.u32 %v10328_v21, %v8836_v55  ;;  %v10440_v41 = vld [vmem:[%s10957_s20 + $0xeac] sm:$0xf]  ;;  %v5820_v55 = vadd.f32 %v13375_v59, %v5791_v27  ;;  %v504_v59 = vld [vmem:[%s14791_s3 + $0x40] sm:$0xff] }
 0x420   : > { %v13394_v52 = vpop.f32.mrf.mxu3  ;;  %v13396_v44 = vpop.f32.mrf.mxu0  ;;  %6275 = vmatpush.bf16.msra.mxu2 %v9351_v30  ;;  %v9284_v0 = vld [vmem:[%s10957_s20 + $0xee8] sm:$0xf0] }
 0x421   : > { %6026 = vmatmul.bf16.gmra.mxu1 %v11628_v3  ;;  %v10184_v46 = vld [vmem:[%s10957_s20 + $0x6ac] sm:$0xf]  ;;  %v9287_v38 = vor.u32 %v10440_v41, %v9284_v0  ;;  %v5849_v7 = vadd.f32 %v13378_v4, %v5820_v55 }
 0x422   : > { %6217 = vmatpush.bf16.msra.mxu0 %v8327_v10  ;;  %6246 = vmatpush.bf16.msra.mxu1 %v8839_v42  ;;  %v8260_v49 = vld [vmem:[%s10957_s20 + $0x6e8] sm:$0xf0] }
 0x423   : > { %5997 = vmatmul.bf16.gmra.mxu0 %v11504_v34  ;;  %6055 = vmatmul.bf16.gmra.mxu2 %v11493_v22  ;;  %v10568_v12 = vld [vmem:[%s10957_s20 + $0x12ac] sm:$0xf]  ;;  %v8263_v39 = vor.u32 %v10184_v46, %v8260_v49 }
 0x424   : > { %6304 = vmatpush.bf16.msra.mxu3 %v9863_v19  ;;  %v9796_v48 = vld [vmem:[%s10957_s20 + $0x12e8] sm:$0xf0]  ;;  %6276 = vmatpush.bf16.msra.mxu2 %v9287_v38 }
 0x425   : > { %6084 = vmatmul.bf16.gmra.mxu3 %v11498_v28  ;;  %v9799_v30 = vor.u32 %v10568_v12, %v9796_v48  ;;  %v10312_v19 = vld [vmem:[%s10957_s20 + $0xaac] sm:$0xf] }
 0x426   : > { %v13412_v54 = vpop.f32.mrf.mxu2  ;;  %v13418_v2 = vpop.f32.mrf.mxu1  ;;  %6218 = vmatpush.bf16.msra.mxu0 %v8263_v39  ;;  %v8772_v21 = vld [vmem:[%s10957_s20 + $0xae8] sm:$0xf0] }
 0x427   : > { %v8775_v42 = vor.u32 %v10312_v19, %v8772_v21  ;;  %v10424_v41 = vld [vmem:[%s10957_s20 + $0xe2c] sm:$0xf]  ;;  %v5793_v19 = vadd.f32 %v13382_v53, %v13380_v6 }
 0x428   : > { %v13414_v56 = vpop.f32.mrf.mxu3  ;;  %v13416_v40 = vpop.f32.mrf.mxu0  ;;  %6305 = vmatpush.bf16.msra.mxu3 %v9799_v30  ;;  %v9220_v0 = vld [vmem:[%s10957_s20 + $0xe68] sm:$0xf0] }
 0x429   : > { %6247 = vmatpush.bf16.msra.mxu1 %v8775_v42  ;;  %v10168_v46 = vld [vmem:[%s10957_s20 + $0x62c] sm:$0xf]  ;;  %v9223_v49 = vor.u32 %v10424_v41, %v9220_v0  ;;  %v5822_v41 = vadd.f32 %v13392_v63, %v5793_v19 }
 0x42a   : > { %v8196_v12 = vld [vmem:[%s10957_s20 + $0x668] sm:$0xf0] }
 0x42b   : > { %v10552_v38 = vld [vmem:[%s10957_s20 + $0x122c] sm:$0xf]  ;;  %v8199_v39 = vor.u32 %v10168_v46, %v8196_v12  ;;  %6277 = vmatpush.bf16.msra.mxu2 %v9223_v49 }
 0x42c   : > { %v9732_v48 = vld [vmem:[%s10957_s20 + $0x1268] sm:$0xf0] }
 0x42d   : > { %v9735_v30 = vor.u32 %v10552_v38, %v9732_v48  ;;  %6219 = vmatpush.bf16.msra.mxu0 %v8199_v39  ;;  %v10296_v4 = vld [vmem:[%s10957_s20 + $0xa2c] sm:$0xf]  ;;  %v5851_v48 = vadd.f32 %v13394_v52, %v5822_v41 }
 0x42e   : > { %v13428_v23 = vpop.f32.mrf.mxu2  ;;  %v13436_v13 = vpop.f32.mrf.mxu1  ;;  %v8708_v55 = vld [vmem:[%s10957_s20 + $0xa68] sm:$0xf0] }
 0x42f   : > { %6306 = vmatpush.bf16.msra.mxu3 %v9735_v30  ;;  %v8711_v46 = vor.u32 %v10296_v4, %v8708_v55  ;;  %v10408_v6 = vld [vmem:[%s10957_s20 + $0xdac] sm:$0xf]  ;;  %v5796_v4 = vadd.f32 %v13398_v37, %v13396_v44 }
 0x430   : > { %v13432_v5 = vpop.f32.mrf.mxu3  ;;  %v13434_v33 = vpop.f32.mrf.mxu0  ;;  %v9156_v53 = vld [vmem:[%s10957_s20 + $0xde8] sm:$0xf0] }
 0x431   : > { %6031 = vmatmul.bf16.gmra.mxu1 %v11652_v43  ;;  %v9159_v49 = vor.u32 %v10408_v6, %v9156_v53  ;;  %v10152_v63 = vld [vmem:[%s10957_s20 + $0x5ac] sm:$0xf] }
 0x432   : > { %6248 = vmatpush.bf16.msra.mxu1 %v8711_v46  ;;  %v8132_v12 = vld [vmem:[%s10957_s20 + $0x5e8] sm:$0xf0]  ;;  %v5825_v46 = vadd.f32 %v13412_v54, %v5796_v4 }
 0x433   : > { %6002 = vmatmul.bf16.gmra.mxu0 %v11544_v17  ;;  %6060 = vmatmul.bf16.gmra.mxu2 %v11538_v14  ;;  %v10536_v38 = vld [vmem:[%s10957_s20 + $0x11ac] sm:$0xf]  ;;  %v8135_v39 = vor.u32 %v10152_v63, %v8132_v12 }
 0x434   : > { %v9668_v30 = vld [vmem:[%s10957_s20 + $0x11e8] sm:$0xf0]  ;;  %6278 = vmatpush.bf16.msra.mxu2 %v9159_v49 }
 0x435   : > { %6089 = vmatmul.bf16.gmra.mxu3 %v11540_v15  ;;  %6220 = vmatpush.bf16.msra.mxu0 %v8135_v39  ;;  %v10280_v41 = vld [vmem:[%s10957_s20 + $0x9ac] sm:$0xf] }
 0x436   : > { %v13448_v9 = vpop.f32.mrf.mxu2  ;;  %v13454_v50 = vpop.f32.mrf.mxu1  ;;  %v10392_v44 = vld [vmem:[%s10957_s20 + $0xd2c] sm:$0xf] }
 0x437   : > { %v9092_v37 = vld [vmem:[%s10957_s20 + $0xd68] sm:$0xf0] }
 0x438   : > { %v13450_v20 = vpop.f32.mrf.mxu3  ;;  %v13452_v25 = vpop.f32.mrf.mxu0  ;;  %v9095_v49 = vor.u32 %v10392_v44, %v9092_v37  ;;  %v10136_v63 = vld [vmem:[%s10957_s20 + $0x52c] sm:$0xf] }
 0x439   : > { %v8068_v12 = vld [vmem:[%s10957_s20 + $0x568] sm:$0xf0] }
 0x43a   : > { %v8071_v54 = vor.u32 %v10136_v63, %v8068_v12  ;;  %6279 = vmatpush.bf16.msra.mxu2 %v9095_v49  ;;  %v8004_v49 = vld [vmem:[%s10957_s20 + $0x4e8] sm:$0xf0] }
 0x43b   : > { %v10504_v63 = vld [vmem:[%s10957_s20 + $0x10ac] sm:$0xf] }
 0x43c   : > { %6221 = vmatpush.bf16.msra.mxu0 %v8071_v54  ;;  %v9540_v54 = vld [vmem:[%s10957_s20 + $0x10e8] sm:$0xf0] }
 0x43e   : > { %v13464_v24 = vpop.f32.mrf.mxu2  ;;  %v13470_v1 = vpop.f32.mrf.mxu1 }
 0x440   : > { %v13466_v45 = vpop.f32.mrf.mxu3  ;;  %v13468_v18 = vpop.f32.mrf.mxu0 }
 0x441   : > { %6036 = vmatmul.bf16.gmra.mxu1 %v11674_v8 }
 0x443   : > { %6007 = vmatmul.bf16.gmra.mxu0 %v11580_v61  ;;  %6065 = vmatmul.bf16.gmra.mxu2 %v11574_v58 }
 0x445   : > { %6094 = vmatmul.bf16.gmra.mxu3 %v14803_v57 }
 0x446   : > { %v13484_v62 = vpop.f32.mrf.mxu2  ;;  %v13492_v10 = vpop.f32.mrf.mxu1 }
 0x448   : > { %v13486_v51 = vpop.f32.mrf.mxu3  ;;  %v13488_v11 = vpop.f32.mrf.mxu0 }
 0x44e   : > { %v13504_v47 = vpop.f32.mrf.mxu2  ;;  %v13513_v42 = vpop.f32.mrf.mxu1 }
 0x450   : > { %v13506_v57 = vpop.f32.mrf.mxu3  ;;  %v5877_v27 = vpop.f32.mrf.mxu0 }
 0x451   : > { %v5878_v21 = vadd.f32 %v5877_v27, %v5849_v7  ;;  %6137 = vmatmul.bf16.vlgmr.msrb.gmra.mxu1 %v11452_v35  ;;  %v520_v27 = vld [vmem:[%s14791_s3 + $0xc0] sm:$0xff] }
 0x453   : > { %v6920_v0 = vadd.f32 %v5878_v21, %v504_v59  ;;  %6108 = vmatmul.bf16.vlgmr.msrb.gmra.mxu0 %v11448_v32  ;;  %6166 = vmatmul.bf16.vlgmr.msrb.gmra.mxu2 %v11604_v36  ;;  %v9671_v21 = vor.u32 %v10536_v38, %v9668_v30  ;;  %v10520_v38 = vld [vmem:[%s10957_s20 + $0x112c] sm:$0xf] }
 0x454   : > { %v9604_v30 = vld [vmem:[%s10957_s20 + $0x1168] sm:$0xf0] }
 0x455   : > { %7048 = vst [vmem:[%s14791_s3 + $0x40] sm:$0xff] %v6920_v0  ;;  %6195 = vmatmul.bf16.vlgmr.msrb.gmra.mxu3 %v11441_v26  ;;  %v8644_v0 = vld [vmem:[%s10957_s20 + $0x9e8] sm:$0xf0]  ;;  %v9607_v4 = vor.u32 %v10520_v38, %v9604_v30 }
 0x456   : > { %v13531_v7 = vpop.f32.mrf.mxu2  ;;  %v13541_v55 = vpop.f32.mrf.mxu1  ;;  %6307 = vmatpush.bf16.msra.mxu3 %v9671_v21  ;;  %v8647_v53 = vor.u32 %v10280_v41, %v8644_v0  ;;  %v10264_v0 = vld [vmem:[%s10957_s20 + $0x92c] sm:$0xf] }
 0x458   : > { %v13534_v59 = vpop.f32.mrf.mxu3  ;;  %v5879_v19 = vpop.f32.mrf.mxu0  ;;  %6249 = vmatpush.bf16.msra.mxu1 %v8647_v53 }
 0x459   : > { %v5880_v52 = vadd.f32 %v5879_v19, %v5851_v48  ;;  %v5854_v48 = vadd.f32 %v13414_v56, %v5825_v46  ;;  %v536_v19 = vld [vmem:[%s14791_s3 + $0x140] sm:$0xff]  ;;  %v8580_v46 = vld [vmem:[%s10957_s20 + $0x968] sm:$0xf0] }
 0x45a   : > { %6308 = vmatpush.bf16.msra.mxu3 %v9607_v4  ;;  %v8583_v44 = vor.u32 %v10264_v0, %v8580_v46  ;;  %v9543_v4 = vor.u32 %v10504_v63, %v9540_v54  ;;  %v10248_v0 = vld [vmem:[%s10957_s20 + $0x8ac] sm:$0xf] }
 0x45b   : > { %v6936_v6 = vadd.f32 %v5880_v52, %v520_v27  ;;  %v5798_v52 = vadd.f32 %v13418_v2, %v13416_v40  ;;  %v10376_v40 = vld [vmem:[%s10957_s20 + $0xcac] sm:$0xf] }
 0x45c   : > { %6250 = vmatpush.bf16.msra.mxu1 %v8583_v44  ;;  %v9028_v2 = vld [vmem:[%s10957_s20 + $0xce8] sm:$0xf0] }
 0x45d   : > { %7064 = vst [vmem:[%s14791_s3 + $0xc0] sm:$0xff] %v6936_v6  ;;  %v5827_v6 = vadd.f32 %v13428_v23, %v5798_v52  ;;  %v9031_v37 = vor.u32 %v10376_v40, %v9028_v2  ;;  %v10120_v23 = vld [vmem:[%s10957_s20 + $0x4ac] sm:$0xf]  ;;  %v5801_v52 = vadd.f32 %v13436_v13, %v13434_v33 }
 0x45e   : > { %v13555_v39 = vpop.f32.mrf.mxu2  ;;  %v13565_v56 = vpop.f32.mrf.mxu1  ;;  %6309 = vmatpush.bf16.msra.mxu3 %v9543_v4  ;;  %v8516_v46 = vld [vmem:[%s10957_s20 + $0x8e8] sm:$0xf0] }
 0x45f   : > { %v5856_v12 = vadd.f32 %v13432_v5, %v5827_v6  ;;  %6280 = vmatpush.bf16.msra.mxu2 %v9031_v37  ;;  %v5830_v6 = vadd.f32 %v13448_v9, %v5801_v52  ;;  %v8519_v44 = vor.u32 %v10248_v0, %v8516_v46  ;;  %v10360_v33 = vld [vmem:[%s10957_s20 + $0xc2c] sm:$0xf]  ;;  %v5803_v0 = vadd.f32 %v13454_v50, %v13452_v25  ;;  %v584_v25 = vld [vmem:[%s14791_s3 + $0x2c0] sm:$0xff] }
 0x460   : > { %v13558_v27 = vpop.f32.mrf.mxu3  ;;  %v5882_v21 = vpop.f32.mrf.mxu0  ;;  %v8964_v13 = vld [vmem:[%s10957_s20 + $0xc68] sm:$0xf0] }
 0x461   : > { %v5883_v41 = vadd.f32 %v5882_v21, %v5854_v48  ;;  %6142 = vmatmul.bf16.gmra.mxu1 %v11504_v34  ;;  %v8007_v48 = vor.u32 %v10120_v23, %v8004_v49  ;;  %v8967_v40 = vor.u32 %v10360_v33, %v8964_v13  ;;  %v10104_v2 = vld [vmem:[%s10957_s20 + $0x42c] sm:$0xf]  ;;  %v5859_v49 = vadd.f32 %v13450_v20, %v5830_v6  ;;  %v10353_v33 = vld [vmem:[%s10957_s20 + $0xbec] sm:$0xf0] }
 0x462   : > { %6251 = vmatpush.bf16.msra.mxu1 %v8519_v44  ;;  %v7940_v37 = vld [vmem:[%s10957_s20 + $0x468] sm:$0xf0]  ;;  %v5832_v6 = vadd.f32 %v13464_v24, %v5803_v0  ;;  %v8906_v44 = vld [vmem:[%s10957_s20 + $0xbb0] sm:$0xf] }
 0x463   : > { %v6952_v53 = vadd.f32 %v5883_v41, %v536_v19  ;;  %6113 = vmatmul.bf16.gmra.mxu0 %v11500_v29  ;;  %6171 = vmatmul.bf16.gmra.mxu2 %v11628_v3  ;;  %v552_v19 = vld [vmem:[%s14791_s3 + $0x1c0] sm:$0xff]  ;;  %v10488_v23 = vld [vmem:[%s10957_s20 + $0x102c] sm:$0xf]  ;;  %v7882_v13 = vld [vmem:[%s10957_s20 + $0x3b0] sm:$0xf] }
 0x464   : > { %6222 = vmatpush.bf16.msra.mxu0 %v8007_v48  ;;  %v9476_v9 = vld [vmem:[%s10957_s20 + $0x1068] sm:$0xf0]  ;;  %6281 = vmatpush.bf16.msra.mxu2 %v8967_v40  ;;  %v5861_v50 = vadd.f32 %v13466_v45, %v5832_v6 }
 0x465   : > { %7080 = vst [vmem:[%s14791_s3 + $0x140] sm:$0xff] %v6952_v53  ;;  %6200 = vmatmul.bf16.gmra.mxu3 %v11493_v22  ;;  %v10232_v48 = vld [vmem:[%s10957_s20 + $0x82c] sm:$0xf]  ;;  %v9479_v52 = vor.u32 %v10488_v23, %v9476_v9  ;;  %v10097_v23 = vld [vmem:[%s10957_s20 + $0x3ec] sm:$0xf0]  ;;  %v5806_v9 = vadd.f32 %v13470_v1, %v13468_v18  ;;  %v600_v18 = vld [vmem:[%s14791_s3 + $0x340] sm:$0xff] }
 0x466   : > { %v13583_v38 = vpop.f32.mrf.mxu2  ;;  %v13593_v41 = vpop.f32.mrf.mxu1  ;;  %v8452_v54 = vld [vmem:[%s10957_s20 + $0x868] sm:$0xf0]  ;;  %v7883_v45 = vor.u32 %v10097_v23, %v7882_v13  ;;  %v10081_v13 = vld [vmem:[%s10957_s20 + $0x36c] sm:$0xf0]  ;;  %v5808_v23 = vadd.f32 %v13492_v10, %v13488_v11  ;;  %v616_v11 = vld [vmem:[%s14791_s3 + $0x3c0] sm:$0xff] }
 0x467   : > { %6310 = vmatpush.bf16.msra.mxu3 %v9479_v52  ;;  %v10225_v52 = vld [vmem:[%s10957_s20 + $0x7ec] sm:$0xf0]  ;;  %v5835_v0 = vadd.f32 %v13484_v62, %v5806_v9 }
 0x468   : > { %v13586_v30 = vpop.f32.mrf.mxu3  ;;  %v5884_v21 = vpop.f32.mrf.mxu0  ;;  %v8842_v62 = vld [vmem:[%s10957_s20 + $0xb30] sm:$0xf] }
 0x469   : > { %v5885_v5 = vadd.f32 %v5884_v21, %v5856_v12  ;;  %v7943_v12 = vor.u32 %v10104_v2, %v7940_v37  ;;  %v568_v21 = vld [vmem:[%s14791_s3 + $0x240] sm:$0xff]  ;;  %v8907_v37 = vor.u32 %v10353_v33, %v8906_v44  ;;  %v5864_v1 = vadd.f32 %v13486_v51, %v5835_v0  ;;  %v10321_v0 = vld [vmem:[%s10957_s20 + $0xaec] sm:$0xf0] }
 0x46b   : > { %v6968_v53 = vadd.f32 %v5885_v5, %v552_v19  ;;  %v8455_v5 = vor.u32 %v10232_v48, %v8452_v54  ;;  %6223 = vmatpush.bf16.msra.mxu0 %v7943_v12  ;;  %v10481_v12 = vld [vmem:[%s10957_s20 + $0xfec] sm:$0xf0]  ;;  %6390 = vmatpush.bf16.msrb.mxu2 %v8907_v37 }
 0x46c   : > { %v10465_v37 = vld [vmem:[%s10957_s20 + $0xf6c] sm:$0xf0] }
 0x46d   : > { %7096 = vst [vmem:[%s14791_s3 + $0x1c0] sm:$0xff] %v6968_v53  ;;  %6252 = vmatpush.bf16.msra.mxu1 %v8455_v5 }
 0x46e   : > { %v13607_v63 = vpop.f32.mrf.mxu2  ;;  %v13619_v46 = vpop.f32.mrf.mxu1 }
 0x46f   : > { %6332 = vmatpush.bf16.msrb.mxu0 %v7883_v45  ;;  %v10209_v45 = vld [vmem:[%s10957_s20 + $0x76c] sm:$0xf0] }
 0x470   : > { %v13612_v19 = vpop.f32.mrf.mxu3  ;;  %v5887_v4 = vpop.f32.mrf.mxu0 }
 0x471   : > { %v5888_v20 = vadd.f32 %v5887_v4, %v5859_v49  ;;  %6147 = vmatmul.bf16.gmra.mxu1 %v11544_v17  ;;  %v9418_v49 = vld [vmem:[%s10957_s20 + $0xfb0] sm:$0xf] }
 0x472   : > { %v8394_v4 = vld [vmem:[%s10957_s20 + $0x7b0] sm:$0xf] }
 0x473   : > { %v6984_v53 = vadd.f32 %v5888_v20, %v568_v21  ;;  %6118 = vmatmul.bf16.gmra.mxu0 %v11542_v16  ;;  %6176 = vmatmul.bf16.gmra.mxu2 %v11652_v43  ;;  %v9419_v21 = vor.u32 %v10481_v12, %v9418_v49  ;;  %v8395_v5 = vor.u32 %v10225_v52, %v8394_v4 }
 0x474   : > { %v5837_v4 = vadd.f32 %v13504_v47, %v5808_v23  ;;  %v10193_v23 = vld [vmem:[%s10957_s20 + $0x6ec] sm:$0xf0] }
 0x475   : > { %7112 = vst [vmem:[%s14791_s3 + $0x240] sm:$0xff] %v6984_v53  ;;  %6205 = vmatmul.bf16.gmra.mxu3 %v11538_v14  ;;  %6361 = vmatpush.bf16.msrb.mxu1 %v8395_v5  ;;  %v10337_v53 = vld [vmem:[%s10957_s20 + $0xb6c] sm:$0xf0] }
 0x476   : > { %v13633_v24 = vpop.f32.mrf.mxu2  ;;  %v13645_v54 = vpop.f32.mrf.mxu1  ;;  %6419 = vmatpush.bf16.msrb.mxu3 %v9419_v21  ;;  %v8843_v33 = vor.u32 %v10337_v53, %v8842_v62  ;;  %v5866_v10 = vadd.f32 %v13506_v57, %v5837_v4  ;;  %v8778_v5 = vld [vmem:[%s10957_s20 + $0xab0] sm:$0xf] }
 0x477   : > { %v8779_v62 = vor.u32 %v10321_v0, %v8778_v5  ;;  %v10065_v53 = vld [vmem:[%s10957_s20 + $0x2ec] sm:$0xf0] }
 0x478   : > { %v13638_v40 = vpop.f32.mrf.mxu3  ;;  %v5889_v2 = vpop.f32.mrf.mxu0  ;;  %6391 = vmatpush.bf16.msrb.mxu2 %v8843_v33  ;;  %v10305_v4 = vld [vmem:[%s10957_s20 + $0xa6c] sm:$0xf0] }
 0x479   : > { %v5890_v48 = vadd.f32 %v5889_v2, %v5861_v50  ;;  %v9354_v2 = vld [vmem:[%s10957_s20 + $0xf30] sm:$0xf] }
 0x47a   : > { %v9355_v9 = vor.u32 %v10465_v37, %v9354_v2  ;;  %v8266_v37 = vld [vmem:[%s10957_s20 + $0x6b0] sm:$0xf] }
 0x47b   : > { %v7000_v20 = vadd.f32 %v5890_v48, %v584_v25  ;;  %v7818_v25 = vld [vmem:[%s10957_s20 + $0x330] sm:$0xf] }
 0x47c   : > { %v7819_v51 = vor.u32 %v10081_v13, %v7818_v25  ;;  %v8330_v48 = vld [vmem:[%s10957_s20 + $0x730] sm:$0xf]  ;;  %6420 = vmatpush.bf16.msrb.mxu3 %v9355_v9  ;;  %6392 = vmatpush.bf16.msrb.mxu2 %v8779_v62 }
 0x47d   : > { %7128 = vst [vmem:[%s14791_s3 + $0x2c0] sm:$0xff] %v7000_v20  ;;  %v8331_v21 = vor.u32 %v10209_v45, %v8330_v48  ;;  %v7754_v20 = vld [vmem:[%s10957_s20 + $0x2b0] sm:$0xf] }
 0x47e   : > { %v13657_v6 = vpop.f32.mrf.mxu2  ;;  %v13669_v12 = vpop.f32.mrf.mxu1  ;;  %6333 = vmatpush.bf16.msrb.mxu0 %v7819_v51  ;;  %v9290_v25 = vld [vmem:[%s10957_s20 + $0xeb0] sm:$0xf]  ;;  %v7755_v2 = vor.u32 %v10065_v53, %v7754_v20  ;;  %v5936_v51 = vadd.f32 %v13531_v7, %v13513_v42 }
 0x47f   : > { %6362 = vmatpush.bf16.msrb.mxu1 %v8331_v21  ;;  %v8714_v21 = vld [vmem:[%s10957_s20 + $0xa30] sm:$0xf] }
 0x480   : > { %v13662_v50 = vpop.f32.mrf.mxu3  ;;  %v5892_v44 = vpop.f32.mrf.mxu0  ;;  %v5965_v48 = vadd.f32 %v13534_v59, %v5936_v51  ;;  %v8715_v7 = vor.u32 %v10305_v4, %v8714_v21  ;;  %v9226_v5 = vld [vmem:[%s10957_s20 + $0xe30] sm:$0xf]  ;;  %v505_v59 = vld [vmem:[%s14791_s3 + $0x48] sm:$0xff] }
 0x481   : > { %v5893_v49 = vadd.f32 %v5892_v44, %v5864_v1  ;;  %6152 = vmatmul.bf16.gmra.mxu1 %v11580_v61  ;;  %v10449_v44 = vld [vmem:[%s10957_s20 + $0xeec] sm:$0xf0] }
 0x482   : > { %v9291_v57 = vor.u32 %v10449_v44, %v9290_v25  ;;  %6334 = vmatpush.bf16.msrb.mxu0 %v7755_v2  ;;  %v10433_v0 = vld [vmem:[%s10957_s20 + $0xe6c] sm:$0xf0]  ;;  %6393 = vmatpush.bf16.msrb.mxu2 %v8715_v7  ;;  %v5938_v2 = vadd.f32 %v13555_v39, %v13541_v55 }
 0x483   : > { %v7016_v52 = vadd.f32 %v5893_v49, %v600_v18  ;;  %6123 = vmatmul.bf16.gmra.mxu0 %v11578_v60  ;;  %6181 = vmatmul.bf16.gmra.mxu2 %v11674_v8  ;;  %v8267_v49 = vor.u32 %v10193_v23, %v8266_v37  ;;  %v9227_v53 = vor.u32 %v10433_v0, %v9226_v5  ;;  %v8202_v25 = vld [vmem:[%s10957_s20 + $0x630] sm:$0xf] }
 0x484   : > { %6421 = vmatpush.bf16.msrb.mxu3 %v9291_v57  ;;  %v10177_v44 = vld [vmem:[%s10957_s20 + $0x66c] sm:$0xf0]  ;;  %v5967_v55 = vadd.f32 %v13558_v27, %v5938_v2 }
 0x485   : > { %7144 = vst [vmem:[%s14791_s3 + $0x340] sm:$0xff] %v7016_v52  ;;  %6210 = vmatmul.bf16.gmra.mxu3 %v11574_v58  ;;  %6363 = vmatpush.bf16.msrb.mxu1 %v8267_v49  ;;  %v7690_v52 = vld [vmem:[%s10957_s20 + $0x230] sm:$0xf] }
 0x486   : > { %v13685_v47 = vpop.f32.mrf.mxu2  ;;  %v13695_v13 = vpop.f32.mrf.mxu1  ;;  %v8650_v23 = vld [vmem:[%s10957_s20 + $0x9b0] sm:$0xf] }
 0x487   : > { %v10289_v49 = vld [vmem:[%s10957_s20 + $0x9ec] sm:$0xf0] }
 0x488   : > { %v13690_v18 = vpop.f32.mrf.mxu3  ;;  %v5894_v1 = vpop.f32.mrf.mxu0  ;;  %6422 = vmatpush.bf16.msrb.mxu3 %v9227_v53  ;;  %v7626_v21 = vld [vmem:[%s10957_s20 + $0x1b0] sm:$0xf]  ;;  %v5941_v53 = vadd.f32 %v13583_v38, %v13565_v56 }
 0x489   : > { %v5895_v33 = vadd.f32 %v5894_v1, %v5866_v10  ;;  %v10033_v4 = vld [vmem:[%s10957_s20 + $0x1ec] sm:$0xf0] }
 0x48a   : > { %v10417_v27 = vld [vmem:[%s10957_s20 + $0xdec] sm:$0xf0] }
 0x48b   : > { %v7032_v9 = vadd.f32 %v5895_v33, %v616_v11  ;;  %v10049_v11 = vld [vmem:[%s10957_s20 + $0x26c] sm:$0xf0]  ;;  %v8203_v33 = vor.u32 %v10177_v44, %v8202_v25 }
 0x48c   : > { %v7691_v62 = vor.u32 %v10049_v11, %v7690_v52  ;;  %v9162_v52 = vld [vmem:[%s10957_s20 + $0xdb0] sm:$0xf]  ;;  %v7627_v11 = vor.u32 %v10033_v4, %v7626_v21 }
 0x48d   : > { %7160 = vst [vmem:[%s14791_s3 + $0x3c0] sm:$0xff] %v7032_v9  ;;  %6364 = vmatpush.bf16.msrb.mxu1 %v8203_v33  ;;  %v8138_v5 = vld [vmem:[%s10957_s20 + $0x5b0] sm:$0xf] }
 0x48e   : > { %v13705_v45 = vpop.f32.mrf.mxu2  ;;  %v6022_v1 = vpop.f32.mrf.mxu1  ;;  %6335 = vmatpush.bf16.msrb.mxu0 %v7691_v62  ;;  %v10161_v0 = vld [vmem:[%s10957_s20 + $0x5ec] sm:$0xf0] }
 0x48f   : > { %v8139_v62 = vor.u32 %v10161_v0, %v8138_v5  ;;  %v8586_v2 = vld [vmem:[%s10957_s20 + $0x930] sm:$0xf] }
 0x490   : > { %v13710_v10 = vpop.f32.mrf.mxu3  ;;  %v5993_v42 = vpop.f32.mrf.mxu0  ;;  %v8074_v4 = vld [vmem:[%s10957_s20 + $0x530] sm:$0xf] }
 0x491   : > { %v5994_v20 = vadd.f32 %v5993_v42, %v5965_v48  ;;  %6253 = vmatmul.bf16.vlgmr.msra.gmra.mxu1 %v11448_v32  ;;  %v8651_v48 = vor.u32 %v10289_v49, %v8650_v23  ;;  %v10017_v23 = vld [vmem:[%s10957_s20 + $0x16c] sm:$0xf0] }
 0x492   : > { %6336 = vmatpush.bf16.msrb.mxu0 %v7627_v11  ;;  %6365 = vmatpush.bf16.msrb.mxu1 %v8139_v62  ;;  %v9098_v49 = vld [vmem:[%s10957_s20 + $0xd30] sm:$0xf] }
 0x493   : > { %v6023_v57 = vadd.f32 %v6022_v1, %v5994_v20  ;;  %6224 = vmatmul.bf16.vlgmr.msra.gmra.mxu0 %v11446_v31  ;;  %6282 = vmatmul.bf16.vlgmr.msra.gmra.mxu2 %v11452_v35  ;;  %v521_v20 = vld [vmem:[%s14791_s3 + $0xc8] sm:$0xff]  ;;  %v9163_v1 = vor.u32 %v10417_v27, %v9162_v52  ;;  %v10145_v52 = vld [vmem:[%s10957_s20 + $0x56c] sm:$0xf0]  ;;  %v5943_v27 = vadd.f32 %v13607_v63, %v13593_v41 }
 0x494   : > { %6394 = vmatpush.bf16.msrb.mxu2 %v8651_v48  ;;  %v8075_v11 = vor.u32 %v10145_v52, %v8074_v4 }
 0x495   : > { %v6921_v37 = vadd.f32 %v6023_v57, %v505_v59  ;;  %6311 = vmatmul.bf16.vlgmr.msra.gmra.mxu3 %v11604_v36  ;;  %v5970_v59 = vadd.f32 %v13586_v30, %v5941_v53  ;;  %v10273_v57 = vld [vmem:[%s10957_s20 + $0x96c] sm:$0xf0]  ;;  %v5972_v41 = vadd.f32 %v13612_v19, %v5943_v27 }
 0x496   : > { %v13730_v39 = vpop.f32.mrf.mxu2  ;;  %v6024_v7 = vpop.f32.mrf.mxu1  ;;  %6423 = vmatpush.bf16.msrb.mxu3 %v9163_v1  ;;  %v10401_v30 = vld [vmem:[%s10957_s20 + $0xd6c] sm:$0xf0]  ;;  %6366 = vmatpush.bf16.msrb.mxu1 %v8075_v11 }
 0x497   : > { %7049 = vst [vmem:[%s14791_s3 + $0x48] sm:$0xff] %v6921_v37  ;;  %v8587_v37 = vor.u32 %v10273_v57, %v8586_v2  ;;  %v10257_v1 = vld [vmem:[%s10957_s20 + $0x8ec] sm:$0xf0] }
 0x498   : > { %v13734_v51 = vpop.f32.mrf.mxu3  ;;  %v5995_v9 = vpop.f32.mrf.mxu0  ;;  %v9034_v2 = vld [vmem:[%s10957_s20 + $0xcb0] sm:$0xf] }
 0x499   : > { %v5996_v42 = vadd.f32 %v5995_v9, %v5967_v55  ;;  %v7562_v55 = vld [vmem:[%s10957_s20 + $0x130] sm:$0xf]  ;;  %6395 = vmatpush.bf16.msrb.mxu2 %v8587_v37 }
 0x49a   : > { %v7563_v21 = vor.u32 %v10017_v23, %v7562_v55  ;;  %v10385_v19 = vld [vmem:[%s10957_s20 + $0xcec] sm:$0xf0] }
 0x49b   : > { %v6025_v25 = vadd.f32 %v6024_v7, %v5996_v42  ;;  %v537_v42 = vld [vmem:[%s14791_s3 + $0x148] sm:$0xff]  ;;  %v9099_v7 = vor.u32 %v10401_v30, %v9098_v49  ;;  %v8010_v55 = vld [vmem:[%s10957_s20 + $0x4b0] sm:$0xf] }
 0x49c   : > { %6337 = vmatpush.bf16.msrb.mxu0 %v7563_v21  ;;  %v10129_v23 = vld [vmem:[%s10957_s20 + $0x4ec] sm:$0xf0]  ;;  %v553_v49 = vld [vmem:[%s14791_s3 + $0x1c8] sm:$0xff]  ;;  %v5946_v21 = vadd.f32 %v13633_v24, %v13619_v46 }
 0x49d   : > { %v6937_v44 = vadd.f32 %v6025_v25, %v521_v20  ;;  %6424 = vmatpush.bf16.msrb.mxu3 %v9099_v7  ;;  %v8522_v20 = vld [vmem:[%s10957_s20 + $0x8b0] sm:$0xf] }
 0x49e   : > { %v13751_v33 = vpop.f32.mrf.mxu2  ;;  %v6027_v48 = vpop.f32.mrf.mxu1  ;;  %v8523_v25 = vor.u32 %v10257_v1, %v8522_v20  ;;  %v5975_v52 = vadd.f32 %v13638_v40, %v5946_v21  ;;  %v8458_v7 = vld [vmem:[%s10957_s20 + $0x830] sm:$0xf] }
 0x49f   : > { %7065 = vst [vmem:[%s14791_s3 + $0xc8] sm:$0xff] %v6937_v44  ;;  %v7498_v44 = vld [vmem:[%s10957_s20 + $0xb0] sm:$0xf] }
 0x4a0   : > { %v13755_v56 = vpop.f32.mrf.mxu3  ;;  %v5998_v38 = vpop.f32.mrf.mxu0  ;;  %6396 = vmatpush.bf16.msrb.mxu2 %v8523_v25  ;;  %v10241_v11 = vld [vmem:[%s10957_s20 + $0x86c] sm:$0xf0] }
 0x4a1   : > { %v5999_v9 = vadd.f32 %v5998_v38, %v5970_v59  ;;  %6258 = vmatmul.bf16.gmra.mxu1 %v11500_v29  ;;  %v10001_v59 = vld [vmem:[%s10957_s20 + $0xec] sm:$0xf0]  ;;  %v8459_v27 = vor.u32 %v10241_v11, %v8458_v7 }
 0x4a2   : > { %v7499_v37 = vor.u32 %v10001_v59, %v7498_v44  ;;  %v10369_v40 = vld [vmem:[%s10957_s20 + $0xc6c] sm:$0xf0]  ;;  %v569_v59 = vld [vmem:[%s14791_s3 + $0x248] sm:$0xff] }
 0x4a3   : > { %v6028_v5 = vadd.f32 %v6027_v48, %v5999_v9  ;;  %6229 = vmatmul.bf16.gmra.mxu0 %v11498_v28  ;;  %6287 = vmatmul.bf16.gmra.mxu2 %v11504_v34  ;;  %v9035_v9 = vor.u32 %v10385_v19, %v9034_v2  ;;  %v8011_v48 = vor.u32 %v10129_v23, %v8010_v55  ;;  %v7946_v25 = vld [vmem:[%s10957_s20 + $0x430] sm:$0xf]  ;;  %v10217_v55 = vld [vmem:[%s10957_s20 + $0x7b4] sm:$0xf] }
 0x4a4   : > { %6338 = vmatpush.bf16.msrb.mxu0 %v7499_v37  ;;  %v10113_v44 = vld [vmem:[%s10957_s20 + $0x46c] sm:$0xf0]  ;;  %6397 = vmatpush.bf16.msrb.mxu2 %v8459_v27  ;;  %v8396_v23 = vld [vmem:[%s10957_s20 + $0x7f0] sm:$0xf0] }
 0x4a5   : > { %v6953_v0 = vadd.f32 %v6028_v5, %v537_v42  ;;  %6316 = vmatmul.bf16.gmra.mxu3 %v11628_v3  ;;  %6367 = vmatpush.bf16.msrb.mxu1 %v8011_v48  ;;  %v7434_v5 = vld [vmem:[%s10957_s20 + $0x30] sm:$0xf] }
 0x4a6   : > { %v13776_v63 = vpop.f32.mrf.mxu2  ;;  %v6029_v38 = vpop.f32.mrf.mxu1  ;;  %6425 = vmatpush.bf16.msrb.mxu3 %v9035_v9  ;;  %v8399_v9 = vor.u32 %v10217_v55, %v8396_v23  ;;  %v10609_v48 = vld [vmem:[%s10957_s20 + $0x13ec] sm:$0xf0] }
 0x4a7   : > { %7081 = vst [vmem:[%s14791_s3 + $0x148] sm:$0xff] %v6953_v0  ;;  %v9985_v0 = vld [vmem:[%s10957_s20 + $0x6c] sm:$0xf0] }
 0x4a8   : > { %v13780_v62 = vpop.f32.mrf.mxu3  ;;  %v6000_v53 = vpop.f32.mrf.mxu0  ;;  %6506 = vmatpush.bf16.msra.mxu2 %v8399_v9  ;;  %v601_v9 = vld [vmem:[%s14791_s3 + $0x348] sm:$0xff] }
 0x4a9   : > { %v6001_v57 = vadd.f32 %v6000_v53, %v5972_v41  ;;  %v8970_v41 = vld [vmem:[%s10957_s20 + $0xc30] sm:$0xf]  ;;  %v7435_v53 = vor.u32 %v9985_v0, %v7434_v5  ;;  %v5951_v5 = vadd.f32 %v13685_v47, %v13669_v12 }
 0x4aa   : > { %v8971_v2 = vor.u32 %v10369_v40, %v8970_v41  ;;  %v10089_v41 = vld [vmem:[%s10957_s20 + $0x3b4] sm:$0xf] }
 0x4ab   : > { %v6030_v30 = vadd.f32 %v6029_v38, %v6001_v57  ;;  %v7947_v57 = vor.u32 %v10113_v44, %v7946_v25  ;;  %v5948_v38 = vadd.f32 %v13657_v6, %v13645_v54  ;;  %6339 = vmatpush.bf16.msrb.mxu0 %v7435_v53  ;;  %v10345_v54 = vld [vmem:[%s10957_s20 + $0xbb4] sm:$0xf]  ;;  %v9866_v44 = vld [vmem:[%s10957_s20 + $0x1330] sm:$0xf] }
 0x4ac   : > { %6426 = vmatpush.bf16.msrb.mxu3 %v8971_v2  ;;  %v8908_v6 = vld [vmem:[%s10957_s20 + $0xbf0] sm:$0xf0] }
 0x4ad   : > { %v6969_v4 = vadd.f32 %v6030_v30, %v553_v49  ;;  %v9930_v49 = vld [vmem:[%s10957_s20 + $0x13b0] sm:$0xf]  ;;  %6368 = vmatpush.bf16.msrb.mxu1 %v7947_v57  ;;  %v5977_v21 = vadd.f32 %v13662_v50, %v5948_v38  ;;  %v585_v50 = vld [vmem:[%s14791_s3 + $0x2c8] sm:$0xff]  ;;  %v8332_v25 = vld [vmem:[%s10957_s20 + $0x770] sm:$0xf0] }
 0x4ae   : > { %v13797_v42 = vpop.f32.mrf.mxu2  ;;  %v6032_v1 = vpop.f32.mrf.mxu1  ;;  %v10329_v38 = vld [vmem:[%s10957_s20 + $0xb34] sm:$0xf] }
 0x4af   : > { %7097 = vst [vmem:[%s14791_s3 + $0x1c8] sm:$0xff] %v6969_v4  ;;  %v9931_v4 = vor.u32 %v10609_v48, %v9930_v49  ;;  %v5953_v48 = vadd.f32 %v13705_v45, %v13695_v13  ;;  %v10313_v13 = vld [vmem:[%s10957_s20 + $0xab4] sm:$0xf] }
 0x4b0   : > { %v13801_v46 = vpop.f32.mrf.mxu3  ;;  %v6003_v24 = vpop.f32.mrf.mxu0  ;;  %v8780_v45 = vld [vmem:[%s10957_s20 + $0xaf0] sm:$0xf0] }
 0x4b1   : > { %v6004_v20 = vadd.f32 %v6003_v24, %v5975_v52  ;;  %6263 = vmatmul.bf16.gmra.mxu1 %v11542_v16  ;;  %v8911_v52 = vor.u32 %v10345_v54, %v8908_v6  ;;  %6448 = vmatpush.bf16.msra.mxu0 %v9931_v4  ;;  %v14804_v6 = vld [vmem:[#allocation9_spill] sm:$0xff] }
 0x4b2   : > { %v7820_v4 = vld [vmem:[%s10957_s20 + $0x370] sm:$0xf0] }
 0x4b3   : > { %v6033_v37 = vadd.f32 %v6032_v1, %v6004_v20  ;;  %6234 = vmatmul.bf16.gmra.mxu0 %v11540_v15  ;;  %6292 = vmatmul.bf16.gmra.mxu2 %v11544_v17  ;;  %v7884_v20 = vld [vmem:[%s10957_s20 + $0x3f0] sm:$0xf0] }
 0x4b4   : > { %6535 = vmatpush.bf16.msra.mxu3 %v8911_v52  ;;  %v10201_v1 = vld [vmem:[%s10957_s20 + $0x734] sm:$0xf]  ;;  %v7887_v40 = vor.u32 %v10089_v41, %v7884_v20  ;;  %v5982_v41 = vadd.f32 %v13710_v10, %v5953_v48 }
 0x4b5   : > { %v6985_v19 = vadd.f32 %v6033_v37, %v569_v59  ;;  %6321 = vmatmul.bf16.gmra.mxu3 %v11652_v43  ;;  %v10593_v59 = vld [vmem:[%s10957_s20 + $0x136c] sm:$0xf0]  ;;  %v8335_v2 = vor.u32 %v10201_v1, %v8332_v25  ;;  %v8844_v37 = vld [vmem:[%s10957_s20 + $0xb70] sm:$0xf0] }
 0x4b6   : > { %v13828_v30 = vpop.f32.mrf.mxu2  ;;  %v6034_v27 = vpop.f32.mrf.mxu1  ;;  %v9867_v57 = vor.u32 %v10593_v59, %v9866_v44  ;;  %6477 = vmatpush.bf16.msra.mxu1 %v7887_v40  ;;  %v8847_v47 = vor.u32 %v10329_v38, %v8844_v37  ;;  %v617_v59 = vld [vmem:[%s14791_s3 + $0x3c8] sm:$0xff]  ;;  %v7756_v38 = vld [vmem:[%s10957_s20 + $0x2f0] sm:$0xf0] }
 0x4b7   : > { %7113 = vst [vmem:[%s14791_s3 + $0x248] sm:$0xff] %v6985_v19  ;;  %v5980_v19 = vadd.f32 %v13690_v18, %v5951_v5  ;;  %6507 = vmatpush.bf16.msra.mxu2 %v8335_v2  ;;  %v10169_v37 = vld [vmem:[%s10957_s20 + $0x634] sm:$0xf] }
 0x4b8   : > { %v13830_v7 = vpop.f32.mrf.mxu3  ;;  %v6005_v11 = vpop.f32.mrf.mxu0  ;;  %6449 = vmatpush.bf16.msra.mxu0 %v9867_v57  ;;  %6536 = vmatpush.bf16.msra.mxu3 %v8847_v47  ;;  %v10057_v57 = vld [vmem:[%s10957_s20 + $0x2b4] sm:$0xf] }
 0x4b9   : > { %v6006_v24 = vadd.f32 %v6005_v11, %v5977_v21  ;;  %v10073_v21 = vld [vmem:[%s10957_s20 + $0x334] sm:$0xf]  ;;  %v7759_v47 = vor.u32 %v10057_v57, %v7756_v38 }
 0x4ba   : > { %v7823_v11 = vor.u32 %v10073_v21, %v7820_v4  ;;  %v8716_v21 = vld [vmem:[%s10957_s20 + $0xa70] sm:$0xf0] }
 0x4bb   : > { %v6035_v0 = vadd.f32 %v6034_v27, %v6006_v24  ;;  %v10185_v24 = vld [vmem:[%s10957_s20 + $0x6b4] sm:$0xf] }
 0x4bc   : > { %v8268_v27 = vld [vmem:[%s10957_s20 + $0x6f0] sm:$0xf0]  ;;  %6478 = vmatpush.bf16.msra.mxu1 %v7823_v11  ;;  %v6081_v11 = vadd.f32 %v13734_v51, %v13730_v39 }
 0x4bd   : > { %v7001_v53 = vadd.f32 %v6035_v0, %v585_v50  ;;  %v9802_v50 = vld [vmem:[%s10957_s20 + $0x12b0] sm:$0xf]  ;;  %v8271_v5 = vor.u32 %v10185_v24, %v8268_v27  ;;  %v10041_v39 = vld [vmem:[%s10957_s20 + $0x234] sm:$0xf] }
 0x4be   : > { %v13849_v12 = vpop.f32.mrf.mxu2  ;;  %v6037_v18 = vpop.f32.mrf.mxu1  ;;  %v10577_v0 = vld [vmem:[%s10957_s20 + $0x12ec] sm:$0xf0]  ;;  %v7692_v51 = vld [vmem:[%s10957_s20 + $0x270] sm:$0xf0] }
 0x4bf   : > { %7129 = vst [vmem:[%s14791_s3 + $0x2c8] sm:$0xff] %v7001_v53  ;;  %v9803_v1 = vor.u32 %v10577_v0, %v9802_v50  ;;  %v8783_v53 = vor.u32 %v10313_v13, %v8780_v45  ;;  %6508 = vmatpush.bf16.msra.mxu2 %v8271_v5  ;;  %v7695_v0 = vor.u32 %v10041_v39, %v7692_v51  ;;  %v10153_v13 = vld [vmem:[%s10957_s20 + $0x5b4] sm:$0xf] }
 0x4c0   : > { %v13851_v55 = vpop.f32.mrf.mxu3  ;;  %v6008_v23 = vpop.f32.mrf.mxu0  ;;  %6479 = vmatpush.bf16.msra.mxu1 %v7759_v47  ;;  %v8140_v45 = vld [vmem:[%s10957_s20 + $0x5f0] sm:$0xf0] }
 0x4c1   : > { %v6009_v49 = vadd.f32 %v6008_v23, %v5980_v19  ;;  %6268 = vmatmul.bf16.gmra.mxu1 %v11578_v60  ;;  %6450 = vmatpush.bf16.msra.mxu0 %v9803_v1  ;;  %v8204_v23 = vld [vmem:[%s10957_s20 + $0x670] sm:$0xf0] }
 0x4c2   : > { %6537 = vmatpush.bf16.msra.mxu3 %v8783_v53  ;;  %v8143_v53 = vor.u32 %v10153_v13, %v8140_v45  ;;  %v8588_v39 = vld [vmem:[%s10957_s20 + $0x970] sm:$0xf0] }
 0x4c3   : > { %v6038_v54 = vadd.f32 %v6037_v18, %v6009_v49  ;;  %6239 = vmatmul.bf16.gmra.mxu0 %v14804_v6  ;;  %6297 = vmatmul.bf16.gmra.mxu2 %v11580_v61  ;;  %v9738_v49 = vld [vmem:[%s10957_s20 + $0x1230] sm:$0xf] }
 0x4c4   : > { %v10561_v18 = vld [vmem:[%s10957_s20 + $0x126c] sm:$0xf0]  ;;  %6480 = vmatpush.bf16.msra.mxu1 %v7695_v0 }
 0x4c5   : > { %v7017_v52 = vadd.f32 %v6038_v54, %v601_v9  ;;  %6326 = vmatmul.bf16.gmra.mxu3 %v11674_v8  ;;  %v8207_v9 = vor.u32 %v10169_v37, %v8204_v23  ;;  %v9739_v48 = vor.u32 %v10561_v18, %v9738_v49  ;;  %v10297_v54 = vld [vmem:[%s10957_s20 + $0xa34] sm:$0xf]  ;;  %v6083_v37 = vadd.f32 %v13755_v56, %v13751_v33 }
 0x4c6   : > { %v13874_v20 = vpop.f32.mrf.mxu2  ;;  %v6039_v10 = vpop.f32.mrf.mxu1  ;;  %v7628_v33 = vld [vmem:[%s10957_s20 + $0x1f0] sm:$0xf0] }
 0x4c7   : > { %7145 = vst [vmem:[%s14791_s3 + $0x348] sm:$0xff] %v7017_v52  ;;  %v8719_v52 = vor.u32 %v10297_v54, %v8716_v21  ;;  %6509 = vmatpush.bf16.msra.mxu2 %v8207_v9  ;;  %6451 = vmatpush.bf16.msra.mxu0 %v9739_v48  ;;  %v10025_v48 = vld [vmem:[%s10957_s20 + $0x1b4] sm:$0xf] }
 0x4c8   : > { %v13876_v40 = vpop.f32.mrf.mxu3  ;;  %v6010_v25 = vpop.f32.mrf.mxu0  ;;  %v7631_v56 = vor.u32 %v10025_v48, %v7628_v33  ;;  %v10137_v54 = vld [vmem:[%s10957_s20 + $0x534] sm:$0xf] }
 0x4c9   : > { %v6011_v44 = vadd.f32 %v6010_v25, %v5982_v41  ;;  %6538 = vmatpush.bf16.msra.mxu3 %v8719_v52  ;;  %v9674_v41 = vld [vmem:[%s10957_s20 + $0x11b0] sm:$0xf]  ;;  %v8076_v21 = vld [vmem:[%s10957_s20 + $0x570] sm:$0xf0] }
 0x4ca   : > { %v10545_v25 = vld [vmem:[%s10957_s20 + $0x11ec] sm:$0xf0]  ;;  %6481 = vmatpush.bf16.msra.mxu1 %v7631_v56 }
 0x4cb   : > { %v6040_v2 = vadd.f32 %v6039_v10, %v6011_v44  ;;  %v10281_v44 = vld [vmem:[%s10957_s20 + $0x9b4] sm:$0xf]  ;;  %v9675_v57 = vor.u32 %v10545_v25, %v9674_v41  ;;  %6510 = vmatpush.bf16.msra.mxu2 %v8143_v53  ;;  %v9610_v52 = vld [vmem:[%s10957_s20 + $0x1130] sm:$0xf]  ;;  %v6086_v41 = vadd.f32 %v13780_v62, %v13776_v63 }
 0x4cc   : > { %v8652_v10 = vld [vmem:[%s10957_s20 + $0x9f0] sm:$0xf0] }
 0x4cd   : > { %v7033_v19 = vadd.f32 %v6040_v2, %v617_v59  ;;  %v506_v59 = vld [vmem:[%s14791_s3 + $0x50] sm:$0xff]  ;;  %v8655_v38 = vor.u32 %v10281_v44, %v8652_v10  ;;  %6452 = vmatpush.bf16.msra.mxu0 %v9675_v57 }
 0x4ce   : > { %v13892_v4 = vpop.f32.mrf.mxu2  ;;  %v6138_v50 = vpop.f32.mrf.mxu1  ;;  %v522_v51 = vld [vmem:[%s14791_s3 + $0xd0] sm:$0xff] }
 0x4cf   : > { %7161 = vst [vmem:[%s14791_s3 + $0x3c8] sm:$0xff] %v7033_v19  ;;  %6539 = vmatpush.bf16.msra.mxu3 %v8655_v38  ;;  %v10009_v63 = vld [vmem:[%s10957_s20 + $0x134] sm:$0xf] }
 0x4d0   : > { %v13896_v24 = vpop.f32.mrf.mxu3  ;;  %v6109_v27 = vpop.f32.mrf.mxu0  ;;  %v7564_v62 = vld [vmem:[%s10957_s20 + $0x170] sm:$0xf0] }
 0x4d1   : > { %v6110_v5 = vadd.f32 %v6109_v27, %v6081_v11  ;;  %6369 = vmatmul.bf16.vlgmr.msrb.gmra.mxu1 %v11446_v31  ;;  %v8079_v27 = vor.u32 %v10137_v54, %v8076_v21  ;;  %v10121_v57 = vld [vmem:[%s10957_s20 + $0x4b4] sm:$0xf]  ;;  %v6088_v21 = vadd.f32 %v13801_v46, %v13797_v42 }
 0x4d2   : > { %v8012_v38 = vld [vmem:[%s10957_s20 + $0x4f0] sm:$0xf0] }
 0x4d3   : > { %6340 = vmatmul.bf16.vlgmr.msrb.gmra.mxu0 %v11441_v26  ;;  %6398 = vmatmul.bf16.vlgmr.msrb.gmra.mxu2 %v11448_v32  ;;  %v6139_v1 = vadd.f32 %v6138_v50, %v6110_v5  ;;  %v10529_v50 = vld [vmem:[%s10957_s20 + $0x116c] sm:$0xf0]  ;;  %v10265_v5 = vld [vmem:[%s10957_s20 + $0x934] sm:$0xf] }
 0x4d4   : > { %v9611_v13 = vor.u32 %v10529_v50, %v9610_v52  ;;  %v8591_v45 = vor.u32 %v10265_v5, %v8588_v39  ;;  %6511 = vmatpush.bf16.msra.mxu2 %v8079_v27  ;;  %v538_v48 = vld [vmem:[%s14791_s3 + $0x150] sm:$0xff] }
 0x4d5   : > { %6427 = vmatmul.bf16.vlgmr.msrb.gmra.mxu3 %v11452_v35  ;;  %v10105_v46 = vld [vmem:[%s10957_s20 + $0x434] sm:$0xf] }
 0x4d6   : > { %v6167_v2 = vpop.f32.mrf.mxu2  ;;  %v6140_v49 = vpop.f32.mrf.mxu1  ;;  %6453 = vmatpush.bf16.msra.mxu0 %v9611_v13  ;;  %6540 = vmatpush.bf16.msra.mxu3 %v8591_v45  ;;  %v7948_v13 = vld [vmem:[%s10957_s20 + $0x470] sm:$0xf0] }
 0x4d7   : > { %v6168_v19 = vadd.f32 %v6167_v2, %v6139_v1  ;;  %v7567_v2 = vor.u32 %v10009_v63, %v7564_v62  ;;  %v7951_v45 = vor.u32 %v10105_v46, %v7948_v13  ;;  %v554_v63 = vld [vmem:[%s14791_s3 + $0x1d0] sm:$0xff] }
 0x4d8   : > { %v13915_v47 = vpop.f32.mrf.mxu3  ;;  %v6111_v23 = vpop.f32.mrf.mxu0 }
 0x4d9   : > { %v6922_v18 = vadd.f32 %v6168_v19, %v506_v59  ;;  %v6112_v9 = vadd.f32 %v6111_v23, %v6083_v37  ;;  %v9546_v37 = vld [vmem:[%s10957_s20 + $0x10b0] sm:$0xf]  ;;  %v8015_v23 = vor.u32 %v10121_v57, %v8012_v38  ;;  %6482 = vmatpush.bf16.msra.mxu1 %v7567_v2  ;;  %v9977_v57 = vld [vmem:[%s10957_s20 + $0x34] sm:$0xf] }
 0x4da   : > { %v7436_v38 = vld [vmem:[%s10957_s20 + $0x70] sm:$0xf0] }
 0x4db   : > { %7050 = vst [vmem:[%s14791_s3 + $0x50] sm:$0xff] %v6922_v18  ;;  %v6141_v11 = vadd.f32 %v6140_v49, %v6112_v9  ;;  %v10513_v49 = vld [vmem:[%s10957_s20 + $0x10ec] sm:$0xf0]  ;;  %v10249_v18 = vld [vmem:[%s10957_s20 + $0x8b4] sm:$0xf]  ;;  %6512 = vmatpush.bf16.msra.mxu2 %v8015_v23 }
 0x4dc   : > { %v8524_v9 = vld [vmem:[%s10957_s20 + $0x8f0] sm:$0xf0]  ;;  %v9547_v56 = vor.u32 %v10513_v49, %v9546_v37  ;;  %v6091_v37 = vadd.f32 %v13830_v7, %v13828_v30  ;;  %v7890_v30 = vld [vmem:[%s10957_s20 + $0x3b8] sm:$0xf] }
 0x4dd   : > { %v8527_v54 = vor.u32 %v10249_v18, %v8524_v9  ;;  %v7439_v18 = vor.u32 %v9977_v57, %v7436_v38  ;;  %v10098_v7 = vld [vmem:[%s10957_s20 + $0x3f4] sm:$0xf0]  ;;  %v10457_v57 = vld [vmem:[%s10957_s20 + $0xf34] sm:$0xf] }
 0x4de   : > { %v6169_v0 = vpop.f32.mrf.mxu2  ;;  %v6143_v44 = vpop.f32.mrf.mxu1  ;;  %6454 = vmatpush.bf16.msra.mxu0 %v9547_v56  ;;  %v10473_v56 = vld [vmem:[%s10957_s20 + $0xfb4] sm:$0xf] }
 0x4df   : > { %v6170_v1 = vadd.f32 %v6169_v0, %v6141_v11  ;;  %6541 = vmatpush.bf16.msra.mxu3 %v8527_v54  ;;  %v7500_v0 = vld [vmem:[%s10957_s20 + $0xf0] sm:$0xf0]  ;;  %6513 = vmatpush.bf16.msra.mxu2 %v7951_v45 }
 0x4e0   : > { %v13933_v53 = vpop.f32.mrf.mxu3  ;;  %v6114_v25 = vpop.f32.mrf.mxu0  ;;  %v9356_v38 = vld [vmem:[%s10957_s20 + $0xf70] sm:$0xf0] }
 0x4e1   : > { %v6938_v10 = vadd.f32 %v6170_v1, %v522_v51  ;;  %v6115_v59 = vadd.f32 %v6114_v25, %v6086_v41  ;;  %6374 = vmatmul.bf16.gmra.mxu1 %v11498_v28  ;;  %v9993_v51 = vld [vmem:[%s10957_s20 + $0xb4] sm:$0xf]  ;;  %v9482_v41 = vld [vmem:[%s10957_s20 + $0x1030] sm:$0xf] }
 0x4e2   : > { %v7503_v42 = vor.u32 %v9993_v51, %v7500_v0  ;;  %v10497_v1 = vld [vmem:[%s10957_s20 + $0x106c] sm:$0xf0]  ;;  %v10233_v25 = vld [vmem:[%s10957_s20 + $0x834] sm:$0xf] }
 0x4e3   : > { %6345 = vmatmul.bf16.gmra.mxu0 %v11493_v22  ;;  %7066 = vst [vmem:[%s14791_s3 + $0xd0] sm:$0xff] %v6938_v10  ;;  %6403 = vmatmul.bf16.gmra.mxu2 %v11500_v29  ;;  %v6144_v19 = vadd.f32 %v6143_v44, %v6115_v59  ;;  %v9483_v10 = vor.u32 %v10497_v1, %v9482_v41  ;;  %v8460_v59 = vld [vmem:[%s10957_s20 + $0x870] sm:$0xf0] }
 0x4e4   : > { %6483 = vmatpush.bf16.msra.mxu1 %v7503_v42  ;;  %v8463_v2 = vor.u32 %v10233_v25, %v8460_v59  ;;  %v6093_v42 = vadd.f32 %v13851_v55, %v13849_v12  ;;  %v586_v12 = vld [vmem:[%s14791_s3 + $0x2d0] sm:$0xff]  ;;  %v7826_v59 = vld [vmem:[%s10957_s20 + $0x338] sm:$0xf] }
 0x4e5   : > { %6432 = vmatmul.bf16.gmra.mxu3 %v11504_v34  ;;  %6455 = vmatpush.bf16.msra.mxu0 %v9483_v10  ;;  %v9932_v10 = vld [vmem:[%s10957_s20 + $0x13f0] sm:$0xf0] }
 0x4e6   : > { %v6172_v33 = vpop.f32.mrf.mxu2  ;;  %v6145_v50 = vpop.f32.mrf.mxu1  ;;  %6542 = vmatpush.bf16.msra.mxu3 %v8463_v2  ;;  %v10082_v2 = vld [vmem:[%s10957_s20 + $0x374] sm:$0xf0] }
 0x4e7   : > { %v6173_v52 = vadd.f32 %v6172_v33, %v6144_v19 }
 0x4e8   : > { %v13955_v11 = vpop.f32.mrf.mxu3  ;;  %v6116_v27 = vpop.f32.mrf.mxu0  ;;  %6484 = vmatpush.bf16.msra.mxu1 %v7439_v18 }
 0x4e9   : > { %v6954_v5 = vadd.f32 %v6173_v52, %v538_v48  ;;  %v6117_v39 = vadd.f32 %v6116_v27, %v6088_v21  ;;  %v7891_v21 = vor.u32 %v10098_v7, %v7890_v30  ;;  %v9420_v52 = vld [vmem:[%s10957_s20 + $0xff0] sm:$0xf0]  ;;  %v8402_v27 = vld [vmem:[%s10957_s20 + $0x7b8] sm:$0xf] }
 0x4ea   : > { %v9423_v51 = vor.u32 %v10473_v56, %v9420_v52  ;;  %v10210_v30 = vld [vmem:[%s10957_s20 + $0x774] sm:$0xf0]  ;;  %v10585_v52 = vld [vmem:[%s10957_s20 + $0x1334] sm:$0xf] }
 0x4eb   : > { %7082 = vst [vmem:[%s14791_s3 + $0x150] sm:$0xff] %v6954_v5  ;;  %v6146_v44 = vadd.f32 %v6145_v50, %v6117_v39  ;;  %v10226_v50 = vld [vmem:[%s10957_s20 + $0x7f4] sm:$0xf0]  ;;  %v570_v5 = vld [vmem:[%s14791_s3 + $0x250] sm:$0xff]  ;;  %6622 = vmatpush.bf16.msrb.mxu2 %v7891_v21 }
 0x4ec   : > { %v8403_v0 = vor.u32 %v10226_v50, %v8402_v27  ;;  %6564 = vmatpush.bf16.msrb.mxu0 %v9423_v51  ;;  %v9868_v27 = vld [vmem:[%s10957_s20 + $0x1370] sm:$0xf0]  ;;  %v7762_v50 = vld [vmem:[%s10957_s20 + $0x2b8] sm:$0xf] }
 0x4ed   : > { %v10066_v51 = vld [vmem:[%s10957_s20 + $0x2f4] sm:$0xf0] }
 0x4ee   : > { %v6174_v62 = vpop.f32.mrf.mxu2  ;;  %v6148_v9 = vpop.f32.mrf.mxu1  ;;  %6651 = vmatpush.bf16.msrb.mxu3 %v8403_v0  ;;  %v10441_v0 = vld [vmem:[%s10957_s20 + $0xeb4] sm:$0xf] }
 0x4ef   : > { %v6175_v19 = vadd.f32 %v6174_v62, %v6146_v44  ;;  %v10601_v44 = vld [vmem:[%s10957_s20 + $0x13b4] sm:$0xf] }
 0x4f0   : > { %v13975_v23 = vpop.f32.mrf.mxu3  ;;  %v6119_v49 = vpop.f32.mrf.mxu0  ;;  %v9935_v62 = vor.u32 %v10601_v44, %v9932_v10  ;;  %v10194_v44 = vld [vmem:[%s10957_s20 + $0x6f4] sm:$0xf0] }
 0x4f1   : > { %v6970_v48 = vadd.f32 %v6175_v19, %v554_v63  ;;  %v6120_v33 = vadd.f32 %v6119_v49, %v6091_v37  ;;  %6379 = vmatmul.bf16.gmra.mxu1 %v11540_v15  ;;  %v6096_v37 = vadd.f32 %v13876_v40, %v13874_v20  ;;  %v602_v20 = vld [vmem:[%s14791_s3 + $0x350] sm:$0xff] }
 0x4f2   : > { %6593 = vmatpush.bf16.msrb.mxu1 %v9935_v62 }
 0x4f3   : > { %6350 = vmatmul.bf16.gmra.mxu0 %v11538_v14  ;;  %7098 = vst [vmem:[%s14791_s3 + $0x1d0] sm:$0xff] %v6970_v48  ;;  %6408 = vmatmul.bf16.gmra.mxu2 %v11542_v16  ;;  %v6149_v54 = vadd.f32 %v6148_v9, %v6120_v33  ;;  %v7827_v9 = vor.u32 %v10082_v2, %v7826_v59  ;;  %v8338_v33 = vld [vmem:[%s10957_s20 + $0x738] sm:$0xf]  ;;  %v10569_v2 = vld [vmem:[%s10957_s20 + $0x12b4] sm:$0xf] }
 0x4f4   : > { %v9359_v48 = vor.u32 %v10457_v57, %v9356_v38  ;;  %v8339_v56 = vor.u32 %v10210_v30, %v8338_v33  ;;  %v9804_v57 = vld [vmem:[%s10957_s20 + $0x12f0] sm:$0xf0]  ;;  %v7698_v38 = vld [vmem:[%s10957_s20 + $0x238] sm:$0xf] }
 0x4f5   : > { %6437 = vmatmul.bf16.gmra.mxu3 %v11544_v17  ;;  %6623 = vmatpush.bf16.msrb.mxu2 %v7827_v9  ;;  %v10425_v9 = vld [vmem:[%s10957_s20 + $0xe34] sm:$0xf] }
 0x4f6   : > { %v6177_v39 = vpop.f32.mrf.mxu2  ;;  %v6150_v41 = vpop.f32.mrf.mxu1  ;;  %6565 = vmatpush.bf16.msrb.mxu0 %v9359_v48  ;;  %6652 = vmatpush.bf16.msrb.mxu3 %v8339_v56  ;;  %v9228_v48 = vld [vmem:[%s10957_s20 + $0xe70] sm:$0xf0] }
 0x4f7   : > { %v6178_v46 = vadd.f32 %v6177_v39, %v6149_v54  ;;  %v9871_v39 = vor.u32 %v10585_v52, %v9868_v27 }
 0x4f8   : > { %v13995_v13 = vpop.f32.mrf.mxu3  ;;  %v6121_v45 = vpop.f32.mrf.mxu0 }
 0x4f9   : > { %v6986_v1 = vadd.f32 %v6178_v46, %v570_v5  ;;  %v6122_v25 = vadd.f32 %v6121_v45, %v6093_v42  ;;  %v9292_v42 = vld [vmem:[%s10957_s20 + $0xef0] sm:$0xf0]  ;;  %v6098_v46 = vadd.f32 %v13896_v24, %v13892_v4  ;;  %6594 = vmatpush.bf16.msrb.mxu1 %v9871_v39 }
 0x4fa   : > { %v618_v4 = vld [vmem:[%s14791_s3 + $0x3d0] sm:$0xff] }
 0x4fb   : > { %7114 = vst [vmem:[%s14791_s3 + $0x250] sm:$0xff] %v6986_v1  ;;  %v6151_v55 = vadd.f32 %v6150_v41, %v6122_v25  ;;  %v7763_v25 = vor.u32 %v10066_v51, %v7762_v50  ;;  %v9740_v39 = vld [vmem:[%s10957_s20 + $0x1270] sm:$0xf0]  ;;  %v7634_v51 = vld [vmem:[%s10957_s20 + $0x1b8] sm:$0xf] }
 0x4fd   : > { %6624 = vmatpush.bf16.msrb.mxu2 %v7763_v25 }
 0x4fe   : > { %v6179_v63 = vpop.f32.mrf.mxu2  ;;  %v6153_v7 = vpop.f32.mrf.mxu1 }
 0x4ff   : > { %v6180_v19 = vadd.f32 %v6179_v63, %v6151_v55  ;;  %v8274_v55 = vld [vmem:[%s10957_s20 + $0x6b8] sm:$0xf] }
 0x500   : > { %v14011_v49 = vpop.f32.mrf.mxu3  ;;  %v6124_v18 = vpop.f32.mrf.mxu0  ;;  %v8275_v59 = vor.u32 %v10194_v44, %v8274_v55 }
 0x501   : > { %v7002_v54 = vadd.f32 %v6180_v19, %v586_v12  ;;  %v6125_v21 = vadd.f32 %v6124_v18, %v6096_v37  ;;  %6384 = vmatmul.bf16.gmra.mxu1 %v14804_v6  ;;  %v9295_v12 = vor.u32 %v10441_v0, %v9292_v42  ;;  %v9807_v19 = vor.u32 %v10569_v2, %v9804_v57  ;;  %v10050_v18 = vld [vmem:[%s10957_s20 + $0x274] sm:$0xf0] }
 0x502   : > { %6653 = vmatpush.bf16.msrb.mxu3 %v8275_v59  ;;  %v7699_v56 = vor.u32 %v10050_v18, %v7698_v38  ;;  %v8146_v59 = vld [vmem:[%s10957_s20 + $0x5b8] sm:$0xf]  ;;  %v9676_v18 = vld [vmem:[%s10957_s20 + $0x11f0] sm:$0xf0] }
 0x503   : > { %6355 = vmatmul.bf16.gmra.mxu0 %v11574_v58  ;;  %7130 = vst [vmem:[%s14791_s3 + $0x2d0] sm:$0xff] %v7002_v54  ;;  %6413 = vmatmul.bf16.gmra.mxu2 %v11578_v60  ;;  %v6154_v40 = vadd.f32 %v6153_v7, %v6125_v21  ;;  %v9231_v54 = vor.u32 %v10425_v9, %v9228_v48  ;;  %v8210_v21 = vld [vmem:[%s10957_s20 + $0x638] sm:$0xf] }
 0x504   : > { %6566 = vmatpush.bf16.msrb.mxu0 %v9295_v12  ;;  %6595 = vmatpush.bf16.msrb.mxu1 %v9807_v19  ;;  %v10537_v19 = vld [vmem:[%s10957_s20 + $0x11b4] sm:$0xf] }
 0x505   : > { %6442 = vmatmul.bf16.gmra.mxu3 %v11580_v61  ;;  %6625 = vmatpush.bf16.msrb.mxu2 %v7699_v56  ;;  %v9679_v48 = vor.u32 %v10537_v19, %v9676_v18  ;;  %v10393_v56 = vld [vmem:[%s10957_s20 + $0xd34] sm:$0xf] }
 0x506   : > { %v6182_v5 = vpop.f32.mrf.mxu2  ;;  %v6155_v10 = vpop.f32.mrf.mxu1 }
 0x507   : > { %v6183_v45 = vadd.f32 %v6182_v5, %v6154_v40  ;;  %v10553_v5 = vld [vmem:[%s10957_s20 + $0x1234] sm:$0xf] }
 0x508   : > { %v14033_v41 = vpop.f32.mrf.mxu3  ;;  %v6126_v1 = vpop.f32.mrf.mxu0  ;;  %6567 = vmatpush.bf16.msrb.mxu0 %v9231_v54  ;;  %v9743_v42 = vor.u32 %v10553_v5, %v9740_v39 }
 0x509   : > { %v7018_v63 = vadd.f32 %v6183_v45, %v602_v20  ;;  %v6127_v62 = vadd.f32 %v6126_v1, %v6098_v46  ;;  %v10178_v20 = vld [vmem:[%s10957_s20 + $0x674] sm:$0xf0]  ;;  %v10409_v45 = vld [vmem:[%s10957_s20 + $0xdb4] sm:$0xf] }
 0x50a   : > { %v8211_v52 = vor.u32 %v10178_v20, %v8210_v21  ;;  %v10034_v46 = vld [vmem:[%s10957_s20 + $0x1f4] sm:$0xf0]  ;;  %v9164_v1 = vld [vmem:[%s10957_s20 + $0xdf0] sm:$0xf0]  ;;  %6596 = vmatpush.bf16.msrb.mxu1 %v9743_v42 }
 0x50b   : > { %7146 = vst [vmem:[%s14791_s3 + $0x350] sm:$0xff] %v7018_v63  ;;  %v6156_v24 = vadd.f32 %v6155_v10, %v6127_v62  ;;  %v7635_v44 = vor.u32 %v10034_v46, %v7634_v51  ;;  %v9167_v10 = vor.u32 %v10409_v45, %v9164_v1  ;;  %v10162_v63 = vld [vmem:[%s10957_s20 + $0x5f4] sm:$0xf0]  ;;  %v10521_v46 = vld [vmem:[%s10957_s20 + $0x1134] sm:$0xf] }
 0x50c   : > { %6654 = vmatpush.bf16.msrb.mxu3 %v8211_v52  ;;  %v507_v62 = vld [vmem:[%s14791_s3 + $0x58] sm:$0xff]  ;;  %v9612_v45 = vld [vmem:[%s10957_s20 + $0x1170] sm:$0xf0] }
 0x50d   : > { %6626 = vmatpush.bf16.msrb.mxu2 %v7635_v44  ;;  %6568 = vmatpush.bf16.msrb.mxu0 %v9167_v10  ;;  %v8082_v52 = vld [vmem:[%s10957_s20 + $0x538] sm:$0xf]  ;;  %v10377_v44 = vld [vmem:[%s10957_s20 + $0xcb4] sm:$0xf] }
 0x50e   : > { %v6184_v37 = vpop.f32.mrf.mxu2  ;;  %v6254_v40 = vpop.f32.mrf.mxu1  ;;  %6597 = vmatpush.bf16.msrb.mxu1 %v9679_v48  ;;  %v10505_v48 = vld [vmem:[%s10957_s20 + $0x10b4] sm:$0xf] }
 0x50f   : > { %v6185_v33 = vadd.f32 %v6184_v37, %v6156_v24  ;;  %v8147_v24 = vor.u32 %v10162_v63, %v8146_v59 }
 0x510   : > { %v14049_v30 = vpop.f32.mrf.mxu3  ;;  %v6225_v7 = vpop.f32.mrf.mxu0 }
 0x511   : > { %v7034_v27 = vadd.f32 %v6185_v33, %v618_v4  ;;  %v6226_v50 = vadd.f32 %v6225_v7, %v13915_v47  ;;  %6485 = vmatmul.bf16.vlgmr.msra.gmra.mxu1 %v11441_v26  ;;  %6655 = vmatpush.bf16.msrb.mxu3 %v8147_v24  ;;  %v7570_v33 = vld [vmem:[%s10957_s20 + $0x138] sm:$0xf] }
 0x512   : > { %v10018_v7 = vld [vmem:[%s10957_s20 + $0x174] sm:$0xf0] }
 0x513   : > { %6456 = vmatmul.bf16.vlgmr.msra.gmra.mxu0 %v11604_v36  ;;  %7162 = vst [vmem:[%s14791_s3 + $0x3d0] sm:$0xff] %v7034_v27  ;;  %6514 = vmatmul.bf16.vlgmr.msra.gmra.mxu2 %v11446_v31  ;;  %v6255_v47 = vadd.f32 %v6254_v40, %v6226_v50  ;;  %v7571_v20 = vor.u32 %v10018_v7, %v7570_v33  ;;  %v9100_v40 = vld [vmem:[%s10957_s20 + $0xd70] sm:$0xf0]  ;;  %v10146_v27 = vld [vmem:[%s10957_s20 + $0x574] sm:$0xf0] }
 0x514   : > { %v523_v50 = vld [vmem:[%s14791_s3 + $0xd8] sm:$0xff]  ;;  %v9103_v5 = vor.u32 %v10393_v56, %v9100_v40  ;;  %v8083_v39 = vor.u32 %v10146_v27, %v8082_v52  ;;  %v9548_v33 = vld [vmem:[%s10957_s20 + $0x10f0] sm:$0xf0] }
 0x515   : > { %6543 = vmatmul.bf16.vlgmr.msra.gmra.mxu3 %v11448_v32  ;;  %6627 = vmatpush.bf16.msrb.mxu2 %v7571_v20  ;;  %v8018_v24 = vld [vmem:[%s10957_s20 + $0x4b8] sm:$0xf]  ;;  %v9551_v56 = vor.u32 %v10505_v48, %v9548_v33  ;;  %v10361_v40 = vld [vmem:[%s10957_s20 + $0xc34] sm:$0xf] }
 0x516   : > { %v6283_v0 = vpop.f32.mrf.mxu2  ;;  %v6256_v4 = vpop.f32.mrf.mxu1  ;;  %6656 = vmatpush.bf16.msrb.mxu3 %v8083_v39  ;;  %6569 = vmatpush.bf16.msrb.mxu0 %v9103_v5  ;;  %v8972_v52 = vld [vmem:[%s10957_s20 + $0xc70] sm:$0xf0]  ;;  %v7954_v27 = vld [vmem:[%s10957_s20 + $0x438] sm:$0xf] }
 0x517   : > { %v6284_v25 = vadd.f32 %v6283_v0, %v6255_v47  ;;  %v8975_v39 = vor.u32 %v10361_v40, %v8972_v52  ;;  %v10338_v40 = vld [vmem:[%s10957_s20 + $0xb74] sm:$0xf0] }
 0x518   : > { %v6312_v12 = vpop.f32.mrf.mxu3  ;;  %v6227_v55 = vpop.f32.mrf.mxu0 }
 0x519   : > { %v6313_v2 = vadd.f32 %v6312_v12, %v6284_v25  ;;  %v6228_v57 = vadd.f32 %v6227_v55, %v13933_v53  ;;  %v9615_v25 = vor.u32 %v10521_v46, %v9612_v45  ;;  %v7506_v12 = vld [vmem:[%s10957_s20 + $0xb8] sm:$0xf]  ;;  %v9484_v45 = vld [vmem:[%s10957_s20 + $0x1070] sm:$0xf0] }
 0x51a   : > { %v10002_v55 = vld [vmem:[%s10957_s20 + $0xf4] sm:$0xf0] }
 0x51b   : > { %v6923_v38 = vadd.f32 %v6313_v2, %v507_v62  ;;  %v6257_v37 = vadd.f32 %v6256_v4, %v6228_v57  ;;  %v7507_v62 = vor.u32 %v10002_v55, %v7506_v12  ;;  %v9036_v4 = vld [vmem:[%s10957_s20 + $0xcf0] sm:$0xf0]  ;;  %v10130_v2 = vld [vmem:[%s10957_s20 + $0x4f4] sm:$0xf0]  ;;  %6598 = vmatpush.bf16.msrb.mxu1 %v9615_v25 }
 0x51c   : > { %v539_v57 = vld [vmem:[%s14791_s3 + $0x158] sm:$0xff]  ;;  %v8019_v19 = vor.u32 %v10130_v2, %v8018_v24 }
 0x51d   : > { %7051 = vst [vmem:[%s14791_s3 + $0x58] sm:$0xff] %v6923_v38  ;;  %6628 = vmatpush.bf16.msrb.mxu2 %v7507_v62  ;;  %v8914_v62 = vld [vmem:[%s10957_s20 + $0xbb8] sm:$0xf]  ;;  %v10090_v24 = vld [vmem:[%s10957_s20 + $0x3bc] sm:$0xf] }
 0x51e   : > { %v6285_v9 = vpop.f32.mrf.mxu2  ;;  %v6259_v47 = vpop.f32.mrf.mxu1  ;;  %6657 = vmatpush.bf16.msrb.mxu3 %v8019_v19  ;;  %v7892_v19 = vld [vmem:[%s10957_s20 + $0x3f8] sm:$0xf0] }
 0x51f   : > { %v6286_v53 = vadd.f32 %v6285_v9, %v6257_v37  ;;  %v9039_v37 = vor.u32 %v10377_v44, %v9036_v4  ;;  %6599 = vmatpush.bf16.msrb.mxu1 %v9551_v56  ;;  %v9938_v44 = vld [vmem:[%s10957_s20 + $0x13b8] sm:$0xf]  ;;  %v7895_v48 = vor.u32 %v10090_v24, %v7892_v19  ;;  %v10058_v24 = vld [vmem:[%s10957_s20 + $0x2bc] sm:$0xf] }
 0x520   : > { %v6314_v54 = vpop.f32.mrf.mxu3  ;;  %v6230_v21 = vpop.f32.mrf.mxu0  ;;  %v10354_v4 = vld [vmem:[%s10957_s20 + $0xbf4] sm:$0xf0] }
 0x521   : > { %v6315_v51 = vadd.f32 %v6314_v54, %v6286_v53  ;;  %v6231_v0 = vadd.f32 %v6230_v21, %v13955_v11  ;;  %6490 = vmatmul.bf16.gmra.mxu1 %v11493_v22  ;;  %6570 = vmatpush.bf16.msrb.mxu0 %v9039_v37  ;;  %v7442_v54 = vld [vmem:[%s10957_s20 + $0x38] sm:$0xf]  ;;  %v8915_v37 = vor.u32 %v10354_v4, %v8914_v62 }
 0x522   : > { %v9986_v21 = vld [vmem:[%s10957_s20 + $0x74] sm:$0xf0] }
 0x523   : > { %6461 = vmatmul.bf16.gmra.mxu0 %v11628_v3  ;;  %v6939_v42 = vadd.f32 %v6315_v51, %v523_v50  ;;  %6519 = vmatmul.bf16.gmra.mxu2 %v11498_v28  ;;  %v6260_v11 = vadd.f32 %v6259_v47, %v6231_v0  ;;  %v7443_v20 = vor.u32 %v9986_v21, %v7442_v54  ;;  %v10114_v51 = vld [vmem:[%s10957_s20 + $0x474] sm:$0xf0]  ;;  %v10489_v0 = vld [vmem:[%s10957_s20 + $0x1034] sm:$0xf] }
 0x524   : > { %v7955_v46 = vor.u32 %v10114_v51, %v7954_v27  ;;  %v9487_v12 = vor.u32 %v10489_v0, %v9484_v45  ;;  %v9426_v56 = vld [vmem:[%s10957_s20 + $0xfb8] sm:$0xf] }
 0x525   : > { %6548 = vmatmul.bf16.gmra.mxu3 %v11500_v29  ;;  %7067 = vst [vmem:[%s14791_s3 + $0xd8] sm:$0xff] %v6939_v42  ;;  %v555_v42 = vld [vmem:[%s14791_s3 + $0x1d8] sm:$0xff]  ;;  %6629 = vmatpush.bf16.msrb.mxu2 %v7443_v20 }
 0x526   : > { %v6288_v1 = vpop.f32.mrf.mxu2  ;;  %v6261_v38 = vpop.f32.mrf.mxu1  ;;  %6571 = vmatpush.bf16.msrb.mxu0 %v8975_v39  ;;  %6658 = vmatpush.bf16.msrb.mxu3 %v7955_v46  ;;  %v9874_v54 = vld [vmem:[%s10957_s20 + $0x1338] sm:$0xf] }
 0x527   : > { %v6289_v10 = vadd.f32 %v6288_v1, %v6260_v11  ;;  %6600 = vmatpush.bf16.msrb.mxu1 %v9487_v12  ;;  %v8850_v20 = vld [vmem:[%s10957_s20 + $0xb38] sm:$0xf] }
 0x528   : > { %v6317_v59 = vpop.f32.mrf.mxu3  ;;  %v6232_v63 = vpop.f32.mrf.mxu0  ;;  %v587_v46 = vld [vmem:[%s14791_s3 + $0x2d8] sm:$0xff] }
 0x529   : > { %v6318_v18 = vadd.f32 %v6317_v59, %v6289_v10  ;;  %v6233_v9 = vadd.f32 %v6232_v63, %v13975_v23  ;;  %v10610_v10 = vld [vmem:[%s10957_s20 + $0x13f4] sm:$0xf0] }
 0x52a   : > { %v9939_v63 = vor.u32 %v10610_v10, %v9938_v44  ;;  %6680 = vmatpush.bf16.msra.mxu0 %v8915_v37  ;;  %6767 = vmatpush.bf16.msra.mxu3 %v7895_v48  ;;  %v9362_v12 = vld [vmem:[%s10957_s20 + $0xf38] sm:$0xf] }
 0x52b   : > { %v6955_v7 = vadd.f32 %v6318_v18, %v539_v57  ;;  %v6262_v53 = vadd.f32 %v6261_v38, %v6233_v9  ;;  %v571_v18 = vld [vmem:[%s14791_s3 + $0x258] sm:$0xff] }
 0x52c   : > { %6738 = vmatpush.bf16.msra.mxu2 %v9939_v63  ;;  %v9810_v10 = vld [vmem:[%s10957_s20 + $0x12b8] sm:$0xf] }
 0x52d   : > { %7083 = vst [vmem:[%s14791_s3 + $0x158] sm:$0xff] %v6955_v7  ;;  %v8786_v63 = vld [vmem:[%s10957_s20 + $0xab8] sm:$0xf] }
 0x52e   : > { %v6290_v23 = vpop.f32.mrf.mxu2  ;;  %v6264_v11 = vpop.f32.mrf.mxu1  ;;  %v10322_v4 = vld [vmem:[%s10957_s20 + $0xaf4] sm:$0xf0] }
 0x52f   : > { %v6291_v50 = vadd.f32 %v6290_v23, %v6262_v53  ;;  %v10482_v53 = vld [vmem:[%s10957_s20 + $0xff4] sm:$0xf0] }
 0x530   : > { %v6319_v47 = vpop.f32.mrf.mxu3  ;;  %v6235_v5 = vpop.f32.mrf.mxu0  ;;  %v9427_v21 = vor.u32 %v10482_v53, %v9426_v56  ;;  %v10594_v23 = vld [vmem:[%s10957_s20 + $0x1374] sm:$0xf0] }
 0x531   : > { %v6320_v1 = vadd.f32 %v6319_v47, %v6291_v50  ;;  %v6236_v25 = vadd.f32 %v6235_v5, %v13995_v13  ;;  %6495 = vmatmul.bf16.gmra.mxu1 %v11538_v14  ;;  %v9875_v27 = vor.u32 %v10594_v23, %v9874_v54  ;;  %v8851_v50 = vor.u32 %v10338_v40, %v8850_v20  ;;  %v10074_v47 = vld [vmem:[%s10957_s20 + $0x33c] sm:$0xf]  ;;  %v9298_v53 = vld [vmem:[%s10957_s20 + $0xeb8] sm:$0xf] }
 0x532   : > { %v7828_v5 = vld [vmem:[%s10957_s20 + $0x378] sm:$0xf0]  ;;  %6709 = vmatpush.bf16.msra.mxu1 %v9427_v21  ;;  %v10450_v54 = vld [vmem:[%s10957_s20 + $0xef4] sm:$0xf0] }
 0x533   : > { %6466 = vmatmul.bf16.gmra.mxu0 %v11652_v43  ;;  %v6971_v55 = vadd.f32 %v6320_v1, %v555_v42  ;;  %6524 = vmatmul.bf16.gmra.mxu2 %v11540_v15  ;;  %v6265_v13 = vadd.f32 %v6264_v11, %v6236_v25  ;;  %v7831_v39 = vor.u32 %v10074_v47, %v7828_v5  ;;  %v603_v48 = vld [vmem:[%s14791_s3 + $0x358] sm:$0xff] }
 0x534   : > { %6739 = vmatpush.bf16.msra.mxu2 %v9875_v27  ;;  %6681 = vmatpush.bf16.msra.mxu0 %v8851_v50  ;;  %v9746_v21 = vld [vmem:[%s10957_s20 + $0x1238] sm:$0xf]  ;;  %v9299_v23 = vor.u32 %v10450_v54, %v9298_v53  ;;  %v10042_v5 = vld [vmem:[%s10957_s20 + $0x23c] sm:$0xf] }
 0x535   : > { %6553 = vmatmul.bf16.gmra.mxu3 %v11542_v16  ;;  %7099 = vst [vmem:[%s14791_s3 + $0x1d8] sm:$0xff] %v6971_v55  ;;  %v10466_v55 = vld [vmem:[%s10957_s20 + $0xf74] sm:$0xf0] }
 0x536   : > { %v6293_v59 = vpop.f32.mrf.mxu2  ;;  %v6266_v9 = vpop.f32.mrf.mxu1  ;;  %6768 = vmatpush.bf16.msra.mxu3 %v7831_v39  ;;  %v10562_v20 = vld [vmem:[%s10957_s20 + $0x1274] sm:$0xf0]  ;;  %v7700_v39 = vld [vmem:[%s10957_s20 + $0x278] sm:$0xf0] }
 0x537   : > { %v6294_v2 = vadd.f32 %v6293_v59, %v6265_v13  ;;  %v9363_v13 = vor.u32 %v10466_v55, %v9362_v12  ;;  %v10578_v59 = vld [vmem:[%s10957_s20 + $0x12f4] sm:$0xf0]  ;;  %v9747_v50 = vor.u32 %v10562_v20, %v9746_v21  ;;  %v7572_v20 = vld [vmem:[%s10957_s20 + $0x178] sm:$0xf0] }
 0x538   : > { %v6322_v57 = vpop.f32.mrf.mxu3  ;;  %v6237_v38 = vpop.f32.mrf.mxu0  ;;  %v9811_v62 = vor.u32 %v10578_v59, %v9810_v10  ;;  %v8722_v40 = vld [vmem:[%s10957_s20 + $0xa38] sm:$0xf] }
 0x539   : > { %v6323_v33 = vadd.f32 %v6322_v57, %v6294_v2  ;;  %v6238_v7 = vadd.f32 %v6237_v38, %v14011_v49  ;;  %6710 = vmatpush.bf16.msra.mxu1 %v9363_v13  ;;  %v8787_v57 = vor.u32 %v10322_v4, %v8786_v63  ;;  %v7764_v38 = vld [vmem:[%s10957_s20 + $0x2f8] sm:$0xf0]  ;;  %v10434_v12 = vld [vmem:[%s10957_s20 + $0xe74] sm:$0xf0] }
 0x53a   : > { %6740 = vmatpush.bf16.msra.mxu2 %v9811_v62  ;;  %v10546_v10 = vld [vmem:[%s10957_s20 + $0x11f4] sm:$0xf0]  ;;  %v10026_v62 = vld [vmem:[%s10957_s20 + $0x1bc] sm:$0xf] }
 0x53b   : > { %v6987_v52 = vadd.f32 %v6323_v33, %v571_v18  ;;  %v6267_v49 = vadd.f32 %v6266_v9, %v6238_v7  ;;  %v7767_v9 = vor.u32 %v10058_v24, %v7764_v38  ;;  %6682 = vmatpush.bf16.msra.mxu0 %v8787_v57  ;;  %v8658_v59 = vld [vmem:[%s10957_s20 + $0x9b8] sm:$0xf] }
 0x53c   : > { %v10274_v53 = vld [vmem:[%s10957_s20 + $0x974] sm:$0xf0] }
 0x53d   : > { %7115 = vst [vmem:[%s14791_s3 + $0x258] sm:$0xff] %v6987_v52  ;;  %6769 = vmatpush.bf16.msra.mxu3 %v7767_v9  ;;  %v10306_v52 = vld [vmem:[%s10957_s20 + $0xa74] sm:$0xf0]  ;;  %6711 = vmatpush.bf16.msra.mxu1 %v9299_v23  ;;  %v10010_v23 = vld [vmem:[%s10957_s20 + $0x13c] sm:$0xf] }
 0x53e   : > { %v6295_v51 = vpop.f32.mrf.mxu2  ;;  %v6269_v45 = vpop.f32.mrf.mxu1  ;;  %v8723_v47 = vor.u32 %v10306_v52, %v8722_v40  ;;  %6741 = vmatpush.bf16.msra.mxu2 %v9747_v50  ;;  %v10418_v9 = vld [vmem:[%s10957_s20 + $0xdf4] sm:$0xf0]  ;;  %v7575_v40 = vor.u32 %v10010_v23, %v7572_v20 }
 0x53f   : > { %v6296_v0 = vadd.f32 %v6295_v51, %v6267_v49  ;;  %v7703_v49 = vor.u32 %v10042_v5, %v7700_v39  ;;  %v9106_v5 = vld [vmem:[%s10957_s20 + $0xd38] sm:$0xf] }
 0x540   : > { %v6324_v42 = vpop.f32.mrf.mxu3  ;;  %v6240_v11 = vpop.f32.mrf.mxu0  ;;  %6683 = vmatpush.bf16.msra.mxu0 %v8723_v47  ;;  %v10402_v39 = vld [vmem:[%s10957_s20 + $0xd74] sm:$0xf0] }
 0x541   : > { %v6325_v1 = vadd.f32 %v6324_v42, %v6296_v0  ;;  %v6241_v25 = vadd.f32 %v6240_v11, %v14033_v41  ;;  %6500 = vmatmul.bf16.gmra.mxu1 %v11574_v58  ;;  %6770 = vmatpush.bf16.msra.mxu3 %v7703_v49  ;;  %v9107_v49 = vor.u32 %v10402_v39, %v9106_v5  ;;  %v10474_v39 = vld [vmem:[%s10957_s20 + $0xfbc] sm:$0xf] }
 0x543   : > { %6471 = vmatmul.bf16.gmra.mxu0 %v11674_v8  ;;  %v7003_v44 = vadd.f32 %v6325_v1, %v587_v46  ;;  %6529 = vmatmul.bf16.gmra.mxu2 %v14804_v6  ;;  %v6270_v41 = vadd.f32 %v6269_v45, %v6241_v25  ;;  %v619_v46 = vld [vmem:[%s14791_s3 + $0x3d8] sm:$0xff] }
 0x544   : > { %v9234_v25 = vld [vmem:[%s10957_s20 + $0xe38] sm:$0xf] }
 0x545   : > { %6558 = vmatmul.bf16.gmra.mxu3 %v11578_v60  ;;  %7131 = vst [vmem:[%s14791_s3 + $0x2d8] sm:$0xff] %v7003_v44  ;;  %v9235_v55 = vor.u32 %v10434_v12, %v9234_v25  ;;  %v9682_v44 = vld [vmem:[%s10957_s20 + $0x11b8] sm:$0xf]  ;;  %v7508_v25 = vld [vmem:[%s10957_s20 + $0xf8] sm:$0xf0] }
 0x546   : > { %v6298_v2 = vpop.f32.mrf.mxu2  ;;  %v6271_v33 = vpop.f32.mrf.mxu1  ;;  %v9683_v63 = vor.u32 %v10546_v10, %v9682_v44 }
 0x547   : > { %v6299_v37 = vadd.f32 %v6298_v2, %v6270_v41  ;;  %6712 = vmatpush.bf16.msra.mxu1 %v9235_v55  ;;  %v10290_v41 = vld [vmem:[%s10957_s20 + $0x9f4] sm:$0xf0]  ;;  %v7636_v2 = vld [vmem:[%s10957_s20 + $0x1f8] sm:$0xf0] }
 0x548   : > { %v6327_v19 = vpop.f32.mrf.mxu3  ;;  %v6242_v18 = vpop.f32.mrf.mxu0  ;;  %v8659_v24 = vor.u32 %v10290_v41, %v8658_v59  ;;  %6742 = vmatpush.bf16.msra.mxu2 %v9683_v63  ;;  %v9042_v63 = vld [vmem:[%s10957_s20 + $0xcb8] sm:$0xf] }
 0x549   : > { %v6328_v7 = vadd.f32 %v6327_v19, %v6299_v37  ;;  %v6243_v56 = vadd.f32 %v6242_v18, %v14049_v30  ;;  %v7639_v37 = vor.u32 %v10026_v62, %v7636_v2  ;;  %v9170_v18 = vld [vmem:[%s10957_s20 + $0xdb8] sm:$0xf] }
 0x54a   : > { %6684 = vmatpush.bf16.msra.mxu0 %v8659_v24  ;;  %v10386_v41 = vld [vmem:[%s10957_s20 + $0xcf4] sm:$0xf0] }
 0x54b   : > { %v7019_v27 = vadd.f32 %v6328_v7, %v603_v48  ;;  %v6272_v30 = vadd.f32 %v6271_v33, %v6243_v56  ;;  %6771 = vmatpush.bf16.msra.mxu3 %v7639_v37  ;;  %v9618_v48 = vld [vmem:[%s10957_s20 + $0x1138] sm:$0xf]  ;;  %v9171_v33 = vor.u32 %v10418_v9, %v9170_v18  ;;  %v9043_v24 = vor.u32 %v10386_v41, %v9042_v63 }
 0x54c   : > { %v10530_v7 = vld [vmem:[%s10957_s20 + $0x1174] sm:$0xf0] }
 0x54d   : > { %7147 = vst [vmem:[%s14791_s3 + $0x358] sm:$0xff] %v7019_v27  ;;  %v8594_v56 = vld [vmem:[%s10957_s20 + $0x938] sm:$0xf]  ;;  %v9619_v54 = vor.u32 %v10530_v7, %v9618_v48  ;;  %6713 = vmatpush.bf16.msra.mxu1 %v9171_v33  ;;  %v9978_v33 = vld [vmem:[%s10957_s20 + $0x3c] sm:$0xf] }
 0x54e   : > { %v6300_v51 = vpop.f32.mrf.mxu2  ;;  %v14191_v45 = vpop.f32.mrf.mxu1  ;;  %v8595_v21 = vor.u32 %v10274_v53, %v8594_v56  ;;  %v9490_v62 = vld [vmem:[%s10957_s20 + $0x1038] sm:$0xf]  ;;  %v7444_v7 = vld [vmem:[%s10957_s20 + $0x78] sm:$0xf0] }
 0x54f   : > { %v6301_v0 = vadd.f32 %v6300_v51, %v6272_v30  ;;  %6743 = vmatpush.bf16.msra.mxu2 %v9619_v54  ;;  %6772 = vmatpush.bf16.msra.mxu3 %v7575_v40  ;;  %v9554_v30 = vld [vmem:[%s10957_s20 + $0x10b8] sm:$0xf]  ;;  %v7447_v56 = vor.u32 %v9978_v33, %v7444_v7  ;;  %v8340_v33 = vld [vmem:[%s10957_s20 + $0x778] sm:$0xf0] }
 0x550   : > { %v6329_v42 = vpop.f32.mrf.mxu3  ;;  %v14186_v11 = vpop.f32.mrf.mxu0  ;;  %6685 = vmatpush.bf16.msra.mxu0 %v8595_v21  ;;  %v10514_v51 = vld [vmem:[%s10957_s20 + $0x10f4] sm:$0xf0]  ;;  %v10586_v7 = vld [vmem:[%s10957_s20 + $0x133c] sm:$0xf] }
 0x551   : > { %v6330_v1 = vadd.f32 %v6329_v42, %v6301_v0  ;;  %6601 = vmatmul.bf16.vlgmr.msrb.gmra.mxu1 %v11604_v36  ;;  %v8530_v0 = vld [vmem:[%s10957_s20 + $0x8b8] sm:$0xf]  ;;  %v9555_v42 = vor.u32 %v10514_v51, %v9554_v30  ;;  %v10218_v30 = vld [vmem:[%s10957_s20 + $0x7bc] sm:$0xf] }
 0x552   : > { %6714 = vmatpush.bf16.msra.mxu1 %v9107_v49  ;;  %v10498_v2 = vld [vmem:[%s10957_s20 + $0x1074] sm:$0xf0]  ;;  %v9428_v49 = vld [vmem:[%s10957_s20 + $0xff8] sm:$0xf0] }
 0x553   : > { %6572 = vmatmul.bf16.vlgmr.msrb.gmra.mxu0 %v11452_v35  ;;  %v7035_v13 = vadd.f32 %v6330_v1, %v619_v46  ;;  %6630 = vmatmul.bf16.vlgmr.msrb.gmra.mxu2 %v11441_v26  ;;  %v10258_v46 = vld [vmem:[%s10957_s20 + $0x8f4] sm:$0xf0]  ;;  %v9994_v1 = vld [vmem:[%s10957_s20 + $0xbc] sm:$0xf]  ;;  %v9491_v9 = vor.u32 %v10498_v2, %v9490_v62  ;;  %v9431_v51 = vor.u32 %v10474_v39, %v9428_v49 }
 0x554   : > { %v8531_v55 = vor.u32 %v10258_v46, %v8530_v0  ;;  %6744 = vmatpush.bf16.msra.mxu2 %v9555_v42  ;;  %v8466_v37 = vld [vmem:[%s10957_s20 + $0x838] sm:$0xf]  ;;  %v8404_v0 = vld [vmem:[%s10957_s20 + $0x7f8] sm:$0xf0] }
 0x555   : > { %6659 = vmatmul.bf16.vlgmr.msrb.gmra.mxu3 %v11446_v31  ;;  %7163 = vst [vmem:[%s14791_s3 + $0x3d8] sm:$0xff] %v7035_v13  ;;  %v7511_v13 = vor.u32 %v9994_v1, %v7508_v25  ;;  %v10242_v18 = vld [vmem:[%s10957_s20 + $0x874] sm:$0xf0]  ;;  %v10602_v42 = vld [vmem:[%s10957_s20 + $0x13bc] sm:$0xf]  ;;  %v8407_v25 = vor.u32 %v10218_v30, %v8404_v0 }
 0x556   : > { %v14207_v4 = vpop.f32.mrf.mxu2  ;;  %v14214_v19 = vpop.f32.mrf.mxu1  ;;  %6686 = vmatpush.bf16.msra.mxu0 %v8531_v55  ;;  %v8467_v48 = vor.u32 %v10242_v18, %v8466_v37  ;;  %6715 = vmatpush.bf16.msra.mxu1 %v9043_v24  ;;  %v8978_v54 = vld [vmem:[%s10957_s20 + $0xc38] sm:$0xf]  ;;  %v9940_v46 = vld [vmem:[%s10957_s20 + $0x13f8] sm:$0xf0] }
 0x557   : > { %6773 = vmatpush.bf16.msra.mxu3 %v7511_v13  ;;  %v10370_v21 = vld [vmem:[%s10957_s20 + $0xc74] sm:$0xf0]  ;;  %v9943_v55 = vor.u32 %v10602_v42, %v9940_v46  ;;  %v10346_v62 = vld [vmem:[%s10957_s20 + $0xbbc] sm:$0xf] }
 0x558   : > { %v14210_v57 = vpop.f32.mrf.mxu3  ;;  %v14212_v38 = vpop.f32.mrf.mxu0  ;;  %6745 = vmatpush.bf16.msra.mxu2 %v9491_v9  ;;  %v8979_v40 = vor.u32 %v10370_v21, %v8978_v54  ;;  %v8916_v24 = vld [vmem:[%s10957_s20 + $0xbf8] sm:$0xf0] }
 0x559   : > { %v8919_v2 = vor.u32 %v10346_v62, %v8916_v24  ;;  %v10458_v37 = vld [vmem:[%s10957_s20 + $0xf3c] sm:$0xf] }
 0x55a   : > { %6687 = vmatpush.bf16.msra.mxu0 %v8467_v48  ;;  %6716 = vmatpush.bf16.msra.mxu1 %v8979_v40  ;;  %v9364_v18 = vld [vmem:[%s10957_s20 + $0xf78] sm:$0xf0] }
 0x55b   : > { %6774 = vmatpush.bf16.msra.mxu3 %v7447_v56  ;;  %v10202_v9 = vld [vmem:[%s10957_s20 + $0x73c] sm:$0xf]  ;;  %v9367_v48 = vor.u32 %v10458_v37, %v9364_v18 }
 0x55c   : > { %6854 = vmatpush.bf16.msrb.mxu2 %v9431_v51  ;;  %v9876_v56 = vld [vmem:[%s10957_s20 + $0x1378] sm:$0xf0]  ;;  %v8343_v21 = vor.u32 %v10202_v9, %v8340_v33 }
 0x55d   : > { %v9879_v40 = vor.u32 %v10586_v7, %v9876_v56  ;;  %v10330_v51 = vld [vmem:[%s10957_s20 + $0xb3c] sm:$0xf]  ;;  %v6371_v56 = vadd.f32 %v14191_v45, %v14186_v11 }
 0x55e   : > { %v14224_v52 = vpop.f32.mrf.mxu2  ;;  %v14230_v47 = vpop.f32.mrf.mxu1  ;;  %6796 = vmatpush.bf16.msrb.mxu0 %v8407_v25  ;;  %6825 = vmatpush.bf16.msrb.mxu1 %v8919_v2  ;;  %v8852_v0 = vld [vmem:[%s10957_s20 + $0xb78] sm:$0xf0] }
 0x55f   : > { %6883 = vmatpush.bf16.msrb.mxu3 %v9943_v55  ;;  %v8855_v42 = vor.u32 %v10330_v51, %v8852_v0  ;;  %v10442_v46 = vld [vmem:[%s10957_s20 + $0xebc] sm:$0xf]  ;;  %v6400_v0 = vadd.f32 %v14207_v4, %v6371_v56  ;;  %v508_v4 = vld [vmem:[%s14791_s3 + $0x60] sm:$0xff] }
 0x560   : > { %v14226_v27 = vpop.f32.mrf.mxu3  ;;  %v14228_v50 = vpop.f32.mrf.mxu0  ;;  %6855 = vmatpush.bf16.msrb.mxu2 %v9367_v48  ;;  %v9300_v25 = vld [vmem:[%s10957_s20 + $0xef8] sm:$0xf0] }
 0x561   : > { %6606 = vmatmul.bf16.gmra.mxu1 %v11628_v3  ;;  %v10186_v55 = vld [vmem:[%s10957_s20 + $0x6bc] sm:$0xf]  ;;  %v9303_v62 = vor.u32 %v10442_v46, %v9300_v25  ;;  %v6429_v11 = vadd.f32 %v14210_v57, %v6400_v0 }
 0x562   : > { %6797 = vmatpush.bf16.msrb.mxu0 %v8343_v21  ;;  %6826 = vmatpush.bf16.msrb.mxu1 %v8855_v42  ;;  %v8276_v24 = vld [vmem:[%s10957_s20 + $0x6f8] sm:$0xf0] }
 0x563   : > { %6577 = vmatmul.bf16.gmra.mxu0 %v11504_v34  ;;  %6635 = vmatmul.bf16.gmra.mxu2 %v11493_v22  ;;  %v10570_v2 = vld [vmem:[%s10957_s20 + $0x12bc] sm:$0xf]  ;;  %v8279_v9 = vor.u32 %v10186_v55, %v8276_v24 }
 0x564   : > { %6884 = vmatpush.bf16.msrb.mxu3 %v9879_v40  ;;  %v9812_v37 = vld [vmem:[%s10957_s20 + $0x12f8] sm:$0xf0]  ;;  %6856 = vmatpush.bf16.msrb.mxu2 %v9303_v62 }
 0x565   : > { %6664 = vmatmul.bf16.gmra.mxu3 %v11498_v28  ;;  %v9815_v48 = vor.u32 %v10570_v2, %v9812_v37  ;;  %v10314_v40 = vld [vmem:[%s10957_s20 + $0xabc] sm:$0xf] }
 0x566   : > { %v14244_v12 = vpop.f32.mrf.mxu2  ;;  %v14250_v59 = vpop.f32.mrf.mxu1  ;;  %6798 = vmatpush.bf16.msrb.mxu0 %v8279_v9  ;;  %v8788_v51 = vld [vmem:[%s10957_s20 + $0xaf8] sm:$0xf0] }
 0x567   : > { %v8791_v42 = vor.u32 %v10314_v40, %v8788_v51  ;;  %v10426_v46 = vld [vmem:[%s10957_s20 + $0xe3c] sm:$0xf]  ;;  %v6373_v40 = vadd.f32 %v14214_v19, %v14212_v38 }
 0x568   : > { %v14246_v44 = vpop.f32.mrf.mxu3  ;;  %v14248_v10 = vpop.f32.mrf.mxu0  ;;  %6885 = vmatpush.bf16.msrb.mxu3 %v9815_v48  ;;  %v9236_v25 = vld [vmem:[%s10957_s20 + $0xe78] sm:$0xf0] }
 0x569   : > { %6827 = vmatpush.bf16.msrb.mxu1 %v8791_v42  ;;  %v10170_v55 = vld [vmem:[%s10957_s20 + $0x63c] sm:$0xf]  ;;  %v9239_v24 = vor.u32 %v10426_v46, %v9236_v25  ;;  %v6402_v46 = vadd.f32 %v14224_v52, %v6373_v40 }
 0x56a   : > { %v8212_v2 = vld [vmem:[%s10957_s20 + $0x678] sm:$0xf0] }
 0x56b   : > { %v10554_v62 = vld [vmem:[%s10957_s20 + $0x123c] sm:$0xf]  ;;  %v8215_v9 = vor.u32 %v10170_v55, %v8212_v2  ;;  %6857 = vmatpush.bf16.msrb.mxu2 %v9239_v24 }
 0x56c   : > { %v9748_v37 = vld [vmem:[%s10957_s20 + $0x1278] sm:$0xf0] }
 0x56d   : > { %v9751_v48 = vor.u32 %v10554_v62, %v9748_v37  ;;  %6799 = vmatpush.bf16.msrb.mxu0 %v8215_v9  ;;  %v10298_v57 = vld [vmem:[%s10957_s20 + $0xa3c] sm:$0xf]  ;;  %v6431_v37 = vadd.f32 %v14226_v27, %v6402_v46 }
 0x56e   : > { %v14260_v53 = vpop.f32.mrf.mxu2  ;;  %v14268_v5 = vpop.f32.mrf.mxu1  ;;  %v8724_v0 = vld [vmem:[%s10957_s20 + $0xa78] sm:$0xf0] }
 0x56f   : > { %6886 = vmatpush.bf16.msrb.mxu3 %v9751_v48  ;;  %v8727_v55 = vor.u32 %v10298_v57, %v8724_v0  ;;  %v10410_v38 = vld [vmem:[%s10957_s20 + $0xdbc] sm:$0xf] }
 0x570   : > { %v14264_v23 = vpop.f32.mrf.mxu3  ;;  %v14266_v20 = vpop.f32.mrf.mxu0  ;;  %v9172_v19 = vld [vmem:[%s10957_s20 + $0xdf8] sm:$0xf0] }
 0x571   : > { %6611 = vmatmul.bf16.gmra.mxu1 %v11652_v43  ;;  %v9175_v24 = vor.u32 %v10410_v38, %v9172_v19  ;;  %v10154_v52 = vld [vmem:[%s10957_s20 + $0x5bc] sm:$0xf] }
 0x572   : > { %6828 = vmatpush.bf16.msrb.mxu1 %v8727_v55  ;;  %v8148_v2 = vld [vmem:[%s10957_s20 + $0x5f8] sm:$0xf0] }
 0x573   : > { %6582 = vmatmul.bf16.gmra.mxu0 %v11544_v17  ;;  %6640 = vmatmul.bf16.gmra.mxu2 %v11538_v14  ;;  %v10538_v62 = vld [vmem:[%s10957_s20 + $0x11bc] sm:$0xf]  ;;  %v8151_v9 = vor.u32 %v10154_v52, %v8148_v2 }
 0x574   : > { %v9684_v48 = vld [vmem:[%s10957_s20 + $0x11f8] sm:$0xf0]  ;;  %6858 = vmatpush.bf16.msrb.mxu2 %v9175_v24 }
 0x575   : > { %6669 = vmatmul.bf16.gmra.mxu3 %v11540_v15  ;;  %v9687_v40 = vor.u32 %v10538_v62, %v9684_v48  ;;  %6800 = vmatpush.bf16.msrb.mxu0 %v8151_v9  ;;  %v10282_v0 = vld [vmem:[%s10957_s20 + $0x9bc] sm:$0xf] }
 0x576   : > { %v14280_v1 = vpop.f32.mrf.mxu2  ;;  %v14286_v41 = vpop.f32.mrf.mxu1  ;;  %v8660_v46 = vld [vmem:[%s10957_s20 + $0x9f8] sm:$0xf0] }
 0x577   : > { %6887 = vmatpush.bf16.msrb.mxu3 %v9687_v40  ;;  %v8663_v38 = vor.u32 %v10282_v0, %v8660_v46  ;;  %v10138_v24 = vld [vmem:[%s10957_s20 + $0x53c] sm:$0xf] }
 0x578   : > { %v14282_v13 = vpop.f32.mrf.mxu3  ;;  %v14284_v63 = vpop.f32.mrf.mxu0  ;;  %v8084_v52 = vld [vmem:[%s10957_s20 + $0x578] sm:$0xf0] }
 0x579   : > { %6829 = vmatpush.bf16.msrb.mxu1 %v8663_v38  ;;  %v10522_v2 = vld [vmem:[%s10957_s20 + $0x113c] sm:$0xf] }
 0x57a   : > { %v9620_v9 = vld [vmem:[%s10957_s20 + $0x1178] sm:$0xf0] }
 0x57b   : > { %v9623_v40 = vor.u32 %v10522_v2, %v9620_v9  ;;  %v10266_v0 = vld [vmem:[%s10957_s20 + $0x93c] sm:$0xf] }
 0x57c   : > { %v8596_v46 = vld [vmem:[%s10957_s20 + $0x978] sm:$0xf0] }
 0x57d   : > { %6888 = vmatpush.bf16.msrb.mxu3 %v9623_v40  ;;  %v8599_v38 = vor.u32 %v10266_v0, %v8596_v46 }
 0x57e   : > { %v14296_v54 = vpop.f32.mrf.mxu2  ;;  %v14302_v30 = vpop.f32.mrf.mxu1 }
 0x57f   : > { %6830 = vmatpush.bf16.msrb.mxu1 %v8599_v38  ;;  %v10106_v38 = vld [vmem:[%s10957_s20 + $0x43c] sm:$0xf] }
 0x580   : > { %v14298_v39 = vpop.f32.mrf.mxu3  ;;  %v14300_v49 = vpop.f32.mrf.mxu0 }
 0x581   : > { %6616 = vmatmul.bf16.gmra.mxu1 %v11674_v8 }
 0x583   : > { %6587 = vmatmul.bf16.gmra.mxu0 %v11580_v61  ;;  %6645 = vmatmul.bf16.gmra.mxu2 %v11574_v58 }
 0x585   : > { %6674 = vmatmul.bf16.gmra.mxu3 %v14804_v6 }
 0x586   : > { %v14316_v18 = vpop.f32.mrf.mxu2  ;;  %v14324_v21 = vpop.f32.mrf.mxu1 }
 0x588   : > { %v14318_v33 = vpop.f32.mrf.mxu3  ;;  %v14320_v7 = vpop.f32.mrf.mxu0 }
 0x58e   : > { %v14336_v45 = vpop.f32.mrf.mxu2  ;;  %v14345_v42 = vpop.f32.mrf.mxu1 }
 0x590   : > { %v14338_v6 = vpop.f32.mrf.mxu3  ;;  %v6457_v56 = vpop.f32.mrf.mxu0 }
 0x591   : > { %v6458_v51 = vadd.f32 %v6457_v56, %v6429_v11  ;;  %6717 = vmatmul.bf16.vlgmr.msra.gmra.mxu1 %v11452_v35 }
 0x593   : > { %v6924_v25 = vadd.f32 %v6458_v51, %v508_v4  ;;  %6688 = vmatmul.bf16.vlgmr.msra.gmra.mxu0 %v11448_v32  ;;  %6746 = vmatmul.bf16.vlgmr.msra.gmra.mxu2 %v11604_v36  ;;  %v6376_v51 = vadd.f32 %v14230_v47, %v14228_v50  ;;  %v10394_v50 = vld [vmem:[%s10957_s20 + $0xd3c] sm:$0xf] }
 0x594   : > { %v9108_v47 = vld [vmem:[%s10957_s20 + $0xd78] sm:$0xf0] }
 0x595   : > { %7052 = vst [vmem:[%s14791_s3 + $0x60] sm:$0xff] %v6924_v25  ;;  %6775 = vmatmul.bf16.vlgmr.msra.gmra.mxu3 %v11441_v26  ;;  %v524_v26 = vld [vmem:[%s14791_s3 + $0xe0] sm:$0xff]  ;;  %v6405_v25 = vadd.f32 %v14244_v12, %v6376_v51  ;;  %v9111_v19 = vor.u32 %v10394_v50, %v9108_v47  ;;  %v8087_v12 = vor.u32 %v10138_v24, %v8084_v52  ;;  %v8020_v47 = vld [vmem:[%s10957_s20 + $0x4f8] sm:$0xf0] }
 0x596   : > { %v14363_v11 = vpop.f32.mrf.mxu2  ;;  %v14373_v57 = vpop.f32.mrf.mxu1  ;;  %v6378_v51 = vadd.f32 %v14250_v59, %v14248_v10  ;;  %v10378_v10 = vld [vmem:[%s10957_s20 + $0xcbc] sm:$0xf] }
 0x597   : > { %v6434_v62 = vadd.f32 %v14246_v44, %v6405_v25  ;;  %6859 = vmatpush.bf16.msrb.mxu2 %v9111_v19  ;;  %6801 = vmatpush.bf16.msrb.mxu0 %v8087_v12  ;;  %v9044_v59 = vld [vmem:[%s10957_s20 + $0xcf8] sm:$0xf0] }
 0x598   : > { %v14366_v4 = vpop.f32.mrf.mxu3  ;;  %v6459_v56 = vpop.f32.mrf.mxu0  ;;  %v6407_v25 = vadd.f32 %v14260_v53, %v6378_v51  ;;  %v9047_v50 = vor.u32 %v10378_v10, %v9044_v59  ;;  %v10122_v53 = vld [vmem:[%s10957_s20 + $0x4bc] sm:$0xf] }
 0x599   : > { %v6460_v27 = vadd.f32 %v6459_v56, %v6431_v37  ;;  %v10506_v19 = vld [vmem:[%s10957_s20 + $0x10bc] sm:$0xf]  ;;  %v8023_v2 = vor.u32 %v10122_v53, %v8020_v47 }
 0x59a   : > { %v6436_v24 = vadd.f32 %v14264_v23, %v6407_v25  ;;  %v10250_v51 = vld [vmem:[%s10957_s20 + $0x8bc] sm:$0xf] }
 0x59b   : > { %v6940_v55 = vadd.f32 %v6460_v27, %v524_v26  ;;  %v540_v26 = vld [vmem:[%s14791_s3 + $0x160] sm:$0xff]  ;;  %6860 = vmatpush.bf16.msrb.mxu2 %v9047_v50  ;;  %6802 = vmatpush.bf16.msrb.mxu0 %v8023_v2  ;;  %v7956_v10 = vld [vmem:[%s10957_s20 + $0x478] sm:$0xf0] }
 0x59c   : > { %v10490_v59 = vld [vmem:[%s10957_s20 + $0x103c] sm:$0xf]  ;;  %v7959_v47 = vor.u32 %v10106_v38, %v7956_v10 }
 0x59d   : > { %7068 = vst [vmem:[%s14791_s3 + $0xe0] sm:$0xff] %v6940_v55 }
 0x59e   : > { %v14387_v37 = vpop.f32.mrf.mxu2  ;;  %v14397_v44 = vpop.f32.mrf.mxu1 }
 0x59f   : > { %6803 = vmatpush.bf16.msrb.mxu0 %v7959_v47 }
 0x5a0   : > { %v14390_v48 = vpop.f32.mrf.mxu3  ;;  %v6462_v56 = vpop.f32.mrf.mxu0 }
 0x5a1   : > { %v6463_v27 = vadd.f32 %v6462_v56, %v6434_v62  ;;  %6722 = vmatmul.bf16.gmra.mxu1 %v11504_v34  ;;  %v9556_v62 = vld [vmem:[%s10957_s20 + $0x10f8] sm:$0xf0]  ;;  %v6381_v56 = vadd.f32 %v14268_v5, %v14266_v20 }
 0x5a2   : > { %v10362_v20 = vld [vmem:[%s10957_s20 + $0xc3c] sm:$0xf] }
 0x5a3   : > { %v6956_v55 = vadd.f32 %v6463_v27, %v540_v26  ;;  %6693 = vmatmul.bf16.gmra.mxu0 %v11500_v29  ;;  %6751 = vmatmul.bf16.gmra.mxu2 %v11628_v3  ;;  %v9559_v26 = vor.u32 %v10506_v19, %v9556_v62  ;;  %v8532_v27 = vld [vmem:[%s10957_s20 + $0x8f8] sm:$0xf0]  ;;  %v6410_v0 = vadd.f32 %v14280_v1, %v6381_v56  ;;  %v572_v62 = vld [vmem:[%s14791_s3 + $0x260] sm:$0xff] }
 0x5a4   : > { %v8535_v25 = vor.u32 %v10250_v51, %v8532_v27  ;;  %v8980_v5 = vld [vmem:[%s10957_s20 + $0xc78] sm:$0xf0]  ;;  %v6383_v56 = vadd.f32 %v14286_v41, %v14284_v63 }
 0x5a5   : > { %7084 = vst [vmem:[%s14791_s3 + $0x160] sm:$0xff] %v6956_v55  ;;  %6780 = vmatmul.bf16.gmra.mxu3 %v11493_v22  ;;  %v556_v22 = vld [vmem:[%s14791_s3 + $0x1e0] sm:$0xff]  ;;  %v8983_v55 = vor.u32 %v10362_v20, %v8980_v5  ;;  %v6439_v50 = vadd.f32 %v14282_v13, %v6410_v0  ;;  %v9492_v1 = vld [vmem:[%s10957_s20 + $0x1078] sm:$0xf0] }
 0x5a6   : > { %v14415_v52 = vpop.f32.mrf.mxu2  ;;  %v14425_v40 = vpop.f32.mrf.mxu1  ;;  %6889 = vmatpush.bf16.msrb.mxu3 %v9559_v26  ;;  %6831 = vmatpush.bf16.msrb.mxu1 %v8535_v25  ;;  %v10234_v19 = vld [vmem:[%s10957_s20 + $0x83c] sm:$0xf]  ;;  %v6412_v51 = vadd.f32 %v14296_v54, %v6383_v56  ;;  %v588_v54 = vld [vmem:[%s14791_s3 + $0x2e0] sm:$0xff]  ;;  %v6386_v25 = vadd.f32 %v14302_v30, %v14300_v49 }
 0x5a7   : > { %6861 = vmatpush.bf16.msrb.mxu2 %v8983_v55  ;;  %v604_v49 = vld [vmem:[%s14791_s3 + $0x360] sm:$0xff] }
 0x5a8   : > { %v14418_v12 = vpop.f32.mrf.mxu3  ;;  %v6464_v9 = vpop.f32.mrf.mxu0  ;;  %v6441_v63 = vadd.f32 %v14298_v39, %v6412_v51  ;;  %v6415_v55 = vadd.f32 %v14316_v18, %v6386_v25 }
 0x5a9   : > { %v6465_v23 = vadd.f32 %v6464_v9, %v6436_v24  ;;  %v8468_v24 = vld [vmem:[%s10957_s20 + $0x878] sm:$0xf0]  ;;  %v9495_v9 = vor.u32 %v10490_v59, %v9492_v1  ;;  %v6388_v59 = vadd.f32 %v14324_v21, %v14320_v7 }
 0x5aa   : > { %v8471_v26 = vor.u32 %v10234_v19, %v8468_v24  ;;  %v6444_v39 = vadd.f32 %v14318_v33, %v6415_v55 }
 0x5ab   : > { %v6972_v46 = vadd.f32 %v6465_v23, %v556_v22  ;;  %6890 = vmatpush.bf16.msrb.mxu3 %v9495_v9  ;;  %v6417_v47 = vadd.f32 %v14336_v45, %v6388_v59  ;;  %v620_v45 = vld [vmem:[%s14791_s3 + $0x3e0] sm:$0xff] }
 0x5ac   : > { %6832 = vmatpush.bf16.msrb.mxu1 %v8471_v26 }
 0x5ad   : > { %7100 = vst [vmem:[%s14791_s3 + $0x1e0] sm:$0xff] %v6972_v46  ;;  %v6446_v33 = vadd.f32 %v14338_v6, %v6417_v47 }
 0x5ae   : > { %v14439_v53 = vpop.f32.mrf.mxu2  ;;  %v14451_v23 = vpop.f32.mrf.mxu1 }
 0x5b0   : > { %v14444_v2 = vpop.f32.mrf.mxu3  ;;  %v6467_v22 = vpop.f32.mrf.mxu0 }
 0x5b1   : > { %v6468_v13 = vadd.f32 %v6467_v22, %v6439_v50  ;;  %6727 = vmatmul.bf16.gmra.mxu1 %v11544_v17  ;;  %v6516_v22 = vadd.f32 %v14363_v11, %v14345_v42  ;;  %v6518_v42 = vadd.f32 %v14387_v37, %v14373_v57 }
 0x5b3   : > { %v6988_v27 = vadd.f32 %v6468_v13, %v572_v62  ;;  %6698 = vmatmul.bf16.gmra.mxu0 %v11542_v16  ;;  %6756 = vmatmul.bf16.gmra.mxu2 %v11652_v43 }
 0x5b5   : > { %7116 = vst [vmem:[%s14791_s3 + $0x260] sm:$0xff] %v6988_v27  ;;  %6785 = vmatmul.bf16.gmra.mxu3 %v11538_v14  ;;  %v509_v27 = vld [vmem:[%s14791_s3 + $0x68] sm:$0xff] }
 0x5b6   : > { %v14462_v41 = vpop.f32.mrf.mxu2  ;;  %v14471_v5 = vpop.f32.mrf.mxu1 }
 0x5b8   : > { %v14464_v0 = vpop.f32.mrf.mxu3  ;;  %v6469_v46 = vpop.f32.mrf.mxu0 }
 0x5b9   : > { %v6470_v20 = vadd.f32 %v6469_v46, %v6441_v63  ;;  %v6547_v63 = vadd.f32 %v14390_v48, %v6518_v42 }
 0x5bb   : > { %v7004_v14 = vadd.f32 %v6470_v20, %v588_v54 }
 0x5bd   : > { %7132 = vst [vmem:[%s14791_s3 + $0x2e0] sm:$0xff] %v7004_v14 }
 0x5be   : > { %v14478_v38 = vpop.f32.mrf.mxu2  ;;  %v14487_v50 = vpop.f32.mrf.mxu1 }
 0x5c0   : > { %v14480_v10 = vpop.f32.mrf.mxu3  ;;  %v6472_v30 = vpop.f32.mrf.mxu0 }
 0x5c1   : > { %v6473_v18 = vadd.f32 %v6472_v30, %v6444_v39  ;;  %6732 = vmatmul.bf16.gmra.mxu1 %v11580_v61  ;;  %v541_v30 = vld [vmem:[%s14791_s3 + $0x168] sm:$0xff] }
 0x5c3   : > { %v7020_v1 = vadd.f32 %v6473_v18, %v604_v49  ;;  %6703 = vmatmul.bf16.gmra.mxu0 %v11578_v60  ;;  %6761 = vmatmul.bf16.gmra.mxu2 %v11674_v8 }
 0x5c5   : > { %7148 = vst [vmem:[%s14791_s3 + $0x360] sm:$0xff] %v7020_v1  ;;  %6790 = vmatmul.bf16.gmra.mxu3 %v11574_v58  ;;  %v6545_v58 = vadd.f32 %v14366_v4, %v6516_v22 }
 0x5c6   : > { %v14498_v7 = vpop.f32.mrf.mxu2  ;;  %v14505_v62 = vpop.f32.mrf.mxu1 }
 0x5c8   : > { %v14500_v21 = vpop.f32.mrf.mxu3  ;;  %v6474_v19 = vpop.f32.mrf.mxu0 }
 0x5c9   : > { %v6475_v24 = vadd.f32 %v6474_v19, %v6446_v33 }
 0x5cb   : > { %v7036_v9 = vadd.f32 %v6475_v24, %v620_v45 }
 0x5cd   : > { %7164 = vst [vmem:[%s14791_s3 + $0x3e0] sm:$0xff] %v7036_v9  ;;  %v573_v9 = vld [vmem:[%s14791_s3 + $0x268] sm:$0xff] }
 0x5ce   : > { %v14513_v6 = vpop.f32.mrf.mxu2  ;;  %v6602_v51 = vpop.f32.mrf.mxu1 }
 0x5d0   : > { %v14515_v26 = vpop.f32.mrf.mxu3  ;;  %v6573_v56 = vpop.f32.mrf.mxu0 }
 0x5d1   : > { %v6574_v13 = vadd.f32 %v6573_v56, %v6545_v58  ;;  %6833 = vmatmul.bf16.vlgmr.msrb.gmra.mxu1 %v11448_v32  ;;  %v525_v32 = vld [vmem:[%s14791_s3 + $0xe8] sm:$0xff] }
 0x5d3   : > { %v6603_v11 = vadd.f32 %v6602_v51, %v6574_v13  ;;  %6804 = vmatmul.bf16.vlgmr.msrb.gmra.mxu0 %v11446_v31  ;;  %6862 = vmatmul.bf16.vlgmr.msrb.gmra.mxu2 %v11452_v35  ;;  %v6521_v35 = vadd.f32 %v14415_v52, %v14397_v44  ;;  %v6523_v44 = vadd.f32 %v14439_v53, %v14425_v40 }
 0x5d5   : > { %v6925_v4 = vadd.f32 %v6603_v11, %v509_v27  ;;  %6891 = vmatmul.bf16.vlgmr.msrb.gmra.mxu3 %v11604_v36  ;;  %v6550_v25 = vadd.f32 %v14418_v12, %v6521_v35  ;;  %v6552_v59 = vadd.f32 %v14444_v2, %v6523_v44  ;;  %v510_v44 = vld [vmem:[%s14791_s3 + $0x70] sm:$0xff] }
 0x5d6   : > { %v14530_v54 = vpop.f32.mrf.mxu2  ;;  %v6604_v31 = vpop.f32.mrf.mxu1 }
 0x5d7   : > { %7053 = vst [vmem:[%s14791_s3 + $0x68] sm:$0xff] %v6925_v4 }
 0x5d8   : > { %v14532_v46 = vpop.f32.mrf.mxu3  ;;  %v6575_v57 = vpop.f32.mrf.mxu0 }
 0x5d9   : > { %v6576_v37 = vadd.f32 %v6575_v57, %v6547_v63  ;;  %v605_v57 = vld [vmem:[%s14791_s3 + $0x368] sm:$0xff] }
 0x5db   : > { %v6605_v36 = vadd.f32 %v6604_v31, %v6576_v37 }
 0x5dd   : > { %v6941_v48 = vadd.f32 %v6605_v36, %v525_v32 }
 0x5de   : > { %v14543_v20 = vpop.f32.mrf.mxu2  ;;  %v6607_v49 = vpop.f32.mrf.mxu1 }
 0x5df   : > { %7069 = vst [vmem:[%s14791_s3 + $0xe8] sm:$0xff] %v6941_v48 }
 0x5e0   : > { %v14545_v55 = vpop.f32.mrf.mxu3  ;;  %v6578_v14 = vpop.f32.mrf.mxu0 }
 0x5e1   : > { %v6579_v39 = vadd.f32 %v6578_v14, %v6550_v25  ;;  %6838 = vmatmul.bf16.gmra.mxu1 %v11500_v29  ;;  %v557_v29 = vld [vmem:[%s14791_s3 + $0x1e8] sm:$0xff] }
 0x5e3   : > { %v6608_v52 = vadd.f32 %v6607_v49, %v6579_v39  ;;  %6809 = vmatmul.bf16.gmra.mxu0 %v11498_v28  ;;  %6867 = vmatmul.bf16.gmra.mxu2 %v11504_v34  ;;  %v6526_v34 = vadd.f32 %v14462_v41, %v14451_v23  ;;  %v6528_v23 = vadd.f32 %v14478_v38, %v14471_v5 }
 0x5e5   : > { %v6957_v12 = vadd.f32 %v6608_v52, %v541_v30  ;;  %6896 = vmatmul.bf16.gmra.mxu3 %v11628_v3  ;;  %v6555_v1 = vadd.f32 %v14464_v0, %v6526_v34  ;;  %v6557_v58 = vadd.f32 %v14480_v10, %v6528_v23  ;;  %v526_v34 = vld [vmem:[%s14791_s3 + $0xf0] sm:$0xff] }
 0x5e6   : > { %v14560_v18 = vpop.f32.mrf.mxu2  ;;  %v6609_v28 = vpop.f32.mrf.mxu1  ;;  %v542_v23 = vld [vmem:[%s14791_s3 + $0x170] sm:$0xff] }
 0x5e7   : > { %7085 = vst [vmem:[%s14791_s3 + $0x168] sm:$0xff] %v6957_v12  ;;  %v6663_v12 = vadd.f32 %v14545_v55, %v14543_v20 }
 0x5e8   : > { %v14562_v47 = vpop.f32.mrf.mxu3  ;;  %v6580_v40 = vpop.f32.mrf.mxu0 }
 0x5e9   : > { %v6581_v53 = vadd.f32 %v6580_v40, %v6552_v59  ;;  %v6666_v20 = vadd.f32 %v14562_v47, %v14560_v18 }
 0x5eb   : > { %v6610_v3 = vadd.f32 %v6609_v28, %v6581_v53 }
 0x5ed   : > { %v6973_v2 = vadd.f32 %v6610_v3, %v557_v29 }
 0x5ee   : > { %v14573_v33 = vpop.f32.mrf.mxu2  ;;  %v6612_v22 = vpop.f32.mrf.mxu1 }
 0x5ef   : > { %7101 = vst [vmem:[%s14791_s3 + $0x1e8] sm:$0xff] %v6973_v2 }
 0x5f0   : > { %v14575_v45 = vpop.f32.mrf.mxu3  ;;  %v6583_v19 = vpop.f32.mrf.mxu0 }
 0x5f1   : > { %v6584_v24 = vadd.f32 %v6583_v19, %v6555_v1  ;;  %6843 = vmatmul.bf16.gmra.mxu1 %v11542_v16  ;;  %v589_v16 = vld [vmem:[%s14791_s3 + $0x2e8] sm:$0xff]  ;;  %v6668_v18 = vadd.f32 %v14575_v45, %v14573_v33 }
 0x5f3   : > { %v6613_v41 = vadd.f32 %v6612_v22, %v6584_v24  ;;  %6814 = vmatmul.bf16.gmra.mxu0 %v11540_v15  ;;  %6872 = vmatmul.bf16.gmra.mxu2 %v11544_v17  ;;  %v6531_v17 = vadd.f32 %v14498_v7, %v14487_v50  ;;  %v6533_v50 = vadd.f32 %v14513_v6, %v14505_v62 }
 0x5f5   : > { %v6989_v0 = vadd.f32 %v6613_v41, %v573_v9  ;;  %6901 = vmatmul.bf16.gmra.mxu3 %v11652_v43  ;;  %v6560_v51 = vadd.f32 %v14500_v21, %v6531_v17  ;;  %v14805_v21 = vld [vmem:[#allocation9_spill] sm:$0xff]  ;;  %v6562_v31 = vadd.f32 %v14515_v26, %v6533_v50  ;;  %v6661_v26 = vadd.f32 %v14532_v46, %v14530_v54 }
 0x5f6   : > { %v14590_v56 = vpop.f32.mrf.mxu2  ;;  %v6614_v15 = vpop.f32.mrf.mxu1  ;;  %v558_v17 = vld [vmem:[%s14791_s3 + $0x1f0] sm:$0xff] }
 0x5f7   : > { %7117 = vst [vmem:[%s14791_s3 + $0x268] sm:$0xff] %v6989_v0  ;;  %v574_v50 = vld [vmem:[%s14791_s3 + $0x270] sm:$0xff] }
 0x5f8   : > { %v14592_v13 = vpop.f32.mrf.mxu3  ;;  %v6585_v5 = vpop.f32.mrf.mxu0 }
 0x5f9   : > { %v6586_v38 = vadd.f32 %v6585_v5, %v6557_v58  ;;  %v6671_v33 = vadd.f32 %v14592_v13, %v14590_v56 }
 0x5fb   : > { %v6615_v43 = vadd.f32 %v6614_v15, %v6586_v38 }
 0x5fd   : > { %v7005_v10 = vadd.f32 %v6615_v43, %v589_v16 }
 0x5fe   : > { %v14603_v27 = vpop.f32.mrf.mxu2  ;;  %v6617_v63 = vpop.f32.mrf.mxu1 }
 0x5ff   : > { %7133 = vst [vmem:[%s14791_s3 + $0x2e8] sm:$0xff] %v7005_v10 }
 0x600   : > { %v14605_v42 = vpop.f32.mrf.mxu3  ;;  %v6588_v11 = vpop.f32.mrf.mxu0 }
 0x601   : > { %v6589_v4 = vadd.f32 %v6588_v11, %v6560_v51  ;;  %6848 = vmatmul.bf16.gmra.mxu1 %v11578_v60  ;;  %v621_v60 = vld [vmem:[%s14791_s3 + $0x3e8] sm:$0xff]  ;;  %v6673_v56 = vadd.f32 %v14605_v42, %v14603_v27 }
 0x603   : > { %v6618_v7 = vadd.f32 %v6617_v63, %v6589_v4  ;;  %6819 = vmatmul.bf16.gmra.mxu0 %v14805_v21  ;;  %6877 = vmatmul.bf16.gmra.mxu2 %v11580_v61 }
 0x605   : > { %v7021_v37 = vadd.f32 %v6618_v7, %v605_v57  ;;  %6906 = vmatmul.bf16.gmra.mxu3 %v11674_v8 }
 0x606   : > { %v14620_v32 = vpop.f32.mrf.mxu2  ;;  %v6619_v36 = vpop.f32.mrf.mxu1 }
 0x607   : > { %7149 = vst [vmem:[%s14791_s3 + $0x368] sm:$0xff] %v7021_v37 }
 0x608   : > { %v14622_v35 = vpop.f32.mrf.mxu3  ;;  %v6590_v62 = vpop.f32.mrf.mxu0 }
 0x609   : > { %v6591_v6 = vadd.f32 %v6590_v62, %v6562_v31  ;;  %v6676_v27 = vadd.f32 %v14622_v35, %v14620_v32 }
 0x60b   : > { %v6620_v61 = vadd.f32 %v6619_v36, %v6591_v6 }
 0x60d   : > { %v7037_v48 = vadd.f32 %v6620_v61, %v621_v60  ;;  %v590_v60 = vld [vmem:[%s14791_s3 + $0x2f0] sm:$0xff] }
 0x60e   : > { %v14630_v8 = vpop.f32.mrf.mxu2  ;;  %v6718_v39 = vpop.f32.mrf.mxu1 }
 0x60f   : > { %7165 = vst [vmem:[%s14791_s3 + $0x3e8] sm:$0xff] %v7037_v48 }
 0x610   : > { %v14634_v25 = vpop.f32.mrf.mxu3  ;;  %v6689_v14 = vpop.f32.mrf.mxu0 }
 0x611   : > { %v6690_v49 = vadd.f32 %v6689_v14, %v6661_v26  ;;  %v6678_v32 = vadd.f32 %v14634_v25, %v14630_v8 }
 0x613   : > { %v6719_v30 = vadd.f32 %v6718_v39, %v6690_v49 }
 0x616   : > { %v6747_v52 = vpop.f32.mrf.mxu2  ;;  %v6720_v28 = vpop.f32.mrf.mxu1 }
 0x617   : > { %v6748_v59 = vadd.f32 %v6747_v52, %v6719_v30 }
 0x618   : > { %v14641_v40 = vpop.f32.mrf.mxu3  ;;  %v6691_v53 = vpop.f32.mrf.mxu0 }
 0x619   : > { %v6926_v54 = vadd.f32 %v6748_v59, %v510_v44  ;;  %v6692_v46 = vadd.f32 %v6691_v53, %v6663_v12  ;;  %v606_v44 = vld [vmem:[%s14791_s3 + $0x370] sm:$0xff] }
 0x61b   : > { %7054 = vst [vmem:[%s14791_s3 + $0x70] sm:$0xff] %v6926_v54  ;;  %v6721_v29 = vadd.f32 %v6720_v28, %v6692_v46 }
 0x61e   : > { %v6749_v3 = vpop.f32.mrf.mxu2  ;;  %v6723_v19 = vpop.f32.mrf.mxu1 }
 0x61f   : > { %v6750_v55 = vadd.f32 %v6749_v3, %v6721_v29  ;;  %v622_v29 = vld [vmem:[%s14791_s3 + $0x3f0] sm:$0xff] }
 0x620   : > { %v14651_v2 = vpop.f32.mrf.mxu3  ;;  %v6694_v1 = vpop.f32.mrf.mxu0 }
 0x621   : > { %v6942_v24 = vadd.f32 %v6750_v55, %v526_v34  ;;  %v6695_v22 = vadd.f32 %v6694_v1, %v6666_v20 }
 0x623   : > { %7070 = vst [vmem:[%s14791_s3 + $0xf0] sm:$0xff] %v6942_v24  ;;  %v6724_v9 = vadd.f32 %v6723_v19, %v6695_v22 }
 0x626   : > { %v6752_v41 = vpop.f32.mrf.mxu2  ;;  %v6725_v5 = vpop.f32.mrf.mxu1 }
 0x627   : > { %v6753_v47 = vadd.f32 %v6752_v41, %v6724_v9  ;;  %v511_v41 = vld [vmem:[%s14791_s3 + $0x78] sm:$0xff] }
 0x628   : > { %v14661_v0 = vpop.f32.mrf.mxu3  ;;  %v6696_v58 = vpop.f32.mrf.mxu0 }
 0x629   : > { %v6958_v38 = vadd.f32 %v6753_v47, %v542_v23  ;;  %v6697_v15 = vadd.f32 %v6696_v58, %v6668_v18 }
 0x62b   : > { %7086 = vst [vmem:[%s14791_s3 + $0x170] sm:$0xff] %v6958_v38  ;;  %v6726_v16 = vadd.f32 %v6725_v5, %v6697_v15 }
 0x62e   : > { %v6754_v43 = vpop.f32.mrf.mxu2  ;;  %v6728_v11 = vpop.f32.mrf.mxu1 }
 0x62f   : > { %v6755_v45 = vadd.f32 %v6754_v43, %v6726_v16  ;;  %v527_v43 = vld [vmem:[%s14791_s3 + $0xf8] sm:$0xff] }
 0x630   : > { %v14671_v10 = vpop.f32.mrf.mxu3  ;;  %v6699_v51 = vpop.f32.mrf.mxu0 }
 0x631   : > { %v6974_v4 = vadd.f32 %v6755_v45, %v558_v17  ;;  %v6700_v63 = vadd.f32 %v6699_v51, %v6671_v33 }
 0x633   : > { %7102 = vst [vmem:[%s14791_s3 + $0x1f0] sm:$0xff] %v6974_v4  ;;  %v6729_v57 = vadd.f32 %v6728_v11, %v6700_v63 }
 0x636   : > { %v6757_v7 = vpop.f32.mrf.mxu2  ;;  %v6730_v31 = vpop.f32.mrf.mxu1 }
 0x637   : > { %v6758_v13 = vadd.f32 %v6757_v7, %v6729_v57  ;;  %v543_v7 = vld [vmem:[%s14791_s3 + $0x178] sm:$0xff] }
 0x638   : > { %v14681_v21 = vpop.f32.mrf.mxu3  ;;  %v6701_v37 = vpop.f32.mrf.mxu0 }
 0x639   : > { %v6990_v62 = vadd.f32 %v6758_v13, %v574_v50  ;;  %v6702_v6 = vadd.f32 %v6701_v37, %v6673_v56 }
 0x63b   : > { %7118 = vst [vmem:[%s14791_s3 + $0x270] sm:$0xff] %v6990_v62  ;;  %v6731_v36 = vadd.f32 %v6730_v31, %v6702_v6 }
 0x63e   : > { %v6759_v61 = vpop.f32.mrf.mxu2  ;;  %v6733_v14 = vpop.f32.mrf.mxu1 }
 0x63f   : > { %v6760_v42 = vadd.f32 %v6759_v61, %v6731_v36  ;;  %v559_v61 = vld [vmem:[%s14791_s3 + $0x1f8] sm:$0xff] }
 0x640   : > { %v14691_v48 = vpop.f32.mrf.mxu3  ;;  %v6704_v26 = vpop.f32.mrf.mxu0 }
 0x641   : > { %v7006_v39 = vadd.f32 %v6760_v42, %v590_v60  ;;  %v6705_v49 = vadd.f32 %v6704_v26, %v6676_v27 }
 0x643   : > { %7134 = vst [vmem:[%s14791_s3 + $0x2f0] sm:$0xff] %v7006_v39  ;;  %v6734_v30 = vadd.f32 %v6733_v14, %v6705_v49 }
 0x646   : > { %v6762_v52 = vpop.f32.mrf.mxu2  ;;  %v6735_v53 = vpop.f32.mrf.mxu1 }
 0x647   : > { %v6763_v35 = vadd.f32 %v6762_v52, %v6734_v30  ;;  %v575_v52 = vld [vmem:[%s14791_s3 + $0x278] sm:$0xff] }
 0x648   : > { %v14701_v12 = vpop.f32.mrf.mxu3  ;;  %v6706_v59 = vpop.f32.mrf.mxu0 }
 0x649   : > { %v7022_v28 = vadd.f32 %v6763_v35, %v606_v44  ;;  %v6707_v54 = vadd.f32 %v6706_v59, %v6678_v32 }
 0x64b   : > { %7150 = vst [vmem:[%s14791_s3 + $0x370] sm:$0xff] %v7022_v28  ;;  %v6736_v46 = vadd.f32 %v6735_v53, %v6707_v54 }
 0x64e   : > { %v6764_v34 = vpop.f32.mrf.mxu2  ;;  %v6834_v25 = vpop.f32.mrf.mxu1 }
 0x64f   : > { %v6765_v3 = vadd.f32 %v6764_v34, %v6736_v46  ;;  %v591_v34 = vld [vmem:[%s14791_s3 + $0x2f8] sm:$0xff] }
 0x650   : > { %v14709_v20 = vpop.f32.mrf.mxu3  ;;  %v6805_v8 = vpop.f32.mrf.mxu0 }
 0x651   : > { %v7038_v55 = vadd.f32 %v6765_v3, %v622_v29  ;;  %v6806_v1 = vadd.f32 %v6805_v8, %v14641_v40 }
 0x653   : > { %7166 = vst [vmem:[%s14791_s3 + $0x3f0] sm:$0xff] %v7038_v55  ;;  %v6835_v19 = vadd.f32 %v6834_v25, %v6806_v1 }
 0x656   : > { %v6863_v24 = vpop.f32.mrf.mxu2  ;;  %v6836_v18 = vpop.f32.mrf.mxu1 }
 0x657   : > { %v6864_v22 = vadd.f32 %v6863_v24, %v6835_v19 }
 0x658   : > { %v6892_v9 = vpop.f32.mrf.mxu3  ;;  %v6807_v23 = vpop.f32.mrf.mxu0 }
 0x659   : > { %v6893_v47 = vadd.f32 %v6892_v9, %v6864_v22  ;;  %v6808_v58 = vadd.f32 %v6807_v23, %v14651_v2  ;;  %v607_v9 = vld [vmem:[%s14791_s3 + $0x378] sm:$0xff] }
 0x65b   : > { %v6927_v5 = vadd.f32 %v6893_v47, %v511_v41  ;;  %v6837_v40 = vadd.f32 %v6836_v18, %v6808_v58 }
 0x65d   : > { %7055 = vst [vmem:[%s14791_s3 + $0x78] sm:$0xff] %v6927_v5 }
 0x65e   : > { %v6865_v38 = vpop.f32.mrf.mxu2  ;;  %v6839_v33 = vpop.f32.mrf.mxu1 }
 0x65f   : > { %v6866_v15 = vadd.f32 %v6865_v38, %v6837_v40  ;;  %v623_v40 = vld [vmem:[%s14791_s3 + $0x3f8] sm:$0xff] }
 0x660   : > { %v6894_v16 = vpop.f32.mrf.mxu3  ;;  %v6810_v17 = vpop.f32.mrf.mxu0 }
 0x661   : > { %v6895_v45 = vadd.f32 %v6894_v16, %v6866_v15  ;;  %v6811_v51 = vadd.f32 %v6810_v17, %v14661_v0 }
 0x663   : > { %v6943_v11 = vadd.f32 %v6895_v45, %v527_v43  ;;  %v6840_v2 = vadd.f32 %v6839_v33, %v6811_v51 }
 0x665   : > { %7071 = vst [vmem:[%s14791_s3 + $0xf8] sm:$0xff] %v6943_v11 }
 0x666   : > { %v6868_v4 = vpop.f32.mrf.mxu2  ;;  %v6841_v56 = vpop.f32.mrf.mxu1 }
 0x667   : > { %v6869_v63 = vadd.f32 %v6868_v4, %v6840_v2 }
 0x668   : > { %v6897_v57 = vpop.f32.mrf.mxu3  ;;  %v6812_v50 = vpop.f32.mrf.mxu0 }
 0x669   : > { %v6898_v13 = vadd.f32 %v6897_v57, %v6869_v63  ;;  %v6813_v37 = vadd.f32 %v6812_v50, %v14671_v10 }
 0x66b   : > { %v6959_v31 = vadd.f32 %v6898_v13, %v543_v7  ;;  %v6842_v0 = vadd.f32 %v6841_v56, %v6813_v37 }
 0x66d   : > { %7087 = vst [vmem:[%s14791_s3 + $0x178] sm:$0xff] %v6959_v31 }
 0x66e   : > { %v6870_v62 = vpop.f32.mrf.mxu2  ;;  %v6844_v27 = vpop.f32.mrf.mxu1 }
 0x66f   : > { %v6871_v6 = vadd.f32 %v6870_v62, %v6842_v0 }
 0x670   : > { %v6899_v36 = vpop.f32.mrf.mxu3  ;;  %v6815_v60 = vpop.f32.mrf.mxu0 }
 0x671   : > { %v6900_v42 = vadd.f32 %v6899_v36, %v6871_v6  ;;  %v6816_v26 = vadd.f32 %v6815_v60, %v14681_v21 }
 0x673   : > { %v6975_v14 = vadd.f32 %v6900_v42, %v559_v61  ;;  %v6845_v10 = vadd.f32 %v6844_v27, %v6816_v26 }
 0x675   : > { %7103 = vst [vmem:[%s14791_s3 + $0x1f8] sm:$0xff] %v6975_v14 }
 0x676   : > { %v6873_v39 = vpop.f32.mrf.mxu2  ;;  %v6846_v32 = vpop.f32.mrf.mxu1 }
 0x677   : > { %v6874_v49 = vadd.f32 %v6873_v39, %v6845_v10 }
 0x678   : > { %v6902_v30 = vpop.f32.mrf.mxu3  ;;  %v6817_v44 = vpop.f32.mrf.mxu0 }
 0x679   : > { %v6903_v35 = vadd.f32 %v6902_v30, %v6874_v49  ;;  %v6818_v59 = vadd.f32 %v6817_v44, %v14691_v48 }
 0x67b   : > { %v6991_v53 = vadd.f32 %v6903_v35, %v575_v52  ;;  %v6847_v21 = vadd.f32 %v6846_v32, %v6818_v59 }
 0x67d   : > { %7119 = vst [vmem:[%s14791_s3 + $0x278] sm:$0xff] %v6991_v53 }
 0x67e   : > { %v6875_v28 = vpop.f32.mrf.mxu2  ;;  %v6849_v25 = vpop.f32.mrf.mxu1 }
 0x67f   : > { %v6876_v54 = vadd.f32 %v6875_v28, %v6847_v21 }
 0x680   : > { %v6904_v46 = vpop.f32.mrf.mxu3  ;;  %v6820_v29 = vpop.f32.mrf.mxu0 }
 0x681   : > { %v6905_v3 = vadd.f32 %v6904_v46, %v6876_v54  ;;  %v6821_v8 = vadd.f32 %v6820_v29, %v14701_v12 }
 0x683   : > { %v7007_v55 = vadd.f32 %v6905_v3, %v591_v34  ;;  %v6850_v48 = vadd.f32 %v6849_v25, %v6821_v8 }
 0x685   : > { %7135 = vst [vmem:[%s14791_s3 + $0x2f8] sm:$0xff] %v7007_v55 }
 0x686   : > { %v6878_v1 = vpop.f32.mrf.mxu2  ;;  %v6851_v12 = vpop.f32.mrf.mxu1 }
 0x687   : > { %v6879_v19 = vadd.f32 %v6878_v1, %v6850_v48 }
 0x688   : > { %v6907_v24 = vpop.f32.mrf.mxu3  ;;  %v6822_v22 = vpop.f32.mrf.mxu0 }
 0x689   : > { %v6908_v23 = vadd.f32 %v6907_v24, %v6879_v19  ;;  %v6823_v41 = vadd.f32 %v6822_v22, %v14709_v20 }
 0x68b   : > { %v7023_v18 = vadd.f32 %v6908_v23, %v607_v9  ;;  %v6852_v47 = vadd.f32 %v6851_v12, %v6823_v41 }
 0x68d   : > { %7151 = vst [vmem:[%s14791_s3 + $0x378] sm:$0xff] %v7023_v18 }
 0x68e   : > { %v6880_v58 = vpop.f32.mrf.mxu2 }
 0x68f   : > { %v6881_v5 = vadd.f32 %v6880_v58, %v6852_v47 }
 0x690   : > { %v6909_v38 = vpop.f32.mrf.mxu3 }
 0x691   : > { %v6910_v15 = vadd.f32 %v6909_v38, %v6881_v5 }
 0x693   : > { %v7039_v16 = vadd.f32 %v6910_v15, %v623_v40 }
 0x695   : > { %7167 = vst [vmem:[%s14791_s3 + $0x3f8] sm:$0xff] %v7039_v16 }
 0x696 PF: > { %s17_s17 = sadd.s32 1, %s10791_s17   ;;  %s14806_s12 = smov %s10775_s13 }
 0x697   : > { %p14_p1 = scmp.ge.s32.totalorder %s17_s17, 7   ;;  %s14807_s13 = smov %s10779_s14 }
 0x698   : > { %s14808_s14 = smov %s10872_s25  ;;  %s14809_s15 = smov %s10787_s16 }
 0x699   : > { %s14810_s16 = smov %s14812_s19  ;;  %16 = sbr.rel (!%p14_p1) target bundleno = 5 (0x5), region = 120 }
 0x69e   :  { %7192 = vsyncpa [#allocation4], 1 }
 0x69f   :  { %7194 = vsyncpa [#allocation4 + $0x1], 1 }
 0x6a0   :  { %7195 = vsyncpa [#allocation6], 1 }

</bundles_post_ra>
